<compile_context>
chip_gen: v7x
topology: tpu7x:2x2x1
jax: 0.10.0
libtpu: 0.0.40
codegen_flags: <defaults>
</compile_context>

<pallas_src>
import functools

import jax
import jax.numpy as jnp
from jax.experimental import pallas as pl
from jax.experimental.pallas import tpu as pltpu

# ---- hyp.* : deterministic synthetic hyperparameters -----------------------
FLOW_HEATMAP_SIZE = 3          # hyp.flow_heatmap_size
FLOW_HINGE_COEFF = 1.0
FLOW_CYCLE_COEFF = 1.0
FLOW_L1_COEFF = 1.0
FLOW_L2_COEFF = 1.0
FLOW_SYNTH_L1_COEFF = 1.0
FLOW_SYNTH_L2_COEFF = 1.0
FLOW_WARP_COEFF = 1.0
FLOW_SMOOTH_COEFF = 1.0
HIDDEN = 64                    # flow_predictor hidden channels
EPS = 1e-6                     # utils_basic.EPS


def _round_up(x, m):
    return ((x + m - 1) // m) * m


# ============================================================================
# Pallas kernel 1: correlation sampler + ReLU + L2-normalize + 1x1x1 conv MLP
# One grid step = one (direction, batch) element, V (padded voxels) on lanes.
# ============================================================================
def _flow_predictor_kernel(f0_ref, f1e_ref, w1t_ref, b1_ref, w2t_ref, b2_ref,
                           out_ref, cc_scr, *, offsets, maxoff, va, num_disp,
                           pad_k):
    f0 = f0_ref[0]                                   # (C, VA) padded feat0

    # K-padding rows (num_disp..pad_k) must be zero for the norm / matmul.
    cc_scr[pl.ds(num_disp, pad_k - num_disp), :] = jnp.zeros(
        (pad_k - num_disp, va), jnp.float32)

    # Spatial correlation: the p-th displaced view of feat1 is a contiguous
    # static window of the extended flat slab (no 27x HBM materialization).
    for p, off in enumerate(offsets):                # static unroll (27 iters)
        f1w = f1e_ref[0, :, pl.ds(maxoff + off, va)]          # (C, VA)
        cc_scr[pl.ds(p, 1), :] = jnp.sum(f0 * f1w, axis=0, keepdims=True)

    cc = cc_scr[...]                                 # (pad_k, VA)

    # F.relu
    cc = jnp.maximum(cc, 0.0)
    # utils_basic.l2_normalize over the displacement-channel axis
    ssq = jnp.sum(cc * cc, axis=0, keepdims=True)
    inv = 1.0 / jnp.maximum(jnp.sqrt(ssq), 1e-12)
    cc = cc * inv

    # flow_predictor: Conv3d(1x1x1) -> LeakyReLU(0.01) -> Conv3d(1x1x1)
    h = jnp.dot(w1t_ref[...], cc, preferred_element_type=jnp.float32) + b1_ref[...]
    h = jnp.maximum(h, 0.01 * h)
    out = jnp.dot(w2t_ref[...], h, preferred_element_type=jnp.float32) + b2_ref[...]
    out_ref[0] = out                                 # (3, VA)


def generate_flow_both(params, feat0, feat1):
    """FlowNet.generate_flow at scale 1.0 for both directions in one call.

    feat*: (B, C, D, H, W) -> (flow_forw, flow_back), each (B, 3, D, H, W).
    """
    B, C, D, H, W = feat0.shape
    P = FLOW_HEATMAP_SIZE
    R = P // 2
    P3 = P ** 3
    Dp, Hp, Wp = D + 2 * R, H + 2 * R, W + 2 * R
    Vp = Dp * Hp * Wp
    VA = _round_up(Vp, 128)                          # lane-aligned padded V
    maxoff = R * Hp * Wp + R * Wp + R                # max |flat displacement|
    LE = _round_up(2 * maxoff + VA, 128)             # extended feat1 length
    PAD_K = _round_up(P3, 8)                         # 27 -> 32 (aligned K)

    # Fuse forward (feat0->feat1) and backward (feat1->feat0) directions.
    src = jnp.concatenate([feat0, feat1], axis=0)    # correlation "feat0" role
    tgt = jnp.concatenate([feat1, feat0], axis=0)    # correlation "feat1" role

    padcfg = ((0, 0), (0, 0), (R, R), (R, R), (R, R))
    src_p = jnp.pad(src, padcfg).reshape(2 * B, C, Vp)
    src_p = jnp.pad(src_p, ((0, 0), (0, 0), (0, VA - Vp)))
    tgt_p = jnp.pad(tgt, padcfg).reshape(2 * B, C, Vp)
    tgt_e = jnp.pad(tgt_p, ((0, 0), (0, 0), (maxoff, LE - Vp - maxoff)))

    # Flat-index offset of displacement (dd, dh, dw) in padded coordinates.
    offsets = tuple((dd - R) * Hp * Wp + (dh - R) * Wp + (dw - R)
                    for dd in range(P) for dh in range(P) for dw in range(P))

    w1t_pad = jnp.pad(params["w1t"], ((0, 0), (0, PAD_K - P3)))

    kernel = functools.partial(_flow_predictor_kernel, offsets=offsets,
                               maxoff=maxoff, va=VA, num_disp=P3, pad_k=PAD_K)
    out = pl.pallas_call(
        kernel,
        out_shape=jax.ShapeDtypeStruct((2 * B, 3, VA), jnp.float32),
        grid_spec=pltpu.PrefetchScalarGridSpec(
            num_scalar_prefetch=0,
            grid=(2 * B,),
            in_specs=[
                pl.BlockSpec((1, C, VA), lambda b: (b, 0, 0)),
                pl.BlockSpec((1, C, LE), lambda b: (b, 0, 0)),
                pl.BlockSpec((HIDDEN, PAD_K), lambda b: (0, 0)),
                pl.BlockSpec((HIDDEN, 1), lambda b: (0, 0)),
                pl.BlockSpec((3, HIDDEN), lambda b: (0, 0)),
                pl.BlockSpec((3, 1), lambda b: (0, 0)),
            ],
            out_specs=pl.BlockSpec((1, 3, VA), lambda b: (b, 0, 0)),
            scratch_shapes=[pltpu.VMEM((PAD_K, VA), jnp.float32)],
        ),
        compiler_params=pltpu.CompilerParams(
            dimension_semantics=("parallel",)),
    )(src_p, tgt_e, w1t_pad, params["b1"], params["w2t"], params["b2"])

    # Drop the lane/ring padding and split directions.
    out = out[:, :, :Vp].reshape(2 * B, 3, Dp, Hp, Wp)
    out = out[:, :, R:R + D, R:R + H, R:R + W]
    return out[:B], out[B:]


# ============================================================================
# Pallas kernel 2: fused masked-sum reductions for all scalar losses.
# One launch, tiled over lanes, accumulator outputs (sum(x*m), sum(m)) per row.
# ============================================================================
def _fused_reduce_kernel(x_ref, m_ref, xm_ref, ms_ref):
    @pl.when(pl.program_id(0) == 0)
    def _():
        xm_ref[...] = jnp.zeros_like(xm_ref)
        ms_ref[...] = jnp.zeros_like(ms_ref)
    x = x_ref[...]
    m = m_ref[...]
    xm_ref[...] += x * m
    ms_ref[...] += m


def _fused_masked_means(pairs, tile=1024):
    """pairs: list of (x, mask).  Returns (n,) array of sum(x*m)/(sum(m)+EPS)."""
    n = len(pairs)
    flats = []
    for x, m in pairs:
        m = jnp.broadcast_to(m, x.shape)
        flats.append((x.reshape(-1).astype(jnp.float32),
                      m.reshape(-1).astype(jnp.float32)))
    max_len = max(v.shape[0] for v, _ in flats)
    l_pad = _round_up(max(max_len, tile), tile)
    xs = jnp.stack([jnp.pad(v, (0, l_pad - v.shape[0])) for v, _ in flats])
    ms = jnp.stack([jnp.pad(m, (0, l_pad - m.shape[0])) for _, m in flats])

    xm, msum = pl.pallas_call(
        _fused_reduce_kernel,
        out_shape=(jax.ShapeDtypeStruct((n, tile), jnp.float32),
                   jax.ShapeDtypeStruct((n, tile), jnp.float32)),
        grid_spec=pltpu.PrefetchScalarGridSpec(
            num_scalar_prefetch=0,
            grid=(l_pad // tile,),
            in_specs=[pl.BlockSpec((n, tile), lambda j: (0, j)),
                      pl.BlockSpec((n, tile), lambda j: (0, j))],
            out_specs=(pl.BlockSpec((n, tile), lambda j: (0, 0)),
                       pl.BlockSpec((n, tile), lambda j: (0, 0))),
        ),
        compiler_params=pltpu.CompilerParams(
            dimension_semantics=("arbitrary",)),
    )(xs, ms)
    num = jnp.sum(xm, axis=1)
    den = jnp.sum(msum, axis=1)
    return num / (den + EPS)


# ============================================================================
# JAX glue: backwarp (trilinear gather), analytic valid region, gradients
# ============================================================================
def backwarp_using_3D_flow(vox, flow):
    # TODO(synk): data-dependent trilinear gather kept in plain JAX (a Pallas
    # version would need manual DMA / one-hot MXU gather); callers now share
    # one gather pass per flow by concatenating channels.
    # vox: (B, C, D, H, W); flow: (B, 3, D, H, W), channels = (dx_W, dy_H, dz_D)
    B, C, D, H, W = vox.shape
    zs = jnp.arange(D, dtype=jnp.float32).reshape(1, D, 1, 1)
    ys = jnp.arange(H, dtype=jnp.float32).reshape(1, 1, H, 1)
    xs = jnp.arange(W, dtype=jnp.float32).reshape(1, 1, 1, W)
    x = xs + flow[:, 0]
    y = ys + flow[:, 1]
    z = zs + flow[:, 2]
    x0 = jnp.floor(x); y0 = jnp.floor(y); z0 = jnp.floor(z)
    x1 = x0 + 1.0; y1 = y0 + 1.0; z1 = z0 + 1.0
    vox_flat = vox.reshape(B, C, D * H * W)

    def gather(zc, yc, xc):
        valid = ((zc >= 0) & (zc <= D - 1) & (yc >= 0) & (yc <= H - 1) &
                 (xc >= 0) & (xc <= W - 1)).astype(jnp.float32)
        zi = jnp.clip(zc, 0, D - 1).astype(jnp.int32)
        yi = jnp.clip(yc, 0, H - 1).astype(jnp.int32)
        xi = jnp.clip(xc, 0, W - 1).astype(jnp.int32)
        idx = (zi * H + yi) * W + xi
        idx = jnp.broadcast_to(idx.reshape(B, 1, D * H * W), (B, C, D * H * W))
        vals = jnp.take_along_axis(vox_flat, idx, axis=2).reshape(B, C, D, H, W)
        return vals * valid[:, None]

    wx1 = x - x0; wx0 = 1.0 - wx1
    wy1 = y - y0; wy0 = 1.0 - wy1
    wz1 = z - z0; wz0 = 1.0 - wz1
    out = (gather(z0, y0, x0) * (wz0 * wy0 * wx0)[:, None]
           + gather(z0, y0, x1) * (wz0 * wy0 * wx1)[:, None]
           + gather(z0, y1, x0) * (wz0 * wy1 * wx0)[:, None]
           + gather(z0, y1, x1) * (wz0 * wy1 * wx1)[:, None]
           + gather(z1, y0, x0) * (wz1 * wy0 * wx0)[:, None]
           + gather(z1, y0, x1) * (wz1 * wy0 * wx1)[:, None]
           + gather(z1, y1, x0) * (wz1 * wy1 * wx0)[:, None]
           + gather(z1, y1, x1) * (wz1 * wy1 * wx1)[:, None])
    return out


def warp_ones_region(flow):
    # backwarp_using_3D_flow(ones, flow) without any gathers: the gathered
    # value is always 1, so the result is the sum of corner weights * valid.
    B, _, D, H, W = flow.shape
    zs = jnp.arange(D, dtype=jnp.float32).reshape(1, D, 1, 1)
    ys = jnp.arange(H, dtype=jnp.float32).reshape(1, 1, H, 1)
    xs = jnp.arange(W, dtype=jnp.float32).reshape(1, 1, 1, W)
    x = xs + flow[:, 0]
    y = ys + flow[:, 1]
    z = zs + flow[:, 2]
    x0 = jnp.floor(x); y0 = jnp.floor(y); z0 = jnp.floor(z)
    x1 = x0 + 1.0; y1 = y0 + 1.0; z1 = z0 + 1.0

    def valid(zc, yc, xc):
        return ((zc >= 0) & (zc <= D - 1) & (yc >= 0) & (yc <= H - 1) &
                (xc >= 0) & (xc <= W - 1)).astype(jnp.float32)

    wx1 = x - x0; wx0 = 1.0 - wx1
    wy1 = y - y0; wy0 = 1.0 - wy1
    wz1 = z - z0; wz0 = 1.0 - wz1
    out = (valid(z0, y0, x0) * (wz0 * wy0 * wx0)
           + valid(z0, y0, x1) * (wz0 * wy0 * wx1)
           + valid(z0, y1, x0) * (wz0 * wy1 * wx0)
           + valid(z0, y1, x1) * (wz0 * wy1 * wx1)
           + valid(z1, y0, x0) * (wz1 * wy0 * wx0)
           + valid(z1, y0, x1) * (wz1 * wy0 * wx1)
           + valid(z1, y1, x0) * (wz1 * wy1 * wx0)
           + valid(z1, y1, x1) * (wz1 * wy1 * wx1))
    return out[:, None]                              # (B, 1, D, H, W)


def l2_on_axis(x, axis=1):
    return jnp.sqrt(EPS + jnp.sum(x * x, axis=axis, keepdims=True))


def smooth_l1(pred, target):
    d = pred - target
    ad = jnp.abs(d)
    return jnp.where(ad < 1.0, 0.5 * d * d, ad - 0.5)


def gradient3D_abs(x):
    # Mirrors utils_basic.gradient3D(..., absolute=True): returns (dz, dy, dx),
    # each zero-padded back to the input shape.
    dz = x[:, :, 1:] - x[:, :, :-1]
    dy = x[:, :, :, 1:] - x[:, :, :, :-1]
    dx = x[:, :, :, :, 1:] - x[:, :, :, :, :-1]
    dz = jnp.concatenate([dz, jnp.zeros_like(x[:, :, :1])], axis=2)
    dy = jnp.concatenate([dy, jnp.zeros_like(x[:, :, :, :1])], axis=3)
    dx = jnp.concatenate([dx, jnp.zeros_like(x[:, :, :, :, :1])], axis=4)
    return jnp.abs(dz), jnp.abs(dy), jnp.abs(dx)


# ============================================================================
# FlowNet.forward
# ============================================================================
def flownet_forward(params, feat0, feat1, flow_g, mask_g, is_synth=False):
    # feat*: (B, C, D, H, W); flow_g: (B, 3, D, H, W); mask_g: (B, 1, D, H, W)
    B, C = feat0.shape[0], feat0.shape[1]
    feat0_aligned = feat0
    feat1_aligned = feat1

    # ---- hinge loss terms --------------------------------------------------
    hinge_loss_vox = l2_on_axis(feat1_aligned - feat0, axis=1)
    hinge_loss_vox = jnp.maximum(0.2 - hinge_loss_vox, 0.0)
    hinge_mask_vox = (jnp.sum(jnp.abs(flow_g), axis=1, keepdims=True) > 1.0
                      ).astype(jnp.float32)

    # ---- single scale loop (scales = [1.0]), both directions fused ---------
    flow_forw, flow_back = generate_flow_both(params, feat0_aligned, feat1_aligned)
    flow_total_forw = flow_forw          # + zeros_like(flow_g)
    flow_total_back = flow_back

    # Share the gather/index computation per flow by warping concatenated
    # channels; valid0_region == valid1_region in the reference, compute once.
    warped_forw = backwarp_using_3D_flow(
        jnp.concatenate([feat1, flow_total_back], axis=1), flow_total_forw)
    feat1_aligned = warped_forw[:, :C]
    flow_back_aligned_to_forw = warped_forw[:, C:]
    warped_back = backwarp_using_3D_flow(
        jnp.concatenate([feat0, flow_total_forw], axis=1), flow_total_back)
    feat0_aligned = warped_back[:, :C]
    flow_forw_aligned_to_back = warped_back[:, C:]
    valid_region = warp_ones_region(flow_total_forw)   # forw for both, as in ref

    feat_l2 = l2_on_axis(feat1_aligned - feat0, axis=1)

    l1_diff = jnp.mean(smooth_l1(flow_total_forw, flow_g), axis=1, keepdims=True)
    l2_diff = jnp.mean((flow_total_forw - flow_g) ** 2, axis=1, keepdims=True)
    nonzero_mask = (jnp.sum(jnp.abs(flow_g), axis=1, keepdims=True) > 0.01
                    ).astype(jnp.float32) * mask_g
    yeszero_mask = (1.0 - nonzero_mask) * mask_g

    cancelled_flow_forw = flow_total_forw + flow_back_aligned_to_forw
    cancelled_flow_back = flow_total_back + flow_forw_aligned_to_back
    cyc_f = smooth_l1(cancelled_flow_forw, jnp.zeros_like(cancelled_flow_forw))
    cyc_b = smooth_l1(cancelled_flow_back, jnp.zeros_like(cancelled_flow_back))

    # smoothness (reproduces the reference's unpack order & dx+dy+dx)
    dx, dy, dz = gradient3D_abs(flow_total_forw)
    smooth_vox_forw = jnp.mean(dx + dy + dx, axis=1, keepdims=True)
    dx, dy, dz = gradient3D_abs(flow_total_back)
    smooth_vox_back = jnp.mean(dx + dy + dx, axis=1, keepdims=True)
    smooth_vox = (smooth_vox_forw + smooth_vox_back) * 0.5

    # ---- all scalar reductions in one fused Pallas launch ------------------
    sums = _fused_masked_means([
        (hinge_loss_vox, hinge_mask_vox),
        (feat_l2, valid_region * valid_region),
        (l1_diff, nonzero_mask),
        (l1_diff, yeszero_mask),
        (l2_diff, nonzero_mask),
        (l2_diff, yeszero_mask),
        (cyc_f, jnp.ones_like(cyc_f)),
        (cyc_b, jnp.ones_like(cyc_b)),
        (smooth_vox, jnp.ones_like(smooth_vox)),
    ])
    hinge_loss = sums[0]
    feat_diff = sums[1]
    l1_loss_nonzero, l1_loss_yeszero = sums[2], sums[3]
    l2_loss_nonzero, l2_loss_yeszero = sums[4], sums[5]
    cycle_forw, cycle_back = sums[6], sums[7]
    smooth_loss = sums[8]

    warp_loss_cumu = feat_diff * 1.0
    l1_loss_balanced = (l1_loss_nonzero + l1_loss_yeszero) * 0.5
    l2_loss_balanced = (l2_loss_nonzero + l2_loss_yeszero) * 0.5
    l1_loss_cumu = l1_loss_balanced * 1.0
    l2_loss_cumu = l2_loss_balanced * 1.0
    cycle_loss = cycle_forw + cycle_back

    total_loss = jnp.float32(0.0)
    total_loss = total_loss + hinge_loss * FLOW_HINGE_COEFF
    total_loss = total_loss + cycle_loss * FLOW_CYCLE_COEFF
    if is_synth:
        total_loss = total_loss + l1_loss_cumu * FLOW_SYNTH_L1_COEFF
        total_loss = total_loss + l2_loss_cumu * FLOW_SYNTH_L2_COEFF
    else:
        total_loss = total_loss + l1_loss_cumu * FLOW_L1_COEFF
        total_loss = total_loss + l2_loss_cumu * FLOW_L2_COEFF
    total_loss = total_loss + warp_loss_cumu * FLOW_WARP_COEFF
    total_loss = total_loss + smooth_loss * FLOW_SMOOTH_COEFF

    # TODO(synk): summ_writer.* calls are tensorboard logging side effects; omitted.
    return total_loss, flow_total_forw


# ============================================================================
# main
# ============================================================================
if __name__ == "__main__":
    key = jax.random.PRNGKey(0)
    kf0, kf1, kfg, kmg, kw1, kb1, kw2, kb2 = jax.random.split(key, 8)

    B, C, D, H, W = 2, 8, 8, 8, 8
    P3 = FLOW_HEATMAP_SIZE ** 3

    feat0 = jax.random.normal(kf0, (B, C, D, H, W), jnp.float32)
    feat1 = jax.random.normal(kf1, (B, C, D, H, W), jnp.float32)
    flow_g = jax.random.uniform(kfg, (B, 3, D, H, W), jnp.float32, -2.0, 2.0)
    mask_g = (jax.random.uniform(kmg, (B, 1, D, H, W)) > 0.5).astype(jnp.float32)

    # flow_predictor parameters (Conv3d 1x1x1 weights stored pre-transposed as
    # (out_ch, in_ch) so the kernel does W @ X directly). Deterministic init.
    params = {
        "w1t": jax.random.normal(kw1, (HIDDEN, P3), jnp.float32) * 0.1,
        "b1": jax.random.normal(kb1, (HIDDEN, 1), jnp.float32) * 0.01,
        "w2t": jax.random.normal(kw2, (3, HIDDEN), jnp.float32) * 0.1,
        "b2": jax.random.normal(kb2, (3, 1), jnp.float32) * 0.01,
    }

    fwd = jax.jit(flownet_forward, static_argnames=("is_synth",))
    total_loss, flow_e = fwd(params, feat0, feat1, flow_g, mask_g, is_synth=False)
    jax.block_until_ready((total_loss, flow_e))
    assert flow_e.shape == (B, 3, D, H, W)
    print("KERNEL_OK")
</pallas_src>

<mosaic_0001>
module attributes {stable_mosaic.version = 11 : i64} {
  func.func private @main(%arg0: i32) attributes {dimension_semantics = [#tpu.dimension_semantics<core_parallel>], iteration_bounds = array<i64: 2>, tpu.core_type = #tpu.core_type<sc_scalar_subcore>, window_params = []} {
    return
  }
}

module attributes {stable_mosaic.version = 11 : i64} {
  func.func private @main(%arg0: i32) attributes {dimension_semantics = [#tpu.dimension_semantics<core_parallel>], iteration_bounds = array<i64: 2>, tpu.core_type = #tpu.core_type<sc_scalar_subcore>, window_params = []} {
    return
  }
}

module attributes {stable_mosaic.version = 11 : i64} {
  func.func @_flow_predictor_kernel(%arg0: i32, %arg1: memref<1x8x1024xf32, #tpu.memory_space<vmem>>, %arg2: memref<1x8x1280xf32, #tpu.memory_space<vmem>>, %arg3: memref<64x32xf32, #tpu.memory_space<vmem>>, %arg4: memref<64x1xf32, #tpu.memory_space<vmem>>, %arg5: memref<3x64xf32, #tpu.memory_space<vmem>>, %arg6: memref<3x1xf32, #tpu.memory_space<vmem>>, %arg7: memref<1x3x1024xf32, #tpu.memory_space<vmem>>, %arg8: memref<32x1024xf32, #tpu.memory_space<vmem>>) attributes {dimension_semantics = [#tpu.dimension_semantics<parallel>], iteration_bounds = array<i64: 4>, scalar_prefetch = 0 : i64, scratch_operands = 1 : i64, tpu.core_type = #tpu.core_type<tc>, window_params = [{transform_indices = @transform_0, window_bounds = array<i64: 1, 8, 1024>}, {transform_indices = @transform_1, window_bounds = array<i64: 1, 8, 1280>}, {pipeline_mode = #tpu.pipeline_mode<synchronous>, transform_indices = @transform_2, window_bounds = array<i64: 64, 32>}, {pipeline_mode = #tpu.pipeline_mode<synchronous>, transform_indices = @transform_3, window_bounds = array<i64: 64, 1>}, {pipeline_mode = #tpu.pipeline_mode<synchronous>, transform_indices = @transform_4, window_bounds = array<i64: 3, 64>}, {pipeline_mode = #tpu.pipeline_mode<synchronous>, transform_indices = @transform_5, window_bounds = array<i64: 3, 1>}, {transform_indices = @transform_6, window_bounds = array<i64: 1, 3, 1024>}]} {
    %c0 = arith.constant 0 : index
    %c0_0 = arith.constant 0 : index
    %c0_1 = arith.constant 0 : index
    %0 = vector.load %arg1[%c0, %c0_0, %c0_1] : memref<1x8x1024xf32, #tpu.memory_space<vmem>>, vector<1x8x1024xf32>
    %1 = vector.shape_cast %0 : vector<1x8x1024xf32> to vector<8x1024xf32>
    %cst = arith.constant 0.000000e+00 : f32
    %2 = vector.broadcast %cst : f32 to vector<5x1024xf32>
    %c27 = arith.constant 27 : index
    %c0_2 = arith.constant 0 : index
    %3 = vector.load %arg8[%c27, %c0_2] : memref<32x1024xf32, #tpu.memory_space<vmem>>, vector<5x1024xf32>
    tpu.vector_store %arg8[%c27, %c0_2], %2 {strides = array<i32>} : memref<32x1024xf32, #tpu.memory_space<vmem>>, vector<5x1024xf32>,
    %c0_3 = arith.constant 0 : index
    %c0_4 = arith.constant 0 : index
    %c0_5 = arith.constant 0 : index
    %4 = vector.load %arg2[%c0_3, %c0_4, %c0_5] : memref<1x8x1280xf32, #tpu.memory_space<vmem>>, vector<1x8x1024xf32>
    %5 = vector.shape_cast %4 : vector<1x8x1024xf32> to vector<8x1024xf32>
    %6 = arith.mulf %1, %5 : vector<8x1024xf32>
    %cst_6 = arith.constant dense<0.000000e+00> : vector<1024xf32>
    %7 = vector.multi_reduction <add>, %6, %cst_6 [0] : vector<8x1024xf32> to vector<1024xf32>
    %8 = vector.shape_cast %7 : vector<1024xf32> to vector<1x1024xf32>
    %c0_7 = arith.constant 0 : index
    %c0_8 = arith.constant 0 : index
    %9 = vector.load %arg8[%c0_7, %c0_8] : memref<32x1024xf32, #tpu.memory_space<vmem>>, vector<1x1024xf32>
    tpu.vector_store %arg8[%c0_7, %c0_8], %8 {strides = array<i32>} : memref<32x1024xf32, #tpu.memory_space<vmem>>, vector<1x1024xf32>,
    %c0_9 = arith.constant 0 : index
    %c0_10 = arith.constant 0 : index
    %c1 = arith.constant 1 : index
    %10 = vector.load %arg2[%c0_9, %c0_10, %c1] : memref<1x8x1280xf32, #tpu.memory_space<vmem>>, vector<1x8x1024xf32>
    %11 = vector.shape_cast %10 : vector<1x8x1024xf32> to vector<8x1024xf32>
    %12 = arith.mulf %1, %11 : vector<8x1024xf32>
    %cst_11 = arith.constant dense<0.000000e+00> : vector<1024xf32>
    %13 = vector.multi_reduction <add>, %12, %cst_11 [0] : vector<8x1024xf32> to vector<1024xf32>
    %14 = vector.shape_cast %13 : vector<1024xf32> to vector<1x1024xf32>
    %c1_12 = arith.constant 1 : index
    %c0_13 = arith.constant 0 : index
    %15 = vector.load %arg8[%c1_12, %c0_13] : memref<32x1024xf32, #tpu.memory_space<vmem>>, vector<1x1024xf32>
    tpu.vector_store %arg8[%c1_12, %c0_13], %14 {strides = array<i32>} : memref<32x1024xf32, #tpu.memory_space<vmem>>, vector<1x1024xf32>,
    %c0_14 = arith.constant 0 : index
    %c0_15 = arith.constant 0 : index
    %c2 = arith.constant 2 : index
    %16 = vector.load %arg2[%c0_14, %c0_15, %c2] : memref<1x8x1280xf32, #tpu.memory_space<vmem>>, vector<1x8x1024xf32>
    %17 = vector.shape_cast %16 : vector<1x8x1024xf32> to vector<8x1024xf32>
    %18 = arith.mulf %1, %17 : vector<8x1024xf32>
    %cst_16 = arith.constant dense<0.000000e+00> : vector<1024xf32>
    %19 = vector.multi_reduction <add>, %18, %cst_16 [0] : vector<8x1024xf32> to vector<1024xf32>
    %20 = vector.shape_cast %19 : vector<1024xf32> to vector<1x1024xf32>
    %c2_17 = arith.constant 2 : index
    %c0_18 = arith.constant 0 : index
    %21 = vector.load %arg8[%c2_17, %c0_18] : memref<32x1024xf32, #tpu.memory_space<vmem>>, vector<1x1024xf32>
    tpu.vector_store %arg8[%c2_17, %c0_18], %20 {strides = array<i32>} : memref<32x1024xf32, #tpu.memory_space<vmem>>, vector<1x1024xf32>,
    %c0_19 = arith.constant 0 : index
    %c0_20 = arith.constant 0 : index
    %c10 = arith.constant 10 : index
    %22 = vector.load %arg2[%c0_19, %c0_20, %c10] : memref<1x8x1280xf32, #tpu.memory_space<vmem>>, vector<1x8x1024xf32>
    %23 = vector.shape_cast %22 : vector<1x8x1024xf32> to vector<8x1024xf32>
    %24 = arith.mulf %1, %23 : vector<8x1024xf32>
    %cst_21 = arith.constant dense<0.000000e+00> : vector<1024xf32>
    %25 = vector.multi_reduction <add>, %24, %cst_21 [0] : vector<8x1024xf32> to vector<1024xf32>
    %26 = vector.shape_cast %25 : vector<1024xf32> to vector<1x1024xf32>
    %c3 = arith.constant 3 : index
    %c0_22 = arith.constant 0 : index
    %27 = vector.load %arg8[%c3, %c0_22] : memref<32x1024xf32, #tpu.memory_space<vmem>>, vector<1x1024xf32>
    tpu.vector_store %arg8[%c3, %c0_22], %26 {strides = array<i32>} : memref<32x1024xf32, #tpu.memory_space<vmem>>, vector<1x1024xf32>,
    %c0_23 = arith.constant 0 : index
    %c0_24 = arith.constant 0 : index
    %c11 = arith.constant 11 : index
    %28 = vector.load %arg2[%c0_23, %c0_24, %c11] : memref<1x8x1280xf32, #tpu.memory_space<vmem>>, vector<1x8x1024xf32>
    %29 = vector.shape_cast %28 : vector<1x8x1024xf32> to vector<8x1024xf32>
    %30 = arith.mulf %1, %29 : vector<8x1024xf32>
    %cst_25 = arith.constant dense<0.000000e+00> : vector<1024xf32>
    %31 = vector.multi_reduction <add>, %30, %cst_25 [0] : vector<8x1024xf32> to vector<1024xf32>
    %32 = vector.shape_cast %31 : vector<1024xf32> to vector<1x1024xf32>
    %c4 = arith.constant 4 : index
    %c0_26 = arith.constant 0 : index
    %33 = vector.load %arg8[%c4, %c0_26] : memref<32x1024xf32, #tpu.memory_space<vmem>>, vector<1x1024xf32>
    tpu.vector_store %arg8[%c4, %c0_26], %32 {strides = array<i32>} : memref<32x1024xf32, #tpu.memory_space<vmem>>, vector<1x1024xf32>,
    %c0_27 = arith.constant 0 : index
    %c0_28 = arith.constant 0 : index
    %c12 = arith.constant 12 : index
    %34 = vector.load %arg2[%c0_27, %c0_28, %c12] : memref<1x8x1280xf32, #tpu.memory_space<vmem>>, vector<1x8x1024xf32>
    %35 = vector.shape_cast %34 : vector<1x8x1024xf32> to vector<8x1024xf32>
    %36 = arith.mulf %1, %35 : vector<8x1024xf32>
    %cst_29 = arith.constant dense<0.000000e+00> : vector<1024xf32>
    %37 = vector.multi_reduction <add>, %36, %cst_29 [0] : vector<8x1024xf32> to vector<1024xf32>
    %38 = vector.shape_cast %37 : vector<1024xf32> to vector<1x1024xf32>
    %c5 = arith.constant 5 : index
    %c0_30 = arith.constant 0 : index
    %39 = vector.load %arg8[%c5, %c0_30] : memref<32x1024xf32, #tpu.memory_space<vmem>>, vector<1x1024xf32>
    tpu.vector_store %arg8[%c5, %c0_30], %38 {strides = array<i32>} : memref<32x1024xf32, #tpu.memory_space<vmem>>, vector<1x1024xf32>,
    %c0_31 = arith.constant 0 : index
    %c0_32 = arith.constant 0 : index
    %c20 = arith.constant 20 : index
    %40 = vector.load %arg2[%c0_31, %c0_32, %c20] : memref<1x8x1280xf32, #tpu.memory_space<vmem>>, vector<1x8x1024xf32>
    %41 = vector.shape_cast %40 : vector<1x8x1024xf32> to vector<8x1024xf32>
    %42 = arith.mulf %1, %41 : vector<8x1024xf32>
    %cst_33 = arith.constant dense<0.000000e+00> : vector<1024xf32>
    %43 = vector.multi_reduction <add>, %42, %cst_33 [0] : vector<8x1024xf32> to vector<1024xf32>
    %44 = vector.shape_cast %43 : vector<1024xf32> to vector<1x1024xf32>
    %c6 = arith.constant 6 : index
    %c0_34 = arith.constant 0 : index
    %45 = vector.load %arg8[%c6, %c0_34] : memref<32x1024xf32, #tpu.memory_space<vmem>>, vector<1x1024xf32>
    tpu.vector_store %arg8[%c6, %c0_34], %44 {strides = array<i32>} : memref<32x1024xf32, #tpu.memory_space<vmem>>, vector<1x1024xf32>,
    %c0_35 = arith.constant 0 : index
    %c0_36 = arith.constant 0 : index
    %c21 = arith.constant 21 : index
    %46 = vector.load %arg2[%c0_35, %c0_36, %c21] : memref<1x8x1280xf32, #tpu.memory_space<vmem>>, vector<1x8x1024xf32>
    %47 = vector.shape_cast %46 : vector<1x8x1024xf32> to vector<8x1024xf32>
    %48 = arith.mulf %1, %47 : vector<8x1024xf32>
    %cst_37 = arith.constant dense<0.000000e+00> : vector<1024xf32>
    %49 = vector.multi_reduction <add>, %48, %cst_37 [0] : vector<8x1024xf32> to vector<1024xf32>
    %50 = vector.shape_cast %49 : vector<1024xf32> to vector<1x1024xf32>
    %c7 = arith.constant 7 : index
    %c0_38 = arith.constant 0 : index
    %51 = vector.load %arg8[%c7, %c0_38] : memref<32x1024xf32, #tpu.memory_space<vmem>>, vector<1x1024xf32>
    tpu.vector_store %arg8[%c7, %c0_38], %50 {strides = array<i32>} : memref<32x1024xf32, #tpu.memory_space<vmem>>, vector<1x1024xf32>,
    %c0_39 = arith.constant 0 : index
    %c0_40 = arith.constant 0 : index
    %c22 = arith.constant 22 : index
    %52 = vector.load %arg2[%c0_39, %c0_40, %c22] : memref<1x8x1280xf32, #tpu.memory_space<vmem>>, vector<1x8x1024xf32>
    %53 = vector.shape_cast %52 : vector<1x8x1024xf32> to vector<8x1024xf32>
    %54 = arith.mulf %1, %53 : vector<8x1024xf32>
    %cst_41 = arith.constant dense<0.000000e+00> : vector<1024xf32>
    %55 = vector.multi_reduction <add>, %54, %cst_41 [0] : vector<8x1024xf32> to vector<1024xf32>
    %56 = vector.shape_cast %55 : vector<1024xf32> to vector<1x1024xf32>
    %c8 = arith.constant 8 : index
    %c0_42 = arith.constant 0 : index
    %57 = vector.load %arg8[%c8, %c0_42] : memref<32x1024xf32, #tpu.memory_space<vmem>>, vector<1x1024xf32>
    tpu.vector_store %arg8[%c8, %c0_42], %56 {strides = array<i32>} : memref<32x1024xf32, #tpu.memory_space<vmem>>, vector<1x1024xf32>,
    %c0_43 = arith.constant 0 : index
    %c0_44 = arith.constant 0 : index
    %c100 = arith.constant 100 : index
    %58 = vector.load %arg2[%c0_43, %c0_44, %c100] : memref<1x8x1280xf32, #tpu.memory_space<vmem>>, vector<1x8x1024xf32>
    %59 = vector.shape_cast %58 : vector<1x8x1024xf32> to vector<8x1024xf32>
    %60 = arith.mulf %1, %59 : vector<8x1024xf32>
    %cst_45 = arith.constant dense<0.000000e+00> : vector<1024xf32>
    %61 = vector.multi_reduction <add>, %60, %cst_45 [0] : vector<8x1024xf32> to vector<1024xf32>
    %62 = vector.shape_cast %61 : vector<1024xf32> to vector<1x1024xf32>
    %c9 = arith.constant 9 : index
    %c0_46 = arith.constant 0 : index
    %63 = vector.load %arg8[%c9, %c0_46] : memref<32x1024xf32, #tpu.memory_space<vmem>>, vector<1x1024xf32>
    tpu.vector_store %arg8[%c9, %c0_46], %62 {strides = array<i32>} : memref<32x1024xf32, #tpu.memory_space<vmem>>, vector<1x1024xf32>,
    %c0_47 = arith.constant 0 : index
    %c0_48 = arith.constant 0 : index
    %c101 = arith.constant 101 : index
    %64 = vector.load %arg2[%c0_47, %c0_48, %c101] : memref<1x8x1280xf32, #tpu.memory_space<vmem>>, vector<1x8x1024xf32>
    %65 = vector.shape_cast %64 : vector<1x8x1024xf32> to vector<8x1024xf32>
    %66 = arith.mulf %1, %65 : vector<8x1024xf32>
    %cst_49 = arith.constant dense<0.000000e+00> : vector<1024xf32>
    %67 = vector.multi_reduction <add>, %66, %cst_49 [0] : vector<8x1024xf32> to vector<1024xf32>
    %68 = vector.shape_cast %67 : vector<1024xf32> to vector<1x1024xf32>
    %c10_50 = arith.constant 10 : index
    %c0_51 = arith.constant 0 : index
    %69 = vector.load %arg8[%c10_50, %c0_51] : memref<32x1024xf32, #tpu.memory_space<vmem>>, vector<1x1024xf32>
    tpu.vector_store %arg8[%c10_50, %c0_51], %68 {strides = array<i32>} : memref<32x1024xf32, #tpu.memory_space<vmem>>, vector<1x1024xf32>,
    %c0_52 = arith.constant 0 : index
    %c0_53 = arith.constant 0 : index
    %c102 = arith.constant 102 : index
    %70 = vector.load %arg2[%c0_52, %c0_53, %c102] : memref<1x8x1280xf32, #tpu.memory_space<vmem>>, vector<1x8x1024xf32>
    %71 = vector.shape_cast %70 : vector<1x8x1024xf32> to vector<8x1024xf32>
    %72 = arith.mulf %1, %71 : vector<8x1024xf32>
    %cst_54 = arith.constant dense<0.000000e+00> : vector<1024xf32>
    %73 = vector.multi_reduction <add>, %72, %cst_54 [0] : vector<8x1024xf32> to vector<1024xf32>
    %74 = vector.shape_cast %73 : vector<1024xf32> to vector<1x1024xf32>
    %c11_55 = arith.constant 11 : index
    %c0_56 = arith.constant 0 : index
    %75 = vector.load %arg8[%c11_55, %c0_56] : memref<32x1024xf32, #tpu.memory_space<vmem>>, vector<1x1024xf32>
    tpu.vector_store %arg8[%c11_55, %c0_56], %74 {strides = array<i32>} : memref<32x1024xf32, #tpu.memory_space<vmem>>, vector<1x1024xf32>,
    %c0_57 = arith.constant 0 : index
    %c0_58 = arith.constant 0 : index
    %c110 = arith.constant 110 : index
    %76 = vector.load %arg2[%c0_57, %c0_58, %c110] : memref<1x8x1280xf32, #tpu.memory_space<vmem>>, vector<1x8x1024xf32>
    %77 = vector.shape_cast %76 : vector<1x8x1024xf32> to vector<8x1024xf32>
    %78 = arith.mulf %1, %77 : vector<8x1024xf32>
    %cst_59 = arith.constant dense<0.000000e+00> : vector<1024xf32>
    %79 = vector.multi_reduction <add>, %78, %cst_59 [0] : vector<8x1024xf32> to vector<1024xf32>
    %80 = vector.shape_cast %79 : vector<1024xf32> to vector<1x1024xf32>
    %c12_60 = arith.constant 12 : index
    %c0_61 = arith.constant 0 : index
    %81 = vector.load %arg8[%c12_60, %c0_61] : memref<32x1024xf32, #tpu.memory_space<vmem>>, vector<1x1024xf32>
    tpu.vector_store %arg8[%c12_60, %c0_61], %80 {strides = array<i32>} : memref<32x1024xf32, #tpu.memory_space<vmem>>, vector<1x1024xf32>,
    %c0_62 = arith.constant 0 : index
    %c0_63 = arith.constant 0 : index
    %c111 = arith.constant 111 : index
    %82 = vector.load %arg2[%c0_62, %c0_63, %c111] : memref<1x8x1280xf32, #tpu.memory_space<vmem>>, vector<1x8x1024xf32>
    %83 = vector.shape_cast %82 : vector<1x8x1024xf32> to vector<8x1024xf32>
    %84 = arith.mulf %1, %83 : vector<8x1024xf32>
    %cst_64 = arith.constant dense<0.000000e+00> : vector<1024xf32>
    %85 = vector.multi_reduction <add>, %84, %cst_64 [0] : vector<8x1024xf32> to vector<1024xf32>
    %86 = vector.shape_cast %85 : vector<1024xf32> to vector<1x1024xf32>
    %c13 = arith.constant 13 : index
    %c0_65 = arith.constant 0 : index
    %87 = vector.load %arg8[%c13, %c0_65] : memref<32x1024xf32, #tpu.memory_space<vmem>>, vector<1x1024xf32>
    tpu.vector_store %arg8[%c13, %c0_65], %86 {strides = array<i32>} : memref<32x1024xf32, #tpu.memory_space<vmem>>, vector<1x1024xf32>,
    %c0_66 = arith.constant 0 : index
    %c0_67 = arith.constant 0 : index
    %c112 = arith.constant 112 : index
    %88 = vector.load %arg2[%c0_66, %c0_67, %c112] : memref<1x8x1280xf32, #tpu.memory_space<vmem>>, vector<1x8x1024xf32>
    %89 = vector.shape_cast %88 : vector<1x8x1024xf32> to vector<8x1024xf32>
    %90 = arith.mulf %1, %89 : vector<8x1024xf32>
    %cst_68 = arith.constant dense<0.000000e+00> : vector<1024xf32>
    %91 = vector.multi_reduction <add>, %90, %cst_68 [0] : vector<8x1024xf32> to vector<1024xf32>
    %92 = vector.shape_cast %91 : vector<1024xf32> to vector<1x1024xf32>
    %c14 = arith.constant 14 : index
    %c0_69 = arith.constant 0 : index
    %93 = vector.load %arg8[%c14, %c0_69] : memref<32x1024xf32, #tpu.memory_space<vmem>>, vector<1x1024xf32>
    tpu.vector_store %arg8[%c14, %c0_69], %92 {strides = array<i32>} : memref<32x1024xf32, #tpu.memory_space<vmem>>, vector<1x1024xf32>,
    %c0_70 = arith.constant 0 : index
    %c0_71 = arith.constant 0 : index
    %c120 = arith.constant 120 : index
    %94 = vector.load %arg2[%c0_70, %c0_71, %c120] : memref<1x8x1280xf32, #tpu.memory_space<vmem>>, vector<1x8x1024xf32>
    %95 = vector.shape_cast %94 : vector<1x8x1024xf32> to vector<8x1024xf32>
    %96 = arith.mulf %1, %95 : vector<8x1024xf32>
    %cst_72 = arith.constant dense<0.000000e+00> : vector<1024xf32>
    %97 = vector.multi_reduction <add>, %96, %cst_72 [0] : vector<8x1024xf32> to vector<1024xf32>
    %98 = vector.shape_cast %97 : vector<1024xf32> to vector<1x1024xf32>
    %c15 = arith.constant 15 : index
    %c0_73 = arith.constant 0 : index
    %99 = vector.load %arg8[%c15, %c0_73] : memref<32x1024xf32, #tpu.memory_space<vmem>>, vector<1x1024xf32>
    tpu.vector_store %arg8[%c15, %c0_73], %98 {strides = array<i32>} : memref<32x1024xf32, #tpu.memory_space<vmem>>, vector<1x1024xf32>,
    %c0_74 = arith.constant 0 : index
    %c0_75 = arith.constant 0 : index
    %c121 = arith.constant 121 : index
    %100 = vector.load %arg2[%c0_74, %c0_75, %c121] : memref<1x8x1280xf32, #tpu.memory_space<vmem>>, vector<1x8x1024xf32>
    %101 = vector.shape_cast %100 : vector<1x8x1024xf32> to vector<8x1024xf32>
    %102 = arith.mulf %1, %101 : vector<8x1024xf32>
    %cst_76 = arith.constant dense<0.000000e+00> : vector<1024xf32>
    %103 = vector.multi_reduction <add>, %102, %cst_76 [0] : vector<8x1024xf32> to vector<1024xf32>
    %104 = vector.shape_cast %103 : vector<1024xf32> to vector<1x1024xf32>
    %c16 = arith.constant 16 : index
    %c0_77 = arith.constant 0 : index
    %105 = vector.load %arg8[%c16, %c0_77] : memref<32x1024xf32, #tpu.memory_space<vmem>>, vector<1x1024xf32>
    tpu.vector_store %arg8[%c16, %c0_77], %104 {strides = array<i32>} : memref<32x1024xf32, #tpu.memory_space<vmem>>, vector<1x1024xf32>,
    %c0_78 = arith.constant 0 : index
    %c0_79 = arith.constant 0 : index
    %c122 = arith.constant 122 : index
    %106 = vector.load %arg2[%c0_78, %c0_79, %c122] : memref<1x8x1280xf32, #tpu.memory_space<vmem>>, vector<1x8x1024xf32>
    %107 = vector.shape_cast %106 : vector<1x8x1024xf32> to vector<8x1024xf32>
    %108 = arith.mulf %1, %107 : vector<8x1024xf32>
    %cst_80 = arith.constant dense<0.000000e+00> : vector<1024xf32>
    %109 = vector.multi_reduction <add>, %108, %cst_80 [0] : vector<8x1024xf32> to vector<1024xf32>
    %110 = vector.shape_cast %109 : vector<1024xf32> to vector<1x1024xf32>
    %c17 = arith.constant 17 : index
    %c0_81 = arith.constant 0 : index
    %111 = vector.load %arg8[%c17, %c0_81] : memref<32x1024xf32, #tpu.memory_space<vmem>>, vector<1x1024xf32>
    tpu.vector_store %arg8[%c17, %c0_81], %110 {strides = array<i32>} : memref<32x1024xf32, #tpu.memory_space<vmem>>, vector<1x1024xf32>,
    %c0_82 = arith.constant 0 : index
    %c0_83 = arith.constant 0 : index
    %c200 = arith.constant 200 : index
    %112 = vector.load %arg2[%c0_82, %c0_83, %c200] : memref<1x8x1280xf32, #tpu.memory_space<vmem>>, vector<1x8x1024xf32>
    %113 = vector.shape_cast %112 : vector<1x8x1024xf32> to vector<8x1024xf32>
    %114 = arith.mulf %1, %113 : vector<8x1024xf32>
    %cst_84 = arith.constant dense<0.000000e+00> : vector<1024xf32>
    %115 = vector.multi_reduction <add>, %114, %cst_84 [0] : vector<8x1024xf32> to vector<1024xf32>
    %116 = vector.shape_cast %115 : vector<1024xf32> to vector<1x1024xf32>
    %c18 = arith.constant 18 : index
    %c0_85 = arith.constant 0 : index
    %117 = vector.load %arg8[%c18, %c0_85] : memref<32x1024xf32, #tpu.memory_space<vmem>>, vector<1x1024xf32>
    tpu.vector_store %arg8[%c18, %c0_85], %116 {strides = array<i32>} : memref<32x1024xf32, #tpu.memory_space<vmem>>, vector<1x1024xf32>,
    %c0_86 = arith.constant 0 : index
    %c0_87 = arith.constant 0 : index
    %c201 = arith.constant 201 : index
    %118 = vector.load %arg2[%c0_86, %c0_87, %c201] : memref<1x8x1280xf32, #tpu.memory_space<vmem>>, vector<1x8x1024xf32>
    %119 = vector.shape_cast %118 : vector<1x8x1024xf32> to vector<8x1024xf32>
    %120 = arith.mulf %1, %119 : vector<8x1024xf32>
    %cst_88 = arith.constant dense<0.000000e+00> : vector<1024xf32>
    %121 = vector.multi_reduction <add>, %120, %cst_88 [0] : vector<8x1024xf32> to vector<1024xf32>
    %122 = vector.shape_cast %121 : vector<1024xf32> to vector<1x1024xf32>
    %c19 = arith.constant 19 : index
    %c0_89 = arith.constant 0 : index
    %123 = vector.load %arg8[%c19, %c0_89] : memref<32x1024xf32, #tpu.memory_space<vmem>>, vector<1x1024xf32>
    tpu.vector_store %arg8[%c19, %c0_89], %122 {strides = array<i32>} : memref<32x1024xf32, #tpu.memory_space<vmem>>, vector<1x1024xf32>,
    %c0_90 = arith.constant 0 : index
    %c0_91 = arith.constant 0 : index
    %c202 = arith.constant 202 : index
    %124 = vector.load %arg2[%c0_90, %c0_91, %c202] : memref<1x8x1280xf32, #tpu.memory_space<vmem>>, vector<1x8x1024xf32>
    %125 = vector.shape_cast %124 : vector<1x8x1024xf32> to vector<8x1024xf32>
    %126 = arith.mulf %1, %125 : vector<8x1024xf32>
    %cst_92 = arith.constant dense<0.000000e+00> : vector<1024xf32>
    %127 = vector.multi_reduction <add>, %126, %cst_92 [0] : vector<8x1024xf32> to vector<1024xf32>
    %128 = vector.shape_cast %127 : vector<1024xf32> to vector<1x1024xf32>
    %c20_93 = arith.constant 20 : index
    %c0_94 = arith.constant 0 : index
    %129 = vector.load %arg8[%c20_93, %c0_94] : memref<32x1024xf32, #tpu.memory_space<vmem>>, vector<1x1024xf32>
    tpu.vector_store %arg8[%c20_93, %c0_94], %128 {strides = array<i32>} : memref<32x1024xf32, #tpu.memory_space<vmem>>, vector<1x1024xf32>,
    %c0_95 = arith.constant 0 : index
    %c0_96 = arith.constant 0 : index
    %c210 = arith.constant 210 : index
    %130 = vector.load %arg2[%c0_95, %c0_96, %c210] : memref<1x8x1280xf32, #tpu.memory_space<vmem>>, vector<1x8x1024xf32>
    %131 = vector.shape_cast %130 : vector<1x8x1024xf32> to vector<8x1024xf32>
    %132 = arith.mulf %1, %131 : vector<8x1024xf32>
    %cst_97 = arith.constant dense<0.000000e+00> : vector<1024xf32>
    %133 = vector.multi_reduction <add>, %132, %cst_97 [0] : vector<8x1024xf32> to vector<1024xf32>
    %134 = vector.shape_cast %133 : vector<1024xf32> to vector<1x1024xf32>
    %c21_98 = arith.constant 21 : index
    %c0_99 = arith.constant 0 : index
    %135 = vector.load %arg8[%c21_98, %c0_99] : memref<32x1024xf32, #tpu.memory_space<vmem>>, vector<1x1024xf32>
    tpu.vector_store %arg8[%c21_98, %c0_99], %134 {strides = array<i32>} : memref<32x1024xf32, #tpu.memory_space<vmem>>, vector<1x1024xf32>,
    %c0_100 = arith.constant 0 : index
    %c0_101 = arith.constant 0 : index
    %c211 = arith.constant 211 : index
    %136 = vector.load %arg2[%c0_100, %c0_101, %c211] : memref<1x8x1280xf32, #tpu.memory_space<vmem>>, vector<1x8x1024xf32>
    %137 = vector.shape_cast %136 : vector<1x8x1024xf32> to vector<8x1024xf32>
    %138 = arith.mulf %1, %137 : vector<8x1024xf32>
    %cst_102 = arith.constant dense<0.000000e+00> : vector<1024xf32>
    %139 = vector.multi_reduction <add>, %138, %cst_102 [0] : vector<8x1024xf32> to vector<1024xf32>
    %140 = vector.shape_cast %139 : vector<1024xf32> to vector<1x1024xf32>
    %c22_103 = arith.constant 22 : index
    %c0_104 = arith.constant 0 : index
    %141 = vector.load %arg8[%c22_103, %c0_104] : memref<32x1024xf32, #tpu.memory_space<vmem>>, vector<1x1024xf32>
    tpu.vector_store %arg8[%c22_103, %c0_104], %140 {strides = array<i32>} : memref<32x1024xf32, #tpu.memory_space<vmem>>, vector<1x1024xf32>,
    %c0_105 = arith.constant 0 : index
    %c0_106 = arith.constant 0 : index
    %c212 = arith.constant 212 : index
    %142 = vector.load %arg2[%c0_105, %c0_106, %c212] : memref<1x8x1280xf32, #tpu.memory_space<vmem>>, vector<1x8x1024xf32>
    %143 = vector.shape_cast %142 : vector<1x8x1024xf32> to vector<8x1024xf32>
    %144 = arith.mulf %1, %143 : vector<8x1024xf32>
    %cst_107 = arith.constant dense<0.000000e+00> : vector<1024xf32>
    %145 = vector.multi_reduction <add>, %144, %cst_107 [0] : vector<8x1024xf32> to vector<1024xf32>
    %146 = vector.shape_cast %145 : vector<1024xf32> to vector<1x1024xf32>
    %c23 = arith.constant 23 : index
    %c0_108 = arith.constant 0 : index
    %147 = vector.load %arg8[%c23, %c0_108] : memref<32x1024xf32, #tpu.memory_space<vmem>>, vector<1x1024xf32>
    tpu.vector_store %arg8[%c23, %c0_108], %146 {strides = array<i32>} : memref<32x1024xf32, #tpu.memory_space<vmem>>, vector<1x1024xf32>,
    %c0_109 = arith.constant 0 : index
    %c0_110 = arith.constant 0 : index
    %c220 = arith.constant 220 : index
    %148 = vector.load %arg2[%c0_109, %c0_110, %c220] : memref<1x8x1280xf32, #tpu.memory_space<vmem>>, vector<1x8x1024xf32>
    %149 = vector.shape_cast %148 : vector<1x8x1024xf32> to vector<8x1024xf32>
    %150 = arith.mulf %1, %149 : vector<8x1024xf32>
    %cst_111 = arith.constant dense<0.000000e+00> : vector<1024xf32>
    %151 = vector.multi_reduction <add>, %150, %cst_111 [0] : vector<8x1024xf32> to vector<1024xf32>
    %152 = vector.shape_cast %151 : vector<1024xf32> to vector<1x1024xf32>
    %c24 = arith.constant 24 : index
    %c0_112 = arith.constant 0 : index
    %153 = vector.load %arg8[%c24, %c0_112] : memref<32x1024xf32, #tpu.memory_space<vmem>>, vector<1x1024xf32>
    tpu.vector_store %arg8[%c24, %c0_112], %152 {strides = array<i32>} : memref<32x1024xf32, #tpu.memory_space<vmem>>, vector<1x1024xf32>,
    %c0_113 = arith.constant 0 : index
    %c0_114 = arith.constant 0 : index
    %c221 = arith.constant 221 : index
    %154 = vector.load %arg2[%c0_113, %c0_114, %c221] : memref<1x8x1280xf32, #tpu.memory_space<vmem>>, vector<1x8x1024xf32>
    %155 = vector.shape_cast %154 : vector<1x8x1024xf32> to vector<8x1024xf32>
    %156 = arith.mulf %1, %155 : vector<8x1024xf32>
    %cst_115 = arith.constant dense<0.000000e+00> : vector<1024xf32>
    %157 = vector.multi_reduction <add>, %156, %cst_115 [0] : vector<8x1024xf32> to vector<1024xf32>
    %158 = vector.shape_cast %157 : vector<1024xf32> to vector<1x1024xf32>
    %c25 = arith.constant 25 : index
    %c0_116 = arith.constant 0 : index
    %159 = vector.load %arg8[%c25, %c0_116] : memref<32x1024xf32, #tpu.memory_space<vmem>>, vector<1x1024xf32>
    tpu.vector_store %arg8[%c25, %c0_116], %158 {strides = array<i32>} : memref<32x1024xf32, #tpu.memory_space<vmem>>, vector<1x1024xf32>,
    %c0_117 = arith.constant 0 : index
    %c0_118 = arith.constant 0 : index
    %c222 = arith.constant 222 : index
    %160 = vector.load %arg2[%c0_117, %c0_118, %c222] : memref<1x8x1280xf32, #tpu.memory_space<vmem>>, vector<1x8x1024xf32>
    %161 = vector.shape_cast %160 : vector<1x8x1024xf32> to vector<8x1024xf32>
    %162 = arith.mulf %1, %161 : vector<8x1024xf32>
    %cst_119 = arith.constant dense<0.000000e+00> : vector<1024xf32>
    %163 = vector.multi_reduction <add>, %162, %cst_119 [0] : vector<8x1024xf32> to vector<1024xf32>
    %164 = vector.shape_cast %163 : vector<1024xf32> to vector<1x1024xf32>
    %c26 = arith.constant 26 : index
    %c0_120 = arith.constant 0 : index
    %165 = vector.load %arg8[%c26, %c0_120] : memref<32x1024xf32, #tpu.memory_space<vmem>>, vector<1x1024xf32>
    tpu.vector_store %arg8[%c26, %c0_120], %164 {strides = array<i32>} : memref<32x1024xf32, #tpu.memory_space<vmem>>, vector<1x1024xf32>,
    %c0_121 = arith.constant 0 : index
    %c0_122 = arith.constant 0 : index
    %166 = vector.load %arg8[%c0_121, %c0_122] : memref<32x1024xf32, #tpu.memory_space<vmem>>, vector<32x1024xf32>
    %cst_123 = arith.constant 0.000000e+00 : f32
    %167 = vector.broadcast %cst_123 : f32 to vector<32x1024xf32>
    %168 = arith.maximumf %166, %167 : vector<32x1024xf32>
    %169 = arith.mulf %168, %168 : vector<32x1024xf32>
    %cst_124 = arith.constant dense<0.000000e+00> : vector<1024xf32>
    %170 = vector.multi_reduction <add>, %169, %cst_124 [0] : vector<32x1024xf32> to vector<1024xf32>
    %171 = vector.shape_cast %170 : vector<1024xf32> to vector<1x1024xf32>
    %172 = math.sqrt %171 : vector<1x1024xf32>
    %cst_125 = arith.constant 9.99999996E-13 : f32
    %173 = vector.broadcast %cst_125 : f32 to vector<1x1024xf32>
    %174 = arith.maximumf %172, %173 : vector<1x1024xf32>
    %cst_126 = arith.constant 1.000000e+00 : f32
    %175 = vector.broadcast %cst_126 : f32 to vector<1x1024xf32>
    %176 = arith.divf %175, %174 : vector<1x1024xf32>
    %177 = vector.broadcast %176 : vector<1x1024xf32> to vector<32x1024xf32>
    %178 = arith.mulf %168, %177 : vector<32x1024xf32>
    %c0_127 = arith.constant 0 : index
    %c0_128 = arith.constant 0 : index
    %179 = vector.load %arg3[%c0_127, %c0_128] : memref<64x32xf32, #tpu.memory_space<vmem>>, vector<64x32xf32>
    %cst_129 = arith.constant dense<0.000000e+00> : vector<64x1024xf32>
    %180 = tpu.matmul %179, %178, %cst_129 {dimension_numbers = #tpu.dot_dimension_numbers<[1], [0], [0], [1], [0, 0, 1, 1], [], []>} : vector<64x32xf32>, vector<32x1024xf32>, vector<64x1024xf32> -> vector<64x1024xf32>
    %c0_130 = arith.constant 0 : index
    %c0_131 = arith.constant 0 : index
    %181 = vector.load %arg4[%c0_130, %c0_131] : memref<64x1xf32, #tpu.memory_space<vmem>>, vector<64x1xf32>
    %182 = vector.broadcast %181 : vector<64x1xf32> to vector<64x1024xf32>
    %183 = arith.addf %180, %182 : vector<64x1024xf32>
    %cst_132 = arith.constant 0.00999999977 : f32
    %184 = vector.broadcast %cst_132 : f32 to vector<64x1024xf32>
    %185 = arith.mulf %184, %183 : vector<64x1024xf32>
    %186 = arith.maximumf %183, %185 : vector<64x1024xf32>
    %c0_133 = arith.constant 0 : index
    %c0_134 = arith.constant 0 : index
    %187 = vector.load %arg5[%c0_133, %c0_134] : memref<3x64xf32, #tpu.memory_space<vmem>>, vector<3x64xf32>
    %cst_135 = arith.constant dense<0.000000e+00> : vector<3x1024xf32>
    %188 = tpu.matmul %187, %186, %cst_135 {dimension_numbers = #tpu.dot_dimension_numbers<[1], [0], [0], [1], [0, 0, 1, 1], [], []>} : vector<3x64xf32>, vector<64x1024xf32>, vector<3x1024xf32> -> vector<3x1024xf32>
    %c0_136 = arith.constant 0 : index
    %c0_137 = arith.constant 0 : index
    %189 = vector.load %arg6[%c0_136, %c0_137] : memref<3x1xf32, #tpu.memory_space<vmem>>, vector<3x1xf32>
    %190 = vector.broadcast %189 : vector<3x1xf32> to vector<3x1024xf32>
    %191 = arith.addf %188, %190 : vector<3x1024xf32>
    %c0_138 = arith.constant 0 : index
    %c0_139 = arith.constant 0 : index
    %c0_140 = arith.constant 0 : index
    %192 = vector.load %arg7[%c0_138, %c0_139, %c0_140] : memref<1x3x1024xf32, #tpu.memory_space<vmem>>, vector<1x3x1024xf32>
    %193 = vector.shape_cast %192 : vector<1x3x1024xf32> to vector<3x1024xf32>
    %194 = vector.shape_cast %191 : vector<3x1024xf32> to vector<1x3x1024xf32>
    tpu.vector_store %arg7[%c0_138, %c0_139, %c0_140], %194 {strides = array<i32>} : memref<1x3x1024xf32, #tpu.memory_space<vmem>>, vector<1x3x1024xf32>,
    return
  }
  func.func @transform_0(%arg0: i32) -> (i32, i32, i32) {
    %c0_i32 = arith.constant 0 : i32
    %c0_i32_0 = arith.constant 0 : i32
    %c0_i32_1 = arith.constant 0 : i32
    return %arg0, %c0_i32, %c0_i32_0 : i32, i32, i32
  }
  func.func @transform_1(%arg0: i32) -> (i32, i32, i32) {
    %c0_i32 = arith.constant 0 : i32
    %c0_i32_0 = arith.constant 0 : i32
    %c0_i32_1 = arith.constant 0 : i32
    return %arg0, %c0_i32, %c0_i32_0 : i32, i32, i32
  }
  func.func @transform_2(%arg0: i32) -> (i32, i32) {
    %c0_i32 = arith.constant 0 : i32
    %c0_i32_0 = arith.constant 0 : i32
    %c0_i32_1 = arith.constant 0 : i32
    return %c0_i32, %c0_i32_0 : i32, i32
  }
  func.func @transform_3(%arg0: i32) -> (i32, i32) {
    %c0_i32 = arith.constant 0 : i32
    %c0_i32_0 = arith.constant 0 : i32
    %c0_i32_1 = arith.constant 0 : i32
    return %c0_i32, %c0_i32_0 : i32, i32
  }
  func.func @transform_4(%arg0: i32) -> (i32, i32) {
    %c0_i32 = arith.constant 0 : i32
    %c0_i32_0 = arith.constant 0 : i32
    %c0_i32_1 = arith.constant 0 : i32
    return %c0_i32, %c0_i32_0 : i32, i32
  }
  func.func @transform_5(%arg0: i32) -> (i32, i32) {
    %c0_i32 = arith.constant 0 : i32
    %c0_i32_0 = arith.constant 0 : i32
    %c0_i32_1 = arith.constant 0 : i32
    return %c0_i32, %c0_i32_0 : i32, i32
  }
  func.func @transform_6(%arg0: i32) -> (i32, i32, i32) {
    %c0_i32 = arith.constant 0 : i32
    %c0_i32_0 = arith.constant 0 : i32
    %c0_i32_1 = arith.constant 0 : i32
    return %arg0, %c0_i32, %c0_i32_0 : i32, i32, i32
  }
}

module attributes {stable_mosaic.version = 11 : i64} {
  func.func @_fused_reduce_kernel(%arg0: i32, %arg1: memref<9x1024xf32, #tpu.memory_space<vmem>>, %arg2: memref<9x1024xf32, #tpu.memory_space<vmem>>, %arg3: memref<9x1024xf32, #tpu.memory_space<vmem>>, %arg4: memref<9x1024xf32, #tpu.memory_space<vmem>>) attributes {dimension_semantics = [#tpu.dimension_semantics<arbitrary>], iteration_bounds = array<i64: 3>, scalar_prefetch = 0 : i64, scratch_operands = 0 : i64, tpu.core_type = #tpu.core_type<tc>, window_params = [{transform_indices = @transform_0, window_bounds = array<i64: 9, 1024>}, {transform_indices = @transform_1, window_bounds = array<i64: 9, 1024>}, {pipeline_mode = #tpu.pipeline_mode<synchronous>, transform_indices = @transform_2, window_bounds = array<i64: 9, 1024>}, {pipeline_mode = #tpu.pipeline_mode<synchronous>, transform_indices = @transform_3, window_bounds = array<i64: 9, 1024>}]} {
    %c0_i32 = arith.constant 0 : i32
    %0 = arith.cmpi eq, %arg0, %c0_i32 : i32
    %1 = arith.extui %0 : i1 to i32
    %c0_i32_0 = arith.constant 0 : i32
    %2 = arith.cmpi ne, %1, %c0_i32_0 : i32
    scf.if %2 {
      %cst = arith.constant 0.000000e+00 : f32
      %12 = vector.broadcast %cst : f32 to vector<9x1024xf32>
      %c0_12 = arith.constant 0 : index
      %c0_13 = arith.constant 0 : index
      %13 = vector.load %arg3[%c0_12, %c0_13] : memref<9x1024xf32, #tpu.memory_space<vmem>>, vector<9x1024xf32>
      tpu.vector_store %arg3[%c0_12, %c0_13], %12 {strides = array<i32>} : memref<9x1024xf32, #tpu.memory_space<vmem>>, vector<9x1024xf32>,
      %cst_14 = arith.constant 0.000000e+00 : f32
      %14 = vector.broadcast %cst_14 : f32 to vector<9x1024xf32>
      %c0_15 = arith.constant 0 : index
      %c0_16 = arith.constant 0 : index
      %15 = vector.load %arg4[%c0_15, %c0_16] : memref<9x1024xf32, #tpu.memory_space<vmem>>, vector<9x1024xf32>
      tpu.vector_store %arg4[%c0_15, %c0_16], %14 {strides = array<i32>} : memref<9x1024xf32, #tpu.memory_space<vmem>>, vector<9x1024xf32>,
    } else {
    }
    %c0 = arith.constant 0 : index
    %c0_1 = arith.constant 0 : index
    %3 = vector.load %arg1[%c0, %c0_1] : memref<9x1024xf32, #tpu.memory_space<vmem>>, vector<9x1024xf32>
    %c0_2 = arith.constant 0 : index
    %c0_3 = arith.constant 0 : index
    %4 = vector.load %arg2[%c0_2, %c0_3] : memref<9x1024xf32, #tpu.memory_space<vmem>>, vector<9x1024xf32>
    %c0_4 = arith.constant 0 : index
    %c0_5 = arith.constant 0 : index
    %5 = vector.load %arg3[%c0_4, %c0_5] : memref<9x1024xf32, #tpu.memory_space<vmem>>, vector<9x1024xf32>
    %6 = arith.mulf %3, %4 : vector<9x1024xf32>
    %7 = arith.addf %5, %6 : vector<9x1024xf32>
    %c0_6 = arith.constant 0 : index
    %c0_7 = arith.constant 0 : index
    %8 = vector.load %arg3[%c0_6, %c0_7] : memref<9x1024xf32, #tpu.memory_space<vmem>>, vector<9x1024xf32>
    tpu.vector_store %arg3[%c0_6, %c0_7], %7 {strides = array<i32>} : memref<9x1024xf32, #tpu.memory_space<vmem>>, vector<9x1024xf32>,
    %c0_8 = arith.constant 0 : index
    %c0_9 = arith.constant 0 : index
    %9 = vector.load %arg4[%c0_8, %c0_9] : memref<9x1024xf32, #tpu.memory_space<vmem>>, vector<9x1024xf32>
    %10 = arith.addf %9, %4 : vector<9x1024xf32>
    %c0_10 = arith.constant 0 : index
    %c0_11 = arith.constant 0 : index
    %11 = vector.load %arg4[%c0_10, %c0_11] : memref<9x1024xf32, #tpu.memory_space<vmem>>, vector<9x1024xf32>
    tpu.vector_store %arg4[%c0_10, %c0_11], %10 {strides = array<i32>} : memref<9x1024xf32, #tpu.memory_space<vmem>>, vector<9x1024xf32>,
    return
  }
  func.func @transform_0(%arg0: i32) -> (i32, i32) {
    %c0_i32 = arith.constant 0 : i32
    %c0_i32_0 = arith.constant 0 : i32
    return %c0_i32, %arg0 : i32, i32
  }
  func.func @transform_1(%arg0: i32) -> (i32, i32) {
    %c0_i32 = arith.constant 0 : i32
    %c0_i32_0 = arith.constant 0 : i32
    return %c0_i32, %arg0 : i32, i32
  }
  func.func @transform_2(%arg0: i32) -> (i32, i32) {
    %c0_i32 = arith.constant 0 : i32
    %c0_i32_0 = arith.constant 0 : i32
    %c0_i32_1 = arith.constant 0 : i32
    return %c0_i32, %c0_i32_0 : i32, i32
  }
  func.func @transform_3(%arg0: i32) -> (i32, i32) {
    %c0_i32 = arith.constant 0 : i32
    %c0_i32_0 = arith.constant 0 : i32
    %c0_i32_1 = arith.constant 0 : i32
    return %c0_i32, %c0_i32_0 : i32, i32
  }
}

</mosaic_0001>

<bundles_post_ra>
// kernel: flownet_forward.2
= control target key start
LH: loop header
LB: loop body
LE: loop exit
PB: predicated region body
PF: predicated region fallthrough
CT: control target
= control target key end

     0   :  { %s6477_s21 = smov 0   ;;  %s8845_s0 = inlined_call_operand.vmem [shape: f32[4,8,1024], index: 0, kind: input, shape index: {}]   ;;  %s8846_s1 = inlined_call_operand.vmem [shape: f32[4,8,1280], index: 1, kind: input, shape index: {}]   ;;  %s8847_s2 = inlined_call_operand.vmem [shape: f32[64,32], index: 2, kind: input, shape index: {}]   ;;  %s8848_s3 = inlined_call_operand.vmem [shape: f32[64,1], index: 3, kind: input, shape index: {}]   ;;  %s8849_s4 = inlined_call_operand.vmem [shape: f32[3,64], index: 4, kind: input, shape index: {}]   ;;  %s8850_s5 = inlined_call_operand.vmem [shape: f32[3,1], index: 5, kind: input, shape index: {}]   ;;  %s8851_s6 = inlined_call_operand.vmem [shape: f32[4,3,1024], index: 6, kind: output, shape index: {}]  }
   0x1 LB: > { %s6155_s22 = sadd.s32 4294967295, %s6411_s21   ;;  %p6159_p0 = scmp.ge.s32.totalorder %s6411_s21, 1  ;;  %s6411_s21 = sphi %s6477_s21, %s16_s21  }
   0x2   : > { %p222_p1 = scmp.lt.s32.totalorder %s6411_s21, 5 }
   0x4   : > { %p223_p2 = pnand %p6159_p0, %p222_p1 }
   0x6   : > { %226 = sbr.rel (%p223_p2) target bundleno = 1261 (0x4ed), region = 44 }
   0xd   : > { %p257_p3 = scmp.lt.s32.totalorder %s6155_s22, 3  ;;  %s6413_s27 = smov 127   ;;  %vm448_vm0 = vcmask 1039360   ;;  %v6420_v22 = vmov 1966171168   ;;  %v367_v24 = vlaneseq  ;;  %vm618_vm1 = vcmask 1031168  }
   0xe   : > { %s6414_s28 = smov 126   ;;  %s6415_s29 = smov 118   ;;  %v365_v23 = vunpack.c.l.s4 %v6420_v22  ;;  %vm788_vm2 = vcmask 965632   ;;  %vm958_vm3 = vcmask 957440   ;;  %vm1128_vm4 = vcmask 949248  }
   0xf   : > { %s8880_s22 = smov (!%p257_p3, %s6155_s22), 3  ;;  %s6416_s30 = smov 117   ;;  %v368_v39 = vshrl.u32 %v367_v24, 7  ;;  %vm1298_vm5 = vcmask 883712   ;;  %vm1468_vm6 = vcmask 875520   ;;  %vm1638_vm7 = vcmask 867328  }
  0x10   : > { %s6301_s23 = smul.u32 80, %s8880_s22  ;;  %s6417_s7 = smov 116   ;;  %v366_v38 = vunpack.c.0.s8 %v365_v23  ;;  %vm1808_vm8 = vcmask 228352   ;;  %vm1978_vm9 = vcmask 220160   ;;  %vm2148_vm10 = vcmask 211968  }
  0x11   : > { %s6418_s8 = smov 108   ;;  %s6419_s9 = smov 107   ;;  %vm2318_vm11 = vcmask 146432   ;;  %vm2488_vm12 = vcmask 138240   ;;  %vm2658_vm13 = vcmask 130048   ;;  %vm2828_vm14 = vcmask 64512  }
  0x12   : > { %s6491_s26 = scalar_lea.vmem %s8846_s1, %s6301_s23  ;;  %s6203_s10 = sshll.u32 %s8880_s22, 6  ;;  %v6635_v56 = vsub.s32 %v366_v38, %v368_v39  ;;  %vm2998_vm15 = vcmask 56320  }
  0x13   : > { %v6494_v0 = vld [vmem:[%s6491_s26 + $0x10] sm:$0xff]  ;;  %v6497_v1 = vld [vmem:[%s6491_s26] sm:$0xff]  ;;  %v6502_v2 = vld [vmem:[%s6491_s26 + $0x18] sm:$0xff]  ;;  %s6586_s13 = scalar_lea.vmem %s8845_s0, %s6203_s10  ;;  %s6421_s14 = smov 106  }
  0x14   : > { %434 = vrot.lane.b32.xlu1 %v6494_v0, %s6413_s27  ;;  %430 = vrot.lane.b32.xlu0 %v6497_v1, %s6413_s27  ;;  %v6505_v3 = vld [vmem:[%s6491_s26 + $0x8] sm:$0xff]  ;;  %v6513_v5 = vld [vmem:[%s6491_s26 + $0x20] sm:$0xff]  ;;  %s6422_s15 = smov 28   ;;  %s6423_s16 = smov 27  }
  0x15   : > { %v6510_v4 = vld [vmem:[%s6491_s26 + $0x28] sm:$0xff]  ;;  %v6518_v6 = vld [vmem:[%s6491_s26 + $0x38] sm:$0xff]  ;;  %v6521_v7 = vld [vmem:[%s6491_s26 + $0x30] sm:$0xff]  ;;  %s6424_s17 = smov 26   ;;  %s6425_s18 = smov 18  }
  0x16   : > { %v6526_v8 = vld [vmem:[%s6491_s26 + $0x40] sm:$0xff]  ;;  %v6593_v11 = vld [vmem:[%s6586_s13 + $0x10] sm:$0xff]  ;;  %v6599_v13 = vld [vmem:[%s6586_s13 + $0x8] sm:$0xff]  ;;  %s6426_s19 = smov 17   ;;  %s6427_s20 = smov 16  }
  0x17   : > { %v6596_v12 = vld [vmem:[%s6586_s13] sm:$0xff]  ;;  %v6612_v25 = vld [vmem:[%s6586_s13 + $0x18] sm:$0xff]  ;;  %v6626_v47 = vld [vmem:[%s6586_s13 + $0x28] sm:$0xff]  ;;  %s6428_s23 = smov 8   ;;  %s6429_s24 = smov 7  }
  0x18   : > { %436 = vrot.lane.b32.xlu1 %v6502_v2, %s6413_s27  ;;  %432 = vrot.lane.b32.xlu0 %v6505_v3, %s6413_s27  ;;  %v6615_v31 = vld [vmem:[%s6586_s13 + $0x20] sm:$0xff]  ;;  %v6629_v48 = vld [vmem:[%s6586_s13 + $0x30] sm:$0xff]  ;;  %s6430_s25 = smov 6   ;;  %s6438_s10 = smov 35  }
  0x19   : > { %s6439_s11 = smov 34  }
  0x1c   : > { %440 = vrot.lane.b32.xlu1 %v6510_v4, %s6413_s27  ;;  %438 = vrot.lane.b32.xlu0 %v6513_v5, %s6413_s27 }
  0x20   : > { %444 = vrot.lane.b32.xlu1 %v6518_v6, %s6413_s27  ;;  %442 = vrot.lane.b32.xlu0 %v6521_v7, %s6413_s27 }
  0x24   : > { %600 = vrot.lane.b32.xlu1 %v6497_v1, %s6414_s28  ;;  %446 = vrot.lane.b32.xlu0 %v6526_v8, %s6413_s27  ;;  %s6431_s27 = smov 56  }
  0x28   : > { %604 = vrot.lane.b32.xlu1 %v6494_v0, %s6414_s28  ;;  %602 = vrot.lane.b32.xlu0 %v6505_v3, %s6414_s28 }
  0x2c   : > { %608 = vrot.lane.b32.xlu1 %v6513_v5, %s6414_s28  ;;  %606 = vrot.lane.b32.xlu0 %v6502_v2, %s6414_s28 }
  0x30   : > { %612 = vrot.lane.b32.xlu1 %v6521_v7, %s6414_s28  ;;  %610 = vrot.lane.b32.xlu0 %v6510_v4, %s6414_s28 }
  0x34   : > { %616 = vrot.lane.b32.xlu1 %v6526_v8, %s6414_s28  ;;  %614 = vrot.lane.b32.xlu0 %v6518_v6, %s6414_s28  ;;  %s6432_s28 = smov 55  }
  0x38   : > { %772 = vrot.lane.b32.xlu1 %v6505_v3, %s6415_s29  ;;  %770 = vrot.lane.b32.xlu0 %v6497_v1, %s6415_s29 }
  0x3c   : > { %776 = vrot.lane.b32.xlu1 %v6502_v2, %s6415_s29  ;;  %774 = vrot.lane.b32.xlu0 %v6494_v0, %s6415_s29 }
  0x40   : > { %780 = vrot.lane.b32.xlu1 %v6510_v4, %s6415_s29  ;;  %778 = vrot.lane.b32.xlu0 %v6513_v5, %s6415_s29 }
  0x44   : > { %784 = vrot.lane.b32.xlu1 %v6518_v6, %s6415_s29  ;;  %782 = vrot.lane.b32.xlu0 %v6521_v7, %s6415_s29 }
  0x48   : > { %940 = vrot.lane.b32.xlu1 %v6497_v1, %s6416_s30  ;;  %786 = vrot.lane.b32.xlu0 %v6526_v8, %s6415_s29  ;;  %s6433_s29 = smov 54  }
  0x4c   : > { %944 = vrot.lane.b32.xlu1 %v6494_v0, %s6416_s30  ;;  %942 = vrot.lane.b32.xlu0 %v6505_v3, %s6416_s30 }
  0x50   : > { %948 = vrot.lane.b32.xlu1 %v6513_v5, %s6416_s30  ;;  %946 = vrot.lane.b32.xlu0 %v6502_v2, %s6416_s30 }
  0x54   : > { %952 = vrot.lane.b32.xlu1 %v6521_v7, %s6416_s30  ;;  %950 = vrot.lane.b32.xlu0 %v6510_v4, %s6416_s30 }
  0x58   : > { %956 = vrot.lane.b32.xlu1 %v6526_v8, %s6416_s30  ;;  %954 = vrot.lane.b32.xlu0 %v6518_v6, %s6416_s30  ;;  %s6434_s30 = smov 46  }
  0x5c   : > { %1112 = vrot.lane.b32.xlu1 %v6505_v3, %s6417_s7  ;;  %1110 = vrot.lane.b32.xlu0 %v6497_v1, %s6417_s7 }
  0x60   : > { %1116 = vrot.lane.b32.xlu1 %v6502_v2, %s6417_s7  ;;  %1114 = vrot.lane.b32.xlu0 %v6494_v0, %s6417_s7 }
  0x64   : > { %1120 = vrot.lane.b32.xlu1 %v6510_v4, %s6417_s7  ;;  %1118 = vrot.lane.b32.xlu0 %v6513_v5, %s6417_s7 }
  0x68   : > { %1124 = vrot.lane.b32.xlu1 %v6518_v6, %s6417_s7  ;;  %1122 = vrot.lane.b32.xlu0 %v6521_v7, %s6417_s7 }
  0x6c   : > { %1280 = vrot.lane.b32.xlu1 %v6497_v1, %s6418_s8  ;;  %1126 = vrot.lane.b32.xlu0 %v6526_v8, %s6417_s7  ;;  %s6435_s7 = smov 45  }
  0x70   : > { %1284 = vrot.lane.b32.xlu1 %v6494_v0, %s6418_s8  ;;  %1282 = vrot.lane.b32.xlu0 %v6505_v3, %s6418_s8 }
  0x74   : > { %1288 = vrot.lane.b32.xlu1 %v6513_v5, %s6418_s8  ;;  %1286 = vrot.lane.b32.xlu0 %v6502_v2, %s6418_s8 }
  0x78   : > { %1292 = vrot.lane.b32.xlu1 %v6521_v7, %s6418_s8  ;;  %1290 = vrot.lane.b32.xlu0 %v6510_v4, %s6418_s8 }
  0x7c   : > { %1296 = vrot.lane.b32.xlu1 %v6526_v8, %s6418_s8  ;;  %1294 = vrot.lane.b32.xlu0 %v6518_v6, %s6418_s8  ;;  %s6436_s8 = smov 44  }
  0x80   : > { %1452 = vrot.lane.b32.xlu1 %v6505_v3, %s6419_s9  ;;  %1450 = vrot.lane.b32.xlu0 %v6497_v1, %s6419_s9 }
  0x84   : > { %1456 = vrot.lane.b32.xlu1 %v6502_v2, %s6419_s9  ;;  %1454 = vrot.lane.b32.xlu0 %v6494_v0, %s6419_s9 }
  0x86   : > { %v435_v9 = vpop.permute.xlu1 %434  ;;  %v431_v10 = vpop.permute.xlu0 %430 }
  0x88   : > { %1460 = vrot.lane.b32.xlu1 %v6510_v4, %s6419_s9  ;;  %1458 = vrot.lane.b32.xlu0 %v6513_v5, %s6419_s9 }
  0x8a   : > { %v437_v14 = vpop.permute.xlu1 %436  ;;  %v433_v15 = vpop.permute.xlu0 %432 }
  0x8b   : > { %v451_v16 = vsel %vm448_vm0, %v435_v9, %v437_v14  ;;  %v449_v17 = vsel %vm448_vm0, %v431_v10, %v433_v15  ;;  %v450_v18 = vsel %vm448_vm0, %v433_v15, %v435_v9  ;;  %v6642_v10 = vld [vmem:[%s6586_s13 + $0x38] sm:$0xff] }
  0x8c   : > { %v467_v19 = vmul.f32 %v451_v16, %v6593_v11  ;;  %v465_v20 = vmul.f32 %v449_v17, %v6596_v12  ;;  %v466_v21 = vmul.f32 %v450_v18, %v6599_v13  ;;  %1464 = vrot.lane.b32.xlu1 %v6518_v6, %s6419_s9  ;;  %1462 = vrot.lane.b32.xlu0 %v6521_v7, %s6419_s9 }
  0x8e   : > { %v485_v26 = vrot.slane %v467_v19, 4  ;;  %v473_v27 = vrot.slane %v465_v20, 4  ;;  %v479_v28 = vrot.slane %v466_v21, 4  ;;  %v441_v29 = vpop.permute.xlu1 %440  ;;  %v439_v30 = vpop.permute.xlu0 %438 }
  0x8f   : > { %v452_v32 = vsel %vm448_vm0, %v437_v14, %v439_v30  ;;  %v453_v33 = vsel %vm448_vm0, %v439_v30, %v441_v29 }
  0x90   : > { %v486_v34 = vadd.f32 %v485_v26, %v467_v19  ;;  %v474_v35 = vadd.f32 %v473_v27, %v465_v20  ;;  %v480_v36 = vadd.f32 %v479_v28, %v466_v21  ;;  %v468_v37 = vmul.f32 %v452_v32, %v6612_v25  ;;  %1620 = vrot.lane.b32.xlu1 %v6497_v1, %s6421_s14 }
  0x91   : > { %v469_v40 = vmul.f32 %v453_v33, %v6615_v31  ;;  %1466 = vrot.lane.b32.xlu0 %v6526_v8, %s6419_s9  ;;  %s6437_s9 = smov 36  }
  0x92   : > { %v487_v41 = vrot.slane %v486_v34, 2  ;;  %v475_v42 = vrot.slane %v474_v35, 2  ;;  %v481_v43 = vrot.slane %v480_v36, 2  ;;  %v491_v44 = vrot.slane %v468_v37, 4  ;;  %v445_v45 = vpop.permute.xlu1 %444  ;;  %v443_v46 = vpop.permute.xlu0 %442 }
  0x93   : > { %v497_v49 = vrot.slane %v469_v40, 4  ;;  %v454_v50 = vsel %vm448_vm0, %v441_v29, %v443_v46  ;;  %v455_v51 = vsel %vm448_vm0, %v443_v46, %v445_v45 }
  0x94   : > { %v488_v52 = vadd.f32 %v487_v41, %v486_v34  ;;  %v476_v53 = vadd.f32 %v475_v42, %v474_v35  ;;  %v482_v54 = vadd.f32 %v481_v43, %v480_v36  ;;  %v492_v55 = vadd.f32 %v491_v44, %v468_v37  ;;  %1624 = vrot.lane.b32.xlu1 %v6494_v0, %s6421_s14 }
  0x95   : > { %v498_v57 = vadd.f32 %v497_v49, %v469_v40  ;;  %v470_v58 = vmul.f32 %v454_v50, %v6626_v47  ;;  %v471_v59 = vmul.f32 %v455_v51, %v6629_v48  ;;  %1622 = vrot.lane.b32.xlu0 %v6505_v3, %s6421_s14 }
  0x96   : > { %v477_v60 = vrot.slane %v476_v53, 1  ;;  %v483_v61 = vrot.slane %v482_v54, 1  ;;  %v493_v62 = vrot.slane %v492_v55, 2  ;;  %v601_v63 = vpop.permute.xlu1 %600  ;;  %v447_v9 = vpop.permute.xlu0 %446  ;;  %v489_v18 = vrot.slane %v488_v52, 1 }
  0x97   : > { %v499_v14 = vrot.slane %v498_v57, 2  ;;  %v503_v15 = vrot.slane %v470_v58, 4  ;;  %v509_v16 = vrot.slane %v471_v59, 4  ;;  %v456_v17 = vsel %vm448_vm0, %v445_v45, %v447_v9 }
  0x98   : > { %v478_v19 = vadd.f32 %v477_v60, %v476_v53  ;;  %v484_v20 = vadd.f32 %v483_v61, %v482_v54  ;;  %v494_v21 = vadd.f32 %v493_v62, %v492_v55  ;;  %1628 = vrot.lane.b32.xlu1 %v6513_v5, %s6421_s14  ;;  %v472_v26 = vmul.f32 %v456_v17, %v6642_v10 }
  0x99   : > { %v500_v22 = vadd.f32 %v499_v14, %v498_v57  ;;  %v504_v23 = vadd.f32 %v503_v15, %v470_v58  ;;  %v510_v24 = vadd.f32 %v509_v16, %v471_v59  ;;  %1626 = vrot.lane.b32.xlu0 %v6502_v2, %s6421_s14  ;;  %v490_v36 = vadd.f32 %v489_v18, %v488_v52 }
  0x9a   : > { %v529_v27 = vcombine.low %v478_v19, %v484_v20  ;;  %v495_v28 = vrot.slane %v494_v21, 1  ;;  %v605_v29 = vpop.permute.xlu1 %604  ;;  %v603_v30 = vpop.permute.xlu0 %602  ;;  %v515_v35 = vrot.slane %v472_v26, 4  ;;  %vm3168_vm0 = vcmask 48128  }
  0x9b   : > { %v501_v32 = vrot.slane %v500_v22, 1  ;;  %v505_v33 = vrot.slane %v504_v23, 2  ;;  %v511_v34 = vrot.slane %v510_v24, 2  ;;  %v619_v38 = vsel %vm618_vm1, %v601_v63, %v603_v30 }
  0x9c   : > { %v496_v37 = vadd.f32 %v495_v28, %v494_v21  ;;  %v620_v39 = vsel %vm618_vm1, %v603_v30, %v605_v29  ;;  %1632 = vrot.lane.b32.xlu1 %v6521_v7, %s6421_s14  ;;  %v539_v40 = vrot.slane %v529_v27, %v6635_v56  ;;  %v516_v43 = vadd.f32 %v515_v35, %v472_v26 }
  0x9d   : > { %v506_v41 = vadd.f32 %v505_v33, %v504_v23  ;;  %v512_v42 = vadd.f32 %v511_v34, %v510_v24  ;;  %1630 = vrot.lane.b32.xlu0 %v6510_v4, %s6421_s14  ;;  %v502_v44 = vadd.f32 %v501_v32, %v500_v22  ;;  %v635_v46 = vmul.f32 %v619_v38, %v6596_v12 }
  0x9e   : > { %v530_v45 = vcombine.low %v490_v36, %v496_v37  ;;  %v636_v49 = vmul.f32 %v620_v39, %v6599_v13  ;;  %v609_v50 = vpop.permute.xlu1 %608  ;;  %v607_v51 = vpop.permute.xlu0 %606  ;;  %v517_v54 = vrot.slane %v516_v43, 2 }
  0x9f   : > { %v507_v52 = vrot.slane %v506_v41, 1  ;;  %v513_v53 = vrot.slane %v512_v42, 1  ;;  %v621_v55 = vsel %vm618_vm1, %v605_v29, %v607_v51  ;;  %v643_v58 = vrot.slane %v635_v46, 4 }
  0xa0   : > { %v546_v57 = vrot.slane %v530_v45, %v6635_v56  ;;  %v649_v59 = vrot.slane %v636_v49, 4  ;;  %v622_v60 = vsel %vm618_vm1, %v607_v51, %v609_v50  ;;  %1636 = vrot.lane.b32.xlu1 %v6526_v8, %s6421_s14  ;;  %v518_v63 = vadd.f32 %v517_v54, %v516_v43 }
  0xa1   : > { %v508_v61 = vadd.f32 %v507_v52, %v506_v41  ;;  %v514_v62 = vadd.f32 %v513_v53, %v512_v42  ;;  %v637_v9 = vmul.f32 %v621_v55, %v6593_v11  ;;  %1634 = vrot.lane.b32.xlu0 %v6518_v6, %s6421_s14  ;;  %v644_v15 = vadd.f32 %v643_v58, %v635_v46 }
  0xa2   : > { %v561_v14 = vcombine.low %v539_v40, %v546_v57  ;;  %v650_v16 = vadd.f32 %v649_v59, %v636_v49  ;;  %v638_v17 = vmul.f32 %v622_v60, %v6612_v25  ;;  %v613_v18 = vpop.permute.xlu1 %612  ;;  %v611_v19 = vpop.permute.xlu0 %610  ;;  %v519_v21 = vrot.slane %v518_v63, 1 }
  0xa3   : > { %v531_v20 = vcombine.low %v502_v44, %v508_v61  ;;  %v655_v22 = vrot.slane %v637_v9, 4  ;;  %v623_v23 = vsel %vm618_vm1, %v609_v50, %v611_v19  ;;  %v645_v26 = vrot.slane %v644_v15, 2 }
  0xa4   : > { %v569_v24 = vrot.slane %v561_v14, %v6635_v56  ;;  %v651_v27 = vrot.slane %v650_v16, 2  ;;  %v661_v28 = vrot.slane %v638_v17, 4  ;;  %1792 = vrot.lane.b32.xlu1 %v6505_v3, %s6422_s15  ;;  %v520_v30 = vadd.f32 %v519_v21, %v518_v63 }
  0xa5   : > { %v553_v29 = vrot.slane %v531_v20, %v6635_v56  ;;  %v656_v32 = vadd.f32 %v655_v22, %v637_v9  ;;  %v624_v33 = vsel %vm618_vm1, %v611_v19, %v613_v18  ;;  %1790 = vrot.lane.b32.xlu0 %v6497_v1, %s6422_s15  ;;  %v646_v34 = vadd.f32 %v645_v26, %v644_v15 }
  0xa6   : > { %v652_v35 = vadd.f32 %v651_v27, %v650_v16  ;;  %v662_v36 = vadd.f32 %v661_v28, %v638_v17  ;;  %v639_v37 = vmul.f32 %v623_v23, %v6615_v31  ;;  %v617_v38 = vpop.permute.xlu1 %616  ;;  %v615_v39 = vpop.permute.xlu0 %614  ;;  %v532_v40 = vcombine.low %v514_v62, %v520_v30 }
  0xa7   : > { %v657_v41 = vrot.slane %v656_v32, 2  ;;  %v640_v42 = vmul.f32 %v624_v33, %v6626_v47  ;;  %v625_v43 = vsel %vm618_vm1, %v613_v18, %v615_v39  ;;  %v647_v44 = vrot.slane %v646_v34, 1 }
  0xa8   : > { %v653_v45 = vrot.slane %v652_v35, 1  ;;  %v663_v46 = vrot.slane %v662_v36, 2  ;;  %v667_v49 = vrot.slane %v639_v37, 4  ;;  %1796 = vrot.lane.b32.xlu1 %v6502_v2, %s6422_s15  ;;  %v560_v50 = vrot.slane %v532_v40, %v6635_v56 }
  0xa9   : > { %v658_v51 = vadd.f32 %v657_v41, %v656_v32  ;;  %v673_v52 = vrot.slane %v640_v42, 4  ;;  %v626_v53 = vsel %vm618_vm1, %v615_v39, %v617_v38  ;;  %1794 = vrot.lane.b32.xlu0 %v6494_v0, %s6422_s15  ;;  %v648_v54 = vadd.f32 %v647_v44, %v646_v34 }
  0xaa   : > { %v654_v55 = vadd.f32 %v653_v45, %v652_v35  ;;  %v664_v57 = vadd.f32 %v663_v46, %v662_v36  ;;  %v668_v58 = vadd.f32 %v667_v49, %v639_v37  ;;  %v773_v59 = vpop.permute.xlu1 %772  ;;  %v771_v60 = vpop.permute.xlu0 %770  ;;  %v562_v61 = vcombine.low %v553_v29, %v560_v50 }
  0xab   : > { %v659_v62 = vrot.slane %v658_v51, 1  ;;  %v674_v63 = vadd.f32 %v673_v52, %v640_v42  ;;  %v641_v9 = vmul.f32 %v625_v43, %v6629_v48  ;;  %v642_v17 = vmul.f32 %v626_v53, %v6642_v10 }
  0xac   : > { %v699_v14 = vcombine.low %v648_v54, %v654_v55  ;;  %v665_v15 = vrot.slane %v664_v57, 1  ;;  %v669_v16 = vrot.slane %v668_v58, 2  ;;  %1800 = vrot.lane.b32.xlu1 %v6510_v4, %s6422_s15  ;;  %v576_v18 = vrot.slane %v562_v61, %v6635_v56 }
  0xad   : > { %v660_v19 = vadd.f32 %v659_v62, %v658_v51  ;;  %v675_v20 = vrot.slane %v674_v63, 2  ;;  %v679_v21 = vrot.slane %v641_v9, 4  ;;  %1798 = vrot.lane.b32.xlu0 %v6513_v5, %s6422_s15  ;;  %v685_v27 = vrot.slane %v642_v17, 4 }
  0xae   : > { %v709_v22 = vrot.slane %v699_v14, %v6635_v56  ;;  %v666_v23 = vadd.f32 %v665_v15, %v664_v57  ;;  %v670_v26 = vadd.f32 %v669_v16, %v668_v58  ;;  %v777_v28 = vpop.permute.xlu1 %776  ;;  %v775_v29 = vpop.permute.xlu0 %774  ;;  %v577_v30 = vcombine.low %v569_v24, %v576_v18 }
  0xaf   : > { %v676_v32 = vadd.f32 %v675_v20, %v674_v63  ;;  %v680_v33 = vadd.f32 %v679_v21, %v641_v9  ;;  %v789_v34 = vsel %vm788_vm2, %v771_v60, %v773_v59  ;;  %v686_v37 = vadd.f32 %v685_v27, %v642_v17 }
  0xb0   : > { %v700_v35 = vcombine.low %v660_v19, %v666_v23  ;;  %v671_v36 = vrot.slane %v670_v26, 1  ;;  %v805_v38 = vmul.f32 %v789_v34, %v6596_v12  ;;  %1804 = vrot.lane.b32.xlu1 %v6518_v6, %s6422_s15  ;;  %580 = vst [vmem:[#allocation2 + $0x1] ss:$8 sm:$0xf] %v577_v30  ;;  %v790_v41 = vsel %vm788_vm2, %v773_v59, %v775_v29 }
  0xb1   : > { %581 = vst [vmem:[#allocation2 + $0x1] ss:$8 sm:$0xf0] %v577_v30  ;;  %v677_v39 = vrot.slane %v676_v32, 1  ;;  %v681_v40 = vrot.slane %v680_v33, 2  ;;  %v791_v24 = vsel %vm788_vm2, %v775_v29, %v777_v28  ;;  %1802 = vrot.lane.b32.xlu0 %v6521_v7, %s6422_s15  ;;  %v687_v44 = vrot.slane %v686_v37, 2 }
  0xb2   : > { %v716_v42 = vrot.slane %v700_v35, %v6635_v56  ;;  %v672_v43 = vadd.f32 %v671_v36, %v670_v26  ;;  %v813_v45 = vrot.slane %v805_v38, 4  ;;  %v781_v46 = vpop.permute.xlu1 %780  ;;  %v779_v49 = vpop.permute.xlu0 %778  ;;  %v806_v52 = vmul.f32 %v790_v41, %v6599_v13 }
  0xb3   : > { %v678_v50 = vadd.f32 %v677_v39, %v676_v32  ;;  %v682_v51 = vadd.f32 %v681_v40, %v680_v33  ;;  %v807_v53 = vmul.f32 %v791_v24, %v6593_v11  ;;  %v688_v55 = vadd.f32 %v687_v44, %v686_v37 }
  0xb4   : > { %v731_v54 = vcombine.low %v709_v22, %v716_v42  ;;  %v814_v57 = vadd.f32 %v813_v45, %v805_v38  ;;  %v792_v58 = vsel %vm788_vm2, %v777_v28, %v779_v49  ;;  %1960 = vrot.lane.b32.xlu1 %v6497_v1, %s6423_s16  ;;  %v819_v61 = vrot.slane %v806_v52, 4 }
  0xb5   : > { %v701_v59 = vcombine.low %v672_v43, %v678_v50  ;;  %v683_v60 = vrot.slane %v682_v51, 1  ;;  %v825_v62 = vrot.slane %v807_v53, 4  ;;  %1806 = vrot.lane.b32.xlu0 %v6526_v8, %s6422_s15  ;;  %v689_v9 = vrot.slane %v688_v55, 1 }
  0xb6   : > { %v739_v63 = vrot.slane %v731_v54, %v6635_v56  ;;  %v815_v14 = vrot.slane %v814_v57, 2  ;;  %v793_v15 = vsel %vm788_vm2, %v779_v49, %v781_v46  ;;  %v785_v16 = vpop.permute.xlu1 %784  ;;  %v783_v17 = vpop.permute.xlu0 %782  ;;  %v820_v1 = vadd.f32 %v819_v61, %v806_v52 }
  0xb7   : > { %v723_v18 = vrot.slane %v701_v59, %v6635_v56  ;;  %v684_v19 = vadd.f32 %v683_v60, %v682_v51  ;;  %v826_v20 = vadd.f32 %v825_v62, %v807_v53  ;;  %v690_v21 = vadd.f32 %v689_v9, %v688_v55 }
  0xb8   : > { %v816_v22 = vadd.f32 %v815_v14, %v814_v57  ;;  %v808_v23 = vmul.f32 %v792_v58, %v6612_v25  ;;  %v809_v26 = vmul.f32 %v793_v15, %v6615_v31  ;;  %1964 = vrot.lane.b32.xlu1 %v6494_v0, %s6423_s16  ;;  %v821_v27 = vrot.slane %v820_v1, 2 }
  0xb9   : > { %v827_v28 = vrot.slane %v826_v20, 2  ;;  %v794_v29 = vsel %vm788_vm2, %v781_v46, %v783_v17  ;;  %v795_v30 = vsel %vm788_vm2, %v783_v17, %v785_v16  ;;  %1962 = vrot.lane.b32.xlu0 %v6505_v3, %s6423_s16  ;;  %v702_v32 = vcombine.low %v684_v19, %v690_v21 }
  0xba   : > { %v817_v33 = vrot.slane %v816_v22, 1  ;;  %v831_v34 = vrot.slane %v808_v23, 4  ;;  %v837_v35 = vrot.slane %v809_v26, 4  ;;  %v941_v36 = vpop.permute.xlu1 %940  ;;  %v787_v37 = vpop.permute.xlu0 %786  ;;  %v822_v38 = vadd.f32 %v821_v27, %v820_v1 }
  0xbb   : > { %v828_v39 = vadd.f32 %v827_v28, %v826_v20  ;;  %v810_v40 = vmul.f32 %v794_v29, %v6626_v47  ;;  %v811_v0 = vmul.f32 %v795_v30, %v6629_v48  ;;  %v730_v41 = vrot.slane %v702_v32, %v6635_v56 }
  0xbc   : > { %v818_v24 = vadd.f32 %v817_v33, %v816_v22  ;;  %v832_v42 = vadd.f32 %v831_v34, %v808_v23  ;;  %v838_v43 = vadd.f32 %v837_v35, %v809_v26  ;;  %1968 = vrot.lane.b32.xlu1 %v6513_v5, %s6423_s16  ;;  %v823_v3 = vrot.slane %v822_v38, 1  ;;  %v6745_v33 = vld [vmem:[%s6491_s26 + $0x8] sm:$0xff] }
  0xbd   : > { %v829_v44 = vrot.slane %v828_v39, 1  ;;  %v843_v45 = vrot.slane %v810_v40, 4  ;;  %v849_v46 = vrot.slane %v811_v0, 4  ;;  %1966 = vrot.lane.b32.xlu0 %v6502_v2, %s6423_s16  ;;  %v732_v49 = vcombine.low %v723_v18, %v730_v41 }
  0xbe   : > { %v833_v50 = vrot.slane %v832_v42, 2  ;;  %v839_v51 = vrot.slane %v838_v43, 2  ;;  %v796_v52 = vsel %vm788_vm2, %v785_v16, %v787_v37  ;;  %v945_v53 = vpop.permute.xlu1 %944  ;;  %v943_v54 = vpop.permute.xlu0 %942  ;;  %v824_v55 = vadd.f32 %v823_v3, %v822_v38 }
  0xbf   : > { %v830_v57 = vadd.f32 %v829_v44, %v828_v39  ;;  %v844_v58 = vadd.f32 %v843_v45, %v810_v40  ;;  %v850_v59 = vadd.f32 %v849_v46, %v811_v0  ;;  %v746_v5 = vrot.slane %v732_v49, %v6635_v56  ;;  %v6749_v40 = vld [vmem:[%s6491_s26] sm:$0xff] }
  0xc0   : > { %v834_v60 = vadd.f32 %v833_v50, %v832_v42  ;;  %v840_v61 = vadd.f32 %v839_v51, %v838_v43  ;;  %v812_v62 = vmul.f32 %v796_v52, %v6642_v10  ;;  %1972 = vrot.lane.b32.xlu1 %v6521_v7, %s6423_s16  ;;  %v869_v2 = vcombine.low %v818_v24, %v824_v55  ;;  %v6760_v50 = vld [vmem:[%s6491_s26 + $0x18] sm:$0xff] }
  0xc1   : > { %v845_v9 = vrot.slane %v844_v58, 2  ;;  %v851_v14 = vrot.slane %v850_v59, 2  ;;  %v959_v15 = vsel %vm958_vm3, %v941_v36, %v943_v54  ;;  %1970 = vrot.lane.b32.xlu0 %v6510_v4, %s6423_s16  ;;  %v747_v16 = vcombine.low %v739_v63, %v746_v5 }
  0xc2   : > { %v835_v17 = vrot.slane %v834_v60, 1  ;;  %v841_v18 = vrot.slane %v840_v61, 1  ;;  %v855_v19 = vrot.slane %v812_v62, 4  ;;  %v949_v1 = vpop.permute.xlu1 %948  ;;  %v947_v20 = vpop.permute.xlu0 %946  ;;  %v879_v21 = vrot.slane %v869_v2, %v6635_v56 }
  0xc3   : > { %v846_v22 = vadd.f32 %v845_v9, %v844_v58  ;;  %v852_v23 = vadd.f32 %v851_v14, %v850_v59  ;;  %v960_v7 = vsel %vm958_vm3, %v943_v54, %v945_v53  ;;  %750 = vst [vmem:[#allocation2 + $0x2] ss:$8 sm:$0xf] %v747_v16  ;;  %751 = vst [vmem:[#allocation2 + $0x2] ss:$8 sm:$0xf0] %v747_v16 }
  0xc4   : > { %v836_v26 = vadd.f32 %v835_v17, %v834_v60  ;;  %v842_v27 = vadd.f32 %v841_v18, %v840_v61  ;;  %v856_v28 = vadd.f32 %v855_v19, %v812_v62  ;;  %v975_v4 = vmul.f32 %v959_v15, %v6596_v12  ;;  %1976 = vrot.lane.b32.xlu1 %v6526_v8, %s6423_s16  ;;  %v6763_v58 = vld [vmem:[%s6491_s26 + $0x10] sm:$0xff]  ;;  %v6775_v19 = vld [vmem:[%s6491_s26 + $0x28] sm:$0xff] }
  0xc5   : > { %v847_v63 = vrot.slane %v846_v22, 1  ;;  %v853_v29 = vrot.slane %v852_v23, 1  ;;  %v976_v30 = vmul.f32 %v960_v7, %v6599_v13  ;;  %v961_v32 = vsel %vm958_vm3, %v945_v53, %v947_v20  ;;  %1974 = vrot.lane.b32.xlu0 %v6518_v6, %s6423_s16 }
  0xc6   : > { %v870_v34 = vcombine.low %v830_v57, %v836_v26  ;;  %v857_v35 = vrot.slane %v856_v28, 2  ;;  %v983_v36 = vrot.slane %v975_v4, 4  ;;  %v962_v37 = vsel %vm958_vm3, %v947_v20, %v949_v1  ;;  %v953_v38 = vpop.permute.xlu1 %952  ;;  %v951_v39 = vpop.permute.xlu0 %950  ;;  %v6779_v26 = vld [vmem:[%s6491_s26 + $0x20] sm:$0xff] }
  0xc7   : > { %v848_v8 = vadd.f32 %v847_v63, %v846_v22  ;;  %v854_v0 = vadd.f32 %v853_v29, %v852_v23  ;;  %v989_v41 = vrot.slane %v976_v30, 4  ;;  %v977_v24 = vmul.f32 %v961_v32, %v6593_v11 }
  0xc8   : > { %v886_v42 = vrot.slane %v870_v34, %v6635_v56  ;;  %v858_v6 = vadd.f32 %v857_v35, %v856_v28  ;;  %v984_v43 = vadd.f32 %v983_v36, %v975_v4  ;;  %v978_v3 = vmul.f32 %v962_v37, %v6612_v25  ;;  %2132 = vrot.lane.b32.xlu1 %v6745_v33, %s6424_s17 }
  0xc9   : > { %v871_v44 = vcombine.low %v842_v27, %v848_v8  ;;  %v990_v45 = vadd.f32 %v989_v41, %v976_v30  ;;  %v995_v46 = vrot.slane %v977_v24, 4  ;;  %v963_v49 = vsel %vm958_vm3, %v949_v1, %v951_v39  ;;  %2130 = vrot.lane.b32.xlu0 %v6749_v40, %s6424_s17 }
  0xca   : > { %v901_v51 = vcombine.low %v879_v21, %v886_v42  ;;  %v859_v52 = vrot.slane %v858_v6, 1  ;;  %v985_v53 = vrot.slane %v984_v43, 2  ;;  %v1001_v54 = vrot.slane %v978_v3, 4  ;;  %v957_v55 = vpop.permute.xlu1 %956  ;;  %v955_v57 = vpop.permute.xlu0 %954 }
  0xcb   : > { %v893_v59 = vrot.slane %v871_v44, %v6635_v56  ;;  %v991_v5 = vrot.slane %v990_v45, 2  ;;  %v996_v60 = vadd.f32 %v995_v46, %v977_v24  ;;  %v964_v61 = vsel %vm958_vm3, %v951_v39, %v953_v38  ;;  %v6788_v39 = vld [vmem:[%s6491_s26 + $0x38] sm:$0xff] }
  0xcc   : > { %v909_v62 = vrot.slane %v901_v51, %v6635_v56  ;;  %v860_v2 = vadd.f32 %v859_v52, %v858_v6  ;;  %v986_v9 = vadd.f32 %v985_v53, %v984_v43  ;;  %v1002_v14 = vadd.f32 %v1001_v54, %v978_v3  ;;  %2136 = vrot.lane.b32.xlu1 %v6760_v50, %s6424_s17  ;;  %v6793_v43 = vld [vmem:[%s6491_s26 + $0x30] sm:$0xff] }
  0xcd   : > { %v992_v15 = vadd.f32 %v991_v5, %v990_v45  ;;  %v997_v16 = vrot.slane %v996_v60, 2  ;;  %v979_v17 = vmul.f32 %v963_v49, %v6615_v31  ;;  %v980_v18 = vmul.f32 %v964_v61, %v6626_v47  ;;  %2134 = vrot.lane.b32.xlu0 %v6763_v58, %s6424_s17 }
  0xce   : > { %v872_v1 = vcombine.low %v854_v0, %v860_v2  ;;  %v987_v20 = vrot.slane %v986_v9, 1  ;;  %v1003_v21 = vrot.slane %v1002_v14, 2  ;;  %v965_v22 = vsel %vm958_vm3, %v953_v38, %v955_v57  ;;  %v1113_v23 = vpop.permute.xlu1 %1112  ;;  %v1111_v7 = vpop.permute.xlu0 %1110 }
  0xcf   : > { %v993_v27 = vrot.slane %v992_v15, 1  ;;  %v998_v28 = vadd.f32 %v997_v16, %v996_v60  ;;  %v1007_v4 = vrot.slane %v979_v17, 4  ;;  %v1013_v63 = vrot.slane %v980_v18, 4 }
  0xd0   : > { %v900_v29 = vrot.slane %v872_v1, %v6635_v56  ;;  %v988_v30 = vadd.f32 %v987_v20, %v986_v9  ;;  %v1004_v32 = vadd.f32 %v1003_v21, %v1002_v14  ;;  %v966_v34 = vsel %vm958_vm3, %v955_v57, %v957_v55  ;;  %2140 = vrot.lane.b32.xlu1 %v6775_v19, %s6424_s17 }
  0xd1   : > { %v994_v35 = vadd.f32 %v993_v27, %v992_v15  ;;  %v999_v36 = vrot.slane %v998_v28, 1  ;;  %v1008_v37 = vadd.f32 %v1007_v4, %v979_v17  ;;  %v1014_v38 = vadd.f32 %v1013_v63, %v980_v18  ;;  %2138 = vrot.lane.b32.xlu0 %v6779_v26, %s6424_s17  ;;  %v6803_v15 = vld [vmem:[%s6491_s26 + $0x40] sm:$0xff] }
  0xd2   : > { %v902_v8 = vcombine.low %v893_v59, %v900_v29  ;;  %v1005_v0 = vrot.slane %v1004_v32, 1  ;;  %v981_v41 = vmul.f32 %v965_v22, %v6629_v48  ;;  %v982_v24 = vmul.f32 %v966_v34, %v6642_v10  ;;  %v1117_v42 = vpop.permute.xlu1 %1116  ;;  %v1115_v6 = vpop.permute.xlu0 %1114 }
  0xd3   : > { %v1039_v3 = vcombine.low %v988_v30, %v994_v35  ;;  %v1000_v44 = vadd.f32 %v999_v36, %v998_v28  ;;  %v1009_v45 = vrot.slane %v1008_v37, 2  ;;  %v1015_v46 = vrot.slane %v1014_v38, 2 }
  0xd4   : > { %v916_v49 = vrot.slane %v902_v8, %v6635_v56  ;;  %v1006_v51 = vadd.f32 %v1005_v0, %v1004_v32  ;;  %v1019_v52 = vrot.slane %v981_v41, 4  ;;  %v1025_v53 = vrot.slane %v982_v24, 4  ;;  %2144 = vrot.lane.b32.xlu1 %v6788_v39, %s6424_s17 }
  0xd5   : > { %v1049_v54 = vrot.slane %v1039_v3, %v6635_v56  ;;  %v1010_v55 = vadd.f32 %v1009_v45, %v1008_v37  ;;  %v1016_v57 = vadd.f32 %v1015_v46, %v1014_v38  ;;  %v1129_v59 = vsel %vm1128_vm4, %v1111_v7, %v1113_v23  ;;  %2142 = vrot.lane.b32.xlu0 %v6793_v43, %s6424_s17 }
  0xd6   : > { %v917_v5 = vcombine.low %v909_v62, %v916_v49  ;;  %v1040_v60 = vcombine.low %v1000_v44, %v1006_v51  ;;  %v1020_v61 = vadd.f32 %v1019_v52, %v981_v41  ;;  %v1026_v2 = vadd.f32 %v1025_v53, %v982_v24  ;;  %v1121_v9 = vpop.permute.xlu1 %1120  ;;  %v1119_v14 = vpop.permute.xlu0 %1118 }
  0xd7   : > { %v1011_v16 = vrot.slane %v1010_v55, 1  ;;  %v1017_v17 = vrot.slane %v1016_v57, 1  ;;  %v1145_v18 = vmul.f32 %v1129_v59, %v6596_v12  ;;  %v1130_v1 = vsel %vm1128_vm4, %v1113_v23, %v1115_v6 }
  0xd8   : > { %920 = vst [vmem:[#allocation2 + $0x3] ss:$8 sm:$0xf] %v917_v5  ;;  %921 = vst [vmem:[#allocation2 + $0x3] ss:$8 sm:$0xf0] %v917_v5  ;;  %v1056_v20 = vrot.slane %v1040_v60, %v6635_v56  ;;  %v1131_v62 = vsel %vm1128_vm4, %v1115_v6, %v1117_v42  ;;  %2300 = vrot.lane.b32.xlu1 %v6749_v40, %s6425_s18  ;;  %v1146_v4 = vmul.f32 %v1130_v1, %v6599_v13 }
  0xd9   : > { %v1021_v21 = vrot.slane %v1020_v61, 2  ;;  %v1027_v22 = vrot.slane %v1026_v2, 2  ;;  %v1012_v7 = vadd.f32 %v1011_v16, %v1010_v55  ;;  %v1018_v27 = vadd.f32 %v1017_v17, %v1016_v57  ;;  %2146 = vrot.lane.b32.xlu0 %v6803_v15, %s6424_s17 }
  0xda   : > { %v1153_v28 = vrot.slane %v1145_v18, 4  ;;  %v1071_v23 = vcombine.low %v1049_v54, %v1056_v20  ;;  %v1147_v30 = vmul.f32 %v1131_v62, %v6593_v11  ;;  %v1125_v32 = vpop.permute.xlu1 %1124  ;;  %v1123_v34 = vpop.permute.xlu0 %1122  ;;  %v1159_v37 = vrot.slane %v1146_v4, 4 }
  0xdb   : > { %v1022_v63 = vadd.f32 %v1021_v21, %v1020_v61  ;;  %v1028_v29 = vadd.f32 %v1027_v22, %v1026_v2  ;;  %v1041_v35 = vcombine.low %v1012_v7, %v1018_v27  ;;  %v1132_v38 = vsel %vm1128_vm4, %v1117_v42, %v1119_v14 }
  0xdc   : > { %v1154_v36 = vadd.f32 %v1153_v28, %v1145_v18  ;;  %v1079_v8 = vrot.slane %v1071_v23, %v6635_v56  ;;  %v1165_v24 = vrot.slane %v1147_v30, 4  ;;  %2304 = vrot.lane.b32.xlu1 %v6763_v58, %s6425_s18  ;;  %v1160_v44 = vadd.f32 %v1159_v37, %v1146_v4 }
  0xdd   : > { %v1023_v0 = vrot.slane %v1022_v63, 1  ;;  %v1029_v41 = vrot.slane %v1028_v29, 1  ;;  %v1063_v6 = vrot.slane %v1041_v35, %v6635_v56  ;;  %v1133_v11 = vsel %vm1128_vm4, %v1119_v14, %v1121_v9  ;;  %2302 = vrot.lane.b32.xlu0 %v6745_v33, %s6425_s18 }
  0xde   : > { %v1155_v3 = vrot.slane %v1154_v36, 2  ;;  %v1166_v46 = vadd.f32 %v1165_v24, %v1147_v30  ;;  %v1148_v49 = vmul.f32 %v1132_v38, %v6612_v25  ;;  %v1281_v51 = vpop.permute.xlu1 %1280  ;;  %v1127_v52 = vpop.permute.xlu0 %1126  ;;  %v1161_v54 = vrot.slane %v1160_v44, 2 }
  0xdf   : > { %v1024_v45 = vadd.f32 %v1023_v0, %v1022_v63  ;;  %v1030_v42 = vadd.f32 %v1029_v41, %v1028_v29  ;;  %v1149_v55 = vmul.f32 %v1133_v11, %v6615_v31  ;;  %v1134_v57 = vsel %vm1128_vm4, %v1121_v9, %v1123_v34 }
  0xe0   : > { %v1156_v53 = vadd.f32 %v1155_v3, %v1154_v36  ;;  %v1167_v5 = vrot.slane %v1166_v46, 2  ;;  %v1171_v60 = vrot.slane %v1148_v49, 4  ;;  %v1135_v61 = vsel %vm1128_vm4, %v1123_v34, %v1125_v32  ;;  %2308 = vrot.lane.b32.xlu1 %v6779_v26, %s6425_s18 }
  0xe1   : > { %v1042_v59 = vcombine.low %v1024_v45, %v1030_v42  ;;  %v1162_v14 = vadd.f32 %v1161_v54, %v1160_v44  ;;  %v1177_v16 = vrot.slane %v1149_v55, 4  ;;  %v1150_v25 = vmul.f32 %v1134_v57, %v6626_v47  ;;  %2306 = vrot.lane.b32.xlu0 %v6760_v50, %s6425_s18 }
  0xe2   : > { %v1157_v2 = vrot.slane %v1156_v53, 1  ;;  %v1168_v17 = vadd.f32 %v1167_v5, %v1166_v46  ;;  %v1172_v9 = vadd.f32 %v1171_v60, %v1148_v49  ;;  %v1151_v18 = vmul.f32 %v1135_v61, %v6629_v48  ;;  %v1285_v1 = vpop.permute.xlu1 %1284  ;;  %v1283_v20 = vpop.permute.xlu0 %1282 }
  0xe3   : > { %v1070_v31 = vrot.slane %v1042_v59, %v6635_v56  ;;  %v1163_v22 = vrot.slane %v1162_v14, 1  ;;  %v1178_v62 = vadd.f32 %v1177_v16, %v1149_v55  ;;  %v1183_v7 = vrot.slane %v1150_v25, 4 }
  0xe4   : > { %v1158_v21 = vadd.f32 %v1157_v2, %v1156_v53  ;;  %v1169_v28 = vrot.slane %v1168_v17, 1  ;;  %v1173_v4 = vrot.slane %v1172_v9, 2  ;;  %v1189_v23 = vrot.slane %v1151_v18, 4  ;;  %2312 = vrot.lane.b32.xlu1 %v6793_v43, %s6425_s18 }
  0xe5   : > { %v1072_v27 = vcombine.low %v1063_v6, %v1070_v31  ;;  %v1164_v47 = vadd.f32 %v1163_v22, %v1162_v14  ;;  %v1179_v63 = vrot.slane %v1178_v62, 2  ;;  %v1184_v29 = vadd.f32 %v1183_v7, %v1150_v25  ;;  %2310 = vrot.lane.b32.xlu0 %v6775_v19, %s6425_s18 }
  0xe6   : > { %v1136_v30 = vsel %vm1128_vm4, %v1125_v32, %v1127_v52  ;;  %v1170_v34 = vadd.f32 %v1169_v28, %v1168_v17  ;;  %v1174_v35 = vadd.f32 %v1173_v4, %v1172_v9  ;;  %v1190_v36 = vadd.f32 %v1189_v23, %v1151_v18  ;;  %v1289_v37 = vpop.permute.xlu1 %1288  ;;  %v1287_v38 = vpop.permute.xlu0 %1286  ;;  %v6858_v18 = vld [vmem:[%s6586_s13 + $0x10] sm:$0xff] }
  0xe7   : > { %v1086_v48 = vrot.slane %v1072_v27, %v6635_v56  ;;  %v1209_v0 = vcombine.low %v1158_v21, %v1164_v47  ;;  %v1180_v41 = vadd.f32 %v1179_v63, %v1178_v62  ;;  %v1185_v24 = vrot.slane %v1184_v29, 2  ;;  %v6862_v27 = vld [vmem:[%s6586_s13 + $0x18] sm:$0xff] }
  0xe8   : > { %v1152_v6 = vmul.f32 %v1136_v30, %v6642_v10  ;;  %v1175_v44 = vrot.slane %v1174_v35, 1  ;;  %v1191_v11 = vrot.slane %v1190_v36, 2  ;;  %v1299_v32 = vsel %vm1298_vm5, %v1281_v51, %v1283_v20  ;;  %2316 = vrot.lane.b32.xlu1 %v6803_v15, %s6425_s18 }
  0xe9   : > { %v1087_v3 = vcombine.low %v1079_v8, %v1086_v48  ;;  %v1219_v45 = vrot.slane %v1209_v0, %v6635_v56  ;;  %v1181_v42 = vrot.slane %v1180_v41, 1  ;;  %v1186_v46 = vadd.f32 %v1185_v24, %v1184_v29  ;;  %2314 = vrot.lane.b32.xlu0 %v6788_v39, %s6425_s18 }
  0xea   : > { %v1195_v49 = vrot.slane %v1152_v6, 4  ;;  %v1176_v52 = vadd.f32 %v1175_v44, %v1174_v35  ;;  %v1192_v10 = vadd.f32 %v1191_v11, %v1190_v36  ;;  %v1300_v8 = vsel %vm1298_vm5, %v1283_v20, %v1285_v1  ;;  %v1293_v51 = vpop.permute.xlu1 %1292  ;;  %v1291_v54 = vpop.permute.xlu0 %1290  ;;  %v6876_v44 = vld [vmem:[%s6586_s13 + $0x20] sm:$0xff] }
  0xeb   : > { %1090 = vst [vmem:[#allocation2 + $0x4] ss:$8 sm:$0xf] %v1087_v3  ;;  %1091 = vst [vmem:[#allocation2 + $0x4] ss:$8 sm:$0xf0] %v1087_v3  ;;  %v1315_v53 = vmul.f32 %v1299_v32, %v6596_v12  ;;  %v1182_v55 = vadd.f32 %v1181_v42, %v1180_v41  ;;  %v1316_v5 = vmul.f32 %v1300_v8, %v6599_v13 }
  0xec   : > { %v1187_v57 = vrot.slane %v1186_v46, 1  ;;  %v1196_v59 = vadd.f32 %v1195_v49, %v1152_v6  ;;  %v1210_v60 = vcombine.low %v1170_v34, %v1176_v52  ;;  %v1193_v61 = vrot.slane %v1192_v10, 1  ;;  %2472 = vrot.lane.b32.xlu1 %v6745_v33, %s6426_s19  ;;  %v6880_v42 = vld [vmem:[%s6586_s13 + $0x28] sm:$0xff] }
  0xed   : > { %v1323_v2 = vrot.slane %v1315_v53, 4  ;;  %v1301_v14 = vsel %vm1298_vm5, %v1285_v1, %v1287_v38  ;;  %v1329_v25 = vrot.slane %v1316_v5, 4  ;;  %v1302_v31 = vsel %vm1298_vm5, %v1287_v38, %v1289_v37  ;;  %2470 = vrot.lane.b32.xlu0 %v6749_v40, %s6426_s19 }
  0xee   : > { %v1188_v16 = vadd.f32 %v1187_v57, %v1186_v46  ;;  %v1197_v12 = vrot.slane %v1196_v59, 2  ;;  %v1226_v13 = vrot.slane %v1210_v60, %v6635_v56  ;;  %v1194_v17 = vadd.f32 %v1193_v61, %v1192_v10  ;;  %v1297_v20 = vpop.permute.xlu1 %1296  ;;  %v1295_v21 = vpop.permute.xlu0 %1294 }
  0xef   : > { %v1324_v9 = vadd.f32 %v1323_v2, %v1315_v53  ;;  %v1317_v1 = vmul.f32 %v6858_v18, %v1301_v14  ;;  %v1330_v7 = vadd.f32 %v1329_v25, %v1316_v5  ;;  %v1318_v28 = vmul.f32 %v6862_v27, %v1302_v31  ;;  %v6891_v25 = vld [vmem:[%s6586_s13 + $0x30] sm:$0xff] }
  0xf0   : > { %v1211_v22 = vcombine.low %v1182_v55, %v1188_v16  ;;  %v1198_v62 = vadd.f32 %v1197_v12, %v1196_v59  ;;  %v1241_v4 = vcombine.low %v1219_v45, %v1226_v13  ;;  %v1303_v63 = vsel %vm1298_vm5, %v1289_v37, %v1291_v54  ;;  %2476 = vrot.lane.b32.xlu1 %v6760_v50, %s6426_s19  ;;  %v6895_v13 = vld [vmem:[%s6586_s13 + $0x38] sm:$0xff] }
  0xf1   : > { %v1325_v23 = vrot.slane %v1324_v9, 2  ;;  %v1335_v47 = vrot.slane %v1317_v1, 4  ;;  %v1331_v48 = vrot.slane %v1330_v7, 2  ;;  %v1341_v34 = vrot.slane %v1318_v28, 4  ;;  %2474 = vrot.lane.b32.xlu0 %v6763_v58, %s6426_s19 }
  0xf2   : > { %v1233_v29 = vrot.slane %v1211_v22, %v6635_v56  ;;  %v1199_v30 = vrot.slane %v1198_v62, 1  ;;  %v1249_v35 = vrot.slane %v1241_v4, %v6635_v56  ;;  %v1304_v37 = vsel %vm1298_vm5, %v1291_v54, %v1293_v51  ;;  %v6873_v0 = vpop.permute.xlu1 %1452  ;;  %v1451_v41 = vpop.permute.xlu0 %1450 }
  0xf3   : > { %v1326_v36 = vadd.f32 %v1325_v23, %v1324_v9  ;;  %v1336_v38 = vadd.f32 %v1335_v47, %v1317_v1  ;;  %v1332_v6 = vadd.f32 %v1331_v48, %v1330_v7  ;;  %v1342_v3 = vadd.f32 %v1341_v34, %v1318_v28 }
  0xf4   : > { %v1200_v24 = vadd.f32 %v1199_v30, %v1198_v62  ;;  %v1319_v11 = vmul.f32 %v6876_v44, %v1303_v63  ;;  %v1320_v46 = vmul.f32 %v6880_v42, %v1304_v37  ;;  %v1305_v49 = vsel %vm1298_vm5, %v1293_v51, %v1295_v21  ;;  %2480 = vrot.lane.b32.xlu1 %v6775_v19, %s6426_s19 }
  0xf5   : > { %v1327_v32 = vrot.slane %v1326_v36, 1  ;;  %v1337_v45 = vrot.slane %v1336_v38, 2  ;;  %v1333_v10 = vrot.slane %v1332_v6, 1  ;;  %v1343_v8 = vrot.slane %v1342_v3, 2  ;;  %2478 = vrot.lane.b32.xlu0 %v6779_v26, %s6426_s19 }
  0xf6   : > { %v1212_v52 = vcombine.low %v1194_v17, %v1200_v24  ;;  %v1347_v53 = vrot.slane %v1319_v11, 4  ;;  %v1353_v57 = vrot.slane %v1320_v46, 4  ;;  %v1306_v59 = vsel %vm1298_vm5, %v1295_v21, %v1297_v20  ;;  %v1457_v5 = vpop.permute.xlu1 %1456  ;;  %v1455_v60 = vpop.permute.xlu0 %1454 }
  0xf7   : > { %v1328_v54 = vadd.f32 %v1327_v32, %v1326_v36  ;;  %v1338_v55 = vadd.f32 %v1337_v45, %v1336_v38  ;;  %v1334_v61 = vadd.f32 %v1333_v10, %v1332_v6  ;;  %v1344_v2 = vadd.f32 %v1343_v8, %v1342_v3  ;;  %v6911_v3 = vld [vmem:[%s6586_s13] sm:$0xff] }
  0xf8   : > { %v1240_v51 = vrot.slane %v1212_v52, %v6635_v56  ;;  %v1348_v14 = vadd.f32 %v1347_v53, %v1319_v11  ;;  %v1354_v12 = vadd.f32 %v1353_v57, %v1320_v46  ;;  %v1321_v31 = vmul.f32 %v6891_v25, %v1305_v49  ;;  %2484 = vrot.lane.b32.xlu1 %v6788_v39, %s6426_s19 }
  0xf9   : > { %v1339_v16 = vrot.slane %v1338_v55, 1  ;;  %v1322_v17 = vmul.f32 %v6895_v13, %v1306_v59  ;;  %v1379_v1 = vcombine.low %v1328_v54, %v1334_v61  ;;  %v1345_v20 = vrot.slane %v1344_v2, 1  ;;  %2482 = vrot.lane.b32.xlu0 %v6793_v43, %s6426_s19  ;;  %v6923_v59 = vld [vmem:[%s6586_s13 + $0x8] sm:$0xff] }
  0xfa   : > { %v1242_v9 = vcombine.low %v1233_v29, %v1240_v51  ;;  %v1349_v21 = vrot.slane %v1348_v14, 2  ;;  %v1355_v62 = vrot.slane %v1354_v12, 2  ;;  %v1359_v7 = vrot.slane %v1321_v31, 4  ;;  %v6902_v4 = vpop.permute.xlu1 %1460  ;;  %v1459_v23 = vpop.permute.xlu0 %1458 }
  0xfb   : > { %v1340_v22 = vadd.f32 %v1339_v16, %v1338_v55  ;;  %v1365_v28 = vrot.slane %v1322_v17, 4  ;;  %v1389_v63 = vrot.slane %v1379_v1, %v6635_v56  ;;  %v1346_v30 = vadd.f32 %v1345_v20, %v1344_v2 }
  0xfc   : > { %v1256_v47 = vrot.slane %v1242_v9, %v6635_v56  ;;  %v1350_v29 = vadd.f32 %v1349_v21, %v1348_v14  ;;  %v1356_v48 = vadd.f32 %v1355_v62, %v1354_v12  ;;  %v1360_v34 = vadd.f32 %v1359_v7, %v1321_v31  ;;  %2640 = vrot.lane.b32.xlu1 %v6749_v40, %s6427_s20 }
  0xfd   : > { %v1366_v36 = vadd.f32 %v1365_v28, %v1322_v17  ;;  %v1469_v38 = vsel %vm1468_vm6, %v1451_v41, %v6873_v0  ;;  %v1380_v24 = vcombine.low %v1340_v22, %v1346_v30  ;;  %2486 = vrot.lane.b32.xlu0 %v6803_v15, %s6426_s19  ;;  %v1470_v41 = vsel %vm1468_vm6, %v6873_v0, %v1455_v60 }
  0xfe   : > { %v1257_v37 = vcombine.low %v1249_v35, %v1256_v47  ;;  %v1351_v6 = vrot.slane %v1350_v29, 1  ;;  %v1485_v11 = vmul.f32 %v6911_v3, %v1469_v38  ;;  %v1357_v32 = vrot.slane %v1356_v48, 1  ;;  %v6918_v49 = vpop.permute.xlu1 %1464  ;;  %v1463_v52 = vpop.permute.xlu0 %1462 }
  0xff   : > { %v1361_v45 = vrot.slane %v1360_v34, 2  ;;  %v1367_v46 = vrot.slane %v1366_v36, 2  ;;  %v1396_v35 = vrot.slane %v1380_v24, %v6635_v56  ;;  %v1471_v53 = vsel %vm1468_vm6, %v1455_v60, %v1457_v5 }
 0x100   : > { %1260 = vst [vmem:[#allocation2 + $0x5] ss:$8 sm:$0xf] %v1257_v37  ;;  %1261 = vst [vmem:[#allocation2 + $0x5] ss:$8 sm:$0xf0] %v1257_v37  ;;  %v1352_v10 = vadd.f32 %v1351_v6, %v1350_v29  ;;  %v1358_v54 = vadd.f32 %v1357_v32, %v1356_v48  ;;  %v1486_v51 = vmul.f32 %v6923_v59, %v1470_v41  ;;  %2644 = vrot.lane.b32.xlu1 %v6763_v58, %s6427_s20 }
 0x101   : > { %v1493_v8 = vrot.slane %v1485_v11, 4  ;;  %v1362_v55 = vadd.f32 %v1361_v45, %v1360_v34  ;;  %v1368_v57 = vadd.f32 %v1367_v46, %v1366_v36  ;;  %v1411_v0 = vcombine.low %v1389_v63, %v1396_v35  ;;  %2642 = vrot.lane.b32.xlu0 %v6745_v33, %s6427_s20 }
 0x102   : > { %v1487_v2 = vmul.f32 %v6858_v18, %v1471_v53  ;;  %v1472_v14 = vsel %vm1468_vm6, %v1457_v5, %v1459_v23  ;;  %v1381_v60 = vcombine.low %v1352_v10, %v1358_v54  ;;  %v1499_v31 = vrot.slane %v1486_v51, 4  ;;  %v6932_v17 = vpop.permute.xlu1 %1620 }
 0x103   : > { %v1494_v61 = vadd.f32 %v1493_v8, %v1485_v11  ;;  %v1363_v16 = vrot.slane %v1362_v55, 1  ;;  %v1369_v12 = vrot.slane %v1368_v57, 1  ;;  %v1419_v9 = vrot.slane %v1411_v0, %v6635_v56  ;;  %v1467_v22 = vpop.permute.xlu0 %1466 }
 0x104   : > { %v1505_v20 = vrot.slane %v1487_v2, 4  ;;  %v1473_v21 = vsel %vm1468_vm6, %v1459_v23, %v6902_v4  ;;  %v1403_v62 = vrot.slane %v1381_v60, %v6635_v56  ;;  %v1500_v28 = vadd.f32 %v1499_v31, %v1486_v51  ;;  %2648 = vrot.lane.b32.xlu1 %v6779_v26, %s6427_s20 }
 0x105   : > { %v1495_v1 = vrot.slane %v1494_v61, 2  ;;  %v1364_v5 = vadd.f32 %v1363_v16, %v1362_v55  ;;  %v1370_v7 = vadd.f32 %v1369_v12, %v1368_v57  ;;  %v1488_v30 = vmul.f32 %v6862_v27, %v1472_v14  ;;  %2646 = vrot.lane.b32.xlu0 %v6760_v50, %s6427_s20 }
 0x106   : > { %v1506_v63 = vadd.f32 %v1505_v20, %v1487_v2  ;;  %v1489_v29 = vmul.f32 %v6876_v44, %v1473_v21  ;;  %v1501_v48 = vrot.slane %v1500_v28, 2  ;;  %v1474_v34 = vsel %vm1468_vm6, %v6902_v4, %v1463_v52  ;;  %v6948_v38 = vpop.permute.xlu1 %1624 }
 0x107   : > { %v1496_v47 = vadd.f32 %v1495_v1, %v1494_v61  ;;  %v1382_v23 = vcombine.low %v1364_v5, %v1370_v7  ;;  %v1475_v36 = vsel %vm1468_vm6, %v1463_v52, %v6918_v49  ;;  %v1511_v6 = vrot.slane %v1488_v30, 4  ;;  %v1623_v32 = vpop.permute.xlu0 %1622 }
 0x108   : > { %v1507_v24 = vrot.slane %v1506_v63, 2  ;;  %v1517_v11 = vrot.slane %v1489_v29, 4  ;;  %v1502_v46 = vadd.f32 %v1501_v48, %v1500_v28  ;;  %v1490_v41 = vmul.f32 %v6880_v42, %v1474_v34  ;;  %2652 = vrot.lane.b32.xlu1 %v6793_v43, %s6427_s20 }
 0x109   : > { %v1497_v37 = vrot.slane %v1496_v47, 1  ;;  %v1410_v45 = vrot.slane %v1382_v23, %v6635_v56  ;;  %v1491_v35 = vmul.f32 %v6891_v25, %v1475_v36  ;;  %v1512_v52 = vadd.f32 %v1511_v6, %v1488_v30  ;;  %2650 = vrot.lane.b32.xlu0 %v6775_v19, %s6427_s20 }
 0x10a   : > { %v1508_v10 = vadd.f32 %v1507_v24, %v1506_v63  ;;  %v1518_v8 = vadd.f32 %v1517_v11, %v1489_v29  ;;  %v1503_v54 = vrot.slane %v1502_v46, 1  ;;  %v1523_v55 = vrot.slane %v1490_v41, 4  ;;  %v6957_v51 = vpop.permute.xlu1 %1628 }
 0x10b   : > { %v1498_v4 = vadd.f32 %v1497_v37, %v1496_v47  ;;  %v1412_v53 = vcombine.low %v1403_v62, %v1410_v45  ;;  %v1529_v57 = vrot.slane %v1491_v35, 4  ;;  %v1513_v61 = vrot.slane %v1512_v52, 2  ;;  %v1627_v60 = vpop.permute.xlu0 %1626 }
 0x10c   : > { %v1509_v0 = vrot.slane %v1508_v10, 1  ;;  %v1519_v2 = vrot.slane %v1518_v8, 2  ;;  %v1476_v14 = vsel %vm1468_vm6, %v6918_v49, %v1467_v22  ;;  %v1504_v12 = vadd.f32 %v1503_v54, %v1502_v46  ;;  %2656 = vrot.lane.b32.xlu1 %v6803_v15, %s6427_s20 }
 0x10d   : > { %v1426_v16 = vrot.slane %v1412_v53, %v6635_v56  ;;  %v1524_v31 = vadd.f32 %v1523_v55, %v1490_v41  ;;  %v1530_v1 = vadd.f32 %v1529_v57, %v1491_v35  ;;  %v1514_v21 = vadd.f32 %v1513_v61, %v1512_v52  ;;  %2654 = vrot.lane.b32.xlu0 %v6788_v39, %s6427_s20 }
 0x10e   : > { %v1510_v20 = vadd.f32 %v1509_v0, %v1508_v10  ;;  %v1520_v62 = vadd.f32 %v1519_v2, %v1518_v8  ;;  %v1492_v5 = vmul.f32 %v6895_v13, %v1476_v14  ;;  %v1549_v28 = vcombine.low %v1498_v4, %v1504_v12  ;;  %v6967_v47 = vpop.permute.xlu1 %1632 }
 0x10f   : > { %v1427_v7 = vcombine.low %v1419_v9, %v1426_v16  ;;  %v1525_v49 = vrot.slane %v1524_v31, 2  ;;  %v1531_v22 = vrot.slane %v1530_v1, 2  ;;  %v1515_v63 = vrot.slane %v1514_v21, 1  ;;  %v1631_v48 = vpop.permute.xlu0 %1630 }
 0x110   : > { %v1521_v30 = vrot.slane %v1520_v62, 1  ;;  %v1535_v29 = vrot.slane %v1492_v5, 4  ;;  %v1639_v23 = vsel %vm1638_vm7, %v6932_v17, %v1623_v32  ;;  %v1559_v34 = vrot.slane %v1549_v28, %v6635_v56  ;;  %2812 = vrot.lane.b32.xlu1 %v6745_v33, %s6428_s23 }
 0x111   : > { %1430 = vst [vmem:[#allocation2 + $0x6] ss:$8 sm:$0xf] %v1427_v7  ;;  %1431 = vst [vmem:[#allocation2 + $0x6] ss:$8 sm:$0xf0] %v1427_v7  ;;  %v1526_v36 = vadd.f32 %v1525_v49, %v1524_v31  ;;  %v1532_v37 = vadd.f32 %v1531_v22, %v1530_v1  ;;  %v1640_v9 = vsel %vm1638_vm7, %v1623_v32, %v6948_v38  ;;  %2810 = vrot.lane.b32.xlu0 %v6749_v40, %s6428_s23 }
 0x112   : > { %v1516_v24 = vadd.f32 %v1515_v63, %v1514_v21  ;;  %v1522_v6 = vadd.f32 %v1521_v30, %v1520_v62  ;;  %v1536_v11 = vadd.f32 %v1535_v29, %v1492_v5  ;;  %v1655_v45 = vmul.f32 %v6911_v3, %v1639_v23  ;;  %v1637_v32 = vpop.permute.xlu1 %1636 }
 0x113   : > { %v1527_v17 = vrot.slane %v1526_v36, 1  ;;  %v1533_v46 = vrot.slane %v1532_v37, 1  ;;  %v1656_v41 = vmul.f32 %v6923_v59, %v1640_v9  ;;  %v1641_v35 = vsel %vm1638_vm7, %v6948_v38, %v1627_v60  ;;  %v1635_v8 = vpop.permute.xlu0 %1634 }
 0x114   : > { %v1550_v4 = vcombine.low %v1510_v20, %v1516_v24  ;;  %v1537_v10 = vrot.slane %v1536_v11, 2  ;;  %v1663_v52 = vrot.slane %v1655_v45, 4  ;;  %v1642_v33 = vsel %vm1638_vm7, %v1627_v60, %v6957_v51  ;;  %2816 = vrot.lane.b32.xlu1 %v6760_v50, %s6428_s23 }
 0x115   : > { %v1528_v53 = vadd.f32 %v1527_v17, %v1526_v36  ;;  %v1534_v54 = vadd.f32 %v1533_v46, %v1532_v37  ;;  %v1669_v55 = vrot.slane %v1656_v41, 4  ;;  %v1657_v40 = vmul.f32 %v6858_v18, %v1641_v35  ;;  %2814 = vrot.lane.b32.xlu0 %v6763_v58, %s6428_s23  ;;  %v7018_v35 = vld [vmem:[%s6491_s26] sm:$0xff] }
 0x116   : > { %v1566_v57 = vrot.slane %v1550_v4, %v6635_v56  ;;  %v1538_v0 = vadd.f32 %v1537_v10, %v1536_v11  ;;  %v1664_v38 = vadd.f32 %v1663_v52, %v1655_v45  ;;  %v1658_v61 = vmul.f32 %v6862_v27, %v1642_v33  ;;  %v6993_v12 = vpop.permute.xlu1 %1792 }
 0x117   : > { %v1551_v2 = vcombine.low %v1522_v6, %v1528_v53  ;;  %v1670_v14 = vadd.f32 %v1669_v55, %v1656_v41  ;;  %v1675_v60 = vrot.slane %v1657_v40, 4  ;;  %v1643_v16 = vsel %vm1638_vm7, %v6957_v51, %v1631_v48  ;;  %v6995_v21 = vpop.permute.xlu0 %1790 }
 0x118   : > { %v1581_v31 = vcombine.low %v1559_v34, %v1566_v57  ;;  %v1539_v1 = vrot.slane %v1538_v0, 1  ;;  %v1665_v50 = vrot.slane %v1664_v38, 2  ;;  %v1681_v20 = vrot.slane %v1658_v61, 4  ;;  %2820 = vrot.lane.b32.xlu1 %v6775_v19, %s6428_s23 }
 0x119   : > { %v1573_v62 = vrot.slane %v1551_v2, %v6635_v56  ;;  %v1671_v5 = vrot.slane %v1670_v14, 2  ;;  %v1676_v7 = vadd.f32 %v1675_v60, %v1657_v40  ;;  %v1644_v58 = vsel %vm1638_vm7, %v1631_v48, %v6967_v47  ;;  %2818 = vrot.lane.b32.xlu0 %v6779_v26, %s6428_s23 }
 0x11a   : > { %v1589_v51 = vrot.slane %v1581_v31, %v6635_v56  ;;  %v1540_v28 = vadd.f32 %v1539_v1, %v1538_v0  ;;  %v1666_v49 = vadd.f32 %v1665_v50, %v1664_v38  ;;  %v1682_v22 = vadd.f32 %v1681_v20, %v1658_v61  ;;  %v7007_v34 = vpop.permute.xlu1 %1796  ;;  %v7038_v50 = vld [vmem:[%s6491_s26 + $0x8] sm:$0xff] }
 0x11b   : > { %v1672_v63 = vadd.f32 %v1671_v5, %v1670_v14  ;;  %v1677_v30 = vrot.slane %v1676_v7, 2  ;;  %v1659_v29 = vmul.f32 %v6876_v44, %v1643_v16  ;;  %v1660_v23 = vmul.f32 %v6880_v42, %v1644_v58  ;;  %v1795_v9 = vpop.permute.xlu0 %1794  ;;  %v7032_v14 = vld [vmem:[%s6491_s26 + $0x10] sm:$0xff] }
 0x11c   : > { %v1552_v48 = vcombine.low %v1534_v54, %v1540_v28  ;;  %v1667_v36 = vrot.slane %v1666_v49, 1  ;;  %v1683_v19 = vrot.slane %v1682_v22, 2  ;;  %v1645_v37 = vsel %vm1638_vm7, %v6967_v47, %v1635_v8  ;;  %2824 = vrot.lane.b32.xlu1 %v6788_v39, %s6428_s23 }
 0x11d   : > { %v1673_v24 = vrot.slane %v1672_v63, 1  ;;  %v1678_v6 = vadd.f32 %v1677_v30, %v1676_v7  ;;  %v1687_v11 = vrot.slane %v1659_v29, 4  ;;  %v1693_v26 = vrot.slane %v1660_v23, 4  ;;  %2822 = vrot.lane.b32.xlu0 %v6793_v43, %s6428_s23 }
 0x11e   : > { %v1580_v45 = vrot.slane %v1552_v48, %v6635_v56  ;;  %v1668_v17 = vadd.f32 %v1667_v36, %v1666_v49  ;;  %v1684_v46 = vadd.f32 %v1683_v19, %v1682_v22  ;;  %v1646_v41 = vsel %vm1638_vm7, %v1635_v8, %v1637_v32  ;;  %v7020_v33 = vpop.permute.xlu1 %1800 }
 0x11f   : > { %v1674_v47 = vadd.f32 %v1673_v24, %v1672_v63  ;;  %v1679_v4 = vrot.slane %v1678_v6, 1  ;;  %v1688_v10 = vadd.f32 %v1687_v11, %v1659_v29  ;;  %v1694_v52 = vadd.f32 %v1693_v26, %v1660_v23  ;;  %v7024_v40 = vpop.permute.xlu0 %1798  ;;  %v7052_v23 = vld [vmem:[%s6491_s26 + $0x20] sm:$0xff] }
 0x120   : > { %v1582_v53 = vcombine.low %v1573_v62, %v1580_v45  ;;  %v1685_v39 = vrot.slane %v1684_v46, 1  ;;  %v1661_v54 = vmul.f32 %v6891_v25, %v1645_v37  ;;  %v1662_v55 = vmul.f32 %v6895_v13, %v1646_v41  ;;  %2980 = vrot.lane.b32.xlu1 %v7018_v35, %s6429_s24  ;;  %v7060_v37 = vld [vmem:[%s6491_s26 + $0x18] sm:$0xff] }
 0x121   : > { %v1719_v32 = vcombine.low %v1668_v17, %v1674_v47  ;;  %v1680_v8 = vadd.f32 %v1679_v4, %v1678_v6  ;;  %v1689_v43 = vrot.slane %v1688_v10, 2  ;;  %v1695_v57 = vrot.slane %v1694_v52, 2  ;;  %2826 = vrot.lane.b32.xlu0 %v6803_v15, %s6428_s23 }
 0x122   : > { %v1596_v0 = vrot.slane %v1582_v53, %v6635_v56  ;;  %v1686_v38 = vadd.f32 %v1685_v39, %v1684_v46  ;;  %v1699_v61 = vrot.slane %v1661_v54, 4  ;;  %v1705_v2 = vrot.slane %v1662_v55, 4  ;;  %v7035_v1 = vpop.permute.xlu1 %1804  ;;  %v7076_v53 = vld [vmem:[%s6491_s26 + $0x30] sm:$0xff] }
 0x123   : > { %v1729_v60 = vrot.slane %v1719_v32, %v6635_v56  ;;  %v1690_v16 = vadd.f32 %v1689_v43, %v1688_v10  ;;  %v1696_v31 = vadd.f32 %v1695_v57, %v1694_v52  ;;  %v1803_v58 = vpop.permute.xlu0 %1802  ;;  %v1809_v15 = vsel %vm1808_vm8, %v6995_v21, %v6993_v12 }
 0x124   : > { %v1597_v20 = vcombine.low %v1589_v51, %v1596_v0  ;;  %v1720_v62 = vcombine.low %v1680_v8, %v1686_v38  ;;  %v1700_v5 = vadd.f32 %v1699_v61, %v1661_v54  ;;  %v1706_v7 = vadd.f32 %v1705_v2, %v1662_v55  ;;  %2984 = vrot.lane.b32.xlu1 %v7032_v14, %s6429_s24  ;;  %v7085_v8 = vld [vmem:[%s6491_s26 + $0x28] sm:$0xff] }
 0x125   : > { %v1691_v28 = vrot.slane %v1690_v16, 1  ;;  %v1697_v49 = vrot.slane %v1696_v31, 1  ;;  %v1810_v22 = vsel %vm1808_vm8, %v6993_v12, %v1795_v9  ;;  %v1825_v29 = vmul.f32 %v6911_v3, %v1809_v15  ;;  %2982 = vrot.lane.b32.xlu0 %v7038_v50, %s6429_s24 }
 0x126   : > { %1600 = vst [vmem:[#allocation2 + $0x7] ss:$8 sm:$0xf] %v1597_v20  ;;  %1601 = vst [vmem:[#allocation2 + $0x7] ss:$8 sm:$0xf0] %v1597_v20  ;;  %v1736_v51 = vrot.slane %v1720_v62, %v6635_v56  ;;  %v1811_v12 = vsel %vm1808_vm8, %v1795_v9, %v7007_v34  ;;  %v1826_v36 = vmul.f32 %v6923_v59, %v1810_v22  ;;  %v7057_v19 = vpop.permute.xlu1 %1960 }
 0x127   : > { %v1701_v63 = vrot.slane %v1700_v5, 2  ;;  %v1707_v30 = vrot.slane %v1706_v7, 2  ;;  %v1692_v21 = vadd.f32 %v1691_v28, %v1690_v16  ;;  %v1698_v48 = vadd.f32 %v1697_v49, %v1696_v31  ;;  %v7062_v45 = vpop.permute.xlu0 %1806 }
 0x128   : > { %v1751_v24 = vcombine.low %v1729_v60, %v1736_v51  ;;  %v1833_v26 = vrot.slane %v1825_v29, 4  ;;  %v1827_v46 = vmul.f32 %v6858_v18, %v1811_v12  ;;  %v1839_v41 = vrot.slane %v1826_v36, 4  ;;  %2988 = vrot.lane.b32.xlu1 %v7052_v23, %s6429_s24  ;;  %v7106_v51 = vld [vmem:[%s6491_s26 + $0x38] sm:$0xff] }
 0x129   : > { %v1702_v6 = vadd.f32 %v1701_v63, %v1700_v5  ;;  %v1708_v11 = vadd.f32 %v1707_v30, %v1706_v7  ;;  %v1721_v17 = vcombine.low %v1692_v21, %v1698_v48  ;;  %v1812_v9 = vsel %vm1808_vm8, %v7007_v34, %v7024_v40  ;;  %2986 = vrot.lane.b32.xlu0 %v7060_v37, %s6429_s24  ;;  %v7100_v7 = vld [vmem:[%s6491_s26 + $0x40] sm:$0xff] }
 0x12a   : > { %v7071_v47 = vrot.slane %v1751_v24, %v6635_v56  ;;  %v1834_v52 = vadd.f32 %v1833_v26, %v1825_v29  ;;  %v1840_v54 = vadd.f32 %v1839_v41, %v1826_v36  ;;  %v1845_v55 = vrot.slane %v1827_v46, 4  ;;  %v7082_v32 = vpop.permute.xlu1 %1964 }
 0x12b   : > { %v1703_v4 = vrot.slane %v1702_v6, 1  ;;  %v1709_v10 = vrot.slane %v1708_v11, 1  ;;  %v1743_v39 = vrot.slane %v1721_v17, %v6635_v56  ;;  %v1813_v34 = vsel %vm1808_vm8, %v7024_v40, %v7020_v33  ;;  %v7088_v61 = vpop.permute.xlu0 %1962 }
 0x12c   : > { %v1835_v0 = vrot.slane %v1834_v52, 2  ;;  %v1828_v38 = vmul.f32 %v6862_v27, %v1812_v9  ;;  %v1841_v2 = vrot.slane %v1840_v54, 2  ;;  %v1846_v60 = vadd.f32 %v1845_v55, %v1827_v46  ;;  %2992 = vrot.lane.b32.xlu1 %v7076_v53, %s6429_s24 }
 0x12d   : > { %v1704_v43 = vadd.f32 %v1703_v4, %v1702_v6  ;;  %v1710_v57 = vadd.f32 %v1709_v10, %v1708_v11  ;;  %v1829_v16 = vmul.f32 %v6876_v44, %v1813_v34  ;;  %v1814_v40 = vsel %vm1808_vm8, %v7020_v33, %v1803_v58  ;;  %2990 = vrot.lane.b32.xlu0 %v7085_v8, %s6429_s24 }
 0x12e   : > { %v1836_v20 = vadd.f32 %v1835_v0, %v1834_v52  ;;  %v1851_v62 = vrot.slane %v1828_v38, 4  ;;  %v1815_v5 = vsel %vm1808_vm8, %v1803_v58, %v7035_v1  ;;  %v1842_v28 = vadd.f32 %v1841_v2, %v1840_v54  ;;  %v7103_v33 = vpop.permute.xlu1 %1968 }
 0x12f   : > { %v1722_v31 = vcombine.low %v1704_v43, %v1710_v57  ;;  %v1847_v49 = vrot.slane %v1846_v60, 2  ;;  %v1857_v15 = vrot.slane %v1829_v16, 4  ;;  %v1830_v22 = vmul.f32 %v6880_v42, %v1814_v40  ;;  %v1967_v21 = vpop.permute.xlu0 %1966 }
 0x130   : > { %v1837_v30 = vrot.slane %v1836_v20, 1  ;;  %v1852_v29 = vadd.f32 %v1851_v62, %v1828_v38  ;;  %v1831_v58 = vmul.f32 %v6891_v25, %v1815_v5  ;;  %v1843_v48 = vrot.slane %v1842_v28, 1  ;;  %2996 = vrot.lane.b32.xlu1 %v7100_v7, %s6429_s24 }
 0x131   : > { %v1750_v63 = vrot.slane %v1722_v31, %v6635_v56  ;;  %v1848_v12 = vadd.f32 %v1847_v49, %v1846_v60  ;;  %v1858_v36 = vadd.f32 %v1857_v15, %v1829_v16  ;;  %v1863_v24 = vrot.slane %v1830_v22, 4  ;;  %2994 = vrot.lane.b32.xlu0 %v7106_v51, %s6429_s24 }
 0x132   : > { %v1838_v11 = vadd.f32 %v1837_v30, %v1836_v20  ;;  %v1853_v26 = vrot.slane %v1852_v29, 2  ;;  %v1869_v17 = vrot.slane %v1831_v58, 4  ;;  %v1844_v46 = vadd.f32 %v1843_v48, %v1842_v28  ;;  %v7114_v10 = vpop.permute.xlu1 %1972 }
 0x133   : > { %v1752_v6 = vcombine.low %v1743_v39, %v1750_v63  ;;  %v1849_v41 = vrot.slane %v1848_v12, 1  ;;  %v1859_v9 = vrot.slane %v1858_v36, 2  ;;  %v1864_v4 = vadd.f32 %v1863_v24, %v1830_v22  ;;  %v7120_v34 = vpop.permute.xlu0 %1970 }
 0x134   : > { %v1854_v54 = vadd.f32 %v1853_v26, %v1852_v29  ;;  %v1870_v55 = vadd.f32 %v1869_v17, %v1831_v58  ;;  %v1816_v39 = vsel %vm1808_vm8, %v7035_v1, %v7062_v45  ;;  %v1889_v57 = vcombine.low %v1838_v11, %v1844_v46  ;;  %3152 = vrot.lane.b32.xlu1 %v7038_v50, %s6430_s25 }
 0x135   : > { %v1766_v52 = vrot.slane %v1752_v6, %v6635_v56  ;;  %v1850_v43 = vadd.f32 %v1849_v41, %v1848_v12  ;;  %v1860_v0 = vadd.f32 %v1859_v9, %v1858_v36  ;;  %v1865_v38 = vrot.slane %v1864_v4, 2  ;;  %3150 = vrot.lane.b32.xlu0 %v7018_v35, %s6430_s25 }
 0x136   : > { %v1855_v60 = vrot.slane %v1854_v54, 1  ;;  %v1871_v16 = vrot.slane %v1870_v55, 2  ;;  %v1832_v40 = vmul.f32 %v6895_v13, %v1816_v39  ;;  %v1899_v1 = vrot.slane %v1889_v57, %v6635_v56  ;;  %v7129_v20 = vpop.permute.xlu1 %1976 }
 0x137   : > { %v1767_v2 = vcombine.low %v7071_v47, %v1766_v52  ;;  %v1861_v45 = vrot.slane %v1860_v0, 1  ;;  %v1866_v31 = vadd.f32 %v1865_v38, %v1864_v4  ;;  %v1979_v47 = vsel %vm1978_vm9, %v7057_v19, %v7088_v61  ;;  %v1975_v49 = vpop.permute.xlu0 %1974 }
 0x138   : > { %v1856_v62 = vadd.f32 %v1855_v60, %v1854_v54  ;;  %v1872_v5 = vadd.f32 %v1871_v16, %v1870_v55  ;;  %v1875_v28 = vrot.slane %v1832_v40, 4  ;;  %v1980_v35 = vsel %vm1978_vm9, %v7088_v61, %v7082_v32  ;;  %3156 = vrot.lane.b32.xlu1 %v7060_v37, %s6430_s25 }
 0x139   : > { %1770 = vst [vmem:[#allocation2 + $0x40] ss:$8 sm:$0xf] %v1767_v2  ;;  %1771 = vst [vmem:[#allocation2 + $0x40] ss:$8 sm:$0xf0] %v1767_v2  ;;  %v1862_v15 = vadd.f32 %v1861_v45, %v1860_v0  ;;  %v1995_v63 = vmul.f32 %v6911_v3, %v1979_v47  ;;  %v1996_v48 = vmul.f32 %v6923_v59, %v1980_v35  ;;  %3154 = vrot.lane.b32.xlu0 %v7032_v14, %s6430_s25 }
 0x13a   : > { %v1867_v22 = vrot.slane %v1866_v31, 1  ;;  %v1890_v30 = vcombine.low %v1850_v43, %v1856_v62  ;;  %v1873_v29 = vrot.slane %v1872_v5, 1  ;;  %v1876_v58 = vadd.f32 %v1875_v28, %v1832_v40  ;;  %v7147_v24 = vpop.permute.xlu1 %2132 }
 0x13b   : > { %v2003_v12 = vrot.slane %v1995_v63, 4  ;;  %v1981_v36 = vsel %vm1978_vm9, %v7082_v32, %v1967_v21  ;;  %v1982_v61 = vsel %vm1978_vm9, %v1967_v21, %v7103_v33  ;;  %v2009_v17 = vrot.slane %v1996_v48, 4  ;;  %v7150_v46 = vpop.permute.xlu0 %2130 }
 0x13c   : > { %v1868_v19 = vadd.f32 %v1867_v22, %v1866_v31  ;;  %v1906_v6 = vrot.slane %v1890_v30, %v6635_v56  ;;  %v1874_v11 = vadd.f32 %v1873_v29, %v1872_v5  ;;  %v1877_v26 = vrot.slane %v1876_v58, 2  ;;  %3160 = vrot.lane.b32.xlu1 %v7085_v8, %s6430_s25 }
 0x13d   : > { %v2004_v9 = vadd.f32 %v2003_v12, %v1995_v63  ;;  %v1997_v4 = vmul.f32 %v6858_v18, %v1981_v36  ;;  %v1998_v52 = vmul.f32 %v6862_v27, %v1982_v61  ;;  %v2010_v54 = vadd.f32 %v2009_v17, %v1996_v48  ;;  %3158 = vrot.lane.b32.xlu0 %v7052_v23, %s6430_s25 }
 0x13e   : > { %v1891_v41 = vcombine.low %v1862_v15, %v1868_v19  ;;  %v1921_v32 = vcombine.low %v1899_v1, %v1906_v6  ;;  %v1878_v21 = vadd.f32 %v1877_v26, %v1876_v58  ;;  %v1983_v55 = vsel %vm1978_vm9, %v7103_v33, %v7120_v34  ;;  %v7162_v38 = vpop.permute.xlu1 %2136 }
 0x13f   : > { %v2005_v43 = vrot.slane %v2004_v9, 2  ;;  %v2015_v57 = vrot.slane %v1997_v4, 4  ;;  %v2021_v0 = vrot.slane %v1998_v52, 4  ;;  %v2011_v60 = vrot.slane %v2010_v54, 2  ;;  %v7168_v40 = vpop.permute.xlu0 %2134 }
 0x140   : > { %v1913_v39 = vrot.slane %v1891_v41, %v6635_v56  ;;  %v1929_v27 = vrot.slane %v1921_v32, %v6635_v56  ;;  %v1879_v2 = vrot.slane %v1878_v21, 1  ;;  %v1984_v16 = vsel %vm1978_vm9, %v7120_v34, %v7114_v10  ;;  %3164 = vrot.lane.b32.xlu1 %v7106_v51, %s6430_s25 }
 0x141   : > { %v2006_v33 = vadd.f32 %v2005_v43, %v2004_v9  ;;  %v2016_v1 = vadd.f32 %v2015_v57, %v1997_v4  ;;  %v2022_v45 = vadd.f32 %v2021_v0, %v1998_v52  ;;  %v1999_v31 = vmul.f32 %v6876_v44, %v1983_v55  ;;  %3162 = vrot.lane.b32.xlu0 %v7076_v53, %s6430_s25 }
 0x142   : > { %v1880_v62 = vadd.f32 %v1879_v2, %v1878_v21  ;;  %v2012_v5 = vadd.f32 %v2011_v60, %v2010_v54  ;;  %v2000_v28 = vmul.f32 %v6880_v42, %v1984_v16  ;;  %v1985_v47 = vsel %vm1978_vm9, %v7114_v10, %v1975_v49  ;;  %v7178_v63 = vpop.permute.xlu1 %2140 }
 0x143   : > { %v2007_v34 = vrot.slane %v2006_v33, 1  ;;  %v2017_v15 = vrot.slane %v2016_v1, 2  ;;  %v2023_v22 = vrot.slane %v2022_v45, 2  ;;  %v2027_v35 = vrot.slane %v1999_v31, 4  ;;  %v7182_v19 = vpop.permute.xlu0 %2138 }
 0x144   : > { %v1892_v30 = vcombine.low %v1874_v11, %v1880_v62  ;;  %v2013_v29 = vrot.slane %v2012_v5, 1  ;;  %v2033_v58 = vrot.slane %v2000_v28, 4  ;;  %v1986_v48 = vsel %vm1978_vm9, %v1975_v49, %v7129_v20  ;;  %3320 = vrot.lane.b32.xlu1 %v7038_v50, %s6431_s27 }
 0x145   : > { %v2008_v12 = vadd.f32 %v2007_v34, %v2006_v33  ;;  %v2018_v36 = vadd.f32 %v2017_v15, %v2016_v1  ;;  %v2024_v10 = vadd.f32 %v2023_v22, %v2022_v45  ;;  %v2028_v61 = vadd.f32 %v2027_v35, %v1999_v31  ;;  %3166 = vrot.lane.b32.xlu0 %v7100_v7, %s6430_s25 }
 0x146   : > { %v1920_v6 = vrot.slane %v1892_v30, %v6635_v56  ;;  %v2014_v26 = vadd.f32 %v2013_v29, %v2012_v5  ;;  %v2034_v17 = vadd.f32 %v2033_v58, %v2000_v28  ;;  %v2001_v11 = vmul.f32 %v6891_v25, %v1985_v47  ;;  %v7191_v4 = vpop.permute.xlu1 %2144 }
 0x147   : > { %v2019_v20 = vrot.slane %v2018_v36, 1  ;;  %v2025_v49 = vrot.slane %v2024_v10, 1  ;;  %v2029_v41 = vrot.slane %v2028_v61, 2  ;;  %v2002_v9 = vmul.f32 %v6895_v13, %v1986_v48  ;;  %v7193_v55 = vpop.permute.xlu0 %2142 }
 0x148   : > { %v1922_v52 = vcombine.low %v1913_v39, %v1920_v6  ;;  %v2059_v32 = vcombine.low %v2008_v12, %v2014_v26  ;;  %v2035_v21 = vrot.slane %v2034_v17, 2  ;;  %v2039_v54 = vrot.slane %v2001_v11, 4  ;;  %3324 = vrot.lane.b32.xlu1 %v7060_v37, %s6431_s27 }
 0x149   : > { %v2020_v43 = vadd.f32 %v2019_v20, %v2018_v36  ;;  %v2026_v57 = vadd.f32 %v2025_v49, %v2024_v10  ;;  %v2030_v0 = vadd.f32 %v2029_v41, %v2028_v61  ;;  %v2045_v2 = vrot.slane %v2002_v9, 4  ;;  %3322 = vrot.lane.b32.xlu0 %v7032_v14, %s6431_s27 }
 0x14a   : > { %v1936_v60 = vrot.slane %v1922_v52, %v6635_v56  ;;  %v2069_v16 = vrot.slane %v2059_v32, %v6635_v56  ;;  %v2036_v13 = vadd.f32 %v2035_v21, %v2034_v17  ;;  %v2040_v33 = vadd.f32 %v2039_v54, %v2001_v11  ;;  %v7201_v31 = vpop.permute.xlu1 %2300  ;;  %v7241_v52 = vld [vmem:[%s6491_s26 + $0x48] sm:$0xff] }
 0x14b   : > { %v2060_v39 = vcombine.low %v2020_v43, %v2026_v57  ;;  %v2031_v1 = vrot.slane %v2030_v0, 1  ;;  %v2046_v45 = vadd.f32 %v2045_v2, %v2002_v9  ;;  %v2149_v47 = vsel %vm2148_vm10, %v7150_v46, %v7147_v24  ;;  %v7206_v34 = vpop.permute.xlu0 %2146  ;;  %v7244_v43 = vld [vmem:[%s6586_s13 + $0x18] sm:$0xff] }
 0x14c   : > { %v1937_v62 = vcombine.low %v1929_v27, %v1936_v60  ;;  %v2037_v5 = vrot.slane %v2036_v13, 1  ;;  %v2041_v28 = vrot.slane %v2040_v33, 2  ;;  %v2165_v30 = vmul.f32 %v6911_v3, %v2149_v47  ;;  %3328 = vrot.lane.b32.xlu1 %v7085_v8, %s6431_s27 }
 0x14d   : > { %v2076_v15 = vrot.slane %v2060_v39, %v6635_v56  ;;  %v2032_v22 = vadd.f32 %v2031_v1, %v2030_v0  ;;  %v2047_v35 = vrot.slane %v2046_v45, 2  ;;  %v2150_v58 = vsel %vm2148_vm10, %v7147_v24, %v7168_v40  ;;  %3326 = vrot.lane.b32.xlu0 %v7052_v23, %s6431_s27 }
 0x14e   : > { %1940 = vst [vmem:[#allocation2 + $0x41] ss:$8 sm:$0xf] %v1937_v62  ;;  %1941 = vst [vmem:[#allocation2 + $0x41] ss:$8 sm:$0xf0] %v1937_v62  ;;  %v2038_v27 = vadd.f32 %v2037_v5, %v2036_v13  ;;  %v2042_v29 = vadd.f32 %v2041_v28, %v2040_v33  ;;  %v2151_v46 = vsel %vm2148_vm10, %v7168_v40, %v7162_v38  ;;  %v7221_v10 = vpop.permute.xlu1 %2304 }
 0x14f   : > { %v2091_v48 = vcombine.low %v2069_v16, %v2076_v15  ;;  %v2048_v3 = vadd.f32 %v2047_v35, %v2046_v45  ;;  %v2173_v12 = vrot.slane %v2165_v30, 4  ;;  %v2166_v36 = vmul.f32 %v6923_v59, %v2150_v58  ;;  %v7227_v40 = vpop.permute.xlu0 %2302 }
 0x150   : > { %v2061_v61 = vcombine.low %v2032_v22, %v2038_v27  ;;  %v2043_v6 = vrot.slane %v2042_v29, 1  ;;  %v2167_v26 = vmul.f32 %v6858_v18, %v2151_v46  ;;  %v2152_v24 = vsel %vm2148_vm10, %v7162_v38, %v7182_v19  ;;  %3332 = vrot.lane.b32.xlu1 %v7106_v51, %s6431_s27 }
 0x151   : > { %v7230_v17 = vrot.slane %v2091_v48, %v6635_v56  ;;  %v2049_v11 = vrot.slane %v2048_v3, 1  ;;  %v2174_v20 = vadd.f32 %v2173_v12, %v2165_v30  ;;  %v2179_v49 = vrot.slane %v2166_v36, 4  ;;  %3330 = vrot.lane.b32.xlu0 %v7076_v53, %s6431_s27 }
 0x152   : > { %v2083_v41 = vrot.slane %v2061_v61, %v6635_v56  ;;  %v2044_v9 = vadd.f32 %v2043_v6, %v2042_v29  ;;  %v2185_v18 = vrot.slane %v2167_v26, 4  ;;  %v2153_v38 = vsel %vm2148_vm10, %v7182_v19, %v7178_v63  ;;  %v7247_v0 = vpop.permute.xlu1 %2308 }
 0x153   : > { %v2050_v32 = vadd.f32 %v2049_v11, %v2048_v3  ;;  %v2175_v21 = vrot.slane %v2174_v20, 2  ;;  %v2180_v54 = vadd.f32 %v2179_v49, %v2166_v36  ;;  %v2168_v57 = vmul.f32 %v7244_v43, %v2152_v24  ;;  %v7256_v13 = vpop.permute.xlu0 %2306 }
 0x154   : > { %v2186_v2 = vadd.f32 %v2185_v18, %v2167_v26  ;;  %v2169_v60 = vmul.f32 %v6876_v44, %v2153_v38  ;;  %v2154_v19 = vsel %vm2148_vm10, %v7178_v63, %v7193_v55  ;;  %v2155_v16 = vsel %vm2148_vm10, %v7193_v55, %v7191_v4  ;;  %3336 = vrot.lane.b32.xlu1 %v7241_v52, %s6431_s27 }
 0x155   : > { %v2062_v33 = vcombine.low %v2044_v9, %v2050_v32  ;;  %v2176_v39 = vadd.f32 %v2175_v21, %v2174_v20  ;;  %v2181_v1 = vrot.slane %v2180_v54, 2  ;;  %v2191_v45 = vrot.slane %v2168_v57, 4  ;;  %3334 = vrot.lane.b32.xlu0 %v7100_v7, %s6431_s27 }
 0x156   : > { %v2187_v62 = vrot.slane %v2186_v2, 2  ;;  %v2197_v5 = vrot.slane %v2169_v60, 4  ;;  %v2170_v44 = vmul.f32 %v6880_v42, %v2154_v19  ;;  %v2171_v28 = vmul.f32 %v6891_v25, %v2155_v16  ;;  %v7265_v22 = vpop.permute.xlu1 %2312 }
 0x157   : > { %v2090_v63 = vrot.slane %v2062_v33, %v6635_v56  ;;  %v2177_v55 = vrot.slane %v2176_v39, 1  ;;  %v2182_v47 = vadd.f32 %v2181_v1, %v2180_v54  ;;  %v2192_v15 = vadd.f32 %v2191_v45, %v2168_v57  ;;  %v7267_v58 = vpop.permute.xlu0 %2310  ;;  %v7283_v57 = vld [vmem:[%s6586_s13 + $0x38] sm:$0xff] }
 0x158   : > { %v2188_v35 = vadd.f32 %v2187_v62, %v2186_v2  ;;  %v2198_v30 = vadd.f32 %v2197_v5, %v2169_v60  ;;  %v2203_v27 = vrot.slane %v2170_v44, 4  ;;  %v2209_v29 = vrot.slane %v2171_v28, 4  ;;  %3492 = vrot.lane.b32.xlu1 %v7032_v14, %s6432_s28 }
 0x159   : > { %v2092_v46 = vcombine.low %v2083_v41, %v2090_v63  ;;  %v2178_v42 = vadd.f32 %v2177_v55, %v2176_v39  ;;  %v2183_v48 = vrot.slane %v2182_v47, 1  ;;  %v2193_v25 = vrot.slane %v2192_v15, 2  ;;  %3490 = vrot.lane.b32.xlu0 %v7038_v50, %s6432_s28  ;;  %v7302_v55 = vld [vmem:[%s6586_s13] sm:$0xff] }
 0x15a   : > { %v2189_v3 = vrot.slane %v2188_v35, 1  ;;  %v2199_v12 = vrot.slane %v2198_v30, 2  ;;  %v2204_v36 = vadd.f32 %v2203_v27, %v2170_v44  ;;  %v2210_v61 = vadd.f32 %v2209_v29, %v2171_v28  ;;  %v7277_v20 = vpop.permute.xlu1 %2316 }
 0x15b   : > { %v2106_v6 = vrot.slane %v2092_v46, %v6635_v56  ;;  %v2184_v26 = vadd.f32 %v2183_v48, %v2182_v47  ;;  %v2194_v24 = vadd.f32 %v2193_v25, %v2192_v15  ;;  %v2156_v11 = vsel %vm2148_vm10, %v7191_v4, %v7206_v34  ;;  %v7279_v38 = vpop.permute.xlu0 %2314  ;;  %v7320_v25 = vld [vmem:[%s6586_s13 + $0x10] sm:$0xff] }
 0x15c   : > { %v2190_v49 = vadd.f32 %v2189_v3, %v2188_v35  ;;  %v2200_v41 = vadd.f32 %v2199_v12, %v2198_v30  ;;  %v2205_v9 = vrot.slane %v2204_v36, 2  ;;  %v2211_v18 = vrot.slane %v2210_v61, 2  ;;  %3496 = vrot.lane.b32.xlu1 %v7052_v23, %s6432_s28 }
 0x15d   : > { %v2107_v32 = vcombine.low %v7230_v17, %v2106_v6  ;;  %v2229_v21 = vcombine.low %v2178_v42, %v2184_v26  ;;  %v2195_v54 = vrot.slane %v2194_v24, 1  ;;  %v2172_v2 = vmul.f32 %v7283_v57, %v2156_v11  ;;  %3494 = vrot.lane.b32.xlu0 %v7060_v37, %s6432_s28 }
 0x15e   : > { %v2201_v4 = vrot.slane %v2200_v41, 1  ;;  %v2206_v34 = vadd.f32 %v2205_v9, %v2204_v36  ;;  %v2212_v60 = vadd.f32 %v2211_v18, %v2210_v61  ;;  %v2319_v33 = vsel %vm2318_vm11, %v7201_v31, %v7227_v40  ;;  %v7294_v39 = vpop.permute.xlu1 %2472 }
 0x15f   : > { %2110 = vst [vmem:[#allocation2 + $0x42] ss:$8 sm:$0xf] %v2107_v32  ;;  %2111 = vst [vmem:[#allocation2 + $0x42] ss:$8 sm:$0xf0] %v2107_v32  ;;  %v2239_v17 = vrot.slane %v2229_v21, %v6635_v56  ;;  %v2196_v19 = vadd.f32 %v2195_v54, %v2194_v24  ;;  %v2320_v5 = vsel %vm2318_vm11, %v7227_v40, %v7221_v10  ;;  %v7299_v44 = vpop.permute.xlu0 %2470 }
 0x160   : > { %v2215_v16 = vrot.slane %v2172_v2, 4  ;;  %v2202_v1 = vadd.f32 %v2201_v4, %v2200_v41  ;;  %v2207_v45 = vrot.slane %v2206_v34, 1  ;;  %v2213_v62 = vrot.slane %v2212_v60, 1  ;;  %3500 = vrot.lane.b32.xlu1 %v7076_v53, %s6432_s28  ;;  %v7343_v4 = vld [vmem:[%s6586_s13 + $0x20] sm:$0xff] }
 0x161   : > { %v2230_v28 = vcombine.low %v2190_v49, %v2196_v19  ;;  %v2335_v47 = vmul.f32 %v7302_v55, %v2319_v33  ;;  %v2336_v31 = vmul.f32 %v6923_v59, %v2320_v5  ;;  %v2321_v40 = vsel %vm2318_vm11, %v7221_v10, %v7256_v13  ;;  %3498 = vrot.lane.b32.xlu0 %v7085_v8, %s6432_s28 }
 0x162   : > { %v2216_v63 = vadd.f32 %v2215_v16, %v2172_v2  ;;  %v2208_v15 = vadd.f32 %v2207_v45, %v2206_v34  ;;  %v2214_v35 = vadd.f32 %v2213_v62, %v2212_v60  ;;  %v2322_v30 = vsel %vm2318_vm11, %v7256_v13, %v7247_v0  ;;  %v7317_v42 = vpop.permute.xlu1 %2476  ;;  %v7347_v60 = vld [vmem:[%s6586_s13 + $0x28] sm:$0xff] }
 0x163   : > { %v2246_v27 = vrot.slane %v2230_v28, %v6635_v56  ;;  %v2343_v59 = vrot.slane %v2335_v47, 4  ;;  %v2349_v46 = vrot.slane %v2336_v31, 4  ;;  %v2337_v3 = vmul.f32 %v7320_v25, %v2321_v40  ;;  %v7327_v12 = vpop.permute.xlu0 %2474 }
 0x164   : > { %v2217_v29 = vrot.slane %v2216_v63, 2  ;;  %v2231_v48 = vcombine.low %v2202_v1, %v2208_v15  ;;  %v2338_v10 = vmul.f32 %v7244_v43, %v2322_v30  ;;  %v2323_v13 = vsel %vm2318_vm11, %v7247_v0, %v7267_v58  ;;  %3504 = vrot.lane.b32.xlu1 %v7100_v7, %s6432_s28 }
 0x165   : > { %v2261_v36 = vcombine.low %v2239_v17, %v2246_v27  ;;  %v2344_v6 = vadd.f32 %v2343_v59, %v2335_v47  ;;  %v2350_v26 = vadd.f32 %v2349_v46, %v2336_v31  ;;  %v2355_v11 = vrot.slane %v2337_v3, 4  ;;  %3502 = vrot.lane.b32.xlu0 %v7106_v51, %s6432_s28 }
 0x166   : > { %v2218_v61 = vadd.f32 %v2217_v29, %v2216_v63  ;;  %v2253_v24 = vrot.slane %v2231_v48, %v6635_v56  ;;  %v2361_v49 = vrot.slane %v2338_v10, 4  ;;  %v2324_v41 = vsel %vm2318_vm11, %v7267_v58, %v7265_v22  ;;  %v7340_v21 = vpop.permute.xlu1 %2480 }
 0x167   : > { %v7338_v0 = vrot.slane %v2261_v36, %v6635_v56  ;;  %v2345_v18 = vrot.slane %v2344_v6, 2  ;;  %v2351_v32 = vrot.slane %v2350_v26, 2  ;;  %v2356_v54 = vadd.f32 %v2355_v11, %v2337_v3  ;;  %v7350_v17 = vpop.permute.xlu0 %2478  ;;  %v7368_v3 = vld [vmem:[%s6586_s13 + $0x30] sm:$0xff] }
 0x168   : > { %v2219_v9 = vrot.slane %v2218_v61, 1  ;;  %v2362_v2 = vadd.f32 %v2361_v49, %v2338_v10  ;;  %v2339_v34 = vmul.f32 %v7343_v4, %v2323_v13  ;;  %v2340_v58 = vmul.f32 %v7347_v60, %v2324_v41  ;;  %3660 = vrot.lane.b32.xlu1 %v7038_v50, %s6433_s29 }
 0x169   : > { %v2346_v16 = vadd.f32 %v2345_v18, %v2344_v6  ;;  %v2352_v33 = vadd.f32 %v2351_v32, %v2350_v26  ;;  %v2325_v1 = vsel %vm2318_vm11, %v7265_v22, %v7279_v38  ;;  %v2357_v45 = vrot.slane %v2356_v54, 2  ;;  %3506 = vrot.lane.b32.xlu0 %v7241_v52, %s6432_s28  ;;  %s6204_s28 = sshll.u32 %s8880_s22, 5 }
 0x16a   : > { %v2220_v19 = vadd.f32 %v2219_v9, %v2218_v61  ;;  %v2363_v62 = vrot.slane %v2362_v2, 2  ;;  %v2367_v5 = vrot.slane %v2339_v34, 4  ;;  %v2373_v28 = vrot.slane %v2340_v58, 4  ;;  %v7362_v22 = vpop.permute.xlu1 %2484 }
 0x16b   : > { %v2347_v47 = vrot.slane %v2346_v16, 1  ;;  %v2353_v31 = vrot.slane %v2352_v33, 1  ;;  %v2326_v15 = vsel %vm2318_vm11, %v7279_v38, %v7277_v20  ;;  %v2358_v40 = vadd.f32 %v2357_v45, %v2356_v54  ;;  %v7364_v29 = vpop.permute.xlu0 %2482 }
 0x16c   : > { %v2232_v63 = vcombine.low %v2214_v35, %v2220_v19  ;;  %v2364_v30 = vadd.f32 %v2363_v62, %v2362_v2  ;;  %v2368_v50 = vadd.f32 %v2367_v5, %v2339_v34  ;;  %v2374_v27 = vadd.f32 %v2373_v28, %v2340_v58  ;;  %3664 = vrot.lane.b32.xlu1 %v7060_v37, %s6433_s29 }
 0x16d   : > { %v2348_v46 = vadd.f32 %v2347_v47, %v2346_v16  ;;  %v2354_v48 = vadd.f32 %v2353_v31, %v2352_v33  ;;  %v2341_v35 = vmul.f32 %v7368_v3, %v2325_v1  ;;  %v2359_v20 = vrot.slane %v2358_v40, 1  ;;  %3662 = vrot.lane.b32.xlu0 %v7032_v14, %s6433_s29 }
 0x16e   : > { %v2260_v59 = vrot.slane %v2232_v63, %v6635_v56  ;;  %v2365_v38 = vrot.slane %v2364_v30, 1  ;;  %v2369_v10 = vrot.slane %v2368_v50, 2  ;;  %v2375_v13 = vrot.slane %v2374_v27, 2  ;;  %v7376_v11 = vpop.permute.xlu1 %2640 }
 0x16f   : > { %v2399_v61 = vcombine.low %v2348_v46, %v2354_v48  ;;  %v2342_v6 = vmul.f32 %v7283_v57, %v2326_v15  ;;  %v2379_v26 = vrot.slane %v2341_v35, 4  ;;  %v2360_v49 = vadd.f32 %v2359_v20, %v2358_v40  ;;  %v7378_v32 = vpop.permute.xlu0 %2486 }
 0x170   : > { %v2262_v36 = vcombine.low %v2253_v24, %v2260_v59  ;;  %v2366_v41 = vadd.f32 %v2365_v38, %v2364_v30  ;;  %v2370_v9 = vadd.f32 %v2369_v10, %v2368_v50  ;;  %v2376_v18 = vadd.f32 %v2375_v13, %v2374_v27  ;;  %3668 = vrot.lane.b32.xlu1 %v7085_v8, %s6433_s29  ;;  %v7405_v30 = vld [vmem:[%s6586_s13 + $0x8] sm:$0xff] }
 0x171   : > { %v2409_v54 = vrot.slane %v2399_v61, %v6635_v56  ;;  %v2380_v2 = vadd.f32 %v2379_v26, %v2341_v35  ;;  %v2385_v34 = vrot.slane %v2342_v6, 4  ;;  %3666 = vrot.lane.b32.xlu0 %v7052_v23, %s6433_s29  ;;  %v2489_v1 = vsel %vm2488_vm12, %v7299_v44, %v7294_v39 }
 0x172   : > { %v2276_v37 = vrot.slane %v2262_v36, %v6635_v56  ;;  %v2400_v14 = vcombine.low %v2360_v49, %v2366_v41  ;;  %v2371_v24 = vrot.slane %v2370_v9, 1  ;;  %v2377_v58 = vrot.slane %v2376_v18, 1  ;;  %v7390_v45 = vpop.permute.xlu1 %2644  ;;  %v7432_v49 = vld [vmem:[%s6491_s26 + $0x10] sm:$0xff] }
 0x173   : > { %v2381_v16 = vrot.slane %v2380_v2, 2  ;;  %v2386_v33 = vadd.f32 %v2385_v34, %v2342_v6  ;;  %v2505_v28 = vmul.f32 %v7302_v55, %v2489_v1  ;;  %v7394_v63 = vpop.permute.xlu0 %2642  ;;  %v2490_v47 = vsel %vm2488_vm12, %v7294_v39, %v7327_v12 }
 0x174   : > { %v2277_v19 = vcombine.low %v7338_v0, %v2276_v37  ;;  %v2416_v8 = vrot.slane %v2400_v14, %v6635_v56  ;;  %v2372_v62 = vadd.f32 %v2371_v24, %v2370_v9  ;;  %v2378_v5 = vadd.f32 %v2377_v58, %v2376_v18  ;;  %3672 = vrot.lane.b32.xlu1 %v7106_v51, %s6433_s29 }
 0x175   : > { %v2382_v23 = vadd.f32 %v2381_v16, %v2380_v2  ;;  %v2387_v0 = vrot.slane %v2386_v33, 2  ;;  %v2491_v44 = vsel %vm2488_vm12, %v7327_v12, %v7317_v42  ;;  %v2513_v40 = vrot.slane %v2505_v28, 4  ;;  %3670 = vrot.lane.b32.xlu0 %v7076_v53, %s6433_s29 }
 0x176   : > { %2280 = vst [vmem:[#allocation2 + $0x43] ss:$8 sm:$0xf] %v2277_v19  ;;  %2281 = vst [vmem:[#allocation2 + $0x43] ss:$8 sm:$0xf0] %v2277_v19  ;;  %v2431_v31 = vcombine.low %v2409_v54, %v2416_v8  ;;  %v2401_v15 = vcombine.low %v2372_v62, %v2378_v5  ;;  %v2506_v50 = vmul.f32 %v7405_v30, %v2490_v47  ;;  %v7414_v46 = vpop.permute.xlu1 %2648 }
 0x177   : > { %v2383_v27 = vrot.slane %v2382_v23, 1  ;;  %v2388_v59 = vadd.f32 %v2387_v0, %v2386_v33  ;;  %v2507_v39 = vmul.f32 %v7320_v25, %v2491_v44  ;;  %v2492_v12 = vsel %vm2488_vm12, %v7317_v42, %v7350_v17  ;;  %v7420_v38 = vpop.permute.xlu0 %2646  ;;  %v7443_v54 = vld [vmem:[%s6491_s26 + $0x8] sm:$0xff]  ;;  %v7454_v62 = vld [vmem:[%s6491_s26 + $0x20] sm:$0xff]  ;;  %v7460_v44 = vld [vmem:[%s6491_s26 + $0x18] sm:$0xff] }
 0x178   : > { %v7417_v51 = vrot.slane %v2431_v31, %v6635_v56  ;;  %v2423_v48 = vrot.slane %v2401_v15, %v6635_v56  ;;  %v2514_v35 = vadd.f32 %v2513_v40, %v2505_v28  ;;  %v2519_v20 = vrot.slane %v2506_v50, 4  ;;  %3676 = vrot.lane.b32.xlu1 %v7241_v52, %s6433_s29 }
 0x179   : > { %v2384_v53 = vadd.f32 %v2383_v27, %v2382_v23  ;;  %v2389_v10 = vrot.slane %v2388_v59, 1  ;;  %v2525_v13 = vrot.slane %v2507_v39, 4  ;;  %v2493_v42 = vsel %vm2488_vm12, %v7350_v17, %v7340_v21  ;;  %3674 = vrot.lane.b32.xlu0 %v7100_v7, %s6433_s29 }
 0x17a   : > { %v2515_v36 = vrot.slane %v2514_v35, 2  ;;  %v2520_v61 = vadd.f32 %v2519_v20, %v2506_v50  ;;  %v2508_v6 = vmul.f32 %v7244_v43, %v2492_v12  ;;  %v2509_v26 = vmul.f32 %v7343_v4, %v2493_v42  ;;  %v7440_v37 = vpop.permute.xlu1 %2652  ;;  %v7472_v42 = vld [vmem:[%s6491_s26 + $0x30] sm:$0xff] }
 0x17b   : > { %v2390_v41 = vadd.f32 %v2389_v10, %v2388_v59  ;;  %v2526_v9 = vadd.f32 %v2525_v13, %v2507_v39  ;;  %v2494_v17 = vsel %vm2488_vm12, %v7340_v21, %v7364_v29  ;;  %v2495_v18 = vsel %vm2488_vm12, %v7364_v29, %v7362_v22  ;;  %v7445_v24 = vpop.permute.xlu0 %2650 }
 0x17c   : > { %v2516_v2 = vadd.f32 %v2515_v36, %v2514_v35  ;;  %v2521_v34 = vrot.slane %v2520_v61, 2  ;;  %v2531_v7 = vrot.slane %v2508_v6, 4  ;;  %v2537_v14 = vrot.slane %v2509_v26, 4  ;;  %3832 = vrot.lane.b32.xlu1 %v7432_v49, %s6434_s30 }
 0x17d   : > { %v2402_v58 = vcombine.low %v2384_v53, %v2390_v41  ;;  %v2527_v19 = vrot.slane %v2526_v9, 2  ;;  %v2510_v21 = vmul.f32 %v7347_v60, %v2494_v17  ;;  %v2511_v16 = vmul.f32 %v7368_v3, %v2495_v18  ;;  %3830 = vrot.lane.b32.xlu0 %v7443_v54, %s6434_s30  ;;  %v7478_v41 = vld [vmem:[%s6491_s26 + $0x28] sm:$0xff] }
 0x17e   : > { %v2517_v29 = vrot.slane %v2516_v2, 1  ;;  %v2522_v33 = vadd.f32 %v2521_v34, %v2520_v61  ;;  %v2532_v1 = vadd.f32 %v2531_v7, %v2508_v6  ;;  %v2538_v8 = vadd.f32 %v2537_v14, %v2509_v26  ;;  %v7457_v47 = vpop.permute.xlu1 %2656 }
 0x17f   : > { %v2430_v5 = vrot.slane %v2402_v58, %v6635_v56  ;;  %v2528_v28 = vadd.f32 %v2527_v19, %v2526_v9  ;;  %v2543_v23 = vrot.slane %v2510_v21, 4  ;;  %v2549_v0 = vrot.slane %v2511_v16, 4  ;;  %v7462_v27 = vpop.permute.xlu0 %2654 }
 0x180   : > { %v2518_v31 = vadd.f32 %v2517_v29, %v2516_v2  ;;  %v2523_v15 = vrot.slane %v2522_v33, 1  ;;  %v2533_v40 = vrot.slane %v2532_v1, 2  ;;  %v2539_v50 = vrot.slane %v2538_v8, 2  ;;  %3836 = vrot.lane.b32.xlu1 %v7454_v62, %s6434_s30 }
 0x181   : > { %v2432_v59 = vcombine.low %v2423_v48, %v2430_v5  ;;  %v2529_v39 = vrot.slane %v2528_v28, 1  ;;  %v2544_v12 = vadd.f32 %v2543_v23, %v2510_v21  ;;  %v2550_v35 = vadd.f32 %v2549_v0, %v2511_v16  ;;  %3834 = vrot.lane.b32.xlu0 %v7460_v44, %s6434_s30  ;;  %v7490_v16 = vld [vmem:[%s6491_s26 + $0x40] sm:$0xff]  ;;  %v7501_v5 = vld [vmem:[%s6491_s26 + $0x38] sm:$0xff] }
 0x182   : > { %v2524_v20 = vadd.f32 %v2523_v15, %v2522_v33  ;;  %v2534_v53 = vadd.f32 %v2533_v40, %v2532_v1  ;;  %v2540_v10 = vadd.f32 %v2539_v50, %v2538_v8  ;;  %v2496_v13 = vsel %vm2488_vm12, %v7362_v22, %v7378_v32  ;;  %v7475_v26 = vpop.permute.xlu1 %2812 }
 0x183   : > { %v2446_v48 = vrot.slane %v2432_v59, %v6635_v56  ;;  %v2530_v36 = vadd.f32 %v2529_v39, %v2528_v28  ;;  %v2545_v61 = vrot.slane %v2544_v12, 2  ;;  %v2551_v6 = vrot.slane %v2550_v35, 2  ;;  %v7481_v32 = vpop.permute.xlu0 %2810 }
 0x184   : > { %v2569_v9 = vcombine.low %v2518_v31, %v2524_v20  ;;  %v2535_v17 = vrot.slane %v2534_v53, 1  ;;  %v2541_v18 = vrot.slane %v2540_v10, 1  ;;  %v2512_v22 = vmul.f32 %v7283_v57, %v2496_v13  ;;  %3840 = vrot.lane.b32.xlu1 %v7472_v42, %s6434_s30 }
 0x185   : > { %v2447_v2 = vcombine.low %v7417_v51, %v2446_v48  ;;  %v2546_v34 = vadd.f32 %v2545_v61, %v2544_v12  ;;  %v2552_v7 = vadd.f32 %v2551_v6, %v2550_v35  ;;  %3838 = vrot.lane.b32.xlu0 %v7478_v41, %s6434_s30  ;;  %v2659_v33 = vsel %vm2658_vm13, %v7376_v11, %v7394_v63 }
 0x186   : > { %v2579_v14 = vrot.slane %v2569_v9, %v6635_v56  ;;  %v2536_v58 = vadd.f32 %v2535_v17, %v2534_v53  ;;  %v2542_v19 = vadd.f32 %v2541_v18, %v2540_v10  ;;  %v2555_v21 = vrot.slane %v2512_v22, 4  ;;  %v7498_v8 = vpop.permute.xlu1 %2816 }
 0x187   : > { %2450 = vst [vmem:[#allocation2 + $0x44] ss:$8 sm:$0xf] %v2447_v2  ;;  %2451 = vst [vmem:[#allocation2 + $0x44] ss:$8 sm:$0xf0] %v2447_v2  ;;  %v2660_v1 = vsel %vm2658_vm13, %v7394_v63, %v7390_v45  ;;  %v2675_v0 = vmul.f32 %v7302_v55, %v2659_v33  ;;  %v7505_v15 = vpop.permute.xlu0 %2814  ;;  %v2661_v11 = vsel %vm2658_vm13, %v7390_v45, %v7420_v38 }
 0x188   : > { %v2547_v51 = vrot.slane %v2546_v34, 1  ;;  %v2553_v29 = vrot.slane %v2552_v7, 1  ;;  %v2570_v28 = vcombine.low %v2530_v36, %v2536_v58  ;;  %v2556_v23 = vadd.f32 %v2555_v21, %v2512_v22  ;;  %3844 = vrot.lane.b32.xlu1 %v7490_v16, %s6434_s30 }
 0x189   : > { %v2676_v31 = vmul.f32 %v7405_v30, %v2660_v1  ;;  %v2662_v63 = vsel %vm2658_vm13, %v7420_v38, %v7414_v46  ;;  %v2683_v12 = vrot.slane %v2675_v0, 4  ;;  %3842 = vrot.lane.b32.xlu0 %v7501_v5, %s6434_s30  ;;  %v2677_v53 = vmul.f32 %v7320_v25, %v2661_v11 }
 0x18a   : > { %v2548_v40 = vadd.f32 %v2547_v51, %v2546_v34  ;;  %v2554_v50 = vadd.f32 %v2553_v29, %v2552_v7  ;;  %v2586_v59 = vrot.slane %v2570_v28, %v6635_v56  ;;  %v2557_v39 = vrot.slane %v2556_v23, 2  ;;  %v7523_v10 = vpop.permute.xlu1 %2820 }
 0x18b   : > { %v2689_v35 = vrot.slane %v2676_v31, 4  ;;  %v2678_v45 = vmul.f32 %v7244_v43, %v2662_v63  ;;  %v2663_v38 = vsel %vm2658_vm13, %v7414_v46, %v7445_v24  ;;  %v2684_v36 = vadd.f32 %v2683_v12, %v2675_v0  ;;  %v7525_v6 = vpop.permute.xlu0 %2818 }
 0x18c   : > { %v2571_v20 = vcombine.low %v2542_v19, %v2548_v40  ;;  %v2601_v13 = vcombine.low %v2579_v14, %v2586_v59  ;;  %v2558_v48 = vadd.f32 %v2557_v39, %v2556_v23  ;;  %v2695_v17 = vrot.slane %v2677_v53, 4  ;;  %4000 = vrot.lane.b32.xlu1 %v7443_v54, %s6435_s7 }
 0x18d   : > { %v2690_v61 = vadd.f32 %v2689_v35, %v2676_v31  ;;  %v2701_v18 = vrot.slane %v2678_v45, 4  ;;  %v2664_v22 = vsel %vm2658_vm13, %v7445_v24, %v7440_v37  ;;  %v2685_v34 = vrot.slane %v2684_v36, 2  ;;  %3846 = vrot.lane.b32.xlu0 %v7241_v52, %s6434_s30 }
 0x18e   : > { %v2593_v9 = vrot.slane %v2571_v20, %v6635_v56  ;;  %v2609_v46 = vrot.slane %v2601_v13, %v6635_v56  ;;  %v2559_v2 = vrot.slane %v2558_v48, 1  ;;  %v2696_v14 = vadd.f32 %v2695_v17, %v2677_v53  ;;  %v7538_v51 = vpop.permute.xlu1 %2824 }
 0x18f   : > { %v2691_v7 = vrot.slane %v2690_v61, 2  ;;  %v2702_v58 = vadd.f32 %v2701_v18, %v2678_v45  ;;  %v2679_v19 = vmul.f32 %v7343_v4, %v2663_v38  ;;  %v2680_v21 = vmul.f32 %v7347_v60, %v2664_v22  ;;  %v7543_v28 = vpop.permute.xlu0 %2822 }
 0x190   : > { %v2560_v24 = vadd.f32 %v2559_v2, %v2558_v48  ;;  %v2686_v29 = vadd.f32 %v2685_v34, %v2684_v36  ;;  %v2665_v1 = vsel %vm2658_vm13, %v7440_v37, %v7462_v27  ;;  %v2697_v23 = vrot.slane %v2696_v14, 2  ;;  %4004 = vrot.lane.b32.xlu1 %v7460_v44, %s6435_s7 }
 0x191   : > { %v2692_v33 = vadd.f32 %v2691_v7, %v2690_v61  ;;  %v2703_v0 = vrot.slane %v2702_v58, 2  ;;  %v2707_v31 = vrot.slane %v2679_v19, 4  ;;  %v2713_v40 = vrot.slane %v2680_v21, 4  ;;  %4002 = vrot.lane.b32.xlu0 %v7432_v49, %s6435_s7 }
 0x192   : > { %v2572_v11 = vcombine.low %v2554_v50, %v2560_v24  ;;  %v2687_v63 = vrot.slane %v2686_v29, 1  ;;  %v2666_v39 = vsel %vm2658_vm13, %v7462_v27, %v7457_v47  ;;  %v2698_v37 = vadd.f32 %v2697_v23, %v2696_v14  ;;  %v7552_v53 = vpop.permute.xlu1 %2980 }
 0x193   : > { %v2693_v59 = vrot.slane %v2692_v33, 1  ;;  %v2704_v12 = vadd.f32 %v2703_v0, %v2702_v58  ;;  %v2708_v35 = vadd.f32 %v2707_v31, %v2679_v19  ;;  %v2714_v20 = vadd.f32 %v2713_v40, %v2680_v21  ;;  %v7556_v48 = vpop.permute.xlu0 %2826 }
 0x194   : > { %v2600_v45 = vrot.slane %v2572_v11, %v6635_v56  ;;  %v2688_v38 = vadd.f32 %v2687_v63, %v2686_v29  ;;  %v2681_v50 = vmul.f32 %v7368_v3, %v2665_v1  ;;  %v2699_v36 = vrot.slane %v2698_v37, 1  ;;  %4008 = vrot.lane.b32.xlu1 %v7478_v41, %s6435_s7 }
 0x195   : > { %v2694_v13 = vadd.f32 %v2693_v59, %v2692_v33  ;;  %v2705_v61 = vrot.slane %v2704_v12, 1  ;;  %v2709_v47 = vrot.slane %v2708_v35, 2  ;;  %v2715_v27 = vrot.slane %v2714_v20, 2  ;;  %4006 = vrot.lane.b32.xlu0 %v7454_v62, %s6435_s7 }
 0x196   : > { %v2602_v17 = vcombine.low %v2593_v9, %v2600_v45  ;;  %v2682_v22 = vmul.f32 %v7283_v57, %v2666_v39  ;;  %v2719_v2 = vrot.slane %v2681_v50, 4  ;;  %v2700_v34 = vadd.f32 %v2699_v36, %v2698_v37  ;;  %v7563_v19 = vpop.permute.xlu1 %2984 }
 0x197   : > { %v2739_v18 = vcombine.low %v2688_v38, %v2694_v13  ;;  %v2706_v7 = vadd.f32 %v2705_v61, %v2704_v12  ;;  %v2710_v14 = vadd.f32 %v2709_v47, %v2708_v35  ;;  %v2716_v58 = vadd.f32 %v2715_v27, %v2714_v20  ;;  %v7567_v9 = vpop.permute.xlu0 %2982 }
 0x198   : > { %v2616_v21 = vrot.slane %v2602_v17, %v6635_v56  ;;  %v2720_v29 = vadd.f32 %v2719_v2, %v2681_v50  ;;  %v2725_v33 = vrot.slane %v2682_v22, 4  ;;  %4012 = vrot.lane.b32.xlu1 %v7501_v5, %s6435_s7  ;;  %v2829_v63 = vsel %vm2828_vm14, %v7481_v32, %v7475_v26 }
 0x199   : > { %v2749_v24 = vrot.slane %v2739_v18, %v6635_v56  ;;  %v2740_v1 = vcombine.low %v2700_v34, %v2706_v7  ;;  %v2711_v23 = vrot.slane %v2710_v14, 1  ;;  %v2717_v0 = vrot.slane %v2716_v58, 1  ;;  %4010 = vrot.lane.b32.xlu0 %v7472_v42, %s6435_s7 }
 0x19a   : > { %v2617_v31 = vcombine.low %v2609_v46, %v2616_v21  ;;  %v2721_v40 = vrot.slane %v2720_v29, 2  ;;  %v2726_v11 = vadd.f32 %v2725_v33, %v2682_v22  ;;  %v2845_v12 = vmul.f32 %v7302_v55, %v2829_v63  ;;  %v7578_v35 = vpop.permute.xlu1 %2988 }
 0x19b   : > { %v2756_v59 = vrot.slane %v2740_v1, %v6635_v56  ;;  %v2712_v39 = vadd.f32 %v2711_v23, %v2710_v14  ;;  %v2718_v37 = vadd.f32 %v2717_v0, %v2716_v58  ;;  %v2830_v45 = vsel %vm2828_vm14, %v7475_v26, %v7505_v15  ;;  %v7586_v38 = vpop.permute.xlu0 %2986 }
 0x19c   : > { %2620 = vst [vmem:[#allocation2 + $0x45] ss:$8 sm:$0xf] %v2617_v31  ;;  %2621 = vst [vmem:[#allocation2 + $0x45] ss:$8 sm:$0xf0] %v2617_v31  ;;  %v2722_v46 = vadd.f32 %v2721_v40, %v2720_v29  ;;  %v2831_v32 = vsel %vm2828_vm14, %v7505_v15, %v7498_v8  ;;  %v2846_v61 = vmul.f32 %v7405_v30, %v2830_v45  ;;  %4016 = vrot.lane.b32.xlu1 %v7241_v52, %s6435_s7 }
 0x19d   : > { %v2727_v20 = vrot.slane %v2726_v11, 2  ;;  %v2771_v13 = vcombine.low %v2749_v24, %v2756_v59  ;;  %v2741_v50 = vcombine.low %v2712_v39, %v2718_v37  ;;  %v2853_v36 = vrot.slane %v2845_v12, 4  ;;  %4014 = vrot.lane.b32.xlu0 %v7490_v16, %s6435_s7  ;;  %s271_s7 = scalar_lea.vmem %s8851_s6, %s6204_s28 }
 0x19e   : > { %v2723_v47 = vrot.slane %v2722_v46, 1  ;;  %v2847_v17 = vmul.f32 %v7320_v25, %v2831_v32  ;;  %v2832_v26 = vsel %vm2828_vm14, %v7498_v8, %v7525_v6  ;;  %v2859_v2 = vrot.slane %v2846_v61, 4  ;;  %v7601_v34 = vpop.permute.xlu1 %2992 }
 0x19f   : > { %v2728_v27 = vadd.f32 %v2727_v20, %v2726_v11  ;;  %v7598_v15 = vrot.slane %v2771_v13, %v6635_v56  ;;  %v2763_v18 = vrot.slane %v2741_v50, %v6635_v56  ;;  %v2854_v22 = vadd.f32 %v2853_v36, %v2845_v12  ;;  %v7606_v8 = vpop.permute.xlu0 %2990 }
 0x1a0   : > { %v2724_v52 = vadd.f32 %v2723_v47, %v2722_v46  ;;  %v2865_v14 = vrot.slane %v2847_v17, 4  ;;  %v2833_v58 = vsel %vm2828_vm14, %v7525_v6, %v7523_v10  ;;  %v2860_v24 = vadd.f32 %v2859_v2, %v2846_v61  ;;  %4172 = vrot.lane.b32.xlu1 %v7432_v49, %s6436_s8 }
 0x1a1   : > { %v2729_v7 = vrot.slane %v2728_v27, 1  ;;  %v2855_v21 = vrot.slane %v2854_v22, 2  ;;  %v2848_v29 = vmul.f32 %v7244_v43, %v2832_v26  ;;  %v2849_v33 = vmul.f32 %v7343_v4, %v2833_v58  ;;  %4170 = vrot.lane.b32.xlu0 %v7443_v54, %s6436_s8 }
 0x1a2   : > { %v2866_v23 = vadd.f32 %v2865_v14, %v2847_v17  ;;  %v2834_v0 = vsel %vm2828_vm14, %v7523_v10, %v7543_v28  ;;  %v2835_v6 = vsel %vm2828_vm14, %v7543_v28, %v7538_v51  ;;  %v2861_v40 = vrot.slane %v2860_v24, 2  ;;  %v7620_v59 = vpop.permute.xlu1 %2996 }
 0x1a3   : > { %v2730_v1 = vadd.f32 %v2729_v7, %v2728_v27  ;;  %v2856_v31 = vadd.f32 %v2855_v21, %v2854_v22  ;;  %v2871_v11 = vrot.slane %v2848_v29, 4  ;;  %v2877_v63 = vrot.slane %v2849_v33, 4  ;;  %v7624_v10 = vpop.permute.xlu0 %2994 }
 0x1a4   : > { %v2867_v37 = vrot.slane %v2866_v23, 2  ;;  %v2850_v12 = vmul.f32 %v7347_v60, %v2834_v0  ;;  %v2851_v46 = vmul.f32 %v7368_v3, %v2835_v6  ;;  %v2862_v45 = vadd.f32 %v2861_v40, %v2860_v24  ;;  %4176 = vrot.lane.b32.xlu1 %v7454_v62, %s6436_s8 }
 0x1a5   : > { %v2742_v39 = vcombine.low %v2724_v52, %v2730_v1  ;;  %v2857_v20 = vrot.slane %v2856_v31, 1  ;;  %v2872_v28 = vadd.f32 %v2871_v11, %v2848_v29  ;;  %v2878_v32 = vadd.f32 %v2877_v63, %v2849_v33  ;;  %4174 = vrot.lane.b32.xlu0 %v7460_v44, %s6436_s8 }
 0x1a6   : > { %v2868_v50 = vadd.f32 %v2867_v37, %v2866_v23  ;;  %v2883_v36 = vrot.slane %v2850_v12, 4  ;;  %v2889_v61 = vrot.slane %v2851_v46, 4  ;;  %v2863_v27 = vrot.slane %v2862_v45, 1  ;;  %v7631_v22 = vpop.permute.xlu1 %3152 }
 0x1a7   : > { %v2770_v13 = vrot.slane %v2742_v39, %v6635_v56  ;;  %v2858_v47 = vadd.f32 %v2857_v20, %v2856_v31  ;;  %v2873_v17 = vrot.slane %v2872_v28, 2  ;;  %v2879_v26 = vrot.slane %v2878_v32, 2  ;;  %v7633_v58 = vpop.permute.xlu0 %3150 }
 0x1a8   : > { %v2869_v52 = vrot.slane %v2868_v50, 1  ;;  %v2884_v7 = vadd.f32 %v2883_v36, %v2850_v12  ;;  %v2890_v14 = vadd.f32 %v2889_v61, %v2851_v46  ;;  %v2864_v21 = vadd.f32 %v2863_v27, %v2862_v45  ;;  %4180 = vrot.lane.b32.xlu1 %v7472_v42, %s6436_s8 }
 0x1a9   : > { %v2772_v2 = vcombine.low %v2763_v18, %v2770_v13  ;;  %v2874_v24 = vadd.f32 %v2873_v17, %v2872_v28  ;;  %v2880_v29 = vadd.f32 %v2879_v26, %v2878_v32  ;;  %v2836_v33 = vsel %vm2828_vm14, %v7538_v51, %v7556_v48  ;;  %4178 = vrot.lane.b32.xlu0 %v7478_v41, %s6436_s8  ;;  %v7665_v17 = vld [vmem:[%s6491_s26 + $0x48] sm:$0xff] }
 0x1aa   : > { %v2870_v23 = vadd.f32 %v2869_v52, %v2868_v50  ;;  %v2885_v0 = vrot.slane %v2884_v7, 2  ;;  %v2891_v18 = vrot.slane %v2890_v14, 2  ;;  %v2909_v6 = vcombine.low %v2858_v47, %v2864_v21  ;;  %v7644_v63 = vpop.permute.xlu1 %3156 }
 0x1ab   : > { %v2786_v1 = vrot.slane %v2772_v2, %v6635_v56  ;;  %v2875_v31 = vrot.slane %v2874_v24, 1  ;;  %v2881_v40 = vrot.slane %v2880_v29, 1  ;;  %v2852_v11 = vmul.f32 %v7283_v57, %v2836_v33  ;;  %v7647_v37 = vpop.permute.xlu0 %3154 }
 0x1ac   : > { %v2886_v48 = vadd.f32 %v2885_v0, %v2884_v7  ;;  %v2892_v39 = vadd.f32 %v2891_v18, %v2890_v14  ;;  %v2919_v12 = vrot.slane %v2909_v6, %v6635_v56  ;;  %4184 = vrot.lane.b32.xlu1 %v7490_v16, %s6436_s8  ;;  %v3000_v13 = vsel %vm2998_vm15, %v7567_v9, %v7563_v19 }
 0x1ad   : > { %v2787_v51 = vcombine.low %v7598_v15, %v2786_v1  ;;  %v2876_v46 = vadd.f32 %v2875_v31, %v2874_v24  ;;  %v2882_v20 = vadd.f32 %v2881_v40, %v2880_v29  ;;  %v2895_v45 = vrot.slane %v2852_v11, 4  ;;  %4182 = vrot.lane.b32.xlu0 %v7501_v5, %s6436_s8 }
 0x1ae   : > { %v2887_v28 = vrot.slane %v2886_v48, 1  ;;  %v2893_v32 = vrot.slane %v2892_v39, 1  ;;  %v2999_v15 = vsel %vm2998_vm15, %v7552_v53, %v7567_v9  ;;  %v3016_v47 = vmul.f32 %v7405_v30, %v3000_v13  ;;  %v7662_v27 = vpop.permute.xlu1 %3160 }
 0x1af   : > { %2790 = vst [vmem:[#allocation2 + $0x46] ss:$8 sm:$0xf] %v2787_v51  ;;  %2791 = vst [vmem:[#allocation2 + $0x46] ss:$8 sm:$0xf0] %v2787_v51  ;;  %v2910_v50 = vcombine.low %v2870_v23, %v2876_v46  ;;  %v2896_v36 = vadd.f32 %v2895_v45, %v2852_v11  ;;  %v3015_v61 = vmul.f32 %v7302_v55, %v2999_v15  ;;  %v7673_v52 = vpop.permute.xlu0 %3158 }
 0x1b0   : > { %v2888_v26 = vadd.f32 %v2887_v28, %v2886_v48  ;;  %v2894_v2 = vadd.f32 %v2893_v32, %v2892_v39  ;;  %v3001_v53 = vsel %vm2998_vm15, %v7563_v19, %v7586_v38  ;;  %v3002_v9 = vsel %vm2998_vm15, %v7586_v38, %v7578_v35  ;;  %4340 = vrot.lane.b32.xlu1 %v7443_v54, %s6437_s9 }
 0x1b1   : > { %v2926_v7 = vrot.slane %v2910_v50, %v6635_v56  ;;  %v2897_v14 = vrot.slane %v2896_v36, 2  ;;  %v3023_v21 = vrot.slane %v3015_v61, 4  ;;  %v3029_v24 = vrot.slane %v3016_v47, 4  ;;  %4186 = vrot.lane.b32.xlu0 %v7665_v17, %s6436_s8 }
 0x1b2   : > { %v2911_v29 = vcombine.low %v2882_v20, %v2888_v26  ;;  %v3017_v33 = vmul.f32 %v7320_v25, %v3001_v53  ;;  %v3018_v19 = vmul.f32 %v7244_v43, %v3002_v9  ;;  %v3003_v38 = vsel %vm2998_vm15, %v7578_v35, %v7606_v8  ;;  %v7685_v6 = vpop.permute.xlu1 %3164 }
 0x1b3   : > { %v2941_v1 = vcombine.low %v2919_v12, %v2926_v7  ;;  %v2898_v23 = vadd.f32 %v2897_v14, %v2896_v36  ;;  %v3024_v0 = vadd.f32 %v3023_v21, %v3015_v61  ;;  %v3030_v18 = vadd.f32 %v3029_v24, %v3016_v47  ;;  %v7691_v51 = vpop.permute.xlu0 %3162 }
 0x1b4   : > { %v2933_v31 = vrot.slane %v2911_v29, %v6635_v56  ;;  %v3035_v40 = vrot.slane %v3017_v33, 4  ;;  %v3041_v11 = vrot.slane %v3018_v19, 4  ;;  %v3004_v43 = vsel %vm2998_vm15, %v7606_v8, %v7601_v34  ;;  %4344 = vrot.lane.b32.xlu1 %v7460_v44, %s6437_s9 }
 0x1b5   : > { %v2949_v35 = vrot.slane %v2941_v1, %v6635_v56  ;;  %v2899_v48 = vrot.slane %v2898_v23, 1  ;;  %v3025_v39 = vrot.slane %v3024_v0, 2  ;;  %v3031_v12 = vrot.slane %v3030_v18, 2  ;;  %4342 = vrot.lane.b32.xlu0 %v7432_v49, %s6437_s9 }
 0x1b6   : > { %v3036_v46 = vadd.f32 %v3035_v40, %v3017_v33  ;;  %v3042_v20 = vadd.f32 %v3041_v11, %v3018_v19  ;;  %v3019_v45 = vmul.f32 %v7343_v4, %v3003_v38  ;;  %v3020_v28 = vmul.f32 %v7347_v60, %v3004_v43  ;;  %v7703_v50 = vpop.permute.xlu1 %3320 }
 0x1b7   : > { %v2900_v8 = vadd.f32 %v2899_v48, %v2898_v23  ;;  %v3026_v32 = vadd.f32 %v3025_v39, %v3024_v0  ;;  %v3032_v15 = vadd.f32 %v3031_v12, %v3030_v18  ;;  %v3005_v13 = vsel %vm2998_vm15, %v7601_v34, %v7624_v10  ;;  %v7705_v53 = vpop.permute.xlu0 %3166 }
 0x1b8   : > { %v3037_v36 = vrot.slane %v3036_v46, 2  ;;  %v3043_v61 = vrot.slane %v3042_v20, 2  ;;  %v3047_v47 = vrot.slane %v3019_v45, 4  ;;  %v3053_v26 = vrot.slane %v3020_v28, 4  ;;  %4348 = vrot.lane.b32.xlu1 %v7478_v41, %s6437_s9 }
 0x1b9   : > { %v2912_v9 = vcombine.low %v2894_v2, %v2900_v8  ;;  %v3027_v60 = vrot.slane %v3026_v32, 1  ;;  %v3033_v7 = vrot.slane %v3032_v15, 1  ;;  %v3006_v14 = vsel %vm2998_vm15, %v7624_v10, %v7620_v59  ;;  %4346 = vrot.lane.b32.xlu0 %v7454_v62, %s6437_s9 }
 0x1ba   : > { %v3038_v21 = vadd.f32 %v3037_v36, %v3036_v46  ;;  %v3044_v34 = vadd.f32 %v3043_v61, %v3042_v20  ;;  %v3048_v24 = vadd.f32 %v3047_v47, %v3019_v45  ;;  %v3054_v29 = vadd.f32 %v3053_v26, %v3020_v28  ;;  %v7716_v1 = vpop.permute.xlu1 %3324 }
 0x1bb   : > { %v2940_v33 = vrot.slane %v2912_v9, %v6635_v56  ;;  %v3028_v19 = vadd.f32 %v3027_v60, %v3026_v32  ;;  %v3034_v2 = vadd.f32 %v3033_v7, %v3032_v15  ;;  %v3021_v38 = vmul.f32 %v7368_v3, %v3005_v13  ;;  %v7718_v18 = vpop.permute.xlu0 %3322 }
 0x1bc   : > { %v3039_v23 = vrot.slane %v3038_v21, 1  ;;  %v3045_v59 = vrot.slane %v3044_v34, 1  ;;  %v3049_v10 = vrot.slane %v3048_v24, 2  ;;  %v3055_v0 = vrot.slane %v3054_v29, 2  ;;  %4352 = vrot.lane.b32.xlu1 %v7501_v5, %s6437_s9 }
 0x1bd   : > { %v2942_v40 = vcombine.low %v2933_v31, %v2940_v33  ;;  %v3079_v11 = vcombine.low %v3028_v19, %v3034_v2  ;;  %v3022_v43 = vmul.f32 %v7283_v57, %v3006_v14  ;;  %v3059_v48 = vrot.slane %v3021_v38, 4  ;;  %4350 = vrot.lane.b32.xlu0 %v7472_v42, %s6437_s9 }
 0x1be   : > { %v3040_v39 = vadd.f32 %v3039_v23, %v3038_v21  ;;  %v3046_v12 = vadd.f32 %v3045_v59, %v3044_v34  ;;  %v3050_v46 = vadd.f32 %v3049_v10, %v3048_v24  ;;  %v3056_v20 = vadd.f32 %v3055_v0, %v3054_v29  ;;  %v7727_v32 = vpop.permute.xlu1 %3328 }
 0x1bf   : > { %v2956_v45 = vrot.slane %v2942_v40, %v6635_v56  ;;  %v3089_v28 = vrot.slane %v3079_v11, %v6635_v56  ;;  %v3060_v8 = vadd.f32 %v3059_v48, %v3021_v38  ;;  %v3065_v31 = vrot.slane %v3022_v43, 4  ;;  %v7729_v36 = vpop.permute.xlu0 %3326 }
 0x1c0   : > { %v3080_v57 = vcombine.low %v3040_v39, %v3046_v12  ;;  %v3051_v15 = vrot.slane %v3050_v46, 1  ;;  %v3057_v13 = vrot.slane %v3056_v20, 1  ;;  %v3169_v9 = vsel %vm3168_vm0, %v7633_v58, %v7631_v22  ;;  %4356 = vrot.lane.b32.xlu1 %v7665_v17, %s6437_s9 }
 0x1c1   : > { %v2957_v61 = vcombine.low %v2949_v35, %v2956_v45  ;;  %v3061_v47 = vrot.slane %v3060_v8, 2  ;;  %v3066_v26 = vadd.f32 %v3065_v31, %v3022_v43  ;;  %v3185_v21 = vmul.f32 %v7302_v55, %v3169_v9  ;;  %4354 = vrot.lane.b32.xlu0 %v7490_v16, %s6437_s9 }
 0x1c2   : > { %v3096_v60 = vrot.slane %v3080_v57, %v6635_v56  ;;  %v3052_v7 = vadd.f32 %v3051_v15, %v3050_v46  ;;  %v3058_v14 = vadd.f32 %v3057_v13, %v3056_v20  ;;  %v3170_v58 = vsel %vm3168_vm0, %v7631_v22, %v7647_v37  ;;  %v7746_v29 = vpop.permute.xlu1 %3332  ;;  %v7769_v46 = vld [vmem:[%s6586_s13 + $0x18] sm:$0xff] }
 0x1c3   : > { %2960 = vst [vmem:[#allocation2 + $0x47] ss:$8 sm:$0xf] %v2957_v61  ;;  %2961 = vst [vmem:[#allocation2 + $0x47] ss:$8 sm:$0xf0] %v2957_v61  ;;  %v3062_v35 = vadd.f32 %v3061_v47, %v3060_v8  ;;  %v3171_v24 = vsel %vm3168_vm0, %v7647_v37, %v7644_v63  ;;  %v3186_v2 = vmul.f32 %v7405_v30, %v3170_v58  ;;  %v7749_v38 = vpop.permute.xlu0 %3330 }
 0x1c4   : > { %v3067_v34 = vrot.slane %v3066_v26, 2  ;;  %v3111_v33 = vcombine.low %v3089_v28, %v3096_v60  ;;  %v3081_v19 = vcombine.low %v3052_v7, %v3058_v14  ;;  %v3193_v55 = vrot.slane %v3185_v21, 4  ;;  %4512 = vrot.lane.b32.xlu1 %v7432_v49, %s6438_s10 }
 0x1c5   : > { %v3063_v23 = vrot.slane %v3062_v35, 1  ;;  %v3187_v10 = vmul.f32 %v7320_v25, %v3171_v24  ;;  %v3172_v22 = vsel %vm3168_vm0, %v7644_v63, %v7673_v52  ;;  %v3199_v11 = vrot.slane %v3186_v2, 4  ;;  %4510 = vrot.lane.b32.xlu0 %v7443_v54, %s6438_s10 }
 0x1c6   : > { %v3068_v59 = vadd.f32 %v3067_v34, %v3066_v26  ;;  %v7758_v37 = vrot.slane %v3111_v33, %v6635_v56  ;;  %v3103_v0 = vrot.slane %v3081_v19, %v6635_v56  ;;  %v3194_v40 = vadd.f32 %v3193_v55, %v3185_v21  ;;  %v7766_v39 = vpop.permute.xlu1 %3336  ;;  %v7786_v26 = vld [vmem:[%s6586_s13 + $0x28] sm:$0xff] }
 0x1c7   : > { %v3064_v25 = vadd.f32 %v3063_v23, %v3062_v35  ;;  %v3205_v48 = vrot.slane %v3187_v10, 4  ;;  %v3173_v63 = vsel %vm3168_vm0, %v7673_v52, %v7662_v27  ;;  %v3200_v12 = vadd.f32 %v3199_v11, %v3186_v2  ;;  %v7773_v28 = vpop.permute.xlu0 %3334 }
 0x1c8   : > { %v3069_v43 = vrot.slane %v3068_v59, 1  ;;  %v3195_v49 = vrot.slane %v3194_v40, 2  ;;  %v3188_v20 = vmul.f32 %v7769_v46, %v3172_v22  ;;  %v3189_v45 = vmul.f32 %v7343_v4, %v3173_v63  ;;  %4516 = vrot.lane.b32.xlu1 %v7454_v62, %s6438_s10 }
 0x1c9   : > { %v3206_v8 = vadd.f32 %v3205_v48, %v3187_v10  ;;  %v3174_v31 = vsel %vm3168_vm0, %v7662_v27, %v7691_v51  ;;  %v3175_v52 = vsel %vm3168_vm0, %v7691_v51, %v7685_v6  ;;  %v3201_v15 = vrot.slane %v3200_v12, 2  ;;  %4514 = vrot.lane.b32.xlu0 %v7460_v44, %s6438_s10 }
 0x1ca   : > { %v3070_v54 = vadd.f32 %v3069_v43, %v3068_v59  ;;  %v3196_v57 = vadd.f32 %v3195_v49, %v3194_v40  ;;  %v3211_v13 = vrot.slane %v3188_v20, 4  ;;  %v3217_v61 = vrot.slane %v3189_v45, 4  ;;  %v7790_v60 = vpop.permute.xlu1 %3492 }
 0x1cb   : > { %v3207_v47 = vrot.slane %v3206_v8, 2  ;;  %v3190_v27 = vmul.f32 %v7786_v26, %v3174_v31  ;;  %v3191_v9 = vmul.f32 %v7368_v3, %v3175_v52  ;;  %v3202_v7 = vadd.f32 %v3201_v15, %v3200_v12  ;;  %v7792_v21 = vpop.permute.xlu0 %3490 }
 0x1cc   : > { %v3082_v4 = vcombine.low %v3064_v25, %v3070_v54  ;;  %v3197_v51 = vrot.slane %v3196_v57, 1  ;;  %v3212_v62 = vadd.f32 %v3211_v13, %v3188_v20  ;;  %v3218_v14 = vadd.f32 %v3217_v61, %v3189_v45  ;;  %4520 = vrot.lane.b32.xlu1 %v7472_v42, %s6438_s10  ;;  %v7810_v20 = vld [vmem:[%s6586_s13 + $0x38] sm:$0xff] }
 0x1cd   : > { %v3208_v34 = vadd.f32 %v3207_v47, %v3206_v8  ;;  %v3223_v44 = vrot.slane %v3190_v27, 4  ;;  %v3229_v58 = vrot.slane %v3191_v9, 4  ;;  %v3203_v33 = vrot.slane %v3202_v7, 1  ;;  %4518 = vrot.lane.b32.xlu0 %v7478_v41, %s6438_s10 }
 0x1ce   : > { %v3110_v35 = vrot.slane %v3082_v4, %v6635_v56  ;;  %v3198_v24 = vadd.f32 %v3197_v51, %v3196_v57  ;;  %v3213_v19 = vrot.slane %v3212_v62, 2  ;;  %v3219_v3 = vrot.slane %v3218_v14, 2  ;;  %v7799_v10 = vpop.permute.xlu1 %3496 }
 0x1cf   : > { %v3209_v2 = vrot.slane %v3208_v34, 1  ;;  %v3224_v23 = vadd.f32 %v3223_v44, %v3190_v27  ;;  %v3230_v59 = vadd.f32 %v3229_v58, %v3191_v9  ;;  %v3204_v22 = vadd.f32 %v3203_v33, %v3202_v7  ;;  %v7804_v25 = vpop.permute.xlu0 %3494  ;;  %v7830_v9 = vld [vmem:[%s6586_s13] sm:$0xff]  ;;  %v4663_v44 = vld [vmem:[%s6491_s26 + $0x10] sm:$0xff] }
 0x1d0   : > { %v3112_v55 = vcombine.low %v3103_v0, %v3110_v35  ;;  %v3214_v40 = vadd.f32 %v3213_v19, %v3212_v62  ;;  %v3220_v11 = vadd.f32 %v3219_v3, %v3218_v14  ;;  %v3176_v42 = vsel %vm3168_vm0, %v7685_v6, %v7705_v53  ;;  %4524 = vrot.lane.b32.xlu1 %v7490_v16, %s6438_s10  ;;  %v4662_v6 = vld [vmem:[%s6491_s26 + $0x8] sm:$0xff] }
 0x1d1   : > { %v3210_v41 = vadd.f32 %v3209_v2, %v3208_v34  ;;  %v3225_v0 = vrot.slane %v3224_v23, 2  ;;  %v3231_v48 = vrot.slane %v3230_v59, 2  ;;  %v3249_v63 = vcombine.low %v3198_v24, %v3204_v22  ;;  %4522 = vrot.lane.b32.xlu0 %v7501_v5, %s6438_s10 }
 0x1d2   : > { %v3126_v43 = vrot.slane %v3112_v55, %v6635_v56  ;;  %v3215_v49 = vrot.slane %v3214_v40, 1  ;;  %v3221_v12 = vrot.slane %v3220_v11, 1  ;;  %v3192_v45 = vmul.f32 %v7810_v20, %v3176_v42  ;;  %v7817_v31 = vpop.permute.xlu1 %3500  ;;  %v7850_v55 = vld [vmem:[%s6586_s13 + $0x10] sm:$0xff] }
 0x1d3   : > { %v3226_v54 = vadd.f32 %v3225_v0, %v3224_v23  ;;  %v3232_v8 = vadd.f32 %v3231_v48, %v3230_v59  ;;  %vm3338_vm1 = vcmask 457728   ;;  %v3259_v16 = vrot.slane %v3249_v63, %v6635_v56  ;;  %v7820_v13 = vpop.permute.xlu0 %3498 }
 0x1d4   : > { %v3127_v53 = vcombine.low %v7758_v37, %v3126_v43  ;;  %v3216_v52 = vadd.f32 %v3215_v49, %v3214_v40  ;;  %v3222_v57 = vadd.f32 %v3221_v12, %v3220_v11  ;;  %v3235_v15 = vrot.slane %v3192_v45, 4  ;;  %4680 = vrot.lane.b32.xlu1 %v4662_v6, %s6439_s11  ;;  %v4666_v11 = vld [vmem:[%s6491_s26 + $0x28] sm:$0xff] }
 0x1d5   : > { %v3227_v5 = vrot.slane %v3226_v54, 1  ;;  %v3233_v61 = vrot.slane %v3232_v8, 1  ;;  %v3339_v37 = vsel %vm3338_vm1, %v7703_v50, %v7718_v18  ;;  %v3340_v4 = vsel %vm3338_vm1, %v7718_v18, %v7716_v1  ;;  %4526 = vrot.lane.b32.xlu0 %v7665_v17, %s6438_s10  ;;  %v4664_v50 = vld [vmem:[%s6491_s26 + $0x18] sm:$0xff] }
 0x1d6   : > { %3130 = vst [vmem:[#allocation2 + $0x80] ss:$8 sm:$0xf] %v3127_v53  ;;  %3131 = vst [vmem:[#allocation2 + $0x80] ss:$8 sm:$0xf0] %v3127_v53  ;;  %v3250_v47 = vcombine.low %v3210_v41, %v3216_v52  ;;  %v3236_v27 = vadd.f32 %v3235_v15, %v3192_v45  ;;  %v3355_v51 = vmul.f32 %v7830_v9, %v3339_v37  ;;  %v7843_v34 = vpop.permute.xlu1 %3504 }
 0x1d7   : > { %v3356_v7 = vmul.f32 %v7405_v30, %v3340_v4  ;;  %v3228_v62 = vadd.f32 %v3227_v5, %v3226_v54  ;;  %v3234_v14 = vadd.f32 %v3233_v61, %v3232_v8  ;;  %v3341_v18 = vsel %vm3338_vm1, %v7716_v1, %v7729_v36  ;;  %v7847_v19 = vpop.permute.xlu0 %3502  ;;  %v7873_v8 = vld [vmem:[%s6586_s13 + $0x20] sm:$0xff]  ;;  %v4668_v61 = vld [vmem:[%s6491_s26 + $0x38] sm:$0xff] }
 0x1d8   : > { %v3342_v35 = vsel %vm3338_vm1, %v7729_v36, %v7727_v32  ;;  %v3266_v58 = vrot.slane %v3250_v47, %v6635_v56  ;;  %v3237_v30 = vrot.slane %v3236_v27, 2  ;;  %v3363_v24 = vrot.slane %v3355_v51, 4  ;;  %4684 = vrot.lane.b32.xlu1 %v4664_v50, %s6439_s11 }
 0x1d9   : > { %v3369_v33 = vrot.slane %v3356_v7, 4  ;;  %v3251_v3 = vcombine.low %v3222_v57, %v3228_v62  ;;  %v3357_v1 = vmul.f32 %v7850_v55, %v3341_v18  ;;  %v3358_v2 = vmul.f32 %v7769_v46, %v3342_v35  ;;  %4682 = vrot.lane.b32.xlu0 %v4663_v44, %s6439_s11 }
 0x1da   : > { %v3343_v36 = vsel %vm3338_vm1, %v7727_v32, %v7749_v38  ;;  %v3281_v23 = vcombine.low %v3259_v16, %v3266_v58  ;;  %v3238_v59 = vadd.f32 %v3237_v30, %v3236_v27  ;;  %v3364_v22 = vadd.f32 %v3363_v24, %v3355_v51  ;;  %v7864_v48 = vpop.permute.xlu1 %3660  ;;  %v4665_v32 = vld [vmem:[%s6491_s26 + $0x20] sm:$0xff] }
 0x1db   : > { %v3370_v40 = vadd.f32 %v3369_v33, %v3356_v7  ;;  %v3273_v42 = vrot.slane %v3251_v3, %v6635_v56  ;;  %v3375_v43 = vrot.slane %v3357_v1, 4  ;;  %v3381_v41 = vrot.slane %v3358_v2, 4  ;;  %v7870_v6 = vpop.permute.xlu0 %3506  ;;  %v4667_v7 = vld [vmem:[%s6491_s26 + $0x30] sm:$0xff] }
 0x1dc   : > { %v3344_v0 = vsel %vm3338_vm1, %v7749_v38, %v7746_v29  ;;  %v7868_v63 = vrot.slane %v3281_v23, %v6635_v56  ;;  %v3239_v49 = vrot.slane %v3238_v59, 1  ;;  %v3365_v12 = vrot.slane %v3364_v22, 2  ;;  %4688 = vrot.lane.b32.xlu1 %v4666_v11, %s6439_s11 }
 0x1dd   : > { %v3371_v45 = vrot.slane %v3370_v40, 2  ;;  %v3376_v53 = vadd.f32 %v3375_v43, %v3357_v1  ;;  %v3382_v54 = vadd.f32 %v3381_v41, %v3358_v2  ;;  %v3359_v16 = vmul.f32 %v7873_v8, %v3343_v36  ;;  %4686 = vrot.lane.b32.xlu0 %v4665_v32, %s6439_s11 }
 0x1de   : > { %v3360_v38 = vmul.f32 %v7786_v26, %v3344_v0  ;;  %v3240_v52 = vadd.f32 %v3239_v49, %v3238_v59  ;;  %v3366_v57 = vadd.f32 %v3365_v12, %v3364_v22  ;;  %v3345_v5 = vsel %vm3338_vm1, %v7746_v29, %v7773_v28  ;;  %v7883_v51 = vpop.permute.xlu1 %3664  ;;  %v4669_v22 = vld [vmem:[%s6491_s26 + $0x40] sm:$0xff] }
 0x1df   : > { %v3372_v15 = vadd.f32 %v3371_v45, %v3370_v40  ;;  %v3377_v37 = vrot.slane %v3376_v53, 2  ;;  %v3383_v4 = vrot.slane %v3382_v54, 2  ;;  %v3387_v47 = vrot.slane %v3359_v16, 4  ;;  %v7889_v44 = vpop.permute.xlu0 %3662 }
 0x1e0   : > { %v3393_v27 = vrot.slane %v3360_v38, 4  ;;  %v3252_v50 = vcombine.low %v3234_v14, %v3240_v52  ;;  %v3367_v62 = vrot.slane %v3366_v57, 1  ;;  %v3346_v35 = vsel %vm3338_vm1, %v7773_v28, %v7766_v39  ;;  %4692 = vrot.lane.b32.xlu1 %v4668_v61, %s6439_s11  ;;  %v7894_v14 = vld [vmem:[%s6586_s13 + $0x30] sm:$0xff] }
 0x1e1   : > { %v3373_v18 = vrot.slane %v3372_v15, 1  ;;  %v3378_v29 = vadd.f32 %v3377_v37, %v3376_v53  ;;  %v3384_v58 = vadd.f32 %v3383_v4, %v3382_v54  ;;  %v3388_v30 = vadd.f32 %v3387_v47, %v3359_v16  ;;  %4690 = vrot.lane.b32.xlu0 %v4667_v7, %s6439_s11 }
 0x1e2   : > { %v3394_v24 = vadd.f32 %v3393_v27, %v3360_v38  ;;  %v3280_v33 = vrot.slane %v3252_v50, %v6635_v56  ;;  %v3368_v3 = vadd.f32 %v3367_v62, %v3366_v57  ;;  %v3361_v2 = vmul.f32 %v7894_v14, %v3345_v5  ;;  %v7898_v59 = vpop.permute.xlu1 %3668 }
 0x1e3   : > { %v3374_v1 = vadd.f32 %v3373_v18, %v3372_v15  ;;  %v3379_v39 = vrot.slane %v3378_v29, 1  ;;  %v3385_v28 = vrot.slane %v3384_v58, 1  ;;  %v3389_v36 = vrot.slane %v3388_v30, 2  ;;  %v7902_v0 = vpop.permute.xlu0 %3666 }
 0x1e4   : > { %v3395_v23 = vrot.slane %v3394_v24, 2  ;;  %v3282_v40 = vcombine.low %v3273_v42, %v3280_v33  ;;  %v3362_v43 = vmul.f32 %v7810_v20, %v3346_v35  ;;  %v3399_v41 = vrot.slane %v3361_v2, 4  ;;  %4696 = vrot.lane.b32.xlu1 %v7665_v17, %s6439_s11 }
 0x1e5   : > { %v3419_v11 = vcombine.low %v3368_v3, %v3374_v1  ;;  %v3380_v32 = vadd.f32 %v3379_v39, %v3378_v29  ;;  %v3386_v49 = vadd.f32 %v3385_v28, %v3384_v58  ;;  %v3390_v12 = vadd.f32 %v3389_v36, %v3388_v30  ;;  %4694 = vrot.lane.b32.xlu0 %v4669_v22, %s6439_s11  ;;  %v7926_v30 = vld [vmem:[%s6586_s13 + $0x8] sm:$0xff] }
 0x1e6   : > { %v3396_v45 = vadd.f32 %v3395_v23, %v3394_v24  ;;  %v3296_v53 = vrot.slane %v3282_v40, %v6635_v56  ;;  %v3400_v16 = vadd.f32 %v3399_v41, %v3361_v2  ;;  %v3405_v38 = vrot.slane %v3362_v43, 4  ;;  %v7909_v15 = vpop.permute.xlu1 %3672 }
 0x1e7   : > { %v3429_v54 = vrot.slane %v3419_v11, %v6635_v56  ;;  %v3420_v42 = vcombine.low %v3380_v32, %v3386_v49  ;;  %v3391_v52 = vrot.slane %v3390_v12, 1  ;;  %vm3508_vm2 = vcmask 449536   ;;  %v7915_v4 = vpop.permute.xlu0 %3670 }
 0x1e8   : > { %v3397_v57 = vrot.slane %v3396_v45, 1  ;;  %v3297_v5 = vcombine.low %v7868_v63, %v3296_v53  ;;  %v3401_v61 = vrot.slane %v3400_v16, 2  ;;  %v3406_v37 = vadd.f32 %v3405_v38, %v3362_v43 }
 0x1e9   : > { %v3509_v17 = vsel %vm3508_vm2, %v7792_v21, %v7790_v60  ;;  %v3436_v47 = vrot.slane %v3420_v42, %v6635_v56  ;;  %v3392_v27 = vadd.f32 %v3391_v52, %v3390_v12  ;;  %v3510_v63 = vsel %vm3508_vm2, %v7790_v60, %v7804_v25 }
 0x1ea   : > { %v3398_v7 = vadd.f32 %v3397_v57, %v3396_v45  ;;  %v3525_v50 = vmul.f32 %v7830_v9, %v3509_v17  ;;  %3300 = vst [vmem:[#allocation2 + $0x81] ss:$8 sm:$0xf] %v3297_v5  ;;  %3301 = vst [vmem:[#allocation2 + $0x81] ss:$8 sm:$0xf0] %v3297_v5  ;;  %v3402_v62 = vadd.f32 %v3401_v61, %v3400_v16  ;;  %v7929_v33 = vpop.permute.xlu1 %3676 }
 0x1eb   : > { %v3407_v18 = vrot.slane %v3406_v37, 2  ;;  %v3511_v21 = vsel %vm3508_vm2, %v7804_v25, %v7799_v10  ;;  %v3451_v35 = vcombine.low %v3429_v54, %v3436_v47  ;;  %v3526_v24 = vmul.f32 %v7926_v30, %v3510_v63  ;;  %v7935_v39 = vpop.permute.xlu0 %3674 }
 0x1ec   : > { %v3421_v29 = vcombine.low %v3392_v27, %v3398_v7  ;;  %v3533_v58 = vrot.slane %v3525_v50, 4  ;;  %v3403_v3 = vrot.slane %v3402_v62, 1  ;;  %v3527_v2 = vmul.f32 %v7850_v55, %v3511_v21 }
 0x1ed   : > { %v3408_v1 = vadd.f32 %v3407_v18, %v3406_v37  ;;  %v3512_v60 = vsel %vm3508_vm2, %v7799_v10, %v7820_v13  ;;  %v3459_v25 = vrot.slane %v3451_v35, %v6635_v56  ;;  %v3539_v23 = vrot.slane %v3526_v24, 4 }
 0x1ee   : > { %v3443_v28 = vrot.slane %v3421_v29, %v6635_v56  ;;  %v3534_v36 = vadd.f32 %v3533_v58, %v3525_v50  ;;  %v3404_v22 = vadd.f32 %v3403_v3, %v3402_v62  ;;  %v3545_v11 = vrot.slane %v3527_v2, 4  ;;  %v7944_v12 = vpop.permute.xlu1 %3832 }
 0x1ef   : > { %v3409_v40 = vrot.slane %v3408_v1, 1  ;;  %v3513_v43 = vsel %vm3508_vm2, %v7820_v13, %v7817_v31  ;;  %v3540_v32 = vadd.f32 %v3539_v23, %v3526_v24  ;;  %v3528_v49 = vmul.f32 %v7769_v46, %v3512_v60  ;;  %v7952_v38 = vpop.permute.xlu0 %3830 }
 0x1f0   : > { %v3535_v41 = vrot.slane %v3534_v36, 2  ;;  %v3529_v10 = vmul.f32 %v7873_v8, %v3513_v43  ;;  %v3546_v53 = vadd.f32 %v3545_v11, %v3527_v2  ;;  %v3514_v54 = vsel %vm3508_vm2, %v7817_v31, %v7847_v19 }
 0x1f1   : > { %v3410_v45 = vadd.f32 %v3409_v40, %v3408_v1  ;;  %v3515_v16 = vsel %vm3508_vm2, %v7847_v19, %v7843_v34  ;;  %v3541_v42 = vrot.slane %v3540_v32, 2  ;;  %v3551_v52 = vrot.slane %v3528_v49, 4 }
 0x1f2   : > { %v3536_v13 = vadd.f32 %v3535_v41, %v3534_v36  ;;  %v3557_v57 = vrot.slane %v3529_v10, 4  ;;  %v3547_v61 = vrot.slane %v3546_v53, 2  ;;  %v3530_v37 = vmul.f32 %v7786_v26, %v3514_v54  ;;  %v7956_v50 = vpop.permute.xlu1 %3836 }
 0x1f3   : > { %v3422_v5 = vcombine.low %v3404_v22, %v3410_v45  ;;  %v3531_v17 = vmul.f32 %v7894_v14, %v3515_v16  ;;  %v3542_v27 = vadd.f32 %v3541_v42, %v3540_v32  ;;  %v3552_v7 = vadd.f32 %v3551_v52, %v3528_v49  ;;  %v7959_v21 = vpop.permute.xlu0 %3834 }
 0x1f4   : > { %v3537_v47 = vrot.slane %v3536_v13, 1  ;;  %v3558_v31 = vadd.f32 %v3557_v57, %v3529_v10  ;;  %v3548_v62 = vadd.f32 %v3547_v61, %v3546_v53  ;;  %v3563_v18 = vrot.slane %v3530_v37, 4 }
 0x1f5   : > { %v3450_v19 = vrot.slane %v3422_v5, %v6635_v56  ;;  %v3569_v63 = vrot.slane %v3531_v17, 4  ;;  %v3543_v29 = vrot.slane %v3542_v27, 1  ;;  %v3553_v58 = vrot.slane %v3552_v7, 2 }
 0x1f6   : > { %v3538_v35 = vadd.f32 %v3537_v47, %v3536_v13  ;;  %v3559_v24 = vrot.slane %v3558_v31, 2  ;;  %v3549_v1 = vrot.slane %v3548_v62, 1  ;;  %v3564_v2 = vadd.f32 %v3563_v18, %v3530_v37  ;;  %v7964_v11 = vpop.permute.xlu1 %3840 }
 0x1f7   : > { %v3452_v3 = vcombine.low %v3443_v28, %v3450_v19  ;;  %v3570_v60 = vadd.f32 %v3569_v63, %v3531_v17  ;;  %v3544_v36 = vadd.f32 %v3543_v29, %v3542_v27  ;;  %v3554_v23 = vadd.f32 %v3553_v58, %v3552_v7  ;;  %v7967_v10 = vpop.permute.xlu0 %3838 }
 0x1f8   : > { %v3560_v22 = vadd.f32 %v3559_v24, %v3558_v31  ;;  %v3516_v40 = vsel %vm3508_vm2, %v7843_v34, %v7870_v6  ;;  %v3550_v41 = vadd.f32 %v3549_v1, %v3548_v62  ;;  %v3565_v32 = vrot.slane %v3564_v2, 2 }
 0x1f9   : > { %v3466_v43 = vrot.slane %v3452_v3, %v6635_v56  ;;  %v3571_v49 = vrot.slane %v3570_v60, 2  ;;  %v3589_v28 = vcombine.low %v3538_v35, %v3544_v36  ;;  %v3555_v45 = vrot.slane %v3554_v23, 1 }
 0x1fa   : > { %v3561_v53 = vrot.slane %v3560_v22, 1  ;;  %v3532_v54 = vmul.f32 %v7810_v20, %v3516_v40  ;;  %v3566_v13 = vadd.f32 %v3565_v32, %v3564_v2  ;;  %vm3678_vm3 = vcmask 441344   ;;  %v7971_v5 = vpop.permute.xlu1 %3844 }
 0x1fb   : > { %v3467_v16 = vcombine.low %v3459_v25, %v3466_v43  ;;  %v3572_v42 = vadd.f32 %v3571_v49, %v3570_v60  ;;  %v3599_v34 = vrot.slane %v3589_v28, %v6635_v56  ;;  %v3556_v6 = vadd.f32 %v3555_v45, %v3554_v23  ;;  %v7979_v47 = vpop.permute.xlu0 %3842 }
 0x1fc   : > { %v3562_v52 = vadd.f32 %v3561_v53, %v3560_v22  ;;  %v3575_v57 = vrot.slane %v3532_v54, 4  ;;  %v3567_v61 = vrot.slane %v3566_v13, 1  ;;  %v3679_v17 = vsel %vm3678_vm3, %v7864_v48, %v7889_v44 }
 0x1fd   : > { %3470 = vst [vmem:[#allocation2 + $0x82] ss:$8 sm:$0xf] %v3467_v16  ;;  %3471 = vst [vmem:[#allocation2 + $0x82] ss:$8 sm:$0xf0] %v3467_v16  ;;  %v3680_v25 = vsel %vm3678_vm3, %v7889_v44, %v7883_v51  ;;  %v3590_v27 = vcombine.low %v3550_v41, %v3556_v6  ;;  %v3695_v31 = vmul.f32 %v7830_v9, %v3679_v17 }
 0x1fe   : > { %v3573_v37 = vrot.slane %v3572_v42, 1  ;;  %v3576_v7 = vadd.f32 %v3575_v57, %v3532_v54  ;;  %v3696_v19 = vmul.f32 %v7926_v30, %v3680_v25  ;;  %v3568_v62 = vadd.f32 %v3567_v61, %v3566_v13  ;;  %v7990_v24 = vpop.permute.xlu1 %4000 }
 0x1ff   : > { %v3681_v63 = vsel %vm3678_vm3, %v7883_v51, %v7902_v0  ;;  %v3682_v48 = vsel %vm3678_vm3, %v7902_v0, %v7898_v59  ;;  %v3606_v44 = vrot.slane %v3590_v27, %v6635_v56  ;;  %v3703_v29 = vrot.slane %v3695_v31, 4  ;;  %v7997_v60 = vpop.permute.xlu0 %3846 }
 0x200   : > { %v3574_v18 = vadd.f32 %v3573_v37, %v3572_v42  ;;  %v3577_v35 = vrot.slane %v3576_v7, 2  ;;  %v3709_v58 = vrot.slane %v3696_v19, 4  ;;  %v3591_v3 = vcombine.low %v3562_v52, %v3568_v62 }
 0x201   : > { %v3697_v1 = vmul.f32 %v7850_v55, %v3681_v63  ;;  %v3698_v2 = vmul.f32 %v7769_v46, %v3682_v48  ;;  %v3683_v51 = vsel %vm3678_vm3, %v7898_v59, %v7915_v4  ;;  %v3621_v36 = vcombine.low %v3599_v34, %v3606_v44 }
 0x202   : > { %v3578_v0 = vadd.f32 %v3577_v35, %v3576_v7  ;;  %v3704_v23 = vadd.f32 %v3703_v29, %v3695_v31  ;;  %v3710_v22 = vadd.f32 %v3709_v58, %v3696_v19  ;;  %v3613_v40 = vrot.slane %v3591_v3, %v6635_v56  ;;  %v8004_v59 = vpop.permute.xlu1 %4004 }
 0x203   : > { %v3715_v43 = vrot.slane %v3697_v1, 4  ;;  %v3721_v41 = vrot.slane %v3698_v2, 4  ;;  %v3684_v32 = vsel %vm3678_vm3, %v7915_v4, %v7909_v15  ;;  %v3629_v49 = vrot.slane %v3621_v36, %v6635_v56  ;;  %v8008_v34 = vpop.permute.xlu0 %4002 }
 0x204   : > { %v3579_v28 = vrot.slane %v3578_v0, 1  ;;  %v3705_v45 = vrot.slane %v3704_v23, 2  ;;  %v3711_v53 = vrot.slane %v3710_v22, 2  ;;  %v3699_v13 = vmul.f32 %v7873_v8, %v3683_v51 }
 0x205   : > { %v3716_v54 = vadd.f32 %v3715_v43, %v3697_v1  ;;  %v3722_v16 = vadd.f32 %v3721_v41, %v3698_v2  ;;  %v3700_v42 = vmul.f32 %v7786_v26, %v3684_v32  ;;  %v3685_v4 = vsel %vm3678_vm3, %v7909_v15, %v7935_v39 }
 0x206   : > { %v3580_v6 = vadd.f32 %v3579_v28, %v3578_v0  ;;  %v3706_v52 = vadd.f32 %v3705_v45, %v3704_v23  ;;  %v3712_v57 = vadd.f32 %v3711_v53, %v3710_v22  ;;  %v3727_v17 = vrot.slane %v3699_v13, 4  ;;  %v8016_v62 = vpop.permute.xlu1 %4008 }
 0x207   : > { %v3717_v61 = vrot.slane %v3716_v54, 2  ;;  %v3723_v37 = vrot.slane %v3722_v16, 2  ;;  %v3733_v25 = vrot.slane %v3700_v42, 4  ;;  %v3686_v19 = vsel %vm3678_vm3, %v7935_v39, %v7929_v33  ;;  %v8018_v29 = vpop.permute.xlu0 %4006 }
 0x208   : > { %v3592_v27 = vcombine.low %v3574_v18, %v3580_v6  ;;  %v3707_v7 = vrot.slane %v3706_v52, 1  ;;  %v3713_v31 = vrot.slane %v3712_v57, 1  ;;  %v3728_v44 = vadd.f32 %v3727_v17, %v3699_v13 }
 0x209   : > { %v3718_v63 = vadd.f32 %v3717_v61, %v3716_v54  ;;  %v3724_v48 = vadd.f32 %v3723_v37, %v3722_v16  ;;  %v3734_v35 = vadd.f32 %v3733_v25, %v3700_v42  ;;  %v3701_v18 = vmul.f32 %v7894_v14, %v3685_v4 }
 0x20a   : > { %v3620_v15 = vrot.slane %v3592_v27, %v6635_v56  ;;  %v3708_v58 = vadd.f32 %v3707_v7, %v3706_v52  ;;  %v3714_v3 = vadd.f32 %v3713_v31, %v3712_v57  ;;  %v3729_v51 = vrot.slane %v3728_v44, 2  ;;  %v8023_v22 = vpop.permute.xlu1 %4012 }
 0x20b   : > { %v3719_v1 = vrot.slane %v3718_v63, 1  ;;  %v3725_v2 = vrot.slane %v3724_v48, 1  ;;  %v3735_v36 = vrot.slane %v3734_v35, 2  ;;  %v3702_v39 = vmul.f32 %v7810_v20, %v3686_v19  ;;  %v8025_v45 = vpop.permute.xlu0 %4010 }
 0x20c   : > { %v3622_v0 = vcombine.low %v3613_v40, %v3620_v15  ;;  %v3759_v33 = vcombine.low %v3708_v58, %v3714_v3  ;;  %v3739_v23 = vrot.slane %v3701_v18, 4  ;;  %v3730_v32 = vadd.f32 %v3729_v51, %v3728_v44 }
 0x20d   : > { %v3720_v43 = vadd.f32 %v3719_v1, %v3718_v63  ;;  %v3726_v41 = vadd.f32 %v3725_v2, %v3724_v48  ;;  %v3736_v28 = vadd.f32 %v3735_v36, %v3734_v35  ;;  %v3745_v13 = vrot.slane %v3702_v39, 4 }
 0x20e   : > { %v3636_v53 = vrot.slane %v3622_v0, %v6635_v56  ;;  %v3769_v54 = vrot.slane %v3759_v33, %v6635_v56  ;;  %v3740_v16 = vadd.f32 %v3739_v23, %v3701_v18  ;;  %v3731_v40 = vrot.slane %v3730_v32, 1  ;;  %v8032_v37 = vpop.permute.xlu1 %4016 }
 0x20f   : > { %v3760_v42 = vcombine.low %v3720_v43, %v3726_v41  ;;  %v3737_v6 = vrot.slane %v3736_v28, 1  ;;  %vm3848_vm4 = vcmask 375808   ;;  %v3746_v4 = vadd.f32 %v3745_v13, %v3702_v39  ;;  %v8036_v31 = vpop.permute.xlu0 %4014 }
 0x210   : > { %v3637_v52 = vcombine.low %v3629_v49, %v3636_v53  ;;  %v3741_v57 = vrot.slane %v3740_v16, 2  ;;  %v3849_v61 = vsel %vm3848_vm4, %v7952_v38, %v7944_v12  ;;  %v3732_v25 = vadd.f32 %v3731_v40, %v3730_v32 }
 0x211   : > { %v3776_v17 = vrot.slane %v3760_v42, %v6635_v56  ;;  %v3738_v27 = vadd.f32 %v3737_v6, %v3736_v28  ;;  %v3865_v7 = vmul.f32 %v7830_v9, %v3849_v61  ;;  %v3747_v49 = vrot.slane %v3746_v4, 2 }
 0x212   : > { %3640 = vst [vmem:[#allocation2 + $0x83] ss:$8 sm:$0xf] %v3637_v52  ;;  %3641 = vst [vmem:[#allocation2 + $0x83] ss:$8 sm:$0xf0] %v3637_v52  ;;  %v3742_v19 = vadd.f32 %v3741_v57, %v3740_v16  ;;  %v3850_v63 = vsel %vm3848_vm4, %v7944_v12, %v7959_v21  ;;  %v3851_v38 = vsel %vm3848_vm4, %v7959_v21, %v7956_v50  ;;  %v8049_v2 = vpop.permute.xlu1 %4172 }
 0x213   : > { %v3791_v48 = vcombine.low %v3769_v54, %v3776_v17  ;;  %v3761_v44 = vcombine.low %v3732_v25, %v3738_v27  ;;  %v3873_v35 = vrot.slane %v3865_v7, 4  ;;  %v3866_v15 = vmul.f32 %v7926_v30, %v3850_v63  ;;  %v8053_v0 = vpop.permute.xlu0 %4170 }
 0x214   : > { %v3743_v58 = vrot.slane %v3742_v19, 1  ;;  %v3748_v3 = vadd.f32 %v3747_v49, %v3746_v4  ;;  %v3867_v18 = vmul.f32 %v7850_v55, %v3851_v38  ;;  %v3852_v1 = vsel %vm3848_vm4, %v7956_v50, %v7967_v10 }
 0x215   : > { %v3799_v12 = vrot.slane %v3791_v48, %v6635_v56  ;;  %v3783_v51 = vrot.slane %v3761_v44, %v6635_v56  ;;  %v3874_v21 = vadd.f32 %v3873_v35, %v3865_v7  ;;  %v3879_v36 = vrot.slane %v3866_v15, 4 }
 0x216   : > { %v3744_v33 = vadd.f32 %v3743_v58, %v3742_v19  ;;  %v3749_v39 = vrot.slane %v3748_v3, 1  ;;  %v3885_v23 = vrot.slane %v3867_v18, 4  ;;  %v3853_v43 = vsel %vm3848_vm4, %v7967_v10, %v7964_v11  ;;  %v8070_v25 = vpop.permute.xlu1 %4176 }
 0x217   : > { %v3875_v41 = vrot.slane %v3874_v21, 2  ;;  %v3880_v32 = vadd.f32 %v3879_v36, %v3866_v15  ;;  %v3868_v50 = vmul.f32 %v7769_v46, %v3852_v1  ;;  %v3869_v28 = vmul.f32 %v7873_v8, %v3853_v43  ;;  %v8066_v52 = vpop.permute.xlu0 %4174 }
 0x218   : > { %v3750_v53 = vadd.f32 %v3749_v39, %v3748_v3  ;;  %v3886_v54 = vadd.f32 %v3885_v23, %v3867_v18  ;;  %v3854_v16 = vsel %vm3848_vm4, %v7964_v11, %v7979_v47  ;;  %v3855_v13 = vsel %vm3848_vm4, %v7979_v47, %v7971_v5 }
 0x219   : > { %v3876_v42 = vadd.f32 %v3875_v41, %v3874_v21  ;;  %v3881_v40 = vrot.slane %v3880_v32, 2  ;;  %v3891_v6 = vrot.slane %v3868_v50, 4  ;;  %v3897_v10 = vrot.slane %v3869_v28, 4 }
 0x21a   : > { %v3762_v57 = vcombine.low %v3744_v33, %v3750_v53  ;;  %v3887_v4 = vrot.slane %v3886_v54, 2  ;;  %v3870_v61 = vmul.f32 %v7786_v26, %v3854_v16  ;;  %v3871_v17 = vmul.f32 %v7894_v14, %v3855_v13 }
 0x21b   : > { %v3877_v27 = vrot.slane %v3876_v42, 1  ;;  %v3882_v11 = vadd.f32 %v3881_v40, %v3880_v32  ;;  %v3892_v7 = vadd.f32 %v3891_v6, %v3868_v50  ;;  %v3898_v19 = vadd.f32 %v3897_v10, %v3869_v28  ;;  %v8073_v21 = vpop.permute.xlu0 %4178  ;;  %v8079_v28 = vpop.permute.xlu1 %4180 }
 0x21c   : > { %v3790_v47 = vrot.slane %v3762_v57, %v6635_v56  ;;  %v3888_v49 = vadd.f32 %v3887_v4, %v3886_v54  ;;  %v3903_v63 = vrot.slane %v3870_v61, 4  ;;  %v3909_v38 = vrot.slane %v3871_v17, 4 }
 0x21d   : > { %v3878_v48 = vadd.f32 %v3877_v27, %v3876_v42  ;;  %v3883_v44 = vrot.slane %v3882_v11, 1  ;;  %v3893_v35 = vrot.slane %v3892_v7, 2  ;;  %v3899_v15 = vrot.slane %v3898_v19, 2 }
 0x21e   : > { %v3792_v58 = vcombine.low %v3783_v51, %v3790_v47  ;;  %v3889_v3 = vrot.slane %v3888_v49, 1  ;;  %v3904_v18 = vadd.f32 %v3903_v63, %v3870_v61  ;;  %v3910_v1 = vadd.f32 %v3909_v38, %v3871_v17 }
 0x21f   : > { %v3884_v36 = vadd.f32 %v3883_v44, %v3882_v11  ;;  %v3894_v33 = vadd.f32 %v3893_v35, %v3892_v7  ;;  %v3900_v39 = vadd.f32 %v3899_v15, %v3898_v19  ;;  %v3856_v23 = vsel %vm3848_vm4, %v7971_v5, %v7997_v60  ;;  %v8089_v17 = vpop.permute.xlu0 %4182  ;;  %v8099_v38 = vpop.permute.xlu1 %4184 }
 0x220   : > { %v3806_v43 = vrot.slane %v3792_v58, %v6635_v56  ;;  %v3890_v41 = vadd.f32 %v3889_v3, %v3888_v49  ;;  %v3905_v32 = vrot.slane %v3904_v18, 2  ;;  %v3911_v50 = vrot.slane %v3910_v1, 2 }
 0x221   : > { %v3929_v51 = vcombine.low %v3878_v48, %v3884_v36  ;;  %v3895_v53 = vrot.slane %v3894_v33, 1  ;;  %v3901_v54 = vrot.slane %v3900_v39, 1  ;;  %v3872_v16 = vmul.f32 %v7810_v20, %v3856_v23 }
 0x222   : > { %v3807_v13 = vcombine.low %v3799_v12, %v3806_v43  ;;  %v3906_v42 = vadd.f32 %v3905_v32, %v3904_v18  ;;  %v3912_v40 = vadd.f32 %v3911_v50, %v3910_v1  ;;  %vm4018_vm5 = vcmask 367616  }
 0x223   : > { %v3939_v6 = vrot.slane %v3929_v51, %v6635_v56  ;;  %v3896_v10 = vadd.f32 %v3895_v53, %v3894_v33  ;;  %v3902_v5 = vadd.f32 %v3901_v54, %v3900_v39  ;;  %v3915_v60 = vrot.slane %v3872_v16, 4 }
 0x224   : > { %3810 = vst [vmem:[#allocation2 + $0x84] ss:$8 sm:$0xf] %v3807_v13  ;;  %3811 = vst [vmem:[#allocation2 + $0x84] ss:$8 sm:$0xf0] %v3807_v13  ;;  %v4019_v61 = vsel %vm4018_vm5, %v7990_v24, %v8008_v34  ;;  %v4020_v12 = vsel %vm4018_vm5, %v8008_v34, %v8004_v59  ;;  %v4021_v63 = vsel %vm4018_vm5, %v8004_v59, %v8018_v29  ;;  %v8116_v13 = vpop.permute.xlu1 %4340 }
 0x225   : > { %v3907_v57 = vrot.slane %v3906_v42, 1  ;;  %v3913_v4 = vrot.slane %v3912_v40, 1  ;;  %v3930_v27 = vcombine.low %v3890_v41, %v3896_v10  ;;  %v3916_v11 = vadd.f32 %v3915_v60, %v3872_v16  ;;  %v8111_v41 = vpop.permute.xlu0 %4186 }
 0x226   : > { %v4035_v7 = vmul.f32 %v7830_v9, %v4019_v61  ;;  %v4036_v19 = vmul.f32 %v7926_v30, %v4020_v12  ;;  %v4022_v24 = vsel %vm4018_vm5, %v8018_v29, %v8016_v62  ;;  %v4037_v58 = vmul.f32 %v7850_v55, %v4021_v63 }
 0x227   : > { %v3908_v47 = vadd.f32 %v3907_v57, %v3906_v42  ;;  %v3914_v49 = vadd.f32 %v3913_v4, %v3912_v40  ;;  %v3946_v34 = vrot.slane %v3930_v27, %v6635_v56  ;;  %v3917_v48 = vrot.slane %v3916_v11, 2 }
 0x228   : > { %v4043_v44 = vrot.slane %v4035_v7, 4  ;;  %v4049_v35 = vrot.slane %v4036_v19, 4  ;;  %v4038_v3 = vmul.f32 %v7769_v46, %v4022_v24  ;;  %v4023_v59 = vsel %vm4018_vm5, %v8016_v62, %v8025_v45 }
 0x229   : > { %v3931_v15 = vcombine.low %v3902_v5, %v3908_v47  ;;  %v3961_v18 = vcombine.low %v3939_v6, %v3946_v34  ;;  %v3918_v1 = vadd.f32 %v3917_v48, %v3916_v11  ;;  %v4055_v39 = vrot.slane %v4037_v58, 4  ;;  %v8124_v47 = vpop.permute.xlu0 %4342 }
 0x22a   : > { %v4044_v36 = vadd.f32 %v4043_v44, %v4035_v7  ;;  %v4050_v29 = vadd.f32 %v4049_v35, %v4036_v19  ;;  %v4061_v23 = vrot.slane %v4038_v3, 4  ;;  %v4024_v43 = vsel %vm4018_vm5, %v8025_v45, %v8023_v22 }
 0x22b   : > { %v3953_v33 = vrot.slane %v3931_v15, %v6635_v56  ;;  %v3969_v46 = vrot.slane %v3961_v18, %v6635_v56  ;;  %v3919_v32 = vrot.slane %v3918_v1, 1  ;;  %v4056_v62 = vadd.f32 %v4055_v39, %v4037_v58  ;;  %v8128_v15 = vpop.permute.xlu1 %4344 }
 0x22c   : > { %v4045_v50 = vrot.slane %v4044_v36, 2  ;;  %v4051_v51 = vrot.slane %v4050_v29, 2  ;;  %v4062_v53 = vadd.f32 %v4061_v23, %v4038_v3  ;;  %v4039_v54 = vmul.f32 %v7873_v8, %v4023_v59 }
 0x22d   : > { %v4040_v16 = vmul.f32 %v7786_v26, %v4024_v43  ;;  %v3920_v42 = vadd.f32 %v3919_v32, %v3918_v1  ;;  %v4025_v45 = vsel %vm4018_vm5, %v8023_v22, %v8036_v31  ;;  %v4057_v10 = vrot.slane %v4056_v62, 2 }
 0x22e   : > { %v4046_v40 = vadd.f32 %v4045_v50, %v4044_v36  ;;  %v4052_v6 = vadd.f32 %v4051_v51, %v4050_v29  ;;  %v4063_v5 = vrot.slane %v4062_v53, 2  ;;  %v4067_v60 = vrot.slane %v4039_v54, 4 }
 0x22f   : > { %v4073_v57 = vrot.slane %v4040_v16, 4  ;;  %v3932_v4 = vcombine.low %v3914_v49, %v3920_v42  ;;  %v4026_v26 = vsel %vm4018_vm5, %v8036_v31, %v8032_v37  ;;  %v4058_v27 = vadd.f32 %v4057_v10, %v4056_v62  ;;  %v8133_v62 = vpop.permute.xlu0 %4346 }
 0x230   : > { %v4047_v61 = vrot.slane %v4046_v40, 1  ;;  %v4053_v12 = vrot.slane %v4052_v6, 1  ;;  %v4064_v11 = vadd.f32 %v4063_v5, %v4062_v53  ;;  %v4068_v7 = vadd.f32 %v4067_v60, %v4039_v54 }
 0x231   : > { %v4074_v19 = vadd.f32 %v4073_v57, %v4040_v16  ;;  %v3960_v63 = vrot.slane %v3932_v4, %v6635_v56  ;;  %v4041_v34 = vmul.f32 %v7894_v14, %v4025_v45  ;;  %v4059_v48 = vrot.slane %v4058_v27, 1  ;;  %v8140_v45 = vpop.permute.xlu1 %4348 }
 0x232   : > { %v4048_v22 = vadd.f32 %v4047_v61, %v4046_v40  ;;  %v4054_v24 = vadd.f32 %v4053_v12, %v4052_v6  ;;  %v4065_v49 = vrot.slane %v4064_v11, 1  ;;  %v4069_v44 = vrot.slane %v4068_v7, 2 }
 0x233   : > { %v4075_v35 = vrot.slane %v4074_v19, 2  ;;  %v3962_v58 = vcombine.low %v3953_v33, %v3960_v63  ;;  %v4042_v31 = vmul.f32 %v7810_v20, %v4026_v26  ;;  %v4079_v3 = vrot.slane %v4041_v34, 4 }
 0x234   : > { %v4099_v37 = vcombine.low %v4048_v22, %v4054_v24  ;;  %v4060_v59 = vadd.f32 %v4059_v48, %v4058_v27  ;;  %v4066_v18 = vadd.f32 %v4065_v49, %v4064_v11  ;;  %v4070_v1 = vadd.f32 %v4069_v44, %v4068_v7  ;;  %v8161_v49 = vld [vmem:[%s6586_s13 + $0x18] sm:$0xff] }
 0x235   : > { %v4076_v36 = vadd.f32 %v4075_v35, %v4074_v19  ;;  %v3976_v29 = vrot.slane %v3962_v58, %v6635_v56  ;;  %v4080_v23 = vadd.f32 %v4079_v3, %v4041_v34  ;;  %v4085_v43 = vrot.slane %v4042_v31, 4  ;;  %v8155_v19 = vpop.permute.xlu0 %4350  ;;  %v8165_v35 = vpop.permute.xlu1 %4352 }
 0x236   : > { %v4109_v39 = vrot.slane %v4099_v37, %v6635_v56  ;;  %v4100_v32 = vcombine.low %v4060_v59, %v4066_v18  ;;  %v4071_v50 = vrot.slane %v4070_v1, 1  ;;  %vm4188_vm6 = vcmask 359424  }
 0x237   : > { %v4077_v51 = vrot.slane %v4076_v36, 1  ;;  %v3977_v33 = vcombine.low %v3969_v46, %v3976_v29  ;;  %v4081_v53 = vrot.slane %v4080_v23, 2  ;;  %v4086_v20 = vadd.f32 %v4085_v43, %v4042_v31 }
 0x238   : > { %v4189_v54 = vsel %vm4188_vm6, %v8053_v0, %v8049_v2  ;;  %v4116_v16 = vrot.slane %v4100_v32, %v6635_v56  ;;  %v4072_v42 = vadd.f32 %v4071_v50, %v4070_v1  ;;  %v4190_v46 = vsel %vm4188_vm6, %v8049_v2, %v8066_v52 }
 0x239   : > { %v4078_v40 = vadd.f32 %v4077_v51, %v4076_v36  ;;  %v4205_v6 = vmul.f32 %v7830_v9, %v4189_v54  ;;  %3980 = vst [vmem:[#allocation2 + $0x85] ss:$8 sm:$0xf] %v3977_v33  ;;  %3981 = vst [vmem:[#allocation2 + $0x85] ss:$8 sm:$0xf0] %v3977_v33  ;;  %v4082_v10 = vadd.f32 %v4081_v53, %v4080_v23  ;;  %v8178_v51 = vpop.permute.xlu0 %4354 }
 0x23a   : > { %v4087_v5 = vrot.slane %v4086_v20, 2  ;;  %v4191_v0 = vsel %vm4188_vm6, %v8066_v52, %v8070_v25  ;;  %v4131_v60 = vcombine.low %v4109_v39, %v4116_v16  ;;  %v4206_v61 = vmul.f32 %v7926_v30, %v4190_v46  ;;  %v8174_v39 = vld [vmem:[%s6586_s13 + $0x28] sm:$0xff] }
 0x23b   : > { %v4101_v57 = vcombine.low %v4072_v42, %v4078_v40  ;;  %v4213_v4 = vrot.slane %v4205_v6, 4  ;;  %v4083_v9 = vrot.slane %v4082_v10, 1  ;;  %v4207_v26 = vmul.f32 %v7850_v55, %v4191_v0 }
 0x23c   : > { %v4088_v12 = vadd.f32 %v4087_v5, %v4086_v20  ;;  %v4192_v27 = vsel %vm4188_vm6, %v8070_v25, %v8073_v21  ;;  %v4139_v2 = vrot.slane %v4131_v60, %v6635_v56  ;;  %v4219_v52 = vrot.slane %v4206_v61, 4 }
 0x23d   : > { %v4123_v11 = vrot.slane %v4101_v57, %v6635_v56  ;;  %v4214_v7 = vadd.f32 %v4213_v4, %v4205_v6  ;;  %v4084_v63 = vadd.f32 %v4083_v9, %v4082_v10  ;;  %v4225_v24 = vrot.slane %v4207_v26, 4  ;;  %v8181_v6 = vpop.permute.xlu1 %4356 }
 0x23e   : > { %v4089_v22 = vrot.slane %v4088_v12, 1  ;;  %v4193_v34 = vsel %vm4188_vm6, %v8073_v21, %v8079_v28  ;;  %v4220_v48 = vadd.f32 %v4219_v52, %v4206_v61  ;;  %v4208_v25 = vmul.f32 %v8161_v49, %v4192_v27 }
 0x23f   : > { %v4215_v55 = vrot.slane %v4214_v7, 2  ;;  %v4209_v44 = vmul.f32 %v7873_v8, %v4193_v34  ;;  %v4226_v37 = vadd.f32 %v4225_v24, %v4207_v26  ;;  %v4194_v31 = vsel %vm4188_vm6, %v8079_v28, %v8089_v17 }
 0x240   : > { %v4090_v58 = vadd.f32 %v4089_v22, %v4088_v12  ;;  %v4195_v21 = vsel %vm4188_vm6, %v8089_v17, %v8099_v38  ;;  %v4221_v59 = vrot.slane %v4220_v48, 2  ;;  %v4231_v18 = vrot.slane %v4208_v25, 4  ;;  %v8191_v22 = vpop.permute.xlu0 %4510 }
 0x241   : > { %v4216_v3 = vadd.f32 %v4215_v55, %v4214_v7  ;;  %v4237_v1 = vrot.slane %v4209_v44, 4  ;;  %v4227_v29 = vrot.slane %v4226_v37, 2  ;;  %v4210_v8 = vmul.f32 %v8174_v39, %v4194_v31 }
 0x242   : > { %v4102_v36 = vcombine.low %v4084_v63, %v4090_v58  ;;  %v4211_v23 = vmul.f32 %v7894_v14, %v4195_v21  ;;  %v4222_v32 = vadd.f32 %v4221_v59, %v4220_v48  ;;  %v4232_v50 = vadd.f32 %v4231_v18, %v4208_v25  ;;  %v8188_v63 = vld [vmem:[%s6586_s13 + $0x38] sm:$0xff]  ;;  %v8203_v59 = vld [vmem:[%s6586_s13] sm:$0xff] }
 0x243   : > { %v4217_v43 = vrot.slane %v4216_v3, 1  ;;  %v4238_v28 = vadd.f32 %v4237_v1, %v4209_v44  ;;  %v4228_v33 = vadd.f32 %v4227_v29, %v4226_v37  ;;  %v4243_v53 = vrot.slane %v4210_v8, 4  ;;  %v8194_v44 = vpop.permute.xlu1 %4512 }
 0x244   : > { %v4130_v17 = vrot.slane %v4102_v36, %v6635_v56  ;;  %v4249_v20 = vrot.slane %v4211_v23, 4  ;;  %v4223_v16 = vrot.slane %v4222_v32, 1  ;;  %v4233_v42 = vrot.slane %v4232_v50, 2 }
 0x245   : > { %v4218_v54 = vadd.f32 %v4217_v43, %v4216_v3  ;;  %v4239_v40 = vrot.slane %v4238_v28, 2  ;;  %v4229_v14 = vrot.slane %v4228_v33, 1  ;;  %v4244_v5 = vadd.f32 %v4243_v53, %v4210_v8 }
 0x246   : > { %v4132_v10 = vcombine.low %v4123_v11, %v4130_v17  ;;  %v4250_v46 = vadd.f32 %v4249_v20, %v4211_v23  ;;  %v4224_v0 = vadd.f32 %v4223_v16, %v4222_v32  ;;  %v4234_v60 = vadd.f32 %v4233_v42, %v4232_v50  ;;  %v8214_v50 = vpop.permute.xlu0 %4514  ;;  %v8217_v17 = vld [vmem:[%s6586_s13 + $0x10] sm:$0xff] }
 0x247   : > { %v4240_v57 = vadd.f32 %v4239_v40, %v4238_v28  ;;  %v4196_v4 = vsel %vm4188_vm6, %v8099_v38, %v8111_v41  ;;  %v4230_v9 = vadd.f32 %v4229_v14, %v4228_v33  ;;  %v4245_v12 = vrot.slane %v4244_v5, 2  ;;  %v8224_v16 = vpop.permute.xlu1 %4516 }
 0x248   : > { %v4146_v61 = vrot.slane %v4132_v10, %v6635_v56  ;;  %v4251_v26 = vrot.slane %v4250_v46, 2  ;;  %v4269_v27 = vcombine.low %v4218_v54, %v4224_v0  ;;  %v4235_v7 = vrot.slane %v4234_v60, 1 }
 0x249   : > { %v4241_v52 = vrot.slane %v4240_v57, 1  ;;  %v4212_v11 = vmul.f32 %v8188_v63, %v4196_v4  ;;  %v4246_v34 = vadd.f32 %v4245_v12, %v4244_v5  ;;  %vm4358_vm7 = vcmask 293888   ;;  %v8232_v4 = vld [vmem:[%s6586_s13 + $0x20] sm:$0xff] }
 0x24a   : > { %v4147_v24 = vcombine.low %v4139_v2, %v4146_v61  ;;  %v4252_v55 = vadd.f32 %v4251_v26, %v4250_v46  ;;  %v4279_v38 = vrot.slane %v4269_v27, %v6635_v56  ;;  %v4236_v41 = vadd.f32 %v4235_v7, %v4234_v60  ;;  %v8239_v7 = vpop.permute.xlu0 %4518 }
 0x24b   : > { %v4242_v48 = vadd.f32 %v4241_v52, %v4240_v57  ;;  %v4255_v25 = vrot.slane %v4212_v11, 4  ;;  %v4247_v58 = vrot.slane %v4246_v34, 1  ;;  %v4359_v31 = vsel %vm4358_vm7, %v8116_v13, %v8124_v47 }
 0x24c   : > { %4150 = vst [vmem:[#allocation2 + $0x86] ss:$8 sm:$0xf] %v4147_v24  ;;  %4151 = vst [vmem:[#allocation2 + $0x86] ss:$8 sm:$0xf0] %v4147_v24  ;;  %v4360_v2 = vsel %vm4358_vm7, %v8124_v47, %v8128_v15  ;;  %v4270_v21 = vcombine.low %v4230_v9, %v4236_v41  ;;  %v4375_v18 = vmul.f32 %v8203_v59, %v4359_v31 }
 0x24d   : > { %v4253_v37 = vrot.slane %v4252_v55, 1  ;;  %v4256_v3 = vadd.f32 %v4255_v25, %v4212_v11  ;;  %v4376_v1 = vmul.f32 %v7926_v30, %v4360_v2  ;;  %v4248_v36 = vadd.f32 %v4247_v58, %v4246_v34  ;;  %v8244_v25 = vpop.permute.xlu1 %4520 }
 0x24e   : > { %v4361_v8 = vsel %vm4358_vm7, %v8128_v15, %v8133_v62  ;;  %v4362_v13 = vsel %vm4358_vm7, %v8133_v62, %v8140_v45  ;;  %v4286_v47 = vrot.slane %v4270_v21, %v6635_v56  ;;  %v4383_v43 = vrot.slane %v4375_v18, 4 }
 0x24f   : > { %v4254_v29 = vadd.f32 %v4253_v37, %v4252_v55  ;;  %v4257_v23 = vrot.slane %v4256_v3, 2  ;;  %v4389_v32 = vrot.slane %v4376_v1, 4  ;;  %v4271_v28 = vcombine.low %v4242_v48, %v4248_v36 }
 0x250   : > { %v4377_v30 = vmul.f32 %v8217_v17, %v4361_v8  ;;  %v4378_v33 = vmul.f32 %v8161_v49, %v4362_v13  ;;  %v4363_v15 = vsel %vm4358_vm7, %v8140_v45, %v8155_v19  ;;  %v4301_v62 = vcombine.low %v4279_v38, %v4286_v47 }
 0x251   : > { %v4258_v53 = vadd.f32 %v4257_v23, %v4256_v3  ;;  %v4384_v20 = vadd.f32 %v4383_v43, %v4375_v18  ;;  %v4390_v54 = vadd.f32 %v4389_v32, %v4376_v1  ;;  %v4293_v42 = vrot.slane %v4271_v28, %v6635_v56  ;;  %v8248_v18 = vld [vmem:[%s6586_s13 + $0x30] sm:$0xff]  ;;  %v4523_v43 = vpop.permute.xlu0 %4522 }
 0x252   : > { %v4395_v40 = vrot.slane %v4377_v30, 4  ;;  %v4401_v10 = vrot.slane %v4378_v33, 4  ;;  %v4364_v14 = vsel %vm4358_vm7, %v8155_v19, %v8165_v35  ;;  %v4309_v5 = vrot.slane %v4301_v62, %v6635_v56 }
 0x253   : > { %v4259_v46 = vrot.slane %v4258_v53, 1  ;;  %v4385_v0 = vrot.slane %v4384_v20, 2  ;;  %v4391_v45 = vrot.slane %v4390_v54, 2  ;;  %v4379_v61 = vmul.f32 %v8232_v4, %v4363_v15 }
 0x254   : > { %v4396_v60 = vadd.f32 %v4395_v40, %v4377_v30  ;;  %v4402_v57 = vadd.f32 %v4401_v10, %v4378_v33  ;;  %v4380_v9 = vmul.f32 %v8174_v39, %v4364_v14  ;;  %v4365_v19 = vsel %vm4358_vm7, %v8165_v35, %v8178_v51 }
 0x255   : > { %v4260_v12 = vadd.f32 %v4259_v46, %v4258_v53  ;;  %v4386_v26 = vadd.f32 %v4385_v0, %v4384_v20  ;;  %v4392_v27 = vadd.f32 %v4391_v45, %v4390_v54  ;;  %v4407_v24 = vrot.slane %v4379_v61, 4  ;;  %v8254_v54 = vpop.permute.xlu1 %4524 }
 0x256   : > { %v4397_v52 = vrot.slane %v4396_v60, 2  ;;  %v4403_v11 = vrot.slane %v4402_v57, 2  ;;  %v4413_v34 = vrot.slane %v4380_v9, 4  ;;  %v4366_v48 = vsel %vm4358_vm7, %v8178_v51, %v8181_v6 }
 0x257   : > { %v4272_v55 = vcombine.low %v4254_v29, %v4260_v12  ;;  %v4387_v38 = vrot.slane %v4386_v26, 1  ;;  %v4393_v41 = vrot.slane %v4392_v27, 1  ;;  %v4408_v31 = vadd.f32 %v4407_v24, %v4379_v61  ;;  %v8268_v24 = vld [vmem:[%s6586_s13 + $0x8] sm:$0xff] }
 0x258   : > { %v4398_v58 = vadd.f32 %v4397_v52, %v4396_v60  ;;  %v4404_v37 = vadd.f32 %v4403_v11, %v4402_v57  ;;  %v4414_v35 = vadd.f32 %v4413_v34, %v4380_v9  ;;  %v4381_v1 = vmul.f32 %v8248_v18, %v4365_v19  ;;  %v4527_v19 = vpop.permute.xlu0 %4526 }
 0x259   : > { %v4300_v2 = vrot.slane %v4272_v55, %v6635_v56  ;;  %v4388_v21 = vadd.f32 %v4387_v38, %v4386_v26  ;;  %v4394_v3 = vadd.f32 %v4393_v41, %v4392_v27  ;;  %v4409_v8 = vrot.slane %v4408_v31, 2 }
 0x25a   : > { %v4399_v36 = vrot.slane %v4398_v58, 1  ;;  %v4405_v29 = vrot.slane %v4404_v37, 1  ;;  %v4415_v13 = vrot.slane %v4414_v35, 2  ;;  %v4382_v6 = vmul.f32 %v8188_v63, %v4366_v48  ;;  %v8275_v48 = vpop.permute.xlu1 %4680 }
 0x25b   : > { %v4302_v47 = vcombine.low %v4293_v42, %v4300_v2  ;;  %v4439_v51 = vcombine.low %v4388_v21, %v4394_v3  ;;  %v4419_v23 = vrot.slane %v4381_v1, 4  ;;  %v4410_v30 = vadd.f32 %v4409_v8, %v4408_v31 }
 0x25c   : > { %v4400_v32 = vadd.f32 %v4399_v36, %v4398_v58  ;;  %v4406_v28 = vadd.f32 %v4405_v29, %v4404_v37  ;;  %v4416_v33 = vadd.f32 %v4415_v13, %v4414_v35  ;;  %v4425_v20 = vrot.slane %v4382_v6, 4 }
 0x25d   : > { %v4316_v15 = vrot.slane %v4302_v47, %v6635_v56  ;;  %v4449_v62 = vrot.slane %v4439_v51, %v6635_v56  ;;  %v4420_v53 = vadd.f32 %v4419_v23, %v4381_v1  ;;  %v4411_v10 = vrot.slane %v4410_v30, 1 }
 0x25e   : > { %v4440_v40 = vcombine.low %v4400_v32, %v4406_v28  ;;  %v4417_v42 = vrot.slane %v4416_v33, 1  ;;  %vm4528_vm8 = vcmask 285696   ;;  %v4426_v0 = vadd.f32 %v4425_v20, %v4382_v6  ;;  %v4683_v6 = vpop.permute.xlu0 %4682 }
 0x25f   : > { %v4317_v14 = vcombine.low %v4309_v5, %v4316_v15  ;;  %v4421_v46 = vrot.slane %v4420_v53, 2  ;;  %v4529_v45 = vsel %vm4528_vm8, %v8191_v22, %v8194_v44  ;;  %v4412_v57 = vadd.f32 %v4411_v10, %v4410_v30 }
 0x260   : > { %v4456_v60 = vrot.slane %v4440_v40, %v6635_v56  ;;  %v4418_v61 = vadd.f32 %v4417_v42, %v4416_v33  ;;  %v4545_v9 = vmul.f32 %v8203_v59, %v4529_v45  ;;  %v4427_v26 = vrot.slane %v4426_v0, 2 }
 0x261   : > { %4320 = vst [vmem:[#allocation2 + $0x87] ss:$8 sm:$0xf] %v4317_v14  ;;  %4321 = vst [vmem:[#allocation2 + $0x87] ss:$8 sm:$0xf0] %v4317_v14  ;;  %v4422_v12 = vadd.f32 %v4421_v46, %v4420_v53  ;;  %v4530_v5 = vsel %vm4528_vm8, %v8194_v44, %v8214_v50  ;;  %v4531_v27 = vsel %vm4528_vm8, %v8214_v50, %v8224_v16  ;;  %v4685_v53 = vpop.permute.xlu1 %4684 }
 0x262   : > { %v4471_v22 = vcombine.low %v4449_v62, %v4456_v60  ;;  %v4441_v52 = vcombine.low %v4412_v57, %v4418_v61  ;;  %v4553_v11 = vrot.slane %v4545_v9, 4  ;;  %v4546_v34 = vmul.f32 %v8268_v24, %v4530_v5  ;;  %v4687_v5 = vpop.permute.xlu0 %4686 }
 0x263   : > { %v4423_v55 = vrot.slane %v4422_v12, 1  ;;  %v4428_v38 = vadd.f32 %v4427_v26, %v4426_v0  ;;  %v4547_v41 = vmul.f32 %v8217_v17, %v4531_v27  ;;  %v4532_v44 = vsel %vm4528_vm8, %v8224_v16, %v8239_v7 }
 0x264   : > { %v4479_v50 = vrot.slane %v4471_v22, %v6635_v56  ;;  %v4463_v58 = vrot.slane %v4441_v52, %v6635_v56  ;;  %v4554_v37 = vadd.f32 %v4553_v11, %v4545_v9  ;;  %v4559_v31 = vrot.slane %v4546_v34, 4 }
 0x265   : > { %v4424_v35 = vadd.f32 %v4423_v55, %v4422_v12  ;;  %v4429_v2 = vrot.slane %v4428_v38, 1  ;;  %v4565_v21 = vrot.slane %v4547_v41, 4  ;;  %v4533_v3 = vsel %vm4528_vm8, %v8239_v7, %v8244_v25 }
 0x266   : > { %v4555_v1 = vrot.slane %v4554_v37, 2  ;;  %v4560_v36 = vadd.f32 %v4559_v31, %v4546_v34  ;;  %v4548_v29 = vmul.f32 %v8161_v49, %v4532_v44  ;;  %v4549_v16 = vmul.f32 %v8232_v4, %v4533_v3  ;;  %v4689_v44 = vpop.permute.xlu1 %4688 }
 0x267   : > { %v4430_v8 = vadd.f32 %v4429_v2, %v4428_v38  ;;  %v4566_v13 = vadd.f32 %v4565_v21, %v4547_v41  ;;  %v4534_v47 = vsel %vm4528_vm8, %v8244_v25, %v4523_v43  ;;  %v4535_v51 = vsel %vm4528_vm8, %v4523_v43, %v8254_v54 }
 0x268   : > { %v4556_v23 = vadd.f32 %v4555_v1, %v4554_v37  ;;  %v4561_v32 = vrot.slane %v4560_v36, 2  ;;  %v4571_v28 = vrot.slane %v4548_v29, 4  ;;  %v4577_v30 = vrot.slane %v4549_v16, 4 }
 0x269   : > { %v4442_v7 = vcombine.low %v4424_v35, %v4430_v8  ;;  %v4567_v33 = vrot.slane %v4566_v13, 2  ;;  %v4550_v15 = vmul.f32 %v8174_v39, %v4534_v47  ;;  %v4551_v62 = vmul.f32 %v8248_v18, %v4535_v51  ;;  %v4691_v47 = vpop.permute.xlu0 %4690 }
 0x26a   : > { %v4557_v20 = vrot.slane %v4556_v23, 1  ;;  %v4562_v40 = vadd.f32 %v4561_v32, %v4560_v36  ;;  %v4572_v10 = vadd.f32 %v4571_v28, %v4548_v29  ;;  %v4578_v42 = vadd.f32 %v4577_v30, %v4549_v16 }
 0x26b   : > { %v4470_v25 = vrot.slane %v4442_v7, %v6635_v56  ;;  %v4568_v14 = vadd.f32 %v4567_v33, %v4566_v13  ;;  %v4583_v43 = vrot.slane %v4550_v15, 4  ;;  %v4589_v46 = vrot.slane %v4551_v62, 4 }
 0x26c   : > { %v4558_v0 = vadd.f32 %v4557_v20, %v4556_v23  ;;  %v4563_v45 = vrot.slane %v4562_v40, 1  ;;  %v4573_v60 = vrot.slane %v4572_v10, 2  ;;  %v4579_v57 = vrot.slane %v4578_v42, 2 }
 0x26d   : > { %v4472_v61 = vcombine.low %v4463_v58, %v4470_v25  ;;  %v4569_v9 = vrot.slane %v4568_v14, 1  ;;  %v4584_v12 = vadd.f32 %v4583_v43, %v4550_v15  ;;  %v4590_v26 = vadd.f32 %v4589_v46, %v4551_v62  ;;  %v4693_v15 = vpop.permute.xlu1 %4692 }
 0x26e   : > { %v4564_v27 = vadd.f32 %v4563_v45, %v4562_v40  ;;  %v4574_v22 = vadd.f32 %v4573_v60, %v4572_v10  ;;  %v4580_v52 = vadd.f32 %v4579_v57, %v4578_v42  ;;  %v4536_v11 = vsel %vm4528_vm8, %v8254_v54, %v4527_v19 }
 0x26f   : > { %v4486_v34 = vrot.slane %v4472_v61, %v6635_v56  ;;  %v4570_v55 = vadd.f32 %v4569_v9, %v4568_v14  ;;  %v4585_v38 = vrot.slane %v4584_v12, 2  ;;  %v4591_v41 = vrot.slane %v4590_v26, 2  ;;  %v4695_v61 = vpop.permute.xlu0 %4694 }
 0x270   : > { %v4609_v37 = vcombine.low %v4558_v0, %v4564_v27  ;;  %v4575_v31 = vrot.slane %v4574_v22, 1  ;;  %v4581_v35 = vrot.slane %v4580_v52, 1  ;;  %v4552_v58 = vmul.f32 %v8188_v63, %v4536_v11 }
 0x271   : > { %v4487_v2 = vcombine.low %v4479_v50, %v4486_v34  ;;  %v4586_v21 = vadd.f32 %v4585_v38, %v4584_v12  ;;  %v4592_v3 = vadd.f32 %v4591_v41, %v4590_v26  ;;  %vm4698_vm9 = vcmask 277504   ;;  %v4697_v34 = vpop.permute.xlu1 %4696 }
 0x272   : > { %v4619_v1 = vrot.slane %v4609_v37, %v6635_v56  ;;  %v4576_v36 = vadd.f32 %v4575_v31, %v4574_v22  ;;  %v4582_v29 = vadd.f32 %v4581_v35, %v4580_v52  ;;  %v4595_v54 = vrot.slane %v4552_v58, 4 }
 0x273   : > { %4490 = vst [vmem:[#allocation2 + $0xc0] ss:$8 sm:$0xf] %v4487_v2  ;;  %4491 = vst [vmem:[#allocation2 + $0xc0] ss:$8 sm:$0xf0] %v4487_v2  ;;  %v4699_v8 = vsel %vm4698_vm9, %v8275_v48, %v4683_v6  ;;  %v4700_v13 = vsel %vm4698_vm9, %v4683_v6, %v4685_v53  ;;  %v4701_v7 = vsel %vm4698_vm9, %v4685_v53, %v4687_v5 }
 0x274   : > { %v4587_v19 = vrot.slane %v4586_v21, 1  ;;  %v4593_v16 = vrot.slane %v4592_v3, 1  ;;  %v4610_v51 = vcombine.low %v4570_v55, %v4576_v36  ;;  %v4596_v50 = vadd.f32 %v4595_v54, %v4552_v58 }
 0x275   : > { %v4715_v23 = vmul.f32 %v8203_v59, %v4699_v8  ;;  %v4716_v32 = vmul.f32 %v8268_v24, %v4700_v13  ;;  %v4702_v33 = vsel %vm4698_vm9, %v4687_v5, %v4689_v44  ;;  %v4717_v10 = vmul.f32 %v8217_v17, %v4701_v7 }
 0x276   : > { %v4588_v28 = vadd.f32 %v4587_v19, %v4586_v21  ;;  %v4594_v30 = vadd.f32 %v4593_v16, %v4592_v3  ;;  %v4626_v62 = vrot.slane %v4610_v51, %v6635_v56  ;;  %v4597_v20 = vrot.slane %v4596_v50, 2 }
 0x277   : > { %v4723_v48 = vrot.slane %v4715_v23, 4  ;;  %v4729_v40 = vrot.slane %v4716_v32, 4  ;;  %v4718_v42 = vmul.f32 %v8161_v49, %v4702_v33  ;;  %v4703_v25 = vsel %vm4698_vm9, %v4689_v44, %v4691_v47 }
 0x278   : > { %v4611_v6 = vcombine.low %v4582_v29, %v4588_v28  ;;  %v4641_v14 = vcombine.low %v4619_v1, %v4626_v62  ;;  %v4598_v43 = vadd.f32 %v4597_v20, %v4596_v50  ;;  %v4735_v45 = vrot.slane %v4717_v10, 4 }
 0x279   : > { %v4724_v46 = vadd.f32 %v4723_v48, %v4715_v23  ;;  %v4730_v0 = vadd.f32 %v4729_v40, %v4716_v32  ;;  %v4741_v60 = vrot.slane %v4718_v42, 4  ;;  %v4704_v57 = vsel %vm4698_vm9, %v4691_v47, %v4693_v15  ;;  %v288_v40 = vld [vmem:[%s6491_s26] sm:$0xff] }
 0x27a   : > { %v4633_v53 = vrot.slane %v4611_v6, %v6635_v56  ;;  %v4649_v9 = vrot.slane %v4641_v14, %v6635_v56  ;;  %v4599_v12 = vrot.slane %v4598_v43, 1  ;;  %v4736_v27 = vadd.f32 %v4735_v45, %v4717_v10  ;;  %v289_v14 = vld [vmem:[%s6491_s26 + $0x8] sm:$0xff]  ;;  %v291_v45 = vld [vmem:[%s6491_s26 + $0x18] sm:$0xff] }
 0x27b   : > { %v4725_v26 = vrot.slane %v4724_v46, 2  ;;  %v4731_v5 = vrot.slane %v4730_v0, 2  ;;  %v4742_v22 = vadd.f32 %v4741_v60, %v4718_v42  ;;  %v4719_v52 = vmul.f32 %v8232_v4, %v4703_v25 }
 0x27c   : > { %v4720_v11 = vmul.f32 %v8174_v39, %v4704_v57  ;;  %v4600_v55 = vadd.f32 %v4599_v12, %v4598_v43  ;;  %v4705_v44 = vsel %vm4698_vm9, %v4693_v15, %v4695_v61  ;;  %v4737_v37 = vrot.slane %v4736_v27, 2 }
 0x27d   : > { %v4726_v38 = vadd.f32 %v4725_v26, %v4724_v46  ;;  %v4732_v41 = vadd.f32 %v4731_v5, %v4730_v0  ;;  %v4743_v31 = vrot.slane %v4742_v22, 2  ;;  %v4747_v35 = vrot.slane %v4719_v52, 4  ;;  %v292_v26 = vld [vmem:[%s6491_s26 + $0x20] sm:$0xff]  ;;  %v293_v5 = vld [vmem:[%s6491_s26 + $0x28] sm:$0xff] }
 0x27e   : > { %v4753_v58 = vrot.slane %v4720_v11, 4  ;;  %v4612_v2 = vcombine.low %v4594_v30, %v4600_v55  ;;  %v4706_v1 = vsel %vm4698_vm9, %v4695_v61, %v4697_v34  ;;  %v4738_v36 = vadd.f32 %v4737_v37, %v4736_v27 }
 0x27f   : > { %v4727_v21 = vrot.slane %v4726_v38, 1  ;;  %v4733_v3 = vrot.slane %v4732_v41, 1  ;;  %v4744_v29 = vadd.f32 %v4743_v31, %v4742_v22  ;;  %v4748_v54 = vadd.f32 %v4747_v35, %v4719_v52  ;;  %v294_v52 = vld [vmem:[%s6491_s26 + $0x30] sm:$0xff] }
 0x280   : > { %v4754_v19 = vadd.f32 %v4753_v58, %v4720_v11  ;;  %v4640_v16 = vrot.slane %v4612_v2, %v6635_v56  ;;  %v4721_v47 = vmul.f32 %v8248_v18, %v4705_v44  ;;  %v4739_v51 = vrot.slane %v4738_v36, 1 }
 0x281   : > { %v4728_v8 = vadd.f32 %v4727_v21, %v4726_v38  ;;  %v4734_v13 = vadd.f32 %v4733_v3, %v4732_v41  ;;  %v4745_v50 = vrot.slane %v4744_v29, 1  ;;  %v4749_v23 = vrot.slane %v4748_v54, 2  ;;  %v295_v38 = vld [vmem:[%s6491_s26 + $0x38] sm:$0xff] }
 0x282   : > { %v4755_v32 = vrot.slane %v4754_v19, 2  ;;  %v4642_v28 = vcombine.low %v4633_v53, %v4640_v16  ;;  %v4722_v7 = vmul.f32 %v8188_v63, %v4706_v1  ;;  %v4759_v33 = vrot.slane %v4721_v47, 4  ;;  %v290_v53 = vld [vmem:[%s6491_s26 + $0x10] sm:$0xff] }
 0x283   : > { %v4779_v30 = vcombine.low %v4728_v8, %v4734_v13  ;;  %v4740_v15 = vadd.f32 %v4739_v51, %v4738_v36  ;;  %v4746_v62 = vadd.f32 %v4745_v50, %v4744_v29  ;;  %v4750_v20 = vadd.f32 %v4749_v23, %v4748_v54 }
 0x284   : > { %v4756_v48 = vadd.f32 %v4755_v32, %v4754_v19  ;;  %v4656_v6 = vrot.slane %v4642_v28, %v6635_v56  ;;  %v4760_v42 = vadd.f32 %v4759_v33, %v4721_v47  ;;  %v4765_v25 = vrot.slane %v4722_v7, 4 }
 0x285   : > { %v8320_v10 = vrot.slane %v4779_v30, %v6635_v56  ;;  %v4780_v43 = vcombine.low %v4740_v15, %v4746_v62  ;;  %v4751_v46 = vrot.slane %v4750_v20, 1  ;;  %v8852_v12 = vmov 0.0  }
 0x286   : > { %v4757_v0 = vrot.slane %v4756_v48, 1  ;;  %v4657_v60 = vcombine.low %v4649_v9, %v4656_v6  ;;  %v4761_v57 = vrot.slane %v4760_v42, 2  ;;  %v4766_v61 = vadd.f32 %v4765_v25, %v4722_v7  ;;  %281 = vst [vmem:[#allocation2 + $0xc8] sm:$0xf8] %v8852_v12  ;;  %280 = vst [vmem:[#allocation2 + $0xc0] sm:$0xf8] %v8852_v12  ;;  %5257 = vmatprep.mubr.f32.mxu0 %v8852_v12 }
 0x287   : > { %v296_v27 = vmul.f32 %v8203_v59, %v288_v40  ;;  %282 = vst [vmem:[#allocation2 + $0xd0] sm:$0xf8] %v8852_v12  ;;  %283 = vst [vmem:[#allocation2 + $0xd8] sm:$0xf8] %v8852_v12  ;;  %5370 = vmatprep.mubr.f32.mxu1 %v8852_v12  ;;  %v4796_v59 = vrot.slane %v4780_v43, %v6635_v56  ;;  %v4752_v9 = vadd.f32 %v4751_v46, %v4750_v20 }
 0x288   : > { %284 = vst [vmem:[#allocation2 + $0xe0] sm:$0xf8] %v8852_v12  ;;  %285 = vst [vmem:[#allocation2 + $0xe8] sm:$0xf8] %v8852_v12  ;;  %v4758_v22 = vadd.f32 %v4757_v0, %v4756_v48  ;;  %v297_v11 = vmul.f32 %v8268_v24, %v289_v14  ;;  %v4762_v34 = vadd.f32 %v4761_v57, %v4760_v42  ;;  %v4767_v55 = vrot.slane %v4766_v61, 2 }
 0x289   : > { %286 = vst [vmem:[#allocation2 + $0xf0] sm:$0xf8] %v8852_v12  ;;  %287 = vst [vmem:[#allocation2 + $0xf8] sm:$0xf8] %v8852_v12  ;;  %v298_v41 = vmul.f32 %v8217_v17, %v290_v53  ;;  %v299_v44 = vmul.f32 %v8161_v49, %v291_v45  ;;  %v300_v31 = vmul.f32 %v8232_v4, %v292_v26  ;;  %v304_v36 = vrot.slane %v296_v27, 4 }
 0x28a   : > { %4660 = vst [vmem:[#allocation2 + $0xc1] ss:$8 sm:$0xf] %v4657_v60  ;;  %4661 = vst [vmem:[#allocation2 + $0xc1] ss:$8 sm:$0xf0] %v4657_v60  ;;  %v4781_v37 = vcombine.low %v4752_v9, %v4758_v22  ;;  %v301_v35 = vmul.f32 %v8174_v39, %v293_v5  ;;  %v4811_v58 = vcombine.low %v8320_v10, %v4796_v59 }
 0x28b   : > { %v4763_v2 = vrot.slane %v4762_v34, 1  ;;  %v4768_v21 = vadd.f32 %v4767_v55, %v4766_v61  ;;  %v302_v24 = vmul.f32 %v8248_v18, %v294_v52  ;;  %v303_v1 = vmul.f32 %v8188_v63, %v295_v38 }
 0x28c   : > { %v4803_v3 = vrot.slane %v4781_v37, %v6635_v56  ;;  %v310_v29 = vrot.slane %v297_v11, 4  ;;  %v316_v49 = vrot.slane %v298_v41, 4  ;;  %v322_v19 = vrot.slane %v299_v44, 4 }
 0x28d   : > { %v4764_v17 = vadd.f32 %v4763_v2, %v4762_v34  ;;  %v4769_v54 = vrot.slane %v4768_v21, 1  ;;  %v305_v16 = vadd.f32 %v304_v36, %v296_v27  ;;  %v328_v8 = vrot.slane %v300_v31, 4 }
 0x28e   : > { %v311_v4 = vadd.f32 %v310_v29, %v297_v11  ;;  %v334_v39 = vrot.slane %v301_v35, 4  ;;  %v317_v47 = vadd.f32 %v316_v49, %v298_v41  ;;  %v323_v51 = vadd.f32 %v322_v19, %v299_v44  ;;  %v4849_v49 = vld [vmem:[#allocation2 + $0x88] sm:$0xff]  ;;  %v4843_v19 = vld [vmem:[#allocation2 + $0x58] sm:$0xff] }
 0x28f   : > { %v4770_v13 = vadd.f32 %v4769_v54, %v4768_v21  ;;  %v340_v50 = vrot.slane %v302_v24, 4  ;;  %v306_v23 = vrot.slane %v305_v16, 2  ;;  %v329_v32 = vadd.f32 %v328_v8, %v300_v31  ;;  %v4841_v54 = vld [vmem:[#allocation2 + $0x48] sm:$0xff]  ;;  %v4840_v8 = vld [vmem:[#allocation2 + $0x40] sm:$0xff] }
 0x290   : > { %v312_v18 = vrot.slane %v311_v4, 2  ;;  %v335_v28 = vadd.f32 %v334_v39, %v301_v35  ;;  %v318_v63 = vrot.slane %v317_v47, 2  ;;  %v324_v7 = vrot.slane %v323_v51, 2  ;;  %v4848_v39 = vld [vmem:[#allocation2 + $0x80] sm:$0xff] }
 0x291   : > { %v4782_v30 = vcombine.low %v4764_v17, %v4770_v13  ;;  %v341_v33 = vadd.f32 %v340_v50, %v302_v24  ;;  %v307_v15 = vadd.f32 %v306_v23, %v305_v16  ;;  %v330_v20 = vrot.slane %v329_v32, 2  ;;  %v4842_v13 = vld [vmem:[#allocation2 + $0x50] sm:$0xff] }
 0x292   : > { %v313_v62 = vadd.f32 %v312_v18, %v311_v4  ;;  %v336_v48 = vrot.slane %v335_v28, 2  ;;  %v319_v6 = vadd.f32 %v318_v63, %v317_v47  ;;  %v325_v10 = vadd.f32 %v324_v7, %v323_v51  ;;  %v4851_v4 = vld [vmem:[#allocation2 + $0x98] sm:$0xff]  ;;  %v4850_v47 = vld [vmem:[#allocation2 + $0x90] sm:$0xff] }
 0x293   : > { %v4810_v40 = vrot.slane %v4782_v30, %v6635_v56  ;;  %v342_v42 = vrot.slane %v341_v33, 2  ;;  %v308_v25 = vrot.slane %v307_v15, 1  ;;  %v331_v43 = vadd.f32 %v330_v20, %v329_v32  ;;  %v4845_v32 = vld [vmem:[#allocation2 + $0x68] sm:$0xff] }
 0x294   : > { %v314_v14 = vrot.slane %v313_v62, 1  ;;  %v337_v46 = vadd.f32 %v336_v48, %v335_v28  ;;  %v320_v53 = vrot.slane %v319_v6, 1  ;;  %v326_v45 = vrot.slane %v325_v10, 1 }
 0x295   : > { %v4812_v0 = vcombine.low %v4803_v3, %v4810_v40  ;;  %v4819_v60 = vrot.slane %v4811_v58, %v6635_v56  ;;  %v343_v57 = vadd.f32 %v342_v42, %v341_v33  ;;  %v309_v26 = vadd.f32 %v308_v25, %v307_v15  ;;  %v4853_v33 = vld [vmem:[#allocation2 + $0xa8] sm:$0xff]  ;;  %v4847_v40 = vld [vmem:[#allocation2 + $0x78] sm:$0xff] }
 0x296   : > { %v315_v5 = vadd.f32 %v314_v14, %v313_v62  ;;  %v332_v27 = vrot.slane %v331_v43, 1  ;;  %v321_v59 = vadd.f32 %v320_v53, %v319_v6  ;;  %v327_v9 = vadd.f32 %v326_v45, %v325_v10  ;;  %v4855_v6 = vld [vmem:[#allocation2 + $0xb8] sm:$0xff] }
 0x297   : > { %v4826_v61 = vrot.slane %v4812_v0, %v6635_v56  ;;  %v338_v22 = vrot.slane %v337_v46, 1  ;;  %v346_v52 = vrot.slane %v303_v1, 4  ;;  %v344_v38 = vrot.slane %v343_v57, 1  ;;  %v4844_v0 = vld [vmem:[#allocation2 + $0x60] sm:$0xff] }
 0x298   : > { %v333_v55 = vadd.f32 %v332_v27, %v331_v43  ;;  %v360_v37 = vcombine.low %v309_v26, %v315_v5  ;;  %v361_v31 = vcombine.low %v321_v59, %v327_v9  ;;  %v8358_v23 = vmax.f32 %v4841_v54, 0.0 }
 0x299   : > { %v4827_v11 = vcombine.low %v4819_v60, %v4826_v61  ;;  %v347_v34 = vadd.f32 %v346_v52, %v303_v1  ;;  %v339_v41 = vadd.f32 %v338_v22, %v337_v46  ;;  %v345_v58 = vadd.f32 %v344_v38, %v343_v57  ;;  %v4852_v52 = vld [vmem:[#allocation2 + $0xa0] sm:$0xff] }
 0x29a   : > { %v370_v24 = vrot.slane %v360_v37, %v6635_v56  ;;  %v377_v3 = vrot.slane %v361_v31, %v6635_v56  ;;  %v8360_v18 = vmax.f32 %v4849_v49, 0.0  ;;  %v8362_v28 = vmax.f32 %v4843_v19, 0.0  ;;  %v4854_v37 = vld [vmem:[#allocation2 + $0xb0] sm:$0xff]  ;;  %v5120_v49 = vld [vmem:[%s8848_s3] sm:$0xff]  ;;  %v5121_v19 = vld [vmem:[%s8848_s3 + $0x8] sm:$0xff] }
 0x29b   : > { %4830 = vst [vmem:[#allocation2 + $0xc2] ss:$8 sm:$0xf] %v4827_v11  ;;  %4831 = vst [vmem:[#allocation2 + $0xc2] ss:$8 sm:$0xf0] %v4827_v11  ;;  %v362_v21 = vcombine.low %v333_v55, %v339_v41  ;;  %v8379_v25 = vmul.f32 %v8358_v23, %v8358_v23 }
 0x29c   : > { %v348_v44 = vrot.slane %v347_v34, 2  ;;  %v392_v17 = vcombine.low %v370_v24, %v377_v3  ;;  %v8364_v30 = vmax.f32 %v4851_v4, 0.0  ;;  %v8366_v63 = vmax.f32 %v4840_v8, 0.0 }
 0x29d   : > { %v384_v1 = vrot.slane %v362_v21, %v6635_v56  ;;  %v8368_v7 = vmax.f32 %v4848_v39, 0.0  ;;  %v8371_v62 = vmax.f32 %v4842_v13, 0.0  ;;  %v8373_v20 = vmax.f32 %v4850_v47, 0.0 }
 0x29e   : > { %v349_v35 = vadd.f32 %v348_v44, %v347_v34  ;;  %v400_v50 = vrot.slane %v392_v17, %v6635_v56  ;;  %v8375_v48 = vmax.f32 %v4845_v32, 0.0  ;;  %v8383_v14 = vmul.f32 %v8360_v18, %v8360_v18  ;;  %v4846_v34 = vld [vmem:[#allocation2 + $0x70] sm:$0xff] }
 0x29f   : > { %v8385_v46 = vmax.f32 %v4853_v33, 0.0  ;;  %v8389_v53 = vmul.f32 %v8362_v28, %v8362_v28  ;;  %v8393_v45 = vmul.f32 %v8364_v30, %v8364_v30  ;;  %v8397_v60 = vmul.f32 %v8366_v63, %v8366_v63  ;;  %v5122_v32 = vld [vmem:[%s8848_s3 + $0x10] sm:$0xff]  ;;  %v5123_v33 = vld [vmem:[%s8848_s3 + $0x18] sm:$0xff] }
 0x2a0   : > { %v350_v2 = vrot.slane %v349_v35, 1  ;;  %v8401_v57 = vmul.f32 %v8368_v7, %v8368_v7  ;;  %v8405_v27 = vmul.f32 %v8371_v62, %v8371_v62  ;;  %v8409_v59 = vmul.f32 %v8373_v20, %v8373_v20 }
 0x2a1   : > { %v8411_v9 = vmax.f32 %v4847_v40, 0.0  ;;  %v8413_v22 = vmax.f32 %v4855_v6, 0.0  ;;  %v8423_v44 = vmul.f32 %v8375_v48, %v8375_v48  ;;  %v8435_v24 = vmax.f32 %v4844_v0, 0.0 }
 0x2a2   : > { %v351_v36 = vadd.f32 %v350_v2, %v349_v35  ;;  %v4857_v42 = vld [vmem:[#allocation2 + $0xc8] sm:$0xff]  ;;  %v4859_v43 = vld [vmem:[#allocation2 + $0xd8] sm:$0xff]  ;;  %v4858_v61 = vld [vmem:[#allocation2 + $0xd0] sm:$0xff]  ;;  %v8437_v3 = vmax.f32 %v4852_v52, 0.0  ;;  %v8449_v54 = vmax.f32 %v4854_v37, 0.0  ;;  %v6441_v13 = vmov 0  }
 0x2a3   : > { %v4861_v26 = vld [vmem:[#allocation2 + $0xe8] sm:$0xff]  ;;  %v4863_v5 = vld [vmem:[#allocation2 + $0xf8] sm:$0xff]  ;;  %8862 = vst [vmem:[#allocation3_spill] sm:$0xff] %v8413_v22  ;;  %v4860_v11 = vld [vmem:[#allocation2 + $0xe0] sm:$0xff]  ;;  %v8415_v55 = vmax.f32 %v4857_v42, 0.0  ;;  %v8417_v38 = vmax.f32 %v4859_v43, 0.0  ;;  %v8447_v17 = vmul.f32 %v8413_v22, %v8413_v22  ;;  %6339 = vset.pattern.permute.xlu0 %v6441_v13  ;;  %6340 = vset.pattern.permute.xlu1 %v6441_v13 }
 0x2a4   : > { %v363_v29 = vcombine.low %v345_v58, %v351_v36  ;;  %v8425_v31 = vmax.f32 %v4858_v61, 0.0  ;;  %v8427_v35 = vmax.f32 %v4861_v26, 0.0  ;;  %v8431_v58 = vmul.f32 %v8385_v46, %v8385_v46  ;;  %v4862_v21 = vld [vmem:[#allocation2 + $0xf0] sm:$0xff]  ;;  %8865 = vst [vmem:[#allocation6_spill] sm:$0xff] %v8437_v3  ;;  %8868 = vst [vmem:[#allocation9_spill] sm:$0xff] %v8449_v54  ;;  %5130 = vperm.xlu0 %6339, %v5120_v49  }
 0x2a5   : > { %v8433_v2 = vmax.f32 %v4863_v5, 0.0  ;;  %v8439_v36 = vmax.f32 %v4860_v11, 0.0  ;;  %v8463_v4 = vmul.f32 %v8417_v38, %v8417_v38  ;;  %v8469_v39 = vmax.f32 %v4862_v21, 0.0  ;;  %5135 = vperm.xlu1 %6340, %v5121_v19  }
 0x2a6   : > { %v391_v16 = vrot.slane %v363_v29, %v6635_v56  ;;  %8863 = vst [vmem:[#allocation4_spill] sm:$0xff] %v8427_v35  ;;  %v8441_v29 = vmax.f32 %v4846_v34, 0.0  ;;  %v8473_v47 = vmul.f32 %v8425_v31, %v8425_v31  ;;  %v4916_v42 = vmul.f32 %v8437_v3, %v8437_v3 }
 0x2a7   : > { %8864 = vst [vmem:[#allocation5_spill] sm:$0xff] %v8433_v2  ;;  %8866 = vst [vmem:[#allocation7_spill] sm:$0xff] %v8439_v36  ;;  %v4924_v43 = vmul.f32 %v8439_v36, %v8439_v36  ;;  %v4918_v34 = vmul.f32 %v8449_v54, %v8449_v54  ;;  %v5124_v36 = vld [vmem:[%s8848_s3 + $0x20] sm:$0xff] }
 0x2a8   : > { %v393_v51 = vcombine.low %v384_v1, %v391_v16  ;;  %8867 = vst [vmem:[#allocation8_spill] sm:$0xff] %v8441_v29  ;;  %v4911_v1 = vmul.f32 %v8411_v9, %v8411_v9  ;;  %v8459_v16 = vmul.f32 %v8415_v55, %v8415_v55  ;;  %8869 = vst [vmem:[#allocation10_spill] sm:$0xff] %v8469_v39  ;;  %5145 = vperm.xlu0 %6339, %v5123_v33  }
 0x2a9   : > { %5140 = vperm.xlu1 %6340, %v5122_v32  }
 0x2aa   : > { %v407_v15 = vrot.slane %v393_v51, %v6635_v56  ;;  %v4856_v56 = vld [vmem:[#allocation2 + $0xc0] sm:$0xff]  ;;  %v8477_v51 = vmul.f32 %v8427_v35, %v8427_v35 }
 0x2ab   : > { %v8419_v41 = vmax.f32 %v4856_v56, 0.0  ;;  %v4910_v56 = vmul.f32 %v8441_v29, %v8441_v29 }
 0x2ac   : > { %v408_v10 = vcombine.low %v400_v50, %v407_v15  ;;  %v8481_v50 = vmul.f32 %v8433_v2, %v8433_v2  ;;  %v5125_v2 = vld [vmem:[%s8848_s3 + $0x28] sm:$0xff] }
 0x2ad   : > { %v8467_v8 = vmul.f32 %v8419_v41, %v8419_v41  ;;  %5150 = vperm.xlu1 %6340, %v5124_v36   ;;  %5155 = vperm.xlu0 %6339, %v5125_v2  }
 0x2ae   : > { %410 = vst [vmem:[#allocation2] ss:$8 sm:$0xf] %v408_v10  ;;  %411 = vst [vmem:[#allocation2] ss:$8 sm:$0xf0] %v408_v10  ;;  %v4908_v10 = vmul.f32 %v8435_v24, %v8435_v24 }
 0x2b5   : > { %v4833_v15 = vld [vmem:[#allocation2 + $0x8] sm:$0xff]  ;;  %v4835_v40 = vld [vmem:[#allocation2 + $0x18] sm:$0xff]  ;;  %v4832_v6 = vld [vmem:[#allocation2] sm:$0xff] }
 0x2b6   : > { %v8497_v0 = vmax.f32 %v4833_v15, 0.0  ;;  %v8499_v61 = vmax.f32 %v4835_v40, 0.0  ;;  %v8501_v26 = vmax.f32 %v4832_v6, 0.0  ;;  %v4834_v5 = vld [vmem:[#allocation2 + $0x10] sm:$0xff]  ;;  %v4837_v52 = vld [vmem:[#allocation2 + $0x28] sm:$0xff]  ;;  %v4839_v11 = vld [vmem:[#allocation2 + $0x38] sm:$0xff]  ;;  %v4926_v15 = vmul.f32 %v8469_v39, %v8469_v39 }
 0x2b7   : > { %v8505_v37 = vmax.f32 %v4834_v5, 0.0  ;;  %v8507_v21 = vmax.f32 %v4837_v52, 0.0  ;;  %v8509_v49 = vmax.f32 %v4839_v11, 0.0  ;;  %v4836_v19 = vld [vmem:[#allocation2 + $0x20] sm:$0xff]  ;;  %v4838_v13 = vld [vmem:[#allocation2 + $0x30] sm:$0xff] }
 0x2b8   : > { %v4897_v40 = vmul.f32 %v8497_v0, %v8497_v0  ;;  %v4899_v6 = vmul.f32 %v8499_v61, %v8499_v61  ;;  %v4896_v12 = vmul.f32 %v8501_v26, %v8501_v26  ;;  %v8519_v5 = vmax.f32 %v4836_v19, 0.0 }
 0x2b9   : > { %v4898_v52 = vmul.f32 %v8505_v37, %v8505_v37  ;;  %v4901_v11 = vmul.f32 %v8507_v21, %v8507_v21  ;;  %v4903_v39 = vmul.f32 %v8509_v49, %v8509_v49  ;;  %v8527_v54 = vmax.f32 %v4838_v13, 0.0 }
 0x2ba   : > { %v4937_v19 = vadd.f32 %v8379_v25, %v4897_v40  ;;  %v4955_v32 = vadd.f32 %v8389_v53, %v4899_v6  ;;  %v4928_v33 = vadd.f32 %v8397_v60, %v4896_v12  ;;  %v4900_v3 = vmul.f32 %v8519_v5, %v8519_v5 }
 0x2bb   : > { %v4946_v13 = vadd.f32 %v8405_v27, %v4898_v52  ;;  %v4973_v22 = vadd.f32 %v8423_v44, %v4901_v11  ;;  %v4991_v35 = vadd.f32 %v4911_v1, %v4903_v39  ;;  %v4902_v29 = vmul.f32 %v8527_v54, %v8527_v54  ;;  %v5126_v44 = vld [vmem:[%s8848_s3 + $0x30] sm:$0xff] }
 0x2bc   : > { %v4938_v25 = vadd.f32 %v4937_v19, %v8383_v14  ;;  %v4956_v53 = vadd.f32 %v4955_v32, %v8393_v45  ;;  %v4929_v12 = vadd.f32 %v4928_v33, %v8401_v57  ;;  %v4964_v60 = vadd.f32 %v4908_v10, %v4900_v3  ;;  %5160 = vperm.xlu1 %6340, %v5126_v44   ;;  %v5774_v10 = vld [vmem:[%s8850_s5] sm:$0x7] }
 0x2bd   : > { %v4947_v40 = vadd.f32 %v4946_v13, %v8409_v59  ;;  %v4974_v6 = vadd.f32 %v4973_v22, %v8431_v58  ;;  %v4992_v27 = vadd.f32 %v4991_v35, %v8447_v17  ;;  %v4982_v52 = vadd.f32 %v4910_v56, %v4902_v29  ;;  %v5127_v59 = vld [vmem:[%s8848_s3 + $0x38] sm:$0xff] }
 0x2be   : > { %v4939_v14 = vadd.f32 %v4938_v25, %v8459_v16  ;;  %v4957_v45 = vadd.f32 %v4956_v53, %v8463_v4  ;;  %v4930_v57 = vadd.f32 %v4929_v12, %v8467_v8  ;;  %v4965_v3 = vadd.f32 %v4964_v60, %v4916_v42  ;;  %5165 = vperm.xlu0 %6339, %v5127_v59  }
 0x2bf   : > { %v4948_v22 = vadd.f32 %v4947_v40, %v8473_v47  ;;  %v4975_v35 = vadd.f32 %v4974_v6, %v8477_v51  ;;  %v4993_v58 = vadd.f32 %v4992_v27, %v8481_v50  ;;  %v4983_v36 = vadd.f32 %v4982_v52, %v4918_v34 }
 0x2c0   : > { %v4940_v29 = vrot.slane %v4939_v14, 4  ;;  %v4958_v2 = vrot.slane %v4957_v45, 4  ;;  %v4931_v1 = vrot.slane %v4930_v57, 4  ;;  %v4966_v17 = vadd.f32 %v4965_v3, %v4924_v43  ;;  %5777 = vperm.xlu1 %6340, %v5774_v10  }
 0x2c1   : > { %v4949_v16 = vrot.slane %v4948_v22, 4  ;;  %v4976_v4 = vrot.slane %v4975_v35, 4  ;;  %v4994_v8 = vrot.slane %v4993_v58, 4  ;;  %v4984_v39 = vadd.f32 %v4983_v36, %v4926_v15 }
 0x2c2   : > { %v4941_v47 = vadd.f32 %v4940_v29, %v4939_v14  ;;  %v4959_v42 = vadd.f32 %v4958_v2, %v4957_v45  ;;  %v4932_v51 = vadd.f32 %v4931_v1, %v4930_v57  ;;  %v4967_v56 = vrot.slane %v4966_v17, 4 }
 0x2c3   : > { %v4950_v50 = vadd.f32 %v4949_v16, %v4948_v22  ;;  %v4977_v34 = vadd.f32 %v4976_v4, %v4975_v35  ;;  %v4995_v11 = vadd.f32 %v4994_v8, %v4993_v58  ;;  %v4985_v19 = vrot.slane %v4984_v39, 4 }
 0x2c4   : > { %v4942_v32 = vrot.slane %v4941_v47, 2  ;;  %v4960_v43 = vrot.slane %v4959_v42, 2  ;;  %v4933_v33 = vrot.slane %v4932_v51, 2  ;;  %v4968_v13 = vadd.f32 %v4967_v56, %v4966_v17 }
 0x2c5   : > { %v4951_v25 = vrot.slane %v4950_v50, 2  ;;  %v4978_v15 = vrot.slane %v4977_v34, 2  ;;  %v4996_v53 = vrot.slane %v4995_v11, 2  ;;  %v4986_v12 = vadd.f32 %v4985_v19, %v4984_v39 }
 0x2c6   : > { %v4943_v60 = vadd.f32 %v4942_v32, %v4941_v47  ;;  %v4961_v40 = vadd.f32 %v4960_v43, %v4959_v42  ;;  %v4934_v6 = vadd.f32 %v4933_v33, %v4932_v51  ;;  %v4969_v27 = vrot.slane %v4968_v13, 2 }
 0x2c7   : > { %v4952_v52 = vadd.f32 %v4951_v25, %v4950_v50  ;;  %v4979_v44 = vadd.f32 %v4978_v15, %v4977_v34  ;;  %v4997_v14 = vadd.f32 %v4996_v53, %v4995_v11  ;;  %v4987_v45 = vrot.slane %v4986_v12, 2 }
 0x2c8   : > { %v4944_v57 = vrot.slane %v4943_v60, 1  ;;  %v4962_v3 = vrot.slane %v4961_v40, 1  ;;  %v4935_v59 = vrot.slane %v4934_v6, 1  ;;  %v4970_v36 = vadd.f32 %v4969_v27, %v4968_v13 }
 0x2c9   : > { %v4953_v22 = vrot.slane %v4952_v52, 1  ;;  %v4980_v35 = vrot.slane %v4979_v44, 1  ;;  %v4998_v58 = vrot.slane %v4997_v14, 1  ;;  %v4988_v17 = vadd.f32 %v4987_v45, %v4986_v12 }
 0x2ca   : > { %v4945_v29 = vadd.f32 %v4944_v57, %v4943_v60  ;;  %v4963_v2 = vadd.f32 %v4962_v3, %v4961_v40  ;;  %v4936_v1 = vadd.f32 %v4935_v59, %v4934_v6  ;;  %v4971_v39 = vrot.slane %v4970_v36, 1 }
 0x2cb   : > { %v4954_v16 = vadd.f32 %v4953_v22, %v4952_v52  ;;  %v8565_v4 = vadd.f32 %v4980_v35, %v4979_v44  ;;  %v8567_v8 = vadd.f32 %v4998_v58, %v4997_v14  ;;  %v4989_v10 = vrot.slane %v4988_v17, 1 }
 0x2cc   : > { %6341 = vrsqrt.f32 %v4945_v29  ;;  %v8571_v47 = vadd.f32 %v4971_v39, %v4970_v36  ;;  %vm5009_vm10 = vcmp.eq.f32.partialorder %v4945_v29, inf  ;;  %vm5011_vm11 = vcmp.eq.f32.partialorder %v4945_v29, 0.0 }
 0x2cd   : > { %6343 = vrsqrt.f32 %v4963_v2  ;;  %v8573_v42 = vadd.f32 %v4989_v10, %v4988_v17  ;;  %v5012_v51 = vand.u32 2147483648, %v4945_v29  ;;  %vm5023_vm12 = vcmp.eq.f32.partialorder %v4963_v2, inf }
 0x2ce   : > { %6345 = vrsqrt.f32 %v4936_v1  ;;  %vm5025_vm13 = vcmp.eq.f32.partialorder %v4963_v2, 0.0  ;;  %v5026_v56 = vand.u32 2147483648, %v4963_v2  ;;  %vm5002_vm14 = vcmp.eq.f32.partialorder %v4936_v1, inf }
 0x2cf   : > { %6347 = vrsqrt.f32 %v4954_v16  ;;  %vm5004_vm15 = vcmp.eq.f32.partialorder %v4936_v1, 0.0  ;;  %v5005_v34 = vand.u32 2147483648, %v4936_v1  ;;  %vm5016_vm0 = vcmp.eq.f32.partialorder %v4954_v16, inf }
 0x2d0   : > { %6349 = vrsqrt.f32 %v8565_v4  ;;  %vm5018_vm1 = vcmp.eq.f32.partialorder %v4954_v16, 0.0  ;;  %v5019_v32 = vand.u32 2147483648, %v4954_v16  ;;  %vm5037_vm2 = vcmp.eq.f32.partialorder %v8565_v4, inf }
 0x2d1   : > { %6351 = vrsqrt.f32 %v8567_v8  ;;  %vm5039_vm3 = vcmp.eq.f32.partialorder %v8565_v4, 0.0  ;;  %v5040_v13 = vand.u32 2147483648, %v8565_v4  ;;  %vm5051_vm4 = vcmp.eq.f32.partialorder %v8567_v8, inf }
 0x2d2   : > { %6353 = vrsqrt.f32 %v8571_v47  ;;  %vm5053_vm5 = vcmp.eq.f32.partialorder %v8567_v8, 0.0  ;;  %v5054_v12 = vand.u32 2147483648, %v8567_v8  ;;  %vm5030_vm6 = vcmp.eq.f32.partialorder %v8571_v47, inf }
 0x2d3   : > { %6355 = vrsqrt.f32 %v8573_v42  ;;  %vm5032_vm7 = vcmp.eq.f32.partialorder %v8571_v47, 0.0  ;;  %vm5044_vm8 = vcmp.eq.f32.partialorder %v8573_v42, inf  ;;  %vm5046_vm9 = vcmp.eq.f32.partialorder %v8573_v42, 0.0 }
 0x2d6   : > { %v6342_v50 = vpop.eup %6341 }
 0x2d7   : > { %v6344_v11 = vpop.eup %6343  ;;  %v5008_v19 = vmul.f32 %v6342_v50, %v4945_v29 }
 0x2d8   : > { %v6346_v43 = vpop.eup %6345  ;;  %v5022_v33 = vmul.f32 %v6344_v11, %v4963_v2 }
 0x2d9   : > { %v6348_v25 = vpop.eup %6347  ;;  %v5010_v15 = vsel %vm5009_vm10, %v4945_v29, %v5008_v19  ;;  %v5001_v53 = vmul.f32 %v6346_v43, %v4936_v1  ;;  %v5047_v19 = vand.u32 2147483648, %v8573_v42  ;;  %vm5168_vm10 = vcmask 261120  }
 0x2da   : > { %v6350_v60 = vpop.eup %6349  ;;  %v5013_v40 = vsel %vm5011_vm11, %v5012_v51, %v5010_v15  ;;  %v5024_v6 = vsel %vm5023_vm12, %v4963_v2, %v5022_v33  ;;  %v5015_v27 = vmul.f32 %v6348_v25, %v4954_v16  ;;  %vm5780_vm11 = vcmask 523264  }
 0x2db   : > { %v6352_v52 = vpop.eup %6351  ;;  %v5057_v44 = vmax.f32 %v5013_v40, 1e-12  ;;  %v5027_v14 = vsel %vm5025_vm13, %v5026_v56, %v5024_v6  ;;  %v5003_v45 = vsel %vm5002_vm14, %v4936_v1, %v5001_v53  ;;  %v5036_v57 = vmul.f32 %v6350_v60, %v8565_v4 }
 0x2dc   : > { %v5059_v3 = vmax.f32 %v5027_v14, 1e-12  ;;  %v5006_v59 = vsel %vm5004_vm15, %v5005_v34, %v5003_v45  ;;  %v5017_v22 = vsel %vm5016_vm0, %v4954_v16, %v5015_v27  ;;  %v5050_v35 = vmul.f32 %v6352_v52, %v8567_v8  ;;  %v6354_v2 = vpop.eup %6353 }
 0x2dd   : > { %6357 = vrcp.f32 %v5057_v44  ;;  %v5056_v58 = vmax.f32 %v5006_v59, 1e-12  ;;  %v5020_v36 = vsel %vm5018_vm1, %v5019_v32, %v5017_v22  ;;  %v5038_v29 = vsel %vm5037_vm2, %v8565_v4, %v5036_v57  ;;  %v6356_v10 = vpop.eup %6355 }
 0x2de   : > { %6359 = vrcp.f32 %v5059_v3  ;;  %v5058_v17 = vmax.f32 %v5020_v36, 1e-12  ;;  %v5041_v39 = vsel %vm5039_vm3, %v5040_v13, %v5038_v29  ;;  %v5052_v1 = vsel %vm5051_vm4, %v8567_v8, %v5050_v35 }
 0x2df   : > { %6361 = vrcp.f32 %v5056_v58  ;;  %v5061_v51 = vmax.f32 %v5041_v39, 1e-12  ;;  %v5055_v16 = vsel %vm5053_vm5, %v5054_v12, %v5052_v1  ;;  %v5029_v56 = vmul.f32 %v6354_v2, %v8571_v47  ;;  %v8871_v39 = vld [vmem:[#allocation4_spill] sm:$0xff] }
 0x2e0   : > { %6363 = vrcp.f32 %v5058_v17  ;;  %v5063_v50 = vmax.f32 %v5055_v16, 1e-12  ;;  %v5033_v34 = vand.u32 2147483648, %v8571_v47  ;;  %v5043_v11 = vmul.f32 %v6356_v10, %v8573_v42  ;;  %v8870_v17 = vld [vmem:[#allocation8_spill] sm:$0xff]  ;;  %v8646_v10 = vld [vmem:[%s8847_s2] sm:$0xff] }
 0x2e1   : > { %6365 = vrcp.f32 %v5061_v51  ;;  %v5031_v4 = vsel %vm5030_vm6, %v8571_v47, %v5029_v56 }
 0x2e2   : > { %6367 = vrcp.f32 %v5063_v50  ;;  %v5034_v8 = vsel %vm5032_vm7, %v5033_v34, %v5031_v4  ;;  %v5045_v32 = vsel %vm5044_vm8, %v8573_v42, %v5043_v11  ;;  %v8875_v50 = vld [vmem:[#allocation7_spill] sm:$0xff] }
 0x2e3   : > { %v5060_v43 = vmax.f32 %v5034_v8, 1e-12  ;;  %v5048_v33 = vsel %vm5046_vm9, %v5047_v19, %v5045_v32  ;;  %v8876_v19 = vld [vmem:[#allocation9_spill] sm:$0xff]  ;;  %v8877_v32 = vld [vmem:[#allocation10_spill] sm:$0xff] }
 0x2e4   : > { %v5062_v13 = vmax.f32 %v5048_v33, 1e-12 }
 0x2e5   : > { %6369 = vrcp.f32 %v5060_v43 }
 0x2e6   : > { %6371 = vrcp.f32 %v5062_v13  ;;  %v5113_v13 = vld [vmem:[%s8847_s2 + $0x8] sm:$0xff] }
 0x2e7   : > { %v6358_v25 = vpop.eup %6357 }
 0x2e8   : > { %v6360_v15 = vpop.eup %6359  ;;  %v5081_v53 = vmul.f32 %v6358_v25, %v8497_v0  ;;  %v5089_v12 = vmul.f32 %v6358_v25, %v8358_v23  ;;  %v5097_v60 = vmul.f32 %v6358_v25, %v8360_v18  ;;  %v5105_v47 = vmul.f32 %v6358_v25, %v8415_v55 }
 0x2e9   : > { %v6362_v40 = vpop.eup %6361  ;;  %v5083_v6 = vmul.f32 %v6360_v15, %v8499_v61  ;;  %v5091_v42 = vmul.f32 %v6360_v15, %v8362_v28  ;;  %v5099_v27 = vmul.f32 %v6360_v15, %v8364_v30  ;;  %v5107_v0 = vmul.f32 %v6360_v15, %v8417_v38 }
 0x2ea   : > { %v6364_v52 = vpop.eup %6363  ;;  %v6205_v44 = vpack.c.bf16 %v5089_v12, %v5081_v53  ;;  %v5080_v14 = vmul.f32 %v6362_v40, %v8501_v26  ;;  %v5088_v45 = vmul.f32 %v6362_v40, %v8366_v63  ;;  %v6209_v3 = vpack.c.bf16 %v5105_v47, %v5097_v60  ;;  %v5114_v12 = vld [vmem:[%s8847_s2 + $0x10] sm:$0xff]  ;;  %v5115_v60 = vld [vmem:[%s8847_s2 + $0x18] sm:$0xff]  ;;  %v5116_v47 = vld [vmem:[%s8847_s2 + $0x20] sm:$0xff] }
 0x2eb   : > { %v6366_v23 = vpop.eup %6365  ;;  %v6213_v57 = vpack.c.bf16 %v5091_v42, %v5083_v6  ;;  %v5082_v18 = vmul.f32 %v6364_v52, %v8505_v37  ;;  %v5090_v55 = vmul.f32 %v6364_v52, %v8371_v62  ;;  %v5096_v30 = vmul.f32 %v6362_v40, %v8368_v7  ;;  %v5118_v6 = vld [vmem:[%s8847_s2 + $0x30] sm:$0xff]  ;;  %v5119_v42 = vld [vmem:[%s8847_s2 + $0x38] sm:$0xff] }
 0x2ec   : > { %v6368_v61 = vpop.eup %6367  ;;  %6206 = vmatprep.subr.bf16.mxu0 %v6205_v44  ;;  %v6207_v28 = vpack.c.bf16 %v5088_v45, %v5080_v14  ;;  %v5104_v59 = vmul.f32 %v6362_v40, %v8419_v41  ;;  %v5098_v26 = vmul.f32 %v6364_v52, %v8373_v20  ;;  %v5106_v38 = vmul.f32 %v6364_v52, %v8425_v31  ;;  %v5117_v40 = vld [vmem:[%s8847_s2 + $0x28] sm:$0xff] }
 0x2ed   : > { %6214 = vmatprep.subr.bf16.mxu1 %v6213_v57  ;;  %v6215_v63 = vpack.c.bf16 %v5090_v55, %v5082_v18  ;;  %v5085_v22 = vmul.f32 %v6366_v23, %v8507_v21  ;;  %v5093_v37 = vmul.f32 %v6366_v23, %v8375_v48  ;;  %v6217_v62 = vpack.c.bf16 %v5107_v0, %v5099_v27 }
 0x2ee   : > { %6208 = vmatpush1.bf16.msra.mxu0 %v6207_v28  ;;  %v5087_v35 = vmul.f32 %v6368_v61, %v8509_v49  ;;  %v5095_v58 = vmul.f32 %v6368_v61, %v8411_v9  ;;  %v6211_v7 = vpack.c.bf16 %v5104_v59, %v5096_v30  ;;  %v6219_v20 = vpack.c.bf16 %v5106_v38, %v5098_v26 }
 0x2ef   : > { %v6370_v36 = vpop.eup %6369  ;;  %6216 = vmatpush1.bf16.msra.mxu1 %v6215_v63  ;;  %6210 = vmatprep.subr.bf16.mxu0 %v6209_v3  ;;  %v5101_v21 = vmul.f32 %v6366_v23, %v8385_v46  ;;  %v6221_v48 = vpack.c.bf16 %v5093_v37, %v5085_v22  ;;  %v5109_v9 = vmul.f32 %v6366_v23, %v8871_v39  ;;  %v8878_v25 = vmov 0.0  }
 0x2f0   : > { %v6372_v41 = vpop.eup %6371  ;;  %6218 = vmatprep.subr.bf16.mxu1 %v6217_v62  ;;  %v5084_v29 = vmul.f32 %v6370_v36, %v8519_v5  ;;  %v5092_v31 = vmul.f32 %v6370_v36, %v8435_v24  ;;  %v6229_v1 = vpack.c.bf16 %v5095_v58, %v5087_v35  ;;  %v8872_v5 = vld [vmem:[#allocation3_spill] sm:$0xff]  ;;  %v8873_v24 = vld [vmem:[#allocation5_spill] sm:$0xff]  ;;  %v5108_v34 = vmul.f32 %v6370_v36, %v8875_v50 }
 0x2f1   : > { %v5086_v2 = vmul.f32 %v6372_v41, %v8527_v54  ;;  %v5094_v49 = vmul.f32 %v6372_v41, %v8870_v17  ;;  %v5103_v51 = vmul.f32 %v6368_v61, %v8872_v5  ;;  %v5111_v16 = vmul.f32 %v6368_v61, %v8873_v24  ;;  %v8874_v54 = vld [vmem:[#allocation6_spill] sm:$0xff] }
 0x2f2   : > { %6212 = vmatpush1.bf16.msra.mxu0 %v6211_v7  ;;  %v6223_v46 = vpack.c.bf16 %v5092_v31, %v5084_v29  ;;  %v5100_v56 = vmul.f32 %v6370_v36, %v8874_v54  ;;  %v6225_v4 = vpack.c.bf16 %v5109_v9, %v5101_v21  ;;  %v5102_v8 = vmul.f32 %v6372_v41, %v8876_v19 }
 0x2f3   : > { %6220 = vmatpush1.bf16.msra.mxu1 %v6219_v20  ;;  %6222 = vmatprep.subr.bf16.mxu0 %v6221_v48  ;;  %v6231_v11 = vpack.c.bf16 %v5094_v49, %v5086_v2  ;;  %v5110_v43 = vmul.f32 %v6372_v41, %v8877_v32  ;;  %v6233_v33 = vpack.c.bf16 %v5111_v16, %v5103_v51 }
 0x2f4   : > { %6230 = vmatprep.subr.bf16.mxu1 %v6229_v1  ;;  %v6227_v15 = vpack.c.bf16 %v5108_v34, %v5100_v56 }
 0x2f5   : > { %6165 = vmatmul.mubr.msk.f32.vlgmr.msra.gmra.mrb[0].mxu0 %vm5168_vm10, %v8646_v10  ;;  %v6235_v53 = vpack.c.bf16 %v5110_v43, %v5102_v8 }
 0x2f6   : > { %6173 = vmatmul.mubr.msk.f32.vlgmr.msra.gmra.mrb[0].mxu1 %vm5168_vm10, %v8646_v10  ;;  %6224 = vmatpush1.bf16.msra.mxu0 %v6223_v46 }
 0x2f7   : > { %6232 = vmatpush1.bf16.msra.mxu1 %v6231_v11  ;;  %6226 = vmatprep.subr.bf16.mxu0 %v6225_v4 }
 0x2f8   : > { %6234 = vmatprep.subr.bf16.mxu1 %v6233_v33  ;;  %5263 = vmatprep.mubr.f32.mxu0 %v8878_v25 }
 0x2f9   : > { %5376 = vmatprep.mubr.f32.mxu1 %v8878_v25  ;;  %6166 = vmatmul.mubr.msk.f32.gmra.mrb[2].mxu0 %vm5168_vm10, %v5113_v13 }
 0x2fa   : > { %6174 = vmatmul.mubr.msk.f32.gmra.mrb[2].mxu1 %vm5168_vm10, %v5113_v13  ;;  %6228 = vmatpush1.bf16.msra.mxu0 %v6227_v15 }
 0x2fb   : > { %6236 = vmatpush1.bf16.msra.mxu1 %v6235_v53  ;;  %5269 = vmatprep.mubr.f32.mxu0 %v8878_v25 }
 0x2fc   : > { %5382 = vmatprep.mubr.f32.mxu1 %v8878_v25 }
 0x2fd   : > { %6167 = vmatmul.mubr.msk.f32.gmra.mrb[4].mxu0 %vm5168_vm10, %v5114_v12 }
 0x2fe   : > { %6175 = vmatmul.mubr.msk.f32.gmra.mrb[4].mxu1 %vm5168_vm10, %v5114_v12  ;;  %5275 = vmatprep.mubr.f32.mxu0 %v8878_v25 }
 0x2ff   : > { %5388 = vmatprep.mubr.f32.mxu1 %v8878_v25 }
 0x301   : > { %6168 = vmatmul.mubr.msk.f32.gmra.mrb[6].mxu0 %vm5168_vm10, %v5115_v60 }
 0x302   : > { %6176 = vmatmul.mubr.msk.f32.gmra.mrb[6].mxu1 %vm5168_vm10, %v5115_v60  ;;  %5281 = vmatprep.mubr.f32.mxu0 %v8878_v25 }
 0x303   : > { %5394 = vmatprep.mubr.f32.mxu1 %v8878_v25 }
 0x305   : > { %6169 = vmatmul.mubr.msk.f32.gmra.mrb[8].mxu0 %vm5168_vm10, %v5116_v47 }
 0x306   : > { %6177 = vmatmul.mubr.msk.f32.gmra.mrb[8].mxu1 %vm5168_vm10, %v5116_v47  ;;  %5287 = vmatprep.mubr.f32.mxu0 %v8878_v25 }
 0x307   : > { %5400 = vmatprep.mubr.f32.mxu1 %v8878_v25 }
 0x309   : > { %6170 = vmatmul.mubr.msk.f32.gmra.mrb[10].mxu0 %vm5168_vm10, %v5117_v40 }
 0x30a   : > { %6178 = vmatmul.mubr.msk.f32.gmra.mrb[10].mxu1 %vm5168_vm10, %v5117_v40  ;;  %5293 = vmatprep.mubr.f32.mxu0 %v8878_v25 }
 0x30b   : > { %5406 = vmatprep.mubr.f32.mxu1 %v8878_v25 }
 0x30d   : > { %6171 = vmatmul.mubr.msk.f32.gmra.mrb[12].mxu0 %vm5168_vm10, %v5118_v6 }
 0x30e   : > { %6179 = vmatmul.mubr.msk.f32.gmra.mrb[12].mxu1 %vm5168_vm10, %v5118_v6  ;;  %5299 = vmatprep.mubr.f32.mxu0 %v8878_v25 }
 0x30f   : > { %5412 = vmatprep.mubr.f32.mxu1 %v8878_v25 }
 0x311   : > { %6172 = vmatmul.mubr.msk.f32.gmra.mrb[14].mxu0 %vm5168_vm10, %v5119_v42 }
 0x312   : > { %6180 = vmatmul.mubr.msk.f32.gmra.mrb[14].mxu1 %vm5168_vm10, %v5119_v42  ;;  %5483 = vmatprep.mubr.f32.mxu0 %v8878_v25 }
 0x313   : > { %5596 = vmatprep.mubr.f32.mxu1 %v8878_v25 }
 0x315   : > { %6181 = vmatmul.mubr.msk.f32.vlgmr.msra.gmra.mrb[16].mxu0 %vm5168_vm10, %v8646_v10 }
 0x316   : > { %6189 = vmatmul.mubr.msk.f32.vlgmr.msra.gmra.mrb[16].mxu1 %vm5168_vm10, %v8646_v10  ;;  %5489 = vmatprep.mubr.f32.mxu0 %v8878_v25 }
 0x317   : > { %5602 = vmatprep.mubr.f32.mxu1 %v8878_v25 }
 0x319   : > { %6182 = vmatmul.mubr.msk.f32.gmra.mrb[18].mxu0 %vm5168_vm10, %v5113_v13 }
 0x31a   : > { %6190 = vmatmul.mubr.msk.f32.gmra.mrb[18].mxu1 %vm5168_vm10, %v5113_v13  ;;  %5495 = vmatprep.mubr.f32.mxu0 %v8878_v25 }
 0x31b   : > { %5608 = vmatprep.mubr.f32.mxu1 %v8878_v25 }
 0x31d   : > { %6183 = vmatmul.mubr.msk.f32.gmra.mrb[20].mxu0 %vm5168_vm10, %v5114_v12 }
 0x31e   : > { %6191 = vmatmul.mubr.msk.f32.gmra.mrb[20].mxu1 %vm5168_vm10, %v5114_v12  ;;  %5501 = vmatprep.mubr.f32.mxu0 %v8878_v25 }
 0x31f   : > { %5614 = vmatprep.mubr.f32.mxu1 %v8878_v25 }
 0x321   : > { %6184 = vmatmul.mubr.msk.f32.gmra.mrb[22].mxu0 %vm5168_vm10, %v5115_v60 }
 0x322   : > { %6192 = vmatmul.mubr.msk.f32.gmra.mrb[22].mxu1 %vm5168_vm10, %v5115_v60  ;;  %5507 = vmatprep.mubr.f32.mxu0 %v8878_v25 }
 0x323   : > { %5620 = vmatprep.mubr.f32.mxu1 %v8878_v25  ;;  %v8743_v27 = vpop.permute.xlu0 %5130 }
 0x324   : > { %v8745_v44 = vpop.permute.xlu1 %5135 }
 0x325   : > { %6185 = vmatmul.mubr.msk.f32.gmra.mrb[24].mxu0 %vm5168_vm10, %v5116_v47 }
 0x326   : > { %6193 = vmatmul.mubr.msk.f32.gmra.mrb[24].mxu1 %vm5168_vm10, %v5116_v47  ;;  %5513 = vmatprep.mubr.f32.mxu0 %v8878_v25 }
 0x327   : > { %5626 = vmatprep.mubr.f32.mxu1 %v8878_v25  ;;  %v8760_v16 = vpop.permute.xlu0 %5145 }
 0x328   : > { %v8754_v35 = vpop.permute.xlu1 %5140 }
 0x329   : > { %6186 = vmatmul.mubr.msk.f32.gmra.mrb[26].mxu0 %vm5168_vm10, %v5117_v40 }
 0x32a   : > { %6194 = vmatmul.mubr.msk.f32.gmra.mrb[26].mxu1 %vm5168_vm10, %v5117_v40  ;;  %5519 = vmatprep.mubr.f32.mxu0 %v8878_v25 }
 0x32b   : > { %5632 = vmatprep.mubr.f32.mxu1 %v8878_v25 }
 0x32c   : > { %v8764_v53 = vpop.permute.xlu1 %5150 }
 0x32d   : > { %6187 = vmatmul.mubr.msk.f32.gmra.mrb[28].mxu0 %vm5168_vm10, %v5118_v6 }
 0x32e   : > { %6195 = vmatmul.mubr.msk.f32.gmra.mrb[28].mxu1 %vm5168_vm10, %v5118_v6  ;;  %5525 = vmatprep.mubr.f32.mxu0 %v8878_v25 }
 0x32f   : > { %5638 = vmatprep.mubr.f32.mxu1 %v8878_v25 }
 0x331   : > { %6188 = vmatmul.mubr.msk.f32.gmra.mrb[30].mxu0 %vm5168_vm10, %v5119_v42 }
 0x332   : > { %6196 = vmatmul.mubr.msk.f32.gmra.mrb[30].mxu1 %vm5168_vm10, %v5119_v42  ;;  %5848 = vmatprep.mubr.f32.mxu0 %v8878_v25 }
 0x333   : > { %5919 = vmatprep.mubr.f32.mxu1 %v8878_v25 }
 0x3c8   : > { %v5259_v52 = vpop.f32.mrb[0].mxu0 }
 0x3c9   : > { %v5260_v14 = vadd.f32 %v5259_v52, %v8743_v27  ;;  %v5372_v45 = vpop.f32.mrb[0].mxu1  ;;  %v5261_v0 = vpop.f32.mrb[1].mxu0 }
 0x3ca   : > { %v5373_v23 = vadd.f32 %v5372_v45, %v8743_v27  ;;  %v5262_v57 = vadd.f32 %v5261_v0, %v8743_v27  ;;  %v5374_v18 = vpop.f32.mrb[1].mxu1 }
 0x3cb   : > { %v5645_v55 = vmul.f32 0.01, %v5260_v14  ;;  %v5375_v3 = vadd.f32 %v5374_v18, %v8743_v27 }
 0x3cc   : > { %v5647_v61 = vmul.f32 0.01, %v5373_v23  ;;  %v5646_v28 = vmul.f32 0.01, %v5262_v57  ;;  %v5265_v30 = vpop.f32.mrb[2].mxu0 }
 0x3cd   : > { %v5648_v59 = vmul.f32 0.01, %v5375_v3  ;;  %v5266_v26 = vadd.f32 %v5265_v30, %v8745_v44  ;;  %v5378_v63 = vpop.f32.mrb[2].mxu1  ;;  %v5267_v38 = vpop.f32.mrb[3].mxu0  ;;  %v5709_v58 = vmax.f32 %v5260_v14, %v5645_v55 }
 0x3ce   : > { %v5379_v22 = vadd.f32 %v5378_v63, %v8745_v44  ;;  %v5268_v37 = vadd.f32 %v5267_v38, %v8745_v44  ;;  %v5380_v62 = vpop.f32.mrb[3].mxu1  ;;  %v5711_v41 = vmax.f32 %v5373_v23, %v5647_v61  ;;  %v5710_v20 = vmax.f32 %v5262_v57, %v5646_v28 }
 0x3cf   : > { %v5653_v36 = vmul.f32 0.01, %v5266_v26  ;;  %v5381_v7 = vadd.f32 %v5380_v62, %v8745_v44  ;;  %v5712_v48 = vmax.f32 %v5375_v3, %v5648_v59 }
 0x3d0   : > { %v5655_v29 = vmul.f32 0.01, %v5379_v22  ;;  %v5654_v31 = vmul.f32 0.01, %v5268_v37  ;;  %v5271_v21 = vpop.f32.mrb[4].mxu0 }
 0x3d1   : > { %v5717_v2 = vmax.f32 %v5266_v26, %v5653_v36  ;;  %v5656_v17 = vmul.f32 0.01, %v5381_v7  ;;  %v5272_v49 = vadd.f32 %v5271_v21, %v8754_v35  ;;  %v5384_v39 = vpop.f32.mrb[4].mxu1  ;;  %v5273_v9 = vpop.f32.mrb[5].mxu0 }
 0x3d2   : > { %v5719_v1 = vmax.f32 %v5379_v22, %v5655_v29  ;;  %v5718_v10 = vmax.f32 %v5268_v37, %v5654_v31  ;;  %v5385_v5 = vadd.f32 %v5384_v39, %v8754_v35  ;;  %v5274_v51 = vadd.f32 %v5273_v9, %v8754_v35  ;;  %v5386_v24 = vpop.f32.mrb[5].mxu1  ;;  %v8770_v26 = vpop.permute.xlu0 %5155 }
 0x3d3   : > { %v6239_v46 = vpack.c.bf16 %v5717_v2, %v5709_v58  ;;  %v5720_v54 = vmax.f32 %v5381_v7, %v5656_v17  ;;  %v5661_v56 = vmul.f32 0.01, %v5272_v49  ;;  %v5387_v50 = vadd.f32 %v5386_v24, %v8754_v35  ;;  %v8776_v39 = vpop.permute.xlu1 %5160 }
 0x3d4   : > { %v6255_v34 = vpack.c.bf16 %v5719_v1, %v5711_v41  ;;  %v5663_v11 = vmul.f32 0.01, %v5385_v5  ;;  %v5662_v4 = vmul.f32 0.01, %v5274_v51  ;;  %v5277_v19 = vpop.f32.mrb[6].mxu0  ;;  %v6237_v8 = vpack.c.bf16 %v5718_v10, %v5710_v20 }
 0x3d5   : > { %v5664_v32 = vmul.f32 0.01, %v5387_v50  ;;  %v5278_v43 = vadd.f32 %v5277_v19, %v8760_v16  ;;  %v5390_v33 = vpop.f32.mrb[6].mxu1  ;;  %v5279_v13 = vpop.f32.mrb[7].mxu0  ;;  %v6253_v15 = vpack.c.bf16 %v5720_v54, %v5712_v48  ;;  %v5725_v40 = vmax.f32 %v5272_v49, %v5661_v56 }
 0x3d6   : > { %v5391_v12 = vadd.f32 %v5390_v33, %v8760_v16  ;;  %v5280_v60 = vadd.f32 %v5279_v13, %v8760_v16  ;;  %v5392_v47 = vpop.f32.mrb[7].mxu1  ;;  %6238 = vmatprep.subr.bf16.mxu0 %v6237_v8  ;;  %v5727_v52 = vmax.f32 %v5385_v5, %v5663_v11  ;;  %v5726_v14 = vmax.f32 %v5274_v51, %v5662_v4  ;;  %v8782_v33 = vpop.permute.xlu0 %5165 }
 0x3d7   : > { %v5669_v6 = vmul.f32 0.01, %v5278_v43  ;;  %v5393_v42 = vadd.f32 %v5392_v47, %v8760_v16  ;;  %6254 = vmatprep.subr.bf16.mxu1 %v6253_v15  ;;  %6240 = vmatpush1.bf16.msra.mxu0 %v6239_v46  ;;  %v5728_v57 = vmax.f32 %v5387_v50, %v5664_v32 }
 0x3d8   : > { %v5671_v45 = vmul.f32 0.01, %v5391_v12  ;;  %v5670_v0 = vmul.f32 0.01, %v5280_v60  ;;  %6256 = vmatpush1.bf16.msra.mxu1 %v6255_v34  ;;  %v5283_v23 = vpop.f32.mrb[8].mxu0 }
 0x3d9   : > { %v5733_v18 = vmax.f32 %v5278_v43, %v5669_v6  ;;  %v5672_v55 = vmul.f32 0.01, %v5393_v42  ;;  %v5284_v3 = vadd.f32 %v5283_v23, %v8764_v53  ;;  %v5396_v61 = vpop.f32.mrb[8].mxu1  ;;  %v5285_v28 = vpop.f32.mrb[9].mxu0 }
 0x3da   : > { %v5735_v30 = vmax.f32 %v5391_v12, %v5671_v45  ;;  %v5734_v59 = vmax.f32 %v5280_v60, %v5670_v0  ;;  %v5397_v63 = vadd.f32 %v5396_v61, %v8764_v53  ;;  %v5286_v38 = vadd.f32 %v5285_v28, %v8764_v53  ;;  %v5398_v22 = vpop.f32.mrb[9].mxu1 }
 0x3db   : > { %v6243_v37 = vpack.c.bf16 %v5733_v18, %v5725_v40  ;;  %v5736_v62 = vmax.f32 %v5393_v42, %v5672_v55  ;;  %v5677_v58 = vmul.f32 0.01, %v5284_v3  ;;  %v5399_v36 = vadd.f32 %v5398_v22, %v8764_v53 }
 0x3dc   : > { %v6259_v7 = vpack.c.bf16 %v5735_v30, %v5727_v52  ;;  %v5679_v41 = vmul.f32 0.01, %v5397_v63  ;;  %v5678_v20 = vmul.f32 0.01, %v5286_v38  ;;  %v5289_v29 = vpop.f32.mrb[10].mxu0  ;;  %v6241_v31 = vpack.c.bf16 %v5734_v59, %v5726_v14 }
 0x3dd   : > { %v5680_v21 = vmul.f32 0.01, %v5399_v36  ;;  %v5290_v48 = vadd.f32 %v5289_v29, %v8770_v26  ;;  %v5402_v2 = vpop.f32.mrb[10].mxu1  ;;  %v5291_v17 = vpop.f32.mrb[11].mxu0  ;;  %v6257_v49 = vpack.c.bf16 %v5736_v62, %v5728_v57  ;;  %v5741_v5 = vmax.f32 %v5284_v3, %v5677_v58 }
 0x3de   : > { %v5403_v9 = vadd.f32 %v5402_v2, %v8770_v26  ;;  %v5292_v1 = vadd.f32 %v5291_v17, %v8770_v26  ;;  %v5404_v10 = vpop.f32.mrb[11].mxu1  ;;  %6242 = vmatprep.subr.bf16.mxu0 %v6241_v31  ;;  %v5743_v46 = vmax.f32 %v5397_v63, %v5679_v41  ;;  %v5742_v54 = vmax.f32 %v5286_v38, %v5678_v20 }
 0x3df   : > { %v5685_v51 = vmul.f32 0.01, %v5290_v48  ;;  %v5405_v24 = vadd.f32 %v5404_v10, %v8770_v26  ;;  %6258 = vmatprep.subr.bf16.mxu1 %v6257_v49  ;;  %6244 = vmatpush1.bf16.msra.mxu0 %v6243_v37  ;;  %v5744_v11 = vmax.f32 %v5399_v36, %v5680_v21 }
 0x3e0   : > { %v5687_v56 = vmul.f32 0.01, %v5403_v9  ;;  %v5686_v50 = vmul.f32 0.01, %v5292_v1  ;;  %6260 = vmatpush1.bf16.msra.mxu1 %v6259_v7  ;;  %v5295_v34 = vpop.f32.mrb[12].mxu0 }
 0x3e1   : > { %v5749_v4 = vmax.f32 %v5290_v48, %v5685_v51  ;;  %v5688_v19 = vmul.f32 0.01, %v5405_v24  ;;  %v5296_v8 = vadd.f32 %v5295_v34, %v8776_v39  ;;  %v5408_v32 = vpop.f32.mrb[12].mxu1  ;;  %v5297_v43 = vpop.f32.mrb[13].mxu0 }
 0x3e2   : > { %v5751_v13 = vmax.f32 %v5403_v9, %v5687_v56  ;;  %v5750_v15 = vmax.f32 %v5292_v1, %v5686_v50  ;;  %v5409_v12 = vadd.f32 %v5408_v32, %v8776_v39  ;;  %v5298_v60 = vadd.f32 %v5297_v43, %v8776_v39  ;;  %v5410_v47 = vpop.f32.mrb[13].mxu1 }
 0x3e3   : > { %v6247_v40 = vpack.c.bf16 %v5749_v4, %v5741_v5  ;;  %v5752_v6 = vmax.f32 %v5405_v24, %v5688_v19  ;;  %v5693_v42 = vmul.f32 0.01, %v5296_v8  ;;  %v5411_v52 = vadd.f32 %v5410_v47, %v8776_v39 }
 0x3e4   : > { %v6263_v14 = vpack.c.bf16 %v5751_v13, %v5743_v46  ;;  %v5695_v45 = vmul.f32 0.01, %v5409_v12  ;;  %v5694_v0 = vmul.f32 0.01, %v5298_v60  ;;  %v5301_v23 = vpop.f32.mrb[14].mxu0  ;;  %v6245_v57 = vpack.c.bf16 %v5750_v15, %v5742_v54 }
 0x3e5   : > { %v5696_v18 = vmul.f32 0.01, %v5411_v52  ;;  %v5302_v55 = vadd.f32 %v5301_v23, %v8782_v33  ;;  %v5414_v3 = vpop.f32.mrb[14].mxu1  ;;  %v5303_v61 = vpop.f32.mrb[15].mxu0  ;;  %v6261_v28 = vpack.c.bf16 %v5752_v6, %v5744_v11  ;;  %v5757_v38 = vmax.f32 %v5296_v8, %v5693_v42 }
 0x3e6   : > { %v5415_v30 = vadd.f32 %v5414_v3, %v8782_v33  ;;  %v5304_v59 = vadd.f32 %v5303_v61, %v8782_v33  ;;  %v5416_v63 = vpop.f32.mrb[15].mxu1  ;;  %6246 = vmatprep.subr.bf16.mxu0 %v6245_v57  ;;  %v5759_v62 = vmax.f32 %v5409_v12, %v5695_v45  ;;  %v5758_v58 = vmax.f32 %v5298_v60, %v5694_v0 }
 0x3e7   : > { %v5701_v22 = vmul.f32 0.01, %v5302_v55  ;;  %v5417_v37 = vadd.f32 %v5416_v63, %v8782_v33  ;;  %6262 = vmatprep.subr.bf16.mxu1 %v6261_v28  ;;  %6248 = vmatpush1.bf16.msra.mxu0 %v6247_v40  ;;  %v5760_v20 = vmax.f32 %v5411_v52, %v5696_v18  ;;  %v8802_v40 = vld [vmem:[%s8849_s4] sm:$0x7] }
 0x3e8   : > { %v5703_v36 = vmul.f32 0.01, %v5415_v30  ;;  %v5702_v7 = vmul.f32 0.01, %v5304_v59  ;;  %6264 = vmatpush1.bf16.msra.mxu1 %v6263_v14  ;;  %v5485_v41 = vpop.f32.mrb[16].mxu0 }
 0x3e9   : > { %v5765_v29 = vmax.f32 %v5302_v55, %v5701_v22  ;;  %v5704_v31 = vmul.f32 0.01, %v5417_v37  ;;  %v5486_v21 = vadd.f32 %v5485_v41, %v8743_v27  ;;  %v5598_v48 = vpop.f32.mrb[16].mxu1  ;;  %v5487_v2 = vpop.f32.mrb[17].mxu0 }
 0x3ea   : > { %v5767_v17 = vmax.f32 %v5415_v30, %v5703_v36  ;;  %v5766_v49 = vmax.f32 %v5304_v59, %v5702_v7  ;;  %v5599_v9 = vadd.f32 %v5598_v48, %v8743_v27  ;;  %v5488_v1 = vadd.f32 %v5487_v2, %v8743_v27  ;;  %v5600_v10 = vpop.f32.mrb[17].mxu1 }
 0x3eb   : > { %v6251_v5 = vpack.c.bf16 %v5765_v29, %v5757_v38  ;;  %v5768_v51 = vmax.f32 %v5417_v37, %v5704_v31  ;;  %v5649_v24 = vmul.f32 0.01, %v5486_v21  ;;  %v5601_v46 = vadd.f32 %v5600_v10, %v8743_v27 }
 0x3ec   : > { %v6267_v54 = vpack.c.bf16 %v5767_v17, %v5759_v62  ;;  %v5651_v56 = vmul.f32 0.01, %v5599_v9  ;;  %v5650_v50 = vmul.f32 0.01, %v5488_v1  ;;  %v5491_v34 = vpop.f32.mrb[18].mxu0  ;;  %v6249_v11 = vpack.c.bf16 %v5766_v49, %v5758_v58 }
 0x3ed   : > { %v5652_v4 = vmul.f32 0.01, %v5601_v46  ;;  %v5492_v19 = vadd.f32 %v5491_v34, %v8745_v44  ;;  %v5604_v8 = vpop.f32.mrb[18].mxu1  ;;  %v5493_v32 = vpop.f32.mrb[19].mxu0  ;;  %v6265_v43 = vpack.c.bf16 %v5768_v51, %v5760_v20  ;;  %v5713_v60 = vmax.f32 %v5486_v21, %v5649_v24 }
 0x3ee   : > { %v5605_v13 = vadd.f32 %v5604_v8, %v8745_v44  ;;  %v5494_v15 = vadd.f32 %v5493_v32, %v8745_v44  ;;  %v5606_v12 = vpop.f32.mrb[19].mxu1  ;;  %6250 = vmatprep.subr.bf16.mxu0 %v6249_v11  ;;  %v5715_v6 = vmax.f32 %v5599_v9, %v5651_v56  ;;  %v5714_v42 = vmax.f32 %v5488_v1, %v5650_v50 }
 0x3ef   : > { %v5657_v47 = vmul.f32 0.01, %v5492_v19  ;;  %v5607_v27 = vadd.f32 %v5606_v12, %v8745_v44  ;;  %6266 = vmatprep.subr.bf16.mxu1 %v6265_v43  ;;  %6252 = vmatpush1.bf16.msra.mxu0 %v6251_v5  ;;  %v5716_v0 = vmax.f32 %v5601_v46, %v5652_v4 }
 0x3f0   : > { %v5659_v52 = vmul.f32 0.01, %v5605_v13  ;;  %v5658_v14 = vmul.f32 0.01, %v5494_v15  ;;  %6268 = vmatpush1.bf16.msra.mxu1 %v6267_v54  ;;  %v5497_v45 = vpop.f32.mrb[20].mxu0 }
 0x3f1   : > { %v5721_v23 = vmax.f32 %v5492_v19, %v5657_v47  ;;  %v5660_v57 = vmul.f32 0.01, %v5607_v27  ;;  %v5498_v18 = vadd.f32 %v5497_v45, %v8754_v35  ;;  %v5610_v44 = vpop.f32.mrb[20].mxu1  ;;  %v5499_v55 = vpop.f32.mrb[21].mxu0 }
 0x3f2   : > { %v5723_v3 = vmax.f32 %v5605_v13, %v5659_v52  ;;  %v5722_v61 = vmax.f32 %v5494_v15, %v5658_v14  ;;  %v5611_v28 = vadd.f32 %v5610_v44, %v8754_v35  ;;  %v5500_v30 = vadd.f32 %v5499_v55, %v8754_v35  ;;  %v5612_v59 = vpop.f32.mrb[21].mxu1  ;;  %6197 = vmatmul.mubr.msk.f32.vlgmr.msra.gmra.mrb[32].mxu0 %vm5780_vm11, %v8802_v40 }
 0x3f3   : > { %v6271_v63 = vpack.c.bf16 %v5721_v23, %v5713_v60  ;;  %v5724_v38 = vmax.f32 %v5607_v27, %v5660_v57  ;;  %v5613_v22 = vadd.f32 %v5612_v59, %v8754_v35  ;;  %6198 = vmatmul.mubr.msk.f32.vlgmr.msra.gmra.mrb[32].mxu1 %vm5780_vm11, %v8802_v40  ;;  %5990 = vmatprep.mubr.f32.mxu0 %v8878_v25  ;;  %v5665_v62 = vmul.f32 0.01, %v5498_v18 }
 0x3f4   : > { %v6287_v37 = vpack.c.bf16 %v5723_v3, %v5715_v6  ;;  %v5667_v58 = vmul.f32 0.01, %v5611_v28  ;;  %v5503_v36 = vpop.f32.mrb[22].mxu0  ;;  %v6269_v7 = vpack.c.bf16 %v5722_v61, %v5714_v42  ;;  %6061 = vmatprep.mubr.f32.mxu1 %v8878_v25  ;;  %v5666_v41 = vmul.f32 0.01, %v5500_v30 }
 0x3f5   : > { %v5504_v20 = vadd.f32 %v5503_v36, %v8760_v16  ;;  %v5616_v29 = vpop.f32.mrb[22].mxu1  ;;  %v5505_v31 = vpop.f32.mrb[23].mxu0  ;;  %v6285_v21 = vpack.c.bf16 %v5724_v38, %v5716_v0  ;;  %v5668_v17 = vmul.f32 0.01, %v5613_v22  ;;  %v5729_v1 = vmax.f32 %v5498_v18, %v5665_v62 }
 0x3f6   : > { %v5617_v35 = vadd.f32 %v5616_v29, %v8760_v16  ;;  %v5506_v48 = vadd.f32 %v5505_v31, %v8760_v16  ;;  %v5618_v2 = vpop.f32.mrb[23].mxu1  ;;  %6270 = vmatprep.subr.bf16.mxu0 %v6269_v7  ;;  %v5731_v25 = vmax.f32 %v5611_v28, %v5667_v58  ;;  %v5730_v24 = vmax.f32 %v5500_v30, %v5666_v41 }
 0x3f7   : > { %v5673_v49 = vmul.f32 0.01, %v5504_v20  ;;  %v5619_v9 = vadd.f32 %v5618_v2, %v8760_v16  ;;  %6286 = vmatprep.subr.bf16.mxu1 %v6285_v21  ;;  %6272 = vmatpush1.bf16.msra.mxu0 %v6271_v63  ;;  %v5732_v32 = vmax.f32 %v5613_v22, %v5668_v17 }
 0x3f8   : > { %v5675_v10 = vmul.f32 0.01, %v5617_v35  ;;  %v5674_v5 = vmul.f32 0.01, %v5506_v48  ;;  %6288 = vmatpush1.bf16.msra.mxu1 %v6287_v37  ;;  %v5509_v51 = vpop.f32.mrb[24].mxu0 }
 0x3f9   : > { %v5737_v46 = vmax.f32 %v5504_v20, %v5673_v49  ;;  %v5676_v54 = vmul.f32 0.01, %v5619_v9  ;;  %v5510_v56 = vadd.f32 %v5509_v51, %v8764_v53  ;;  %v5622_v50 = vpop.f32.mrb[24].mxu1  ;;  %v5511_v34 = vpop.f32.mrb[25].mxu0 }
 0x3fa   : > { %v5739_v11 = vmax.f32 %v5617_v35, %v5675_v10  ;;  %v5738_v4 = vmax.f32 %v5506_v48, %v5674_v5  ;;  %v5623_v19 = vadd.f32 %v5622_v50, %v8764_v53  ;;  %v5512_v16 = vadd.f32 %v5511_v34, %v8764_v53  ;;  %v5624_v8 = vpop.f32.mrb[25].mxu1 }
 0x3fb   : > { %v6275_v43 = vpack.c.bf16 %v5737_v46, %v5729_v1  ;;  %v5740_v13 = vmax.f32 %v5619_v9, %v5676_v54  ;;  %v5625_v15 = vadd.f32 %v5624_v8, %v8764_v53  ;;  %v5681_v60 = vmul.f32 0.01, %v5510_v56 }
 0x3fc   : > { %v6291_v12 = vpack.c.bf16 %v5739_v11, %v5731_v25  ;;  %v5683_v47 = vmul.f32 0.01, %v5623_v19  ;;  %v5515_v27 = vpop.f32.mrb[26].mxu0  ;;  %v6273_v6 = vpack.c.bf16 %v5738_v4, %v5730_v24  ;;  %v5682_v42 = vmul.f32 0.01, %v5512_v16 }
 0x3fd   : > { %v5516_v52 = vadd.f32 %v5515_v27, %v8770_v26  ;;  %v5628_v14 = vpop.f32.mrb[26].mxu1  ;;  %v5517_v45 = vpop.f32.mrb[27].mxu0  ;;  %v6289_v0 = vpack.c.bf16 %v5740_v13, %v5732_v32  ;;  %v5684_v44 = vmul.f32 0.01, %v5625_v15  ;;  %v5745_v3 = vmax.f32 %v5510_v56, %v5681_v60 }
 0x3fe   : > { %v5629_v23 = vadd.f32 %v5628_v14, %v8770_v26  ;;  %v5518_v57 = vadd.f32 %v5517_v45, %v8770_v26  ;;  %v5630_v18 = vpop.f32.mrb[27].mxu1  ;;  %6274 = vmatprep.subr.bf16.mxu0 %v6273_v6  ;;  %v5747_v61 = vmax.f32 %v5623_v19, %v5683_v47  ;;  %v5746_v63 = vmax.f32 %v5512_v16, %v5682_v42 }
 0x3ff   : > { %v5689_v55 = vmul.f32 0.01, %v5516_v52  ;;  %v5631_v53 = vadd.f32 %v5630_v18, %v8770_v26  ;;  %6290 = vmatprep.subr.bf16.mxu1 %v6289_v0  ;;  %6276 = vmatpush1.bf16.msra.mxu0 %v6275_v43  ;;  %v5748_v29 = vmax.f32 %v5625_v15, %v5684_v44 }
 0x400   : > { %v5691_v28 = vmul.f32 0.01, %v5629_v23  ;;  %v5690_v30 = vmul.f32 0.01, %v5518_v57  ;;  %6292 = vmatpush1.bf16.msra.mxu1 %v6291_v12  ;;  %v5521_v59 = vpop.f32.mrb[28].mxu0 }
 0x401   : > { %v5753_v38 = vmax.f32 %v5516_v52, %v5689_v55  ;;  %v5692_v22 = vmul.f32 0.01, %v5631_v53  ;;  %v5522_v37 = vadd.f32 %v5521_v59, %v8776_v39  ;;  %v5634_v62 = vpop.f32.mrb[28].mxu1  ;;  %v5523_v58 = vpop.f32.mrb[29].mxu0 }
 0x402   : > { %v5755_v36 = vmax.f32 %v5629_v23, %v5691_v28  ;;  %v5754_v7 = vmax.f32 %v5518_v57, %v5690_v30  ;;  %v5635_v41 = vadd.f32 %v5634_v62, %v8776_v39  ;;  %v5524_v26 = vadd.f32 %v5523_v58, %v8776_v39  ;;  %v5636_v20 = vpop.f32.mrb[29].mxu1 }
 0x403   : > { %v6279_v31 = vpack.c.bf16 %v5753_v38, %v5745_v3  ;;  %v5756_v21 = vmax.f32 %v5631_v53, %v5692_v22  ;;  %v5637_v35 = vadd.f32 %v5636_v20, %v8776_v39  ;;  %v5697_v49 = vmul.f32 0.01, %v5522_v37 }
 0x404   : > { %v6295_v48 = vpack.c.bf16 %v5755_v36, %v5747_v61  ;;  %v5527_v2 = vpop.f32.mrb[30].mxu0  ;;  %v6277_v17 = vpack.c.bf16 %v5754_v7, %v5746_v63  ;;  %v5699_v5 = vmul.f32 0.01, %v5635_v41  ;;  %v5698_v51 = vmul.f32 0.01, %v5524_v26 }
 0x405   : > { %v5528_v9 = vadd.f32 %v5527_v2, %v8782_v33  ;;  %v5640_v1 = vpop.f32.mrb[30].mxu1  ;;  %v5529_v25 = vpop.f32.mrb[31].mxu0  ;;  %v6293_v10 = vpack.c.bf16 %v5756_v21, %v5748_v29  ;;  %v5700_v56 = vmul.f32 0.01, %v5637_v35  ;;  %v5761_v4 = vmax.f32 %v5522_v37, %v5697_v49 }
 0x406   : > { %v5641_v24 = vadd.f32 %v5640_v1, %v8782_v33  ;;  %v5530_v46 = vadd.f32 %v5529_v25, %v8782_v33  ;;  %v5642_v54 = vpop.f32.mrb[31].mxu1  ;;  %6278 = vmatprep.subr.bf16.mxu0 %v6277_v17  ;;  %v5763_v8 = vmax.f32 %v5635_v41, %v5699_v5  ;;  %v5762_v32 = vmax.f32 %v5524_v26, %v5698_v51 }
 0x407   : > { %v5705_v50 = vmul.f32 0.01, %v5528_v9  ;;  %v5643_v39 = vadd.f32 %v5642_v54, %v8782_v33  ;;  %6294 = vmatprep.subr.bf16.mxu1 %v6293_v10  ;;  %6280 = vmatpush1.bf16.msra.mxu0 %v6279_v31  ;;  %v5764_v15 = vmax.f32 %v5637_v35, %v5700_v56  ;;  %v5778_v33 = vpop.permute.xlu1 %5777 }
 0x408   : > { %v5707_v34 = vmul.f32 0.01, %v5641_v24  ;;  %v5706_v11 = vmul.f32 0.01, %v5530_v46  ;;  %6296 = vmatpush1.bf16.msra.mxu1 %v6295_v48 }
 0x409   : > { %v5769_v19 = vmax.f32 %v5528_v9, %v5705_v50  ;;  %v5708_v16 = vmul.f32 0.01, %v5643_v39 }
 0x40a   : > { %v5771_v43 = vmax.f32 %v5641_v24, %v5707_v34  ;;  %v5770_v13 = vmax.f32 %v5530_v46, %v5706_v11 }
 0x40b   : > { %v6283_v12 = vpack.c.bf16 %v5769_v19, %v5761_v4  ;;  %v5772_v60 = vmax.f32 %v5643_v39, %v5708_v16 }
 0x40c   : > { %v6299_v47 = vpack.c.bf16 %v5771_v43, %v5763_v8  ;;  %v6281_v27 = vpack.c.bf16 %v5770_v13, %v5762_v32 }
 0x40d   : > { %v6297_v6 = vpack.c.bf16 %v5772_v60, %v5764_v15 }
 0x40e   : > { %6282 = vmatprep.subr.bf16.mxu0 %v6281_v27 }
 0x40f   : > { %6298 = vmatprep.subr.bf16.mxu1 %v6297_v6  ;;  %6284 = vmatpush1.bf16.msra.mxu0 %v6283_v12 }
 0x410   : > { %6300 = vmatpush1.bf16.msra.mxu1 %v6299_v47 }
 0x412   : > { %6199 = vmatmul.mubr.msk.f32.vlgmr.msra.gmra.mrb[34].mxu0 %vm5780_vm11, %v8802_v40 }
 0x413   : > { %6200 = vmatmul.mubr.msk.f32.vlgmr.msra.gmra.mrb[34].mxu1 %vm5780_vm11, %v8802_v40 }
 0x4c5   : > { %v5850_v42 = vpop.f32.mrb[32].mxu0 }
 0x4c6   : > { %v5851_v52 = vadd.f32 %v5850_v42, %v5778_v33  ;;  %v5921_v14 = vpop.f32.mrb[32].mxu1  ;;  %v5852_v45 = vpop.f32.mrb[33].mxu0 }
 0x4c7   : > { %v5922_v0 = vadd.f32 %v5921_v14, %v5778_v33  ;;  %v5853_v23 = vadd.f32 %v5852_v45, %v5778_v33  ;;  %v5923_v57 = vpop.f32.mrb[33].mxu1 }
 0x4c8   : > { %v5924_v18 = vadd.f32 %v5923_v57, %v5778_v33 }
 0x4c9   : > { %v6076_v44 = vcombine.low %v5851_v52, %v5853_v23 }
 0x4ca   : > { %v6077_v55 = vcombine.low %v5922_v0, %v5924_v18 }
 0x4cb   : > { %6084 = vst [vmem:[%s271_s7] sm:$0x77] %v6076_v44 }
 0x4cc   : > { %6085 = vst [vmem:[%s271_s7 + $0x8] sm:$0x77] %v6077_v55 }
 0x4e5   : > { %v5992_v53 = vpop.f32.mrb[34].mxu0 }
 0x4e6   : > { %v5993_v40 = vadd.f32 %v5992_v53, %v5778_v33  ;;  %v6063_v3 = vpop.f32.mrb[34].mxu1  ;;  %v5994_v61 = vpop.f32.mrb[35].mxu0 }
 0x4e7   : > { %v6064_v28 = vadd.f32 %v6063_v3, %v5778_v33  ;;  %v5995_v30 = vadd.f32 %v5994_v61, %v5778_v33  ;;  %v6065_v59 = vpop.f32.mrb[35].mxu1 }
 0x4e8   : > { %v6066_v63 = vadd.f32 %v6065_v59, %v5778_v33 }
 0x4e9   : > { %v6078_v38 = vcombine.low %v5993_v40, %v5995_v30 }
 0x4ea   : > { %v6079_v22 = vcombine.low %v6064_v28, %v6066_v63 }
 0x4eb   : > { %6086 = vst [vmem:[%s271_s7 + $0x10] sm:$0x77] %v6078_v38 }
 0x4ec   : > { %6087 = vst [vmem:[%s271_s7 + $0x18] sm:$0x77] %v6079_v22 }
 0x4ed PF: > { %s16_s21 = sadd.s32 1, %s6411_s21  }
 0x4ee   : > { %p13_p4 = scmp.ge.s32.totalorder %s16_s21, 6  }
 0x4f0   :  { %15 = sbr.rel (!%p13_p4) target bundleno = 1 (0x1), region = 103 }

// kernel: flownet_forward.3
= control target key start
LH: loop header
LB: loop body
LE: loop exit
PB: predicated region body
PF: predicated region fallthrough
CT: control target
= control target key end

     0   :  { %s601_s12 = smov 0   ;;  %s603_s13 = smov 0   ;;  %s1075_s0 = inlined_call_operand.vmem [shape: f32[9,3072], index: 0, kind: input, shape index: {}]   ;;  %s1076_s1 = inlined_call_operand.vmem [shape: f32[9,3072], index: 1, kind: input, shape index: {}]   ;;  %s1077_s2 = inlined_call_operand.vmem [shape: f32[9,1024], index: 2, kind: output, shape index: {0}]   ;;  %s1078_s3 = inlined_call_operand.vmem [shape: f32[9,1024], index: 3, kind: output, shape index: {1}]  }
   0x1   :  { %s605_s14 = smov 0  }
   0x2 LB: > { %s514_s15 = sadd.s32 4294967295, %s578_s14   ;;  %s618_s16 = sadd.s32 1, %s578_s14   ;;  %s578_s14 = sphi %s605_s14, %s1082_s14   ;;  %s574_s13 = sphi %s603_s13, %s1081_s13   ;;  %s570_s12 = sphi %s601_s12, %s1080_s12  }
   0x3   : > { %s18_s17 = ssub.s32 %s578_s14, %s618_s16  ;;  %s21_s18 = sadd.s32 1, %s574_s13 }
   0x4   : > { %p19_p0 = scmp.eq.s32.totalorder %s18_s17, 0  ;;  %p28_p1 = scmp.ne.s32.totalorder %s574_s13, %s570_s12 }
   0x5   : > { %p29_p2 = scmp.eq.s32.totalorder %s578_s14, 0  ;;  %p516_p4 = scmp.ge.s32.totalorder %s578_s14, 3 }
   0x6   : > { %s627_s19 = scalar_select %p19_p0, %s574_s13, %s21_s18  }
   0x7   : > { %p629_p3 = por %p29_p2, %p28_p1  ;;  %122 = sbr.rel (%p516_p4) target bundleno = 38 (0x26), region = 16 }
   0xe   : > { %125 = sbr.rel (!%p629_p3) target bundleno = 26 (0x1a), region = 20  ;;  %s127_s21 = sand.u32 (%p629_p3), 1, %s574_s13  }
   0xf   : > { %s529_s22 = sshll.u32 (%p629_p3), %s578_s14, 6  ;;  %s517_s23 = sshll.u32 (%p629_p3), %s127_s21, 7 }
  0x10   : > { %s641_s26 = scalar_lea.vmem (%p629_p3), %s1075_s0, %s529_s22  ;;  %s129_s27 = scalar_lea.vmem (%p629_p3), [#allocation2], %s517_s23 }
  0x11   : > { %v145_v0 = vld [vmem:[%s641_s26] sm:$0xff] (%p629_p3)  ;;  %v147_v1 = vld [vmem:[%s641_s26 + $0x8] sm:$0xff] (%p629_p3)  ;;  %v149_v2 = vld [vmem:[%s641_s26 + $0x10] sm:$0xff] (%p629_p3) }
  0x12   : > { %146 = vst [vmem:[%s129_s27] sm:$0xff] (%p629_p3), %v145_v0  ;;  %148 = vst [vmem:[%s129_s27 + $0x8] sm:$0xff] (%p629_p3), %v147_v1  ;;  %v151_v3 = vld [vmem:[%s641_s26 + $0x18] sm:$0xff] (%p629_p3)  ;;  %v153_v4 = vld [vmem:[%s641_s26 + $0x20] sm:$0xff] (%p629_p3) }
  0x13   : > { %150 = vst [vmem:[%s129_s27 + $0x10] sm:$0xff] (%p629_p3), %v149_v2  ;;  %v155_v5 = vld [vmem:[%s641_s26 + $0x28] sm:$0xff] (%p629_p3)  ;;  %152 = vst [vmem:[%s129_s27 + $0x18] sm:$0xff] (%p629_p3), %v151_v3  ;;  %v157_v6 = vld [vmem:[%s641_s26 + $0x30] sm:$0xff] (%p629_p3) }
  0x14   : > { %154 = vst [vmem:[%s129_s27 + $0x20] sm:$0xff] (%p629_p3), %v153_v4  ;;  %156 = vst [vmem:[%s129_s27 + $0x28] sm:$0xff] (%p629_p3), %v155_v5  ;;  %v159_v7 = vld [vmem:[%s641_s26 + $0x38] sm:$0xff] (%p629_p3)  ;;  %v161_v8 = vld [vmem:[%s641_s26 + $0xc0] sm:$0xff] (%p629_p3) }
  0x15   : > { %158 = vst [vmem:[%s129_s27 + $0x30] sm:$0xff] %v157_v6  ;;  %160 = vst [vmem:[%s129_s27 + $0x38] sm:$0xff] %v159_v7  ;;  %v163_v9 = vld [vmem:[%s641_s26 + $0xc8] sm:$0xff]  ;;  %v165_v10 = vld [vmem:[%s641_s26 + $0xd0] sm:$0xff] }
  0x16   : > { %162 = vst [vmem:[%s129_s27 + $0x40] sm:$0xff] %v161_v8  ;;  %v167_v11 = vld [vmem:[%s641_s26 + $0xd8] sm:$0xff]  ;;  %164 = vst [vmem:[%s129_s27 + $0x48] sm:$0xff] %v163_v9  ;;  %v169_v12 = vld [vmem:[%s641_s26 + $0xe0] sm:$0xff] }
  0x17   : > { %166 = vst [vmem:[%s129_s27 + $0x50] sm:$0xff] %v165_v10  ;;  %168 = vst [vmem:[%s129_s27 + $0x58] sm:$0xff] %v167_v11  ;;  %v171_v13 = vld [vmem:[%s641_s26 + $0xe8] sm:$0xff]  ;;  %v173_v14 = vld [vmem:[%s641_s26 + $0xf0] sm:$0xff] }
  0x18   : > { %170 = vst [vmem:[%s129_s27 + $0x60] sm:$0xff] %v169_v12  ;;  %172 = vst [vmem:[%s129_s27 + $0x68] sm:$0xff] %v171_v13  ;;  %v175_v15 = vld [vmem:[%s641_s26 + $0xf8] sm:$0xff] }
  0x19   : > { %174 = vst [vmem:[%s129_s27 + $0x70] sm:$0xff] %v173_v14  ;;  %176 = vst [vmem:[%s129_s27 + $0x78] sm:$0xff] %v175_v15 }
  0x1a PF: > { %182 = sbr.rel (!%p629_p3) target bundleno = 38 (0x26), region = 43  ;;  %s184_s28 = sand.u32 (%p629_p3), 1, %s574_s13  }
  0x1b   : > { %s530_s29 = sshll.u32 (%p629_p3), %s578_s14, 6  ;;  %s520_s30 = sshll.u32 (%p629_p3), %s184_s28, 7 }
  0x1c   : > { %s666_s6 = scalar_lea.vmem (%p629_p3), %s1076_s1, %s530_s29  ;;  %s186_s7 = scalar_lea.vmem (%p629_p3), [#allocation3], %s520_s30 }
  0x1d   : > { %v202_v16 = vld [vmem:[%s666_s6] sm:$0xff] (%p629_p3)  ;;  %v204_v17 = vld [vmem:[%s666_s6 + $0x8] sm:$0xff] (%p629_p3)  ;;  %v206_v18 = vld [vmem:[%s666_s6 + $0x10] sm:$0xff] (%p629_p3) }
  0x1e   : > { %203 = vst [vmem:[%s186_s7] sm:$0xff] (%p629_p3), %v202_v16  ;;  %205 = vst [vmem:[%s186_s7 + $0x8] sm:$0xff] (%p629_p3), %v204_v17  ;;  %v208_v19 = vld [vmem:[%s666_s6 + $0x18] sm:$0xff] (%p629_p3)  ;;  %v210_v20 = vld [vmem:[%s666_s6 + $0x20] sm:$0xff] (%p629_p3) }
  0x1f   : > { %207 = vst [vmem:[%s186_s7 + $0x10] sm:$0xff] (%p629_p3), %v206_v18  ;;  %v212_v21 = vld [vmem:[%s666_s6 + $0x28] sm:$0xff] (%p629_p3)  ;;  %209 = vst [vmem:[%s186_s7 + $0x18] sm:$0xff] (%p629_p3), %v208_v19  ;;  %v214_v22 = vld [vmem:[%s666_s6 + $0x30] sm:$0xff] (%p629_p3) }
  0x20   : > { %211 = vst [vmem:[%s186_s7 + $0x20] sm:$0xff] (%p629_p3), %v210_v20  ;;  %213 = vst [vmem:[%s186_s7 + $0x28] sm:$0xff] (%p629_p3), %v212_v21  ;;  %v216_v23 = vld [vmem:[%s666_s6 + $0x38] sm:$0xff] (%p629_p3)  ;;  %v218_v24 = vld [vmem:[%s666_s6 + $0xc0] sm:$0xff] (%p629_p3) }
  0x21   : > { %215 = vst [vmem:[%s186_s7 + $0x30] sm:$0xff] %v214_v22  ;;  %217 = vst [vmem:[%s186_s7 + $0x38] sm:$0xff] %v216_v23  ;;  %v220_v25 = vld [vmem:[%s666_s6 + $0xc8] sm:$0xff]  ;;  %v222_v26 = vld [vmem:[%s666_s6 + $0xd0] sm:$0xff] }
  0x22   : > { %219 = vst [vmem:[%s186_s7 + $0x40] sm:$0xff] %v218_v24  ;;  %v224_v27 = vld [vmem:[%s666_s6 + $0xd8] sm:$0xff]  ;;  %221 = vst [vmem:[%s186_s7 + $0x48] sm:$0xff] %v220_v25  ;;  %v226_v28 = vld [vmem:[%s666_s6 + $0xe0] sm:$0xff] }
  0x23   : > { %223 = vst [vmem:[%s186_s7 + $0x50] sm:$0xff] %v222_v26  ;;  %225 = vst [vmem:[%s186_s7 + $0x58] sm:$0xff] %v224_v27  ;;  %v228_v29 = vld [vmem:[%s666_s6 + $0xe8] sm:$0xff]  ;;  %v230_v30 = vld [vmem:[%s666_s6 + $0xf0] sm:$0xff] }
  0x24   : > { %227 = vst [vmem:[%s186_s7 + $0x60] sm:$0xff] %v226_v28  ;;  %229 = vst [vmem:[%s186_s7 + $0x68] sm:$0xff] %v228_v29  ;;  %v232_v31 = vld [vmem:[%s666_s6 + $0xf8] sm:$0xff] }
  0x25   : > { %231 = vst [vmem:[%s186_s7 + $0x70] sm:$0xff] %v230_v30  ;;  %233 = vst [vmem:[%s186_s7 + $0x78] sm:$0xff] %v232_v31 }
  0x26 PF: > { %p523_p5 = scmp.ge.s32.totalorder %s578_s14, 1  ;;  %p238_p6 = scmp.lt.s32.totalorder %s578_s14, 4 }
  0x28   : > { %p239_p7 = pnand %p523_p5, %p238_p6 }
  0x29   : > { %s245_s8 = sand.u32 (!%p239_p7), 1, %s570_s12   ;;  %p526_p8 = scmp.ne.s32.totalorder (!%p239_p7), %s514_s15, 0 }
  0x2a   : > { %242 = sbr.rel (%p239_p7) target bundleno = 96 (0x60), region = 66  ;;  %s524_s9 = sshll.u32 (!%p239_p7), %s245_s8, 7 }
  0x2b   : > { %s687_s10 = scalar_lea.vmem (!%p239_p7), [#allocation2], %s524_s9  ;;  %s689_s11 = scalar_lea.vmem (!%p239_p7), [#allocation3], %s524_s9 }
  0x31   : > { %279 = sbr.rel (%p526_p8) target bundleno = 66 (0x42), region = 78  ;;  %v580_v32 = vmov (!%p526_p8), 0.0  }
  0x32   : > { %280 = vst [vmem:[%s1077_s2] sm:$0xff] (!%p526_p8), %v580_v32  ;;  %281 = vst [vmem:[%s1077_s2 + $0x8] sm:$0xff] (!%p526_p8), %v580_v32 }
  0x33   : > { %282 = vst [vmem:[%s1077_s2 + $0x10] sm:$0xff] (!%p526_p8), %v580_v32  ;;  %283 = vst [vmem:[%s1077_s2 + $0x18] sm:$0xff] (!%p526_p8), %v580_v32 }
  0x34   : > { %284 = vst [vmem:[%s1077_s2 + $0x20] sm:$0xff] (!%p526_p8), %v580_v32  ;;  %285 = vst [vmem:[%s1077_s2 + $0x28] sm:$0xff] (!%p526_p8), %v580_v32 }
  0x35   : > { %286 = vst [vmem:[%s1077_s2 + $0x30] sm:$0xff] (!%p526_p8), %v580_v32  ;;  %287 = vst [vmem:[%s1077_s2 + $0x38] sm:$0xff] (!%p526_p8), %v580_v32 }
  0x36   : > { %288 = vst [vmem:[%s1077_s2 + $0x40] sm:$0x1] (!%p526_p8), %v580_v32  ;;  %289 = vst [vmem:[%s1077_s2 + $0x48] sm:$0x1] (!%p526_p8), %v580_v32 }
  0x37   : > { %290 = vst [vmem:[%s1077_s2 + $0x50] sm:$0x1] (!%p526_p8), %v580_v32  ;;  %291 = vst [vmem:[%s1077_s2 + $0x58] sm:$0x1] (!%p526_p8), %v580_v32 }
  0x38   : > { %292 = vst [vmem:[%s1077_s2 + $0x60] sm:$0x1] %v580_v32  ;;  %293 = vst [vmem:[%s1077_s2 + $0x68] sm:$0x1] %v580_v32 }
  0x39   : > { %294 = vst [vmem:[%s1077_s2 + $0x70] sm:$0x1] %v580_v32  ;;  %295 = vst [vmem:[%s1077_s2 + $0x78] sm:$0x1] %v580_v32 }
  0x3a   : > { %296 = vst [vmem:[%s1078_s3] sm:$0xff] %v580_v32  ;;  %297 = vst [vmem:[%s1078_s3 + $0x8] sm:$0xff] %v580_v32 }
  0x3b   : > { %298 = vst [vmem:[%s1078_s3 + $0x10] sm:$0xff] %v580_v32  ;;  %299 = vst [vmem:[%s1078_s3 + $0x18] sm:$0xff] %v580_v32 }
  0x3c   : > { %300 = vst [vmem:[%s1078_s3 + $0x20] sm:$0xff] %v580_v32  ;;  %301 = vst [vmem:[%s1078_s3 + $0x28] sm:$0xff] %v580_v32 }
  0x3d   : > { %302 = vst [vmem:[%s1078_s3 + $0x30] sm:$0xff] %v580_v32  ;;  %303 = vst [vmem:[%s1078_s3 + $0x38] sm:$0xff] %v580_v32 }
  0x3e   : > { %304 = vst [vmem:[%s1078_s3 + $0x40] sm:$0x1] %v580_v32  ;;  %305 = vst [vmem:[%s1078_s3 + $0x48] sm:$0x1] %v580_v32 }
  0x3f   : > { %306 = vst [vmem:[%s1078_s3 + $0x50] sm:$0x1] %v580_v32  ;;  %307 = vst [vmem:[%s1078_s3 + $0x58] sm:$0x1] %v580_v32 }
  0x40   : > { %308 = vst [vmem:[%s1078_s3 + $0x60] sm:$0x1] %v580_v32  ;;  %309 = vst [vmem:[%s1078_s3 + $0x68] sm:$0x1] %v580_v32 }
  0x41   : > { %310 = vst [vmem:[%s1078_s3 + $0x70] sm:$0x1] %v580_v32  ;;  %311 = vst [vmem:[%s1078_s3 + $0x78] sm:$0x1] %v580_v32 }
  0x42 PF: > { %v312_v33 = vld [vmem:[%s687_s10] sm:$0xff]  ;;  %v313_v37 = vld [vmem:[%s687_s10 + $0x8] sm:$0xff]  ;;  %v314_v41 = vld [vmem:[%s687_s10 + $0x10] sm:$0xff] }
  0x43   : > { %v791_v34 = vld [vmem:[%s689_s11] sm:$0xff]  ;;  %v799_v38 = vld [vmem:[%s689_s11 + $0x8] sm:$0xff]  ;;  %v807_v42 = vld [vmem:[%s689_s11 + $0x10] sm:$0xff] }
  0x44   : > { %v344_v35 = vld [vmem:[%s1077_s2] sm:$0xff]  ;;  %v360_v36 = vmul.f32 %v791_v34, %v312_v33  ;;  %v345_v39 = vld [vmem:[%s1077_s2 + $0x8] sm:$0xff]  ;;  %v361_v40 = vmul.f32 %v799_v38, %v313_v37  ;;  %v346_v43 = vld [vmem:[%s1077_s2 + $0x10] sm:$0xff]  ;;  %v362_v45 = vmul.f32 %v807_v42, %v314_v41 }
  0x45   : > { %v315_v46 = vld [vmem:[%s687_s10 + $0x18] sm:$0xff]  ;;  %v316_v51 = vld [vmem:[%s687_s10 + $0x20] sm:$0xff]  ;;  %v317_v56 = vld [vmem:[%s687_s10 + $0x28] sm:$0xff] }
  0x46   : > { %v376_v44 = vadd.f32 %v360_v36, %v344_v35  ;;  %v815_v47 = vld [vmem:[%s689_s11 + $0x18] sm:$0xff]  ;;  %v377_v49 = vadd.f32 %v361_v40, %v345_v39  ;;  %v823_v52 = vld [vmem:[%s689_s11 + $0x20] sm:$0xff]  ;;  %v378_v54 = vadd.f32 %v362_v45, %v346_v43  ;;  %v834_v57 = vld [vmem:[%s689_s11 + $0x28] sm:$0xff] }
  0x47   : > { %v347_v48 = vld [vmem:[%s1077_s2 + $0x18] sm:$0xff]  ;;  %v363_v50 = vmul.f32 %v815_v47, %v315_v46  ;;  %v348_v53 = vld [vmem:[%s1077_s2 + $0x20] sm:$0xff]  ;;  %v364_v55 = vmul.f32 %v823_v52, %v316_v51  ;;  %v349_v58 = vld [vmem:[%s1077_s2 + $0x28] sm:$0xff]  ;;  %v365_v60 = vmul.f32 %v834_v57, %v317_v56 }
  0x48   : > { %392 = vst [vmem:[%s1077_s2] sm:$0xff] %v376_v44  ;;  %393 = vst [vmem:[%s1077_s2 + $0x8] sm:$0xff] %v377_v49  ;;  %v318_v61 = vld [vmem:[%s687_s10 + $0x30] sm:$0xff]  ;;  %v319_v2 = vld [vmem:[%s687_s10 + $0x38] sm:$0xff] }
  0x49   : > { %v379_v59 = vadd.f32 %v363_v50, %v347_v48  ;;  %v845_v62 = vld [vmem:[%s689_s11 + $0x30] sm:$0xff]  ;;  %394 = vst [vmem:[%s1077_s2 + $0x10] sm:$0xff] %v378_v54  ;;  %v380_v0 = vadd.f32 %v364_v55, %v348_v53  ;;  %v856_v3 = vld [vmem:[%s689_s11 + $0x38] sm:$0xff]  ;;  %v381_v5 = vadd.f32 %v365_v60, %v349_v58  ;;  %v320_v7 = vld [vmem:[%s687_s10 + $0x40] sm:$0x1] }
  0x4a   : > { %v350_v63 = vld [vmem:[%s1077_s2 + $0x30] sm:$0xff]  ;;  %v366_v1 = vmul.f32 %v845_v62, %v318_v61  ;;  %v351_v4 = vld [vmem:[%s1077_s2 + $0x38] sm:$0xff]  ;;  %v367_v6 = vmul.f32 %v856_v3, %v319_v2  ;;  %v867_v8 = vld [vmem:[%s689_s11 + $0x40] sm:$0x1] }
  0x4b   : > { %395 = vst [vmem:[%s1077_s2 + $0x18] sm:$0xff] %v379_v59  ;;  %v352_v9 = vld [vmem:[%s1077_s2 + $0x40] sm:$0x1]  ;;  %396 = vst [vmem:[%s1077_s2 + $0x20] sm:$0xff] %v380_v0  ;;  %v368_v11 = vmul.f32 %v867_v8, %v320_v7  ;;  %v321_v12 = vld [vmem:[%s687_s10 + $0x48] sm:$0x1] }
  0x4c   : > { %v382_v10 = vadd.f32 %v366_v1, %v350_v63  ;;  %v878_v13 = vld [vmem:[%s689_s11 + $0x48] sm:$0x1]  ;;  %397 = vst [vmem:[%s1077_s2 + $0x28] sm:$0xff] %v381_v5  ;;  %v383_v15 = vadd.f32 %v367_v6, %v351_v4  ;;  %v322_v17 = vld [vmem:[%s687_s10 + $0x50] sm:$0x1]  ;;  %v408_v51 = vld [vmem:[%s1078_s3] sm:$0xff] }
  0x4d   : > { %v353_v14 = vld [vmem:[%s1077_s2 + $0x48] sm:$0x1]  ;;  %v369_v16 = vmul.f32 %v878_v13, %v321_v12  ;;  %v889_v18 = vld [vmem:[%s689_s11 + $0x50] sm:$0x1]  ;;  %v384_v20 = vadd.f32 %v368_v11, %v352_v9  ;;  %v323_v22 = vld [vmem:[%s687_s10 + $0x58] sm:$0x1]  ;;  %v424_v56 = vadd.f32 %v408_v51, %v791_v34 }
  0x4e   : > { %v354_v19 = vld [vmem:[%s1077_s2 + $0x50] sm:$0x1]  ;;  %398 = vst [vmem:[%s1077_s2 + $0x30] sm:$0xff] %v382_v10  ;;  %v370_v21 = vmul.f32 %v889_v18, %v322_v17  ;;  %v900_v23 = vld [vmem:[%s689_s11 + $0x58] sm:$0x1]  ;;  %399 = vst [vmem:[%s1077_s2 + $0x38] sm:$0xff] %v383_v15 }
  0x4f   : > { %v355_v24 = vld [vmem:[%s1077_s2 + $0x58] sm:$0x1]  ;;  %v385_v25 = vadd.f32 %v369_v16, %v353_v14  ;;  %v371_v26 = vmul.f32 %v900_v23, %v323_v22  ;;  %v324_v27 = vld [vmem:[%s687_s10 + $0x60] sm:$0x1]  ;;  %400 = vst [vmem:[%s1077_s2 + $0x40] sm:$0x1] %v384_v20  ;;  %440 = vst [vmem:[%s1078_s3] sm:$0xff] %v424_v56 }
  0x50   : > { %v911_v28 = vld [vmem:[%s689_s11 + $0x60] sm:$0x1]  ;;  %v386_v30 = vadd.f32 %v370_v21, %v354_v19  ;;  %v325_v32 = vld [vmem:[%s687_s10 + $0x68] sm:$0x1]  ;;  %v326_v39 = vld [vmem:[%s687_s10 + $0x70] sm:$0x1] }
  0x51   : > { %v356_v29 = vld [vmem:[%s1077_s2 + $0x60] sm:$0x1]  ;;  %v372_v31 = vmul.f32 %v911_v28, %v324_v27  ;;  %v341_v33 = vld [vmem:[%s689_s11 + $0x68] sm:$0x1]  ;;  %401 = vst [vmem:[%s1077_s2 + $0x48] sm:$0x1] %v385_v25  ;;  %v387_v36 = vadd.f32 %v371_v26, %v355_v24 }
  0x52   : > { %v357_v35 = vld [vmem:[%s1077_s2 + $0x68] sm:$0x1]  ;;  %v373_v37 = vmul.f32 %v341_v33, %v325_v32  ;;  %v342_v40 = vld [vmem:[%s689_s11 + $0x70] sm:$0x1]  ;;  %402 = vst [vmem:[%s1077_s2 + $0x50] sm:$0x1] %v386_v30 }
  0x53   : > { %v358_v41 = vld [vmem:[%s1077_s2 + $0x70] sm:$0x1]  ;;  %v388_v43 = vadd.f32 %v372_v31, %v356_v29  ;;  %v374_v44 = vmul.f32 %v342_v40, %v326_v39  ;;  %v327_v45 = vld [vmem:[%s687_s10 + $0x78] sm:$0x1]  ;;  %403 = vst [vmem:[%s1077_s2 + $0x58] sm:$0x1] %v387_v36 }
  0x54   : > { %v343_v46 = vld [vmem:[%s689_s11 + $0x78] sm:$0x1]  ;;  %v389_v49 = vadd.f32 %v373_v37, %v357_v35  ;;  %v409_v53 = vld [vmem:[%s1078_s3 + $0x8] sm:$0xff]  ;;  %v410_v54 = vld [vmem:[%s1078_s3 + $0x10] sm:$0xff] }
  0x55   : > { %v359_v48 = vld [vmem:[%s1077_s2 + $0x78] sm:$0x1]  ;;  %v375_v50 = vmul.f32 %v343_v46, %v327_v45  ;;  %404 = vst [vmem:[%s1077_s2 + $0x60] sm:$0x1] %v388_v43  ;;  %v390_v55 = vadd.f32 %v374_v44, %v358_v41  ;;  %v425_v58 = vadd.f32 %v409_v53, %v799_v38  ;;  %v426_v59 = vadd.f32 %v410_v54, %v807_v42  ;;  %v412_v61 = vld [vmem:[%s1078_s3 + $0x20] sm:$0xff]  ;;  %v413_v63 = vld [vmem:[%s1078_s3 + $0x28] sm:$0xff] }
  0x56   : > { %v411_v60 = vld [vmem:[%s1078_s3 + $0x18] sm:$0xff]  ;;  %405 = vst [vmem:[%s1077_s2 + $0x68] sm:$0x1] %v389_v49  ;;  %v428_v42 = vadd.f32 %v412_v61, %v823_v52  ;;  %v429_v0 = vadd.f32 %v413_v63, %v834_v57  ;;  %v414_v1 = vld [vmem:[%s1078_s3 + $0x30] sm:$0xff]  ;;  %v416_v4 = vld [vmem:[%s1078_s3 + $0x40] sm:$0x1] }
  0x57   : > { %v391_v34 = vadd.f32 %v375_v50, %v359_v48  ;;  %v427_v38 = vadd.f32 %v411_v60, %v815_v47  ;;  %v415_v2 = vld [vmem:[%s1078_s3 + $0x38] sm:$0xff]  ;;  %406 = vst [vmem:[%s1077_s2 + $0x70] sm:$0x1] %v390_v55  ;;  %441 = vst [vmem:[%s1078_s3 + $0x8] sm:$0xff] %v425_v58  ;;  %v430_v47 = vadd.f32 %v414_v1, %v845_v62  ;;  %v417_v5 = vld [vmem:[%s1078_s3 + $0x48] sm:$0x1] }
  0x58   : > { %442 = vst [vmem:[%s1078_s3 + $0x10] sm:$0xff] %v426_v59  ;;  %v431_v52 = vadd.f32 %v415_v2, %v856_v3  ;;  %v432_v57 = vadd.f32 %v416_v4, %v867_v8  ;;  %v418_v6 = vld [vmem:[%s1078_s3 + $0x50] sm:$0x1]  ;;  %v419_v7 = vld [vmem:[%s1078_s3 + $0x58] sm:$0x1]  ;;  %444 = vst [vmem:[%s1078_s3 + $0x20] sm:$0xff] %v428_v42  ;;  %v433_v62 = vadd.f32 %v417_v5, %v878_v13 }
  0x59   : > { %407 = vst [vmem:[%s1077_s2 + $0x78] sm:$0x1] %v391_v34  ;;  %443 = vst [vmem:[%s1078_s3 + $0x18] sm:$0xff] %v427_v38  ;;  %v434_v3 = vadd.f32 %v418_v6, %v889_v18  ;;  %v435_v8 = vadd.f32 %v419_v7, %v900_v23  ;;  %v420_v9 = vld [vmem:[%s1078_s3 + $0x60] sm:$0x1] }
  0x5a   : > { %445 = vst [vmem:[%s1078_s3 + $0x28] sm:$0xff] %v429_v0  ;;  %v421_v10 = vld [vmem:[%s1078_s3 + $0x68] sm:$0x1]  ;;  %v422_v11 = vld [vmem:[%s1078_s3 + $0x70] sm:$0x1]  ;;  %446 = vst [vmem:[%s1078_s3 + $0x30] sm:$0xff] %v430_v47  ;;  %v436_v12 = vadd.f32 %v420_v9, %v911_v28 }
  0x5b   : > { %447 = vst [vmem:[%s1078_s3 + $0x38] sm:$0xff] %v431_v52  ;;  %448 = vst [vmem:[%s1078_s3 + $0x40] sm:$0x1] %v432_v57  ;;  %v437_v13 = vadd.f32 %v421_v10, %v341_v33  ;;  %v438_v14 = vadd.f32 %v422_v11, %v342_v40  ;;  %v423_v15 = vld [vmem:[%s1078_s3 + $0x78] sm:$0x1] }
  0x5c   : > { %449 = vst [vmem:[%s1078_s3 + $0x48] sm:$0x1] %v433_v62  ;;  %450 = vst [vmem:[%s1078_s3 + $0x50] sm:$0x1] %v434_v3  ;;  %v439_v16 = vadd.f32 %v423_v15, %v343_v46 }
  0x5d   : > { %451 = vst [vmem:[%s1078_s3 + $0x58] sm:$0x1] %v435_v8  ;;  %452 = vst [vmem:[%s1078_s3 + $0x60] sm:$0x1] %v436_v12 }
  0x5e   : > { %453 = vst [vmem:[%s1078_s3 + $0x68] sm:$0x1] %v437_v13  ;;  %454 = vst [vmem:[%s1078_s3 + $0x70] sm:$0x1] %v438_v14 }
  0x5f   : > { %455 = vst [vmem:[%s1078_s3 + $0x78] sm:$0x1] %v439_v16 }
  0x60 PF: > { %p11_p9 = scmp.ge.s32.totalorder %s618_s16, 5   ;;  %s1080_s12 = smov %s574_s13 }
  0x61   : > { %s1081_s13 = smov %s627_s19  ;;  %s1082_s14 = smov %s618_s16 }
  0x62   :  { %13 = sbr.rel (!%p11_p9) target bundleno = 2 (0x2), region = 125 }

</bundles_post_ra>
